<compile_context>
chip_gen: v7x
topology: tpu7x:2x2x1
jax: 0.10.0
libtpu: 0.0.40
codegen_flags: <defaults>
</compile_context>

<pallas_src>
import jax
import jax.numpy as jnp
import numpy as np
from jax.experimental import pallas as pl
from jax.experimental.pallas import tpu as pltpu

K1, K2 = 6, 3
C_IN, C_HID = 33, 300
COL_DIM = 37          # Linear in_features 337 = 300 (pooled conv) + 37 (col)
FC_HID = 600
MAX_BATCH_TILE = 256  # ~6 MiB of VMEM per block incl. double-buffered input


def cnn1d_kernel(xw_ref, col_ref, w1_ref, b1_ref, w2_ref, b2_ref,
                 wf1a_ref, wf1b_ref, bf1_ref, wf2t_ref, bf2_ref, out_ref):
    L1, bt, _ = xw_ref.shape          # (L1, batch_tile, K1*C_IN)
    L2 = L1 - (K2 - 1)

    w1 = w1_ref[...]                                      # (198, 300) bf16
    b1 = b1_ref[...]                                      # (1, 300)   f32
    w2 = [w2_ref[k] for k in range(K2)]                   # K2 x (300, 300) bf16
    b2_full = jnp.broadcast_to(b2_ref[...], (bt, C_HID))  # hoisted bias broadcast

    # Conv1d(33 -> 300, k=6): one MXU matmul per output position, M = bt
    h1 = []
    for p in range(L1):
        a = jnp.dot(xw_ref[p], w1, preferred_element_type=jnp.float32)
        h1.append(jnp.maximum(a + b1, 0.0).astype(jnp.bfloat16))   # (bt, 300)

    # Conv1d(300 -> 300, k=3) + ReLU + sum over length, fused
    pooled = jnp.zeros((bt, C_HID), jnp.float32)
    for l in range(L2):
        acc = b2_full                                    # bias-initialized accumulator
        for k in range(K2):
            acc = acc + jnp.dot(h1[l + k], w2[k],
                                preferred_element_type=jnp.float32)
        pooled = pooled + jnp.maximum(acc, 0.0)          # (bt, 300) f32

    # FC head, batched over the whole tile
    f1 = jnp.maximum(
        jnp.dot(pooled.astype(jnp.bfloat16), wf1a_ref[...],
                preferred_element_type=jnp.float32)
        + jnp.dot(col_ref[...], wf1b_ref[...],
                  preferred_element_type=jnp.float32)
        + bf1_ref[...],
        0.0)                                             # (bt, 600) f32
    # Linear(600 -> 1) as elementwise mul + lane reduce (skips an M=1 matmul),
    # stored as a single (bt, 1) block write.
    out_ref[...] = (jnp.sum(f1 * wf2t_ref[...], axis=-1, keepdims=True)
                    + bf2_ref[...])


def init_params(key):
    """Deterministic PyTorch-style uniform(-1/sqrt(fan_in), 1/sqrt(fan_in)) init."""
    ks = jax.random.split(key, 8)

    def u(k, shape, fan_in):
        bound = 1.0 / float(np.sqrt(fan_in))
        return jax.random.uniform(k, shape, jnp.float32, -bound, bound)

    w1 = u(ks[0], (K1, C_IN, C_HID), C_IN * K1)          # Conv1d(33,300,6), (K,Cin,Cout)
    b1 = u(ks[1], (1, C_HID), C_IN * K1)
    w2 = u(ks[2], (K2, C_HID, C_HID), C_HID * K2)        # Conv1d(300,300,3)
    b2 = u(ks[3], (1, C_HID), C_HID * K2)
    wf1 = u(ks[4], (C_HID + COL_DIM, FC_HID), C_HID + COL_DIM)   # Linear(337,600), (in,out)
    bf1 = u(ks[5], (1, FC_HID), C_HID + COL_DIM)
    wf2 = u(ks[6], (FC_HID, 1), FC_HID)                  # Linear(600,1)
    bf2 = u(ks[7], (1, 1), FC_HID)
    return w1, b1, w2, b2, wf1, bf1, wf2, bf2


@jax.jit
def cnn1d_forward(x_ncw, col, params):
    w1, b1, w2, b2, wf1, bf1, wf2, bf2 = params
    B, _, L = x_ncw.shape
    L1 = L - (K1 - 1)
    L2 = L1 - (K2 - 1)

    # im2col for conv1, layout (L1, B, K1*C_IN): batch on sublanes, taps*chan on lanes
    x_lbc = jnp.transpose(x_ncw, (2, 0, 1))                          # (L, B, 33)
    xw = jnp.stack([x_lbc[k:k + L1] for k in range(K1)], axis=2)     # (L1, B, K1, 33)
    xw = xw.reshape(L1, B, K1 * C_IN).astype(jnp.bfloat16)

    # batch tiling / padding
    if B <= MAX_BATCH_TILE:
        bt, Bp = B, B
    else:
        bt = MAX_BATCH_TILE
        Bp = ((B + bt - 1) // bt) * bt
    col_p = col.astype(jnp.bfloat16)
    if Bp != B:
        xw = jnp.pad(xw, ((0, 0), (0, Bp - B), (0, 0)))
        col_p = jnp.pad(col_p, ((0, Bp - B), (0, 0)))
    nb = Bp // bt

    # weights packed once: bf16 for the MXU, f32 biases / final row-vector
    w1_flat = w1.reshape(K1 * C_IN, C_HID).astype(jnp.bfloat16)      # (198, 300)
    w2_b = w2.astype(jnp.bfloat16)                                   # (3, 300, 300)
    wf1a = wf1[:C_HID].astype(jnp.bfloat16)                          # (300, 600)
    wf1b = wf1[C_HID:].astype(jnp.bfloat16)                          # (37, 600)
    wf2t = wf2.T                                                     # (1, 600) f32

    def const(shape):
        return pl.BlockSpec(shape, lambda i: (0,) * len(shape))

    flops = 2 * Bp * (L1 * (K1 * C_IN) * C_HID
                      + L2 * K2 * C_HID * C_HID
                      + (C_HID + COL_DIM) * FC_HID
                      + FC_HID)
    bytes_accessed = (xw.size * 2 + col_p.size * 2 + Bp * 4
                      + w1_flat.size * 2 + w2_b.size * 2
                      + wf1a.size * 2 + wf1b.size * 2
                      + (b1.size + b2.size + bf1.size + wf2t.size + bf2.size) * 4)

    out = pl.pallas_call(
        cnn1d_kernel,
        out_shape=jax.ShapeDtypeStruct((Bp, 1), jnp.float32),
        grid=(nb,),
        in_specs=[
            pl.BlockSpec((L1, bt, K1 * C_IN), lambda i: (0, i, 0)),  # xw
            pl.BlockSpec((bt, COL_DIM), lambda i: (i, 0)),           # col
            const((K1 * C_IN, C_HID)),                               # w1_flat
            const((1, C_HID)),                                       # b1
            const((K2, C_HID, C_HID)),                               # w2
            const((1, C_HID)),                                       # b2
            const((C_HID, FC_HID)),                                  # wf1a
            const((COL_DIM, FC_HID)),                                # wf1b
            const((1, FC_HID)),                                      # bf1
            const((1, FC_HID)),                                      # wf2t
            const((1, 1)),                                           # bf2
        ],
        out_specs=pl.BlockSpec((bt, 1), lambda i: (i, 0)),
        compiler_params=pltpu.CompilerParams(
            dimension_semantics=("parallel",),
            vmem_limit_bytes=32 * 1024 * 1024),
        cost_estimate=pl.CostEstimate(flops=flops, transcendentals=0,
                                      bytes_accessed=bytes_accessed),
    )(xw, col_p, w1_flat, b1, w2_b, b2, wf1a, wf1b, bf1, wf2t, bf2)
    return out[:B]


def reference_forward(x_ncw, col, params):
    """Pure-JAX f32 reference reproducing the PyTorch forward."""
    w1, b1, w2, b2, wf1, bf1, wf2, bf2 = params
    k1 = jnp.transpose(w1, (2, 1, 0))   # (Cout, Cin, K)
    h = jax.lax.conv_general_dilated(x_ncw, k1, (1,), 'VALID',
                                     dimension_numbers=('NCH', 'OIH', 'NCH'))
    h = jax.nn.relu(h + b1[0][None, :, None])
    k2 = jnp.transpose(w2, (2, 1, 0))
    h = jax.lax.conv_general_dilated(h, k2, (1,), 'VALID',
                                     dimension_numbers=('NCH', 'OIH', 'NCH'))
    h = jax.nn.relu(h + b2[0][None, :, None])
    pooled = h.sum(axis=2)                              # sum(dim=2,keepdim=True).squeeze()
    feat = jnp.concatenate([pooled, col], axis=1)       # (B, 337)
    f1 = jax.nn.relu(feat @ wf1 + bf1[0])
    return f1 @ wf2 + bf2[0]


if __name__ == "__main__":
    key = jax.random.PRNGKey(0)
    kx, kc, kp = jax.random.split(key, 3)

    B, L = 2, 16                                        # small shapes; L >= 8 required
    x = jax.random.normal(kx, (B, C_IN, L), jnp.float32)
    col = jax.random.normal(kc, (B, COL_DIM), jnp.float32)
    params = init_params(kp)

    out = cnn1d_forward(x, col, params)
    jax.block_until_ready(out)

    assert out.shape == (B, 1)
    ref = reference_forward(x, col, params)
    np.testing.assert_allclose(np.asarray(out), np.asarray(ref), rtol=2e-2, atol=2e-2)
    print("KERNEL_OK")
</pallas_src>

<mosaic_0001>
module attributes {stable_mosaic.version = 11 : i64} {
  func.func @cnn1d_kernel(%arg0: i32, %arg1: memref<11x2x198xbf16, #tpu.memory_space<vmem>>, %arg2: memref<2x37xbf16, #tpu.memory_space<vmem>>, %arg3: memref<198x300xbf16, #tpu.memory_space<vmem>>, %arg4: memref<1x300xf32, #tpu.memory_space<vmem>>, %arg5: memref<3x300x300xbf16, #tpu.memory_space<vmem>>, %arg6: memref<1x300xf32, #tpu.memory_space<vmem>>, %arg7: memref<300x600xbf16, #tpu.memory_space<vmem>>, %arg8: memref<37x600xbf16, #tpu.memory_space<vmem>>, %arg9: memref<1x600xf32, #tpu.memory_space<vmem>>, %arg10: memref<1x600xf32, #tpu.memory_space<vmem>>, %arg11: memref<1x1xf32, #tpu.memory_space<vmem>>, %arg12: memref<2x1xf32, #tpu.memory_space<vmem>>) attributes {dimension_semantics = [#tpu.dimension_semantics<parallel>], iteration_bounds = array<i64: 1>, scalar_prefetch = 0 : i64, scratch_operands = 0 : i64, tpu.core_type = #tpu.core_type<tc>, window_params = [{transform_indices = @transform_0, window_bounds = array<i64: 11, 2, 198>}, {transform_indices = @transform_1, window_bounds = array<i64: 2, 37>}, {pipeline_mode = #tpu.pipeline_mode<synchronous>, transform_indices = @transform_2, window_bounds = array<i64: 198, 300>}, {pipeline_mode = #tpu.pipeline_mode<synchronous>, transform_indices = @transform_3, window_bounds = array<i64: 1, 300>}, {pipeline_mode = #tpu.pipeline_mode<synchronous>, transform_indices = @transform_4, window_bounds = array<i64: 3, 300, 300>}, {pipeline_mode = #tpu.pipeline_mode<synchronous>, transform_indices = @transform_5, window_bounds = array<i64: 1, 300>}, {pipeline_mode = #tpu.pipeline_mode<synchronous>, transform_indices = @transform_6, window_bounds = array<i64: 300, 600>}, {pipeline_mode = #tpu.pipeline_mode<synchronous>, transform_indices = @transform_7, window_bounds = array<i64: 37, 600>}, {pipeline_mode = #tpu.pipeline_mode<synchronous>, transform_indices = @transform_8, window_bounds = array<i64: 1, 600>}, {pipeline_mode = #tpu.pipeline_mode<synchronous>, transform_indices = @transform_9, window_bounds = array<i64: 1, 600>}, {pipeline_mode = #tpu.pipeline_mode<synchronous>, transform_indices = @transform_10, window_bounds = array<i64: 1, 1>}, {transform_indices = @transform_11, window_bounds = array<i64: 2, 1>}]} {
    %c0 = arith.constant 0 : index
    %c0_0 = arith.constant 0 : index
    %0 = vector.load %arg3[%c0, %c0_0] : memref<198x300xbf16, #tpu.memory_space<vmem>>, vector<198x300xbf16>
    %c0_1 = arith.constant 0 : index
    %c0_2 = arith.constant 0 : index
    %1 = vector.load %arg4[%c0_1, %c0_2] : memref<1x300xf32, #tpu.memory_space<vmem>>, vector<1x300xf32>
    %c0_3 = arith.constant 0 : index
    %c0_4 = arith.constant 0 : index
    %c0_5 = arith.constant 0 : index
    %2 = vector.load %arg5[%c0_3, %c0_4, %c0_5] : memref<3x300x300xbf16, #tpu.memory_space<vmem>>, vector<1x300x300xbf16>
    %3 = vector.shape_cast %2 : vector<1x300x300xbf16> to vector<300x300xbf16>
    %c1 = arith.constant 1 : index
    %c0_6 = arith.constant 0 : index
    %c0_7 = arith.constant 0 : index
    %4 = vector.load %arg5[%c1, %c0_6, %c0_7] : memref<3x300x300xbf16, #tpu.memory_space<vmem>>, vector<1x300x300xbf16>
    %5 = vector.shape_cast %4 : vector<1x300x300xbf16> to vector<300x300xbf16>
    %c2 = arith.constant 2 : index
    %c0_8 = arith.constant 0 : index
    %c0_9 = arith.constant 0 : index
    %6 = vector.load %arg5[%c2, %c0_8, %c0_9] : memref<3x300x300xbf16, #tpu.memory_space<vmem>>, vector<1x300x300xbf16>
    %7 = vector.shape_cast %6 : vector<1x300x300xbf16> to vector<300x300xbf16>
    %c0_10 = arith.constant 0 : index
    %c0_11 = arith.constant 0 : index
    %8 = vector.load %arg6[%c0_10, %c0_11] : memref<1x300xf32, #tpu.memory_space<vmem>>, vector<1x300xf32>
    %9 = vector.shape_cast %8 : vector<1x300xf32> to vector<1x300xf32>
    %10 = vector.broadcast %9 : vector<1x300xf32> to vector<2x300xf32>
    %c0_12 = arith.constant 0 : index
    %c0_13 = arith.constant 0 : index
    %c0_14 = arith.constant 0 : index
    %11 = vector.load %arg1[%c0_12, %c0_13, %c0_14] : memref<11x2x198xbf16, #tpu.memory_space<vmem>>, vector<1x2x198xbf16>
    %12 = vector.shape_cast %11 : vector<1x2x198xbf16> to vector<2x198xbf16>
    %cst = arith.constant dense<0.000000e+00> : vector<2x300xf32>
    %13 = tpu.matmul %12, %0, %cst {dimension_numbers = #tpu.dot_dimension_numbers<[1], [0], [0], [1], [0, 0, 1, 1], [], []>} : vector<2x198xbf16>, vector<198x300xbf16>, vector<2x300xf32> -> vector<2x300xf32>
    %14 = vector.broadcast %1 : vector<1x300xf32> to vector<2x300xf32>
    %15 = arith.addf %13, %14 : vector<2x300xf32>
    %cst_15 = arith.constant 0.000000e+00 : f32
    %16 = vector.broadcast %cst_15 : f32 to vector<2x300xf32>
    %17 = arith.maximumf %15, %16 : vector<2x300xf32>
    %18 = arith.truncf %17 : vector<2x300xf32> to vector<2x300xbf16>
    %c1_16 = arith.constant 1 : index
    %c0_17 = arith.constant 0 : index
    %c0_18 = arith.constant 0 : index
    %19 = vector.load %arg1[%c1_16, %c0_17, %c0_18] : memref<11x2x198xbf16, #tpu.memory_space<vmem>>, vector<1x2x198xbf16>
    %20 = vector.shape_cast %19 : vector<1x2x198xbf16> to vector<2x198xbf16>
    %cst_19 = arith.constant dense<0.000000e+00> : vector<2x300xf32>
    %21 = tpu.matmul %20, %0, %cst_19 {dimension_numbers = #tpu.dot_dimension_numbers<[1], [0], [0], [1], [0, 0, 1, 1], [], []>} : vector<2x198xbf16>, vector<198x300xbf16>, vector<2x300xf32> -> vector<2x300xf32>
    %22 = vector.broadcast %1 : vector<1x300xf32> to vector<2x300xf32>
    %23 = arith.addf %21, %22 : vector<2x300xf32>
    %cst_20 = arith.constant 0.000000e+00 : f32
    %24 = vector.broadcast %cst_20 : f32 to vector<2x300xf32>
    %25 = arith.maximumf %23, %24 : vector<2x300xf32>
    %26 = arith.truncf %25 : vector<2x300xf32> to vector<2x300xbf16>
    %c2_21 = arith.constant 2 : index
    %c0_22 = arith.constant 0 : index
    %c0_23 = arith.constant 0 : index
    %27 = vector.load %arg1[%c2_21, %c0_22, %c0_23] : memref<11x2x198xbf16, #tpu.memory_space<vmem>>, vector<1x2x198xbf16>
    %28 = vector.shape_cast %27 : vector<1x2x198xbf16> to vector<2x198xbf16>
    %cst_24 = arith.constant dense<0.000000e+00> : vector<2x300xf32>
    %29 = tpu.matmul %28, %0, %cst_24 {dimension_numbers = #tpu.dot_dimension_numbers<[1], [0], [0], [1], [0, 0, 1, 1], [], []>} : vector<2x198xbf16>, vector<198x300xbf16>, vector<2x300xf32> -> vector<2x300xf32>
    %30 = vector.broadcast %1 : vector<1x300xf32> to vector<2x300xf32>
    %31 = arith.addf %29, %30 : vector<2x300xf32>
    %cst_25 = arith.constant 0.000000e+00 : f32
    %32 = vector.broadcast %cst_25 : f32 to vector<2x300xf32>
    %33 = arith.maximumf %31, %32 : vector<2x300xf32>
    %34 = arith.truncf %33 : vector<2x300xf32> to vector<2x300xbf16>
    %c3 = arith.constant 3 : index
    %c0_26 = arith.constant 0 : index
    %c0_27 = arith.constant 0 : index
    %35 = vector.load %arg1[%c3, %c0_26, %c0_27] : memref<11x2x198xbf16, #tpu.memory_space<vmem>>, vector<1x2x198xbf16>
    %36 = vector.shape_cast %35 : vector<1x2x198xbf16> to vector<2x198xbf16>
    %cst_28 = arith.constant dense<0.000000e+00> : vector<2x300xf32>
    %37 = tpu.matmul %36, %0, %cst_28 {dimension_numbers = #tpu.dot_dimension_numbers<[1], [0], [0], [1], [0, 0, 1, 1], [], []>} : vector<2x198xbf16>, vector<198x300xbf16>, vector<2x300xf32> -> vector<2x300xf32>
    %38 = vector.broadcast %1 : vector<1x300xf32> to vector<2x300xf32>
    %39 = arith.addf %37, %38 : vector<2x300xf32>
    %cst_29 = arith.constant 0.000000e+00 : f32
    %40 = vector.broadcast %cst_29 : f32 to vector<2x300xf32>
    %41 = arith.maximumf %39, %40 : vector<2x300xf32>
    %42 = arith.truncf %41 : vector<2x300xf32> to vector<2x300xbf16>
    %c4 = arith.constant 4 : index
    %c0_30 = arith.constant 0 : index
    %c0_31 = arith.constant 0 : index
    %43 = vector.load %arg1[%c4, %c0_30, %c0_31] : memref<11x2x198xbf16, #tpu.memory_space<vmem>>, vector<1x2x198xbf16>
    %44 = vector.shape_cast %43 : vector<1x2x198xbf16> to vector<2x198xbf16>
    %cst_32 = arith.constant dense<0.000000e+00> : vector<2x300xf32>
    %45 = tpu.matmul %44, %0, %cst_32 {dimension_numbers = #tpu.dot_dimension_numbers<[1], [0], [0], [1], [0, 0, 1, 1], [], []>} : vector<2x198xbf16>, vector<198x300xbf16>, vector<2x300xf32> -> vector<2x300xf32>
    %46 = vector.broadcast %1 : vector<1x300xf32> to vector<2x300xf32>
    %47 = arith.addf %45, %46 : vector<2x300xf32>
    %cst_33 = arith.constant 0.000000e+00 : f32
    %48 = vector.broadcast %cst_33 : f32 to vector<2x300xf32>
    %49 = arith.maximumf %47, %48 : vector<2x300xf32>
    %50 = arith.truncf %49 : vector<2x300xf32> to vector<2x300xbf16>
    %c5 = arith.constant 5 : index
    %c0_34 = arith.constant 0 : index
    %c0_35 = arith.constant 0 : index
    %51 = vector.load %arg1[%c5, %c0_34, %c0_35] : memref<11x2x198xbf16, #tpu.memory_space<vmem>>, vector<1x2x198xbf16>
    %52 = vector.shape_cast %51 : vector<1x2x198xbf16> to vector<2x198xbf16>
    %cst_36 = arith.constant dense<0.000000e+00> : vector<2x300xf32>
    %53 = tpu.matmul %52, %0, %cst_36 {dimension_numbers = #tpu.dot_dimension_numbers<[1], [0], [0], [1], [0, 0, 1, 1], [], []>} : vector<2x198xbf16>, vector<198x300xbf16>, vector<2x300xf32> -> vector<2x300xf32>
    %54 = vector.broadcast %1 : vector<1x300xf32> to vector<2x300xf32>
    %55 = arith.addf %53, %54 : vector<2x300xf32>
    %cst_37 = arith.constant 0.000000e+00 : f32
    %56 = vector.broadcast %cst_37 : f32 to vector<2x300xf32>
    %57 = arith.maximumf %55, %56 : vector<2x300xf32>
    %58 = arith.truncf %57 : vector<2x300xf32> to vector<2x300xbf16>
    %c6 = arith.constant 6 : index
    %c0_38 = arith.constant 0 : index
    %c0_39 = arith.constant 0 : index
    %59 = vector.load %arg1[%c6, %c0_38, %c0_39] : memref<11x2x198xbf16, #tpu.memory_space<vmem>>, vector<1x2x198xbf16>
    %60 = vector.shape_cast %59 : vector<1x2x198xbf16> to vector<2x198xbf16>
    %cst_40 = arith.constant dense<0.000000e+00> : vector<2x300xf32>
    %61 = tpu.matmul %60, %0, %cst_40 {dimension_numbers = #tpu.dot_dimension_numbers<[1], [0], [0], [1], [0, 0, 1, 1], [], []>} : vector<2x198xbf16>, vector<198x300xbf16>, vector<2x300xf32> -> vector<2x300xf32>
    %62 = vector.broadcast %1 : vector<1x300xf32> to vector<2x300xf32>
    %63 = arith.addf %61, %62 : vector<2x300xf32>
    %cst_41 = arith.constant 0.000000e+00 : f32
    %64 = vector.broadcast %cst_41 : f32 to vector<2x300xf32>
    %65 = arith.maximumf %63, %64 : vector<2x300xf32>
    %66 = arith.truncf %65 : vector<2x300xf32> to vector<2x300xbf16>
    %c7 = arith.constant 7 : index
    %c0_42 = arith.constant 0 : index
    %c0_43 = arith.constant 0 : index
    %67 = vector.load %arg1[%c7, %c0_42, %c0_43] : memref<11x2x198xbf16, #tpu.memory_space<vmem>>, vector<1x2x198xbf16>
    %68 = vector.shape_cast %67 : vector<1x2x198xbf16> to vector<2x198xbf16>
    %cst_44 = arith.constant dense<0.000000e+00> : vector<2x300xf32>
    %69 = tpu.matmul %68, %0, %cst_44 {dimension_numbers = #tpu.dot_dimension_numbers<[1], [0], [0], [1], [0, 0, 1, 1], [], []>} : vector<2x198xbf16>, vector<198x300xbf16>, vector<2x300xf32> -> vector<2x300xf32>
    %70 = vector.broadcast %1 : vector<1x300xf32> to vector<2x300xf32>
    %71 = arith.addf %69, %70 : vector<2x300xf32>
    %cst_45 = arith.constant 0.000000e+00 : f32
    %72 = vector.broadcast %cst_45 : f32 to vector<2x300xf32>
    %73 = arith.maximumf %71, %72 : vector<2x300xf32>
    %74 = arith.truncf %73 : vector<2x300xf32> to vector<2x300xbf16>
    %c8 = arith.constant 8 : index
    %c0_46 = arith.constant 0 : index
    %c0_47 = arith.constant 0 : index
    %75 = vector.load %arg1[%c8, %c0_46, %c0_47] : memref<11x2x198xbf16, #tpu.memory_space<vmem>>, vector<1x2x198xbf16>
    %76 = vector.shape_cast %75 : vector<1x2x198xbf16> to vector<2x198xbf16>
    %cst_48 = arith.constant dense<0.000000e+00> : vector<2x300xf32>
    %77 = tpu.matmul %76, %0, %cst_48 {dimension_numbers = #tpu.dot_dimension_numbers<[1], [0], [0], [1], [0, 0, 1, 1], [], []>} : vector<2x198xbf16>, vector<198x300xbf16>, vector<2x300xf32> -> vector<2x300xf32>
    %78 = vector.broadcast %1 : vector<1x300xf32> to vector<2x300xf32>
    %79 = arith.addf %77, %78 : vector<2x300xf32>
    %cst_49 = arith.constant 0.000000e+00 : f32
    %80 = vector.broadcast %cst_49 : f32 to vector<2x300xf32>
    %81 = arith.maximumf %79, %80 : vector<2x300xf32>
    %82 = arith.truncf %81 : vector<2x300xf32> to vector<2x300xbf16>
    %c9 = arith.constant 9 : index
    %c0_50 = arith.constant 0 : index
    %c0_51 = arith.constant 0 : index
    %83 = vector.load %arg1[%c9, %c0_50, %c0_51] : memref<11x2x198xbf16, #tpu.memory_space<vmem>>, vector<1x2x198xbf16>
    %84 = vector.shape_cast %83 : vector<1x2x198xbf16> to vector<2x198xbf16>
    %cst_52 = arith.constant dense<0.000000e+00> : vector<2x300xf32>
    %85 = tpu.matmul %84, %0, %cst_52 {dimension_numbers = #tpu.dot_dimension_numbers<[1], [0], [0], [1], [0, 0, 1, 1], [], []>} : vector<2x198xbf16>, vector<198x300xbf16>, vector<2x300xf32> -> vector<2x300xf32>
    %86 = vector.broadcast %1 : vector<1x300xf32> to vector<2x300xf32>
    %87 = arith.addf %85, %86 : vector<2x300xf32>
    %cst_53 = arith.constant 0.000000e+00 : f32
    %88 = vector.broadcast %cst_53 : f32 to vector<2x300xf32>
    %89 = arith.maximumf %87, %88 : vector<2x300xf32>
    %90 = arith.truncf %89 : vector<2x300xf32> to vector<2x300xbf16>
    %c10 = arith.constant 10 : index
    %c0_54 = arith.constant 0 : index
    %c0_55 = arith.constant 0 : index
    %91 = vector.load %arg1[%c10, %c0_54, %c0_55] : memref<11x2x198xbf16, #tpu.memory_space<vmem>>, vector<1x2x198xbf16>
    %92 = vector.shape_cast %91 : vector<1x2x198xbf16> to vector<2x198xbf16>
    %cst_56 = arith.constant dense<0.000000e+00> : vector<2x300xf32>
    %93 = tpu.matmul %92, %0, %cst_56 {dimension_numbers = #tpu.dot_dimension_numbers<[1], [0], [0], [1], [0, 0, 1, 1], [], []>} : vector<2x198xbf16>, vector<198x300xbf16>, vector<2x300xf32> -> vector<2x300xf32>
    %94 = vector.broadcast %1 : vector<1x300xf32> to vector<2x300xf32>
    %95 = arith.addf %93, %94 : vector<2x300xf32>
    %cst_57 = arith.constant 0.000000e+00 : f32
    %96 = vector.broadcast %cst_57 : f32 to vector<2x300xf32>
    %97 = arith.maximumf %95, %96 : vector<2x300xf32>
    %98 = arith.truncf %97 : vector<2x300xf32> to vector<2x300xbf16>
    %cst_58 = arith.constant 0.000000e+00 : f32
    %99 = vector.broadcast %cst_58 : f32 to vector<2x300xf32>
    %cst_59 = arith.constant dense<0.000000e+00> : vector<2x300xf32>
    %100 = tpu.matmul %18, %3, %cst_59 {dimension_numbers = #tpu.dot_dimension_numbers<[1], [0], [0], [1], [0, 0, 1, 1], [], []>} : vector<2x300xbf16>, vector<300x300xbf16>, vector<2x300xf32> -> vector<2x300xf32>
    %101 = arith.addf %10, %100 : vector<2x300xf32>
    %cst_60 = arith.constant dense<0.000000e+00> : vector<2x300xf32>
    %102 = tpu.matmul %26, %5, %cst_60 {dimension_numbers = #tpu.dot_dimension_numbers<[1], [0], [0], [1], [0, 0, 1, 1], [], []>} : vector<2x300xbf16>, vector<300x300xbf16>, vector<2x300xf32> -> vector<2x300xf32>
    %103 = arith.addf %101, %102 : vector<2x300xf32>
    %cst_61 = arith.constant dense<0.000000e+00> : vector<2x300xf32>
    %104 = tpu.matmul %34, %7, %cst_61 {dimension_numbers = #tpu.dot_dimension_numbers<[1], [0], [0], [1], [0, 0, 1, 1], [], []>} : vector<2x300xbf16>, vector<300x300xbf16>, vector<2x300xf32> -> vector<2x300xf32>
    %105 = arith.addf %103, %104 : vector<2x300xf32>
    %cst_62 = arith.constant 0.000000e+00 : f32
    %106 = vector.broadcast %cst_62 : f32 to vector<2x300xf32>
    %107 = arith.maximumf %105, %106 : vector<2x300xf32>
    %108 = arith.addf %99, %107 : vector<2x300xf32>
    %cst_63 = arith.constant dense<0.000000e+00> : vector<2x300xf32>
    %109 = tpu.matmul %26, %3, %cst_63 {dimension_numbers = #tpu.dot_dimension_numbers<[1], [0], [0], [1], [0, 0, 1, 1], [], []>} : vector<2x300xbf16>, vector<300x300xbf16>, vector<2x300xf32> -> vector<2x300xf32>
    %110 = arith.addf %10, %109 : vector<2x300xf32>
    %cst_64 = arith.constant dense<0.000000e+00> : vector<2x300xf32>
    %111 = tpu.matmul %34, %5, %cst_64 {dimension_numbers = #tpu.dot_dimension_numbers<[1], [0], [0], [1], [0, 0, 1, 1], [], []>} : vector<2x300xbf16>, vector<300x300xbf16>, vector<2x300xf32> -> vector<2x300xf32>
    %112 = arith.addf %110, %111 : vector<2x300xf32>
    %cst_65 = arith.constant dense<0.000000e+00> : vector<2x300xf32>
    %113 = tpu.matmul %42, %7, %cst_65 {dimension_numbers = #tpu.dot_dimension_numbers<[1], [0], [0], [1], [0, 0, 1, 1], [], []>} : vector<2x300xbf16>, vector<300x300xbf16>, vector<2x300xf32> -> vector<2x300xf32>
    %114 = arith.addf %112, %113 : vector<2x300xf32>
    %cst_66 = arith.constant 0.000000e+00 : f32
    %115 = vector.broadcast %cst_66 : f32 to vector<2x300xf32>
    %116 = arith.maximumf %114, %115 : vector<2x300xf32>
    %117 = arith.addf %108, %116 : vector<2x300xf32>
    %cst_67 = arith.constant dense<0.000000e+00> : vector<2x300xf32>
    %118 = tpu.matmul %34, %3, %cst_67 {dimension_numbers = #tpu.dot_dimension_numbers<[1], [0], [0], [1], [0, 0, 1, 1], [], []>} : vector<2x300xbf16>, vector<300x300xbf16>, vector<2x300xf32> -> vector<2x300xf32>
    %119 = arith.addf %10, %118 : vector<2x300xf32>
    %cst_68 = arith.constant dense<0.000000e+00> : vector<2x300xf32>
    %120 = tpu.matmul %42, %5, %cst_68 {dimension_numbers = #tpu.dot_dimension_numbers<[1], [0], [0], [1], [0, 0, 1, 1], [], []>} : vector<2x300xbf16>, vector<300x300xbf16>, vector<2x300xf32> -> vector<2x300xf32>
    %121 = arith.addf %119, %120 : vector<2x300xf32>
    %cst_69 = arith.constant dense<0.000000e+00> : vector<2x300xf32>
    %122 = tpu.matmul %50, %7, %cst_69 {dimension_numbers = #tpu.dot_dimension_numbers<[1], [0], [0], [1], [0, 0, 1, 1], [], []>} : vector<2x300xbf16>, vector<300x300xbf16>, vector<2x300xf32> -> vector<2x300xf32>
    %123 = arith.addf %121, %122 : vector<2x300xf32>
    %cst_70 = arith.constant 0.000000e+00 : f32
    %124 = vector.broadcast %cst_70 : f32 to vector<2x300xf32>
    %125 = arith.maximumf %123, %124 : vector<2x300xf32>
    %126 = arith.addf %117, %125 : vector<2x300xf32>
    %cst_71 = arith.constant dense<0.000000e+00> : vector<2x300xf32>
    %127 = tpu.matmul %42, %3, %cst_71 {dimension_numbers = #tpu.dot_dimension_numbers<[1], [0], [0], [1], [0, 0, 1, 1], [], []>} : vector<2x300xbf16>, vector<300x300xbf16>, vector<2x300xf32> -> vector<2x300xf32>
    %128 = arith.addf %10, %127 : vector<2x300xf32>
    %cst_72 = arith.constant dense<0.000000e+00> : vector<2x300xf32>
    %129 = tpu.matmul %50, %5, %cst_72 {dimension_numbers = #tpu.dot_dimension_numbers<[1], [0], [0], [1], [0, 0, 1, 1], [], []>} : vector<2x300xbf16>, vector<300x300xbf16>, vector<2x300xf32> -> vector<2x300xf32>
    %130 = arith.addf %128, %129 : vector<2x300xf32>
    %cst_73 = arith.constant dense<0.000000e+00> : vector<2x300xf32>
    %131 = tpu.matmul %58, %7, %cst_73 {dimension_numbers = #tpu.dot_dimension_numbers<[1], [0], [0], [1], [0, 0, 1, 1], [], []>} : vector<2x300xbf16>, vector<300x300xbf16>, vector<2x300xf32> -> vector<2x300xf32>
    %132 = arith.addf %130, %131 : vector<2x300xf32>
    %cst_74 = arith.constant 0.000000e+00 : f32
    %133 = vector.broadcast %cst_74 : f32 to vector<2x300xf32>
    %134 = arith.maximumf %132, %133 : vector<2x300xf32>
    %135 = arith.addf %126, %134 : vector<2x300xf32>
    %cst_75 = arith.constant dense<0.000000e+00> : vector<2x300xf32>
    %136 = tpu.matmul %50, %3, %cst_75 {dimension_numbers = #tpu.dot_dimension_numbers<[1], [0], [0], [1], [0, 0, 1, 1], [], []>} : vector<2x300xbf16>, vector<300x300xbf16>, vector<2x300xf32> -> vector<2x300xf32>
    %137 = arith.addf %10, %136 : vector<2x300xf32>
    %cst_76 = arith.constant dense<0.000000e+00> : vector<2x300xf32>
    %138 = tpu.matmul %58, %5, %cst_76 {dimension_numbers = #tpu.dot_dimension_numbers<[1], [0], [0], [1], [0, 0, 1, 1], [], []>} : vector<2x300xbf16>, vector<300x300xbf16>, vector<2x300xf32> -> vector<2x300xf32>
    %139 = arith.addf %137, %138 : vector<2x300xf32>
    %cst_77 = arith.constant dense<0.000000e+00> : vector<2x300xf32>
    %140 = tpu.matmul %66, %7, %cst_77 {dimension_numbers = #tpu.dot_dimension_numbers<[1], [0], [0], [1], [0, 0, 1, 1], [], []>} : vector<2x300xbf16>, vector<300x300xbf16>, vector<2x300xf32> -> vector<2x300xf32>
    %141 = arith.addf %139, %140 : vector<2x300xf32>
    %cst_78 = arith.constant 0.000000e+00 : f32
    %142 = vector.broadcast %cst_78 : f32 to vector<2x300xf32>
    %143 = arith.maximumf %141, %142 : vector<2x300xf32>
    %144 = arith.addf %135, %143 : vector<2x300xf32>
    %cst_79 = arith.constant dense<0.000000e+00> : vector<2x300xf32>
    %145 = tpu.matmul %58, %3, %cst_79 {dimension_numbers = #tpu.dot_dimension_numbers<[1], [0], [0], [1], [0, 0, 1, 1], [], []>} : vector<2x300xbf16>, vector<300x300xbf16>, vector<2x300xf32> -> vector<2x300xf32>
    %146 = arith.addf %10, %145 : vector<2x300xf32>
    %cst_80 = arith.constant dense<0.000000e+00> : vector<2x300xf32>
    %147 = tpu.matmul %66, %5, %cst_80 {dimension_numbers = #tpu.dot_dimension_numbers<[1], [0], [0], [1], [0, 0, 1, 1], [], []>} : vector<2x300xbf16>, vector<300x300xbf16>, vector<2x300xf32> -> vector<2x300xf32>
    %148 = arith.addf %146, %147 : vector<2x300xf32>
    %cst_81 = arith.constant dense<0.000000e+00> : vector<2x300xf32>
    %149 = tpu.matmul %74, %7, %cst_81 {dimension_numbers = #tpu.dot_dimension_numbers<[1], [0], [0], [1], [0, 0, 1, 1], [], []>} : vector<2x300xbf16>, vector<300x300xbf16>, vector<2x300xf32> -> vector<2x300xf32>
    %150 = arith.addf %148, %149 : vector<2x300xf32>
    %cst_82 = arith.constant 0.000000e+00 : f32
    %151 = vector.broadcast %cst_82 : f32 to vector<2x300xf32>
    %152 = arith.maximumf %150, %151 : vector<2x300xf32>
    %153 = arith.addf %144, %152 : vector<2x300xf32>
    %cst_83 = arith.constant dense<0.000000e+00> : vector<2x300xf32>
    %154 = tpu.matmul %66, %3, %cst_83 {dimension_numbers = #tpu.dot_dimension_numbers<[1], [0], [0], [1], [0, 0, 1, 1], [], []>} : vector<2x300xbf16>, vector<300x300xbf16>, vector<2x300xf32> -> vector<2x300xf32>
    %155 = arith.addf %10, %154 : vector<2x300xf32>
    %cst_84 = arith.constant dense<0.000000e+00> : vector<2x300xf32>
    %156 = tpu.matmul %74, %5, %cst_84 {dimension_numbers = #tpu.dot_dimension_numbers<[1], [0], [0], [1], [0, 0, 1, 1], [], []>} : vector<2x300xbf16>, vector<300x300xbf16>, vector<2x300xf32> -> vector<2x300xf32>
    %157 = arith.addf %155, %156 : vector<2x300xf32>
    %cst_85 = arith.constant dense<0.000000e+00> : vector<2x300xf32>
    %158 = tpu.matmul %82, %7, %cst_85 {dimension_numbers = #tpu.dot_dimension_numbers<[1], [0], [0], [1], [0, 0, 1, 1], [], []>} : vector<2x300xbf16>, vector<300x300xbf16>, vector<2x300xf32> -> vector<2x300xf32>
    %159 = arith.addf %157, %158 : vector<2x300xf32>
    %cst_86 = arith.constant 0.000000e+00 : f32
    %160 = vector.broadcast %cst_86 : f32 to vector<2x300xf32>
    %161 = arith.maximumf %159, %160 : vector<2x300xf32>
    %162 = arith.addf %153, %161 : vector<2x300xf32>
    %cst_87 = arith.constant dense<0.000000e+00> : vector<2x300xf32>
    %163 = tpu.matmul %74, %3, %cst_87 {dimension_numbers = #tpu.dot_dimension_numbers<[1], [0], [0], [1], [0, 0, 1, 1], [], []>} : vector<2x300xbf16>, vector<300x300xbf16>, vector<2x300xf32> -> vector<2x300xf32>
    %164 = arith.addf %10, %163 : vector<2x300xf32>
    %cst_88 = arith.constant dense<0.000000e+00> : vector<2x300xf32>
    %165 = tpu.matmul %82, %5, %cst_88 {dimension_numbers = #tpu.dot_dimension_numbers<[1], [0], [0], [1], [0, 0, 1, 1], [], []>} : vector<2x300xbf16>, vector<300x300xbf16>, vector<2x300xf32> -> vector<2x300xf32>
    %166 = arith.addf %164, %165 : vector<2x300xf32>
    %cst_89 = arith.constant dense<0.000000e+00> : vector<2x300xf32>
    %167 = tpu.matmul %90, %7, %cst_89 {dimension_numbers = #tpu.dot_dimension_numbers<[1], [0], [0], [1], [0, 0, 1, 1], [], []>} : vector<2x300xbf16>, vector<300x300xbf16>, vector<2x300xf32> -> vector<2x300xf32>
    %168 = arith.addf %166, %167 : vector<2x300xf32>
    %cst_90 = arith.constant 0.000000e+00 : f32
    %169 = vector.broadcast %cst_90 : f32 to vector<2x300xf32>
    %170 = arith.maximumf %168, %169 : vector<2x300xf32>
    %171 = arith.addf %162, %170 : vector<2x300xf32>
    %cst_91 = arith.constant dense<0.000000e+00> : vector<2x300xf32>
    %172 = tpu.matmul %82, %3, %cst_91 {dimension_numbers = #tpu.dot_dimension_numbers<[1], [0], [0], [1], [0, 0, 1, 1], [], []>} : vector<2x300xbf16>, vector<300x300xbf16>, vector<2x300xf32> -> vector<2x300xf32>
    %173 = arith.addf %10, %172 : vector<2x300xf32>
    %cst_92 = arith.constant dense<0.000000e+00> : vector<2x300xf32>
    %174 = tpu.matmul %90, %5, %cst_92 {dimension_numbers = #tpu.dot_dimension_numbers<[1], [0], [0], [1], [0, 0, 1, 1], [], []>} : vector<2x300xbf16>, vector<300x300xbf16>, vector<2x300xf32> -> vector<2x300xf32>
    %175 = arith.addf %173, %174 : vector<2x300xf32>
    %cst_93 = arith.constant dense<0.000000e+00> : vector<2x300xf32>
    %176 = tpu.matmul %98, %7, %cst_93 {dimension_numbers = #tpu.dot_dimension_numbers<[1], [0], [0], [1], [0, 0, 1, 1], [], []>} : vector<2x300xbf16>, vector<300x300xbf16>, vector<2x300xf32> -> vector<2x300xf32>
    %177 = arith.addf %175, %176 : vector<2x300xf32>
    %cst_94 = arith.constant 0.000000e+00 : f32
    %178 = vector.broadcast %cst_94 : f32 to vector<2x300xf32>
    %179 = arith.maximumf %177, %178 : vector<2x300xf32>
    %180 = arith.addf %171, %179 : vector<2x300xf32>
    %181 = arith.truncf %180 : vector<2x300xf32> to vector<2x300xbf16>
    %c0_95 = arith.constant 0 : index
    %c0_96 = arith.constant 0 : index
    %182 = vector.load %arg7[%c0_95, %c0_96] : memref<300x600xbf16, #tpu.memory_space<vmem>>, vector<300x600xbf16>
    %cst_97 = arith.constant dense<0.000000e+00> : vector<2x600xf32>
    %183 = tpu.matmul %181, %182, %cst_97 {dimension_numbers = #tpu.dot_dimension_numbers<[1], [0], [0], [1], [0, 0, 1, 1], [], []>} : vector<2x300xbf16>, vector<300x600xbf16>, vector<2x600xf32> -> vector<2x600xf32>
    %c0_98 = arith.constant 0 : index
    %c0_99 = arith.constant 0 : index
    %184 = vector.load %arg2[%c0_98, %c0_99] : memref<2x37xbf16, #tpu.memory_space<vmem>>, vector<2x37xbf16>
    %c0_100 = arith.constant 0 : index
    %c0_101 = arith.constant 0 : index
    %185 = vector.load %arg8[%c0_100, %c0_101] : memref<37x600xbf16, #tpu.memory_space<vmem>>, vector<37x600xbf16>
    %cst_102 = arith.constant dense<0.000000e+00> : vector<2x600xf32>
    %186 = tpu.matmul %184, %185, %cst_102 {dimension_numbers = #tpu.dot_dimension_numbers<[1], [0], [0], [1], [0, 0, 1, 1], [], []>} : vector<2x37xbf16>, vector<37x600xbf16>, vector<2x600xf32> -> vector<2x600xf32>
    %187 = arith.addf %183, %186 : vector<2x600xf32>
    %c0_103 = arith.constant 0 : index
    %c0_104 = arith.constant 0 : index
    %188 = vector.load %arg9[%c0_103, %c0_104] : memref<1x600xf32, #tpu.memory_space<vmem>>, vector<1x600xf32>
    %189 = vector.broadcast %188 : vector<1x600xf32> to vector<2x600xf32>
    %190 = arith.addf %187, %189 : vector<2x600xf32>
    %cst_105 = arith.constant 0.000000e+00 : f32
    %191 = vector.broadcast %cst_105 : f32 to vector<2x600xf32>
    %192 = arith.maximumf %190, %191 : vector<2x600xf32>
    %c0_106 = arith.constant 0 : index
    %c0_107 = arith.constant 0 : index
    %193 = vector.load %arg10[%c0_106, %c0_107] : memref<1x600xf32, #tpu.memory_space<vmem>>, vector<1x600xf32>
    %194 = vector.broadcast %193 : vector<1x600xf32> to vector<2x600xf32>
    %195 = arith.mulf %192, %194 : vector<2x600xf32>
    %cst_108 = arith.constant dense<0.000000e+00> : vector<2xf32>
    %196 = vector.multi_reduction <add>, %195, %cst_108 [1] : vector<2x600xf32> to vector<2xf32>
    %197 = vector.shape_cast %196 : vector<2xf32> to vector<2x1xf32>
    %c0_109 = arith.constant 0 : index
    %c0_110 = arith.constant 0 : index
    %198 = vector.load %arg11[%c0_109, %c0_110] : memref<1x1xf32, #tpu.memory_space<vmem>>, vector<1x1xf32>
    %199 = vector.broadcast %198 : vector<1x1xf32> to vector<2x1xf32>
    %200 = arith.addf %197, %199 : vector<2x1xf32>
    %c0_111 = arith.constant 0 : index
    %c0_112 = arith.constant 0 : index
    %201 = vector.load %arg12[%c0_111, %c0_112] : memref<2x1xf32, #tpu.memory_space<vmem>>, vector<2x1xf32>
    tpu.vector_store %arg12[%c0_111, %c0_112], %200 {strides = array<i32>} : memref<2x1xf32, #tpu.memory_space<vmem>>, vector<2x1xf32>,
    return
  }
  func.func @transform_0(%arg0: i32) -> (i32, i32, i32) {
    %c0_i32 = arith.constant 0 : i32
    %c0_i32_0 = arith.constant 0 : i32
    %c0_i32_1 = arith.constant 0 : i32
    return %c0_i32, %arg0, %c0_i32_0 : i32, i32, i32
  }
  func.func @transform_1(%arg0: i32) -> (i32, i32) {
    %c0_i32 = arith.constant 0 : i32
    %c0_i32_0 = arith.constant 0 : i32
    return %arg0, %c0_i32 : i32, i32
  }
  func.func @transform_2(%arg0: i32) -> (i32, i32) {
    %c0_i32 = arith.constant 0 : i32
    %c0_i32_0 = arith.constant 0 : i32
    %c0_i32_1 = arith.constant 0 : i32
    return %c0_i32, %c0_i32_0 : i32, i32
  }
  func.func @transform_3(%arg0: i32) -> (i32, i32) {
    %c0_i32 = arith.constant 0 : i32
    %c0_i32_0 = arith.constant 0 : i32
    %c0_i32_1 = arith.constant 0 : i32
    return %c0_i32, %c0_i32_0 : i32, i32
  }
  func.func @transform_4(%arg0: i32) -> (i32, i32, i32) {
    %c0_i32 = arith.constant 0 : i32
    %c0_i32_0 = arith.constant 0 : i32
    %c0_i32_1 = arith.constant 0 : i32
    %c0_i32_2 = arith.constant 0 : i32
    return %c0_i32, %c0_i32_0, %c0_i32_1 : i32, i32, i32
  }
  func.func @transform_5(%arg0: i32) -> (i32, i32) {
    %c0_i32 = arith.constant 0 : i32
    %c0_i32_0 = arith.constant 0 : i32
    %c0_i32_1 = arith.constant 0 : i32
    return %c0_i32, %c0_i32_0 : i32, i32
  }
  func.func @transform_6(%arg0: i32) -> (i32, i32) {
    %c0_i32 = arith.constant 0 : i32
    %c0_i32_0 = arith.constant 0 : i32
    %c0_i32_1 = arith.constant 0 : i32
    return %c0_i32, %c0_i32_0 : i32, i32
  }
  func.func @transform_7(%arg0: i32) -> (i32, i32) {
    %c0_i32 = arith.constant 0 : i32
    %c0_i32_0 = arith.constant 0 : i32
    %c0_i32_1 = arith.constant 0 : i32
    return %c0_i32, %c0_i32_0 : i32, i32
  }
  func.func @transform_8(%arg0: i32) -> (i32, i32) {
    %c0_i32 = arith.constant 0 : i32
    %c0_i32_0 = arith.constant 0 : i32
    %c0_i32_1 = arith.constant 0 : i32
    return %c0_i32, %c0_i32_0 : i32, i32
  }
  func.func @transform_9(%arg0: i32) -> (i32, i32) {
    %c0_i32 = arith.constant 0 : i32
    %c0_i32_0 = arith.constant 0 : i32
    %c0_i32_1 = arith.constant 0 : i32
    return %c0_i32, %c0_i32_0 : i32, i32
  }
  func.func @transform_10(%arg0: i32) -> (i32, i32) {
    %c0_i32 = arith.constant 0 : i32
    %c0_i32_0 = arith.constant 0 : i32
    %c0_i32_1 = arith.constant 0 : i32
    return %c0_i32, %c0_i32_0 : i32, i32
  }
  func.func @transform_11(%arg0: i32) -> (i32, i32) {
    %c0_i32 = arith.constant 0 : i32
    %c0_i32_0 = arith.constant 0 : i32
    return %arg0, %c0_i32 : i32, i32
  }
}

</mosaic_0001>

<bundles_post_ra>
// kernel: cnn1d_forward.1
= control target key start
LH: loop header
LB: loop body
LE: loop exit
PB: predicated region body
PF: predicated region fallthrough
CT: control target
= control target key end

     0   :  { %v18143_v0 = vmov 0   ;;  %v324_v20 = vlaneseq  ;;  %v11408_v21 = vmov 1966171168   ;;  %vm580_vm0 = vcmask 572416   ;;  %s18131_s2 = inlined_call_operand.vmem [shape: bf16[198,300], index: 2, kind: input, shape index: {}]   ;;  %s18132_s0 = inlined_call_operand.vmem [shape: bf16[11,2,198], index: 0, kind: input, shape index: {}]   ;;  %s18133_s4 = inlined_call_operand.vmem [shape: bf16[3,300,300], index: 4, kind: input, shape index: {}]   ;;  %s18134_s3 = inlined_call_operand.vmem [shape: f32[1,300], index: 3, kind: input, shape index: {}]   ;;  %s18135_s5 = inlined_call_operand.vmem [shape: f32[1,300], index: 5, kind: input, shape index: {}]   ;;  %s18136_s7 = inlined_call_operand.vmem [shape: bf16[37,600], index: 7, kind: input, shape index: {}]   ;;  %s18137_s6 = inlined_call_operand.vmem [shape: bf16[300,600], index: 6, kind: input, shape index: {}]   ;;  %s18138_s1 = inlined_call_operand.vmem [shape: bf16[2,37], index: 1, kind: input, shape index: {}]   ;;  %s18139_s10 = inlined_call_operand.<no memory space> [shape: f32[1,1], index: 10, kind: input, shape index: {}]   ;;  %s18140_s8 = inlined_call_operand.vmem [shape: f32[1,600], index: 8, kind: input, shape index: {}]   ;;  %s18141_s9 = inlined_call_operand.vmem [shape: f32[1,600], index: 9, kind: input, shape index: {}]   ;;  %s18142_s11 = inlined_call_operand.vmem [shape: f32[2,1], index: 11, kind: output, shape index: {}]  }
   0x1   :  { %635 = vmatprep.subr.bf16.mxu1 %v18143_v0  ;;  %v11476_v1 = vld [vmem:[%s18131_s2 + $0x4] ss:$12 sps:$4 sm:$0xff]   ;;  %v11481_v2 = vld [vmem:[%s18131_s2 + $0x8] ss:$12 sps:$4 sm:$0xff]   ;;  %v11487_v3 = vld [vmem:[%s18131_s2] ss:$12 sps:$4 sm:$0xff]   ;;  %v366_v22 = vunpack.c.l.s4 %v11408_v21 }
   0x2   :  { %594 = vmatprep.subr.bf16.mxu0 %v11476_v1  ;;  %636 = vmatpush1.bf16.msra.mxu1 %v11481_v2  ;;  %v11493_v4 = vld [vmem:[%s18131_s2 + $0x1c] ss:$12 sps:$4 sm:$0xff]   ;;  %v11500_v5 = vld [vmem:[%s18131_s2 + $0x20] ss:$12 sps:$4 sm:$0xff]   ;;  %v11505_v6 = vld [vmem:[%s18131_s2 + $0x18] ss:$12 sps:$4 sm:$0xff]  }
   0x3   :  { %595 = vmatpush1.bf16.msra.mxu0 %v11487_v3  ;;  %637 = vmatprep.subr.bf16.mxu1 %v18143_v0  ;;  %v11511_v7 = vld [vmem:[%s18131_s2 + $0x34] ss:$12 sps:$4 sm:$0xff]   ;;  %v11517_v8 = vld [vmem:[%s18131_s2 + $0x38] ss:$12 sps:$4 sm:$0xff]   ;;  %v11524_v9 = vld [vmem:[%s18131_s2 + $0x30] ss:$12 sps:$4 sm:$0xff]   ;;  %v367_v27 = vunpack.c.0.s8 %v366_v22 }
   0x4   :  { %596 = vmatprep.subr.bf16.mxu0 %v11493_v4  ;;  %v11530_v10 = vld [vmem:[%s18131_s2 + $0x4c] ss:$12 sps:$4 sm:$0xff]   ;;  %v11536_v11 = vld [vmem:[%s18131_s2 + $0x50] ss:$12 sps:$4 sm:$0xff]   ;;  %v11543_v12 = vld [vmem:[%s18131_s2 + $0x48] ss:$12 sps:$4 sm:$0xff]  }
   0x5   :  { %v11549_v13 = vld [vmem:[%s18131_s2 + $0x64] ss:$12 sps:$4 sm:$0xff]   ;;  %v11555_v14 = vld [vmem:[%s18131_s2 + $0x68] ss:$12 sps:$4 sm:$0xff]   ;;  %v11562_v15 = vld [vmem:[%s18131_s2 + $0x60] ss:$12 sps:$4 sm:$0xff]  }
   0x6   :  { %638 = vmatpush1.bf16.msra.mxu1 %v11500_v5  ;;  %v11568_v16 = vld [vmem:[%s18131_s2 + $0x7c] ss:$12 sps:$4 sm:$0xff]   ;;  %v11574_v17 = vld [vmem:[%s18131_s2 + $0x80] ss:$12 sps:$4 sm:$0xff]   ;;  %v11581_v18 = vld [vmem:[%s18131_s2 + $0x78] ss:$12 sps:$4 sm:$0xff]  }
   0x7   :  { %597 = vmatpush1.bf16.msra.mxu0 %v11505_v6  ;;  %639 = vmatprep.subr.bf16.mxu1 %v18143_v0  ;;  %v11587_v19 = vld [vmem:[%s18131_s2 + $0x94] ss:$12 sps:$4 sm:$0xff]   ;;  %v11593_v23 = vld [vmem:[%s18131_s2 + $0x98] ss:$12 sps:$4 sm:$0xff]   ;;  %v11600_v24 = vld [vmem:[%s18131_s2 + $0x90] ss:$12 sps:$4 sm:$0xff]  }
   0x8   :  { %598 = vmatprep.subr.bf16.mxu0 %v11511_v7  ;;  %v11606_v25 = vld [vmem:[%s18131_s2 + $0xac] ss:$12 sps:$4 sm:$0xff]   ;;  %v11608_v26 = vshrl.u32 %v324_v20, 7  ;;  %v11614_v28 = vld [vmem:[%s18131_s2 + $0xb0] ss:$12 sps:$4 sm:$0xff]   ;;  %vm584_vm1 = vcmask 1042432  }
   0x9   :  { %v11621_v29 = vld [vmem:[%s18131_s2 + $0xa8] ss:$12 sps:$4 sm:$0xff]   ;;  %v11627_v30 = vld [vmem:[%s18131_s2 + $0xc4] ss:$12 sps:$4 sm:$0xff]   ;;  %v11646_v35 = vld [vmem:[%s18131_s2 + $0xc0] ss:$12 sps:$4 sm:$0xff]  }
   0xa   :  { %640 = vmatpush1.bf16.msra.mxu1 %v11517_v8  ;;  %18737 = vst [vmem:[#allocation3_spill] sm:$0xff] %v11608_v26  ;;  %v11630_v31 = vsub.s32 %v367_v27, %v11608_v26  ;;  %v8655_v32 = vld.sshfl [vmem:[%s18132_s0] sm:$0x11 pattern:$0x75316420]  ;;  %vm11410_vm2 = vmmov 0  }
   0xb   :  { %599 = vmatpush1.bf16.msra.mxu0 %v11524_v9  ;;  %641 = vmatprep.subr.bf16.mxu1 %v18143_v0  ;;  %v11639_v33 = vld [vmem:[%s18131_s2 + $0xc8] ss:$12 sps:$4 sm:$0xff]   ;;  %v364_v34 = vcombine.high %v8655_v32, %v8655_v32  ;;  %v11659_v38 = vld [vmem:[%s18131_s2 + $0xe0] ss:$12 sps:$4 sm:$0xff]   ;;  %v11667_v39 = vld [vmem:[%s18131_s2 + $0xd8] ss:$12 sps:$4 sm:$0xff]  }
   0xc   :  { %600 = vmatprep.subr.bf16.mxu0 %v11530_v10  ;;  %v11652_v36 = vld [vmem:[%s18131_s2 + $0xdc] ss:$12 sps:$4 sm:$0xff]   ;;  %v11673_v40 = vld [vmem:[%s18131_s2 + $0xf4] ss:$12 sps:$4 sm:$0xff]   ;;  %v11680_v41 = vld [vmem:[%s18131_s2 + $0xf8] ss:$12 sps:$4 sm:$0xff]   ;;  %v371_v54 = vrot.slane %v8655_v32, %v11630_v31 }
   0xd   :  { %v378_v37 = vrot.slane %v364_v34, %v11630_v31  ;;  %v11687_v42 = vld [vmem:[%s18131_s2 + $0xf0] ss:$12 sps:$4 sm:$0xff]   ;;  %v11693_v43 = vld [vmem:[%s18131_s2 + $0x10c] ss:$12 sps:$4 sm:$0xff]   ;;  %v89_v44 = vld [vmem:[%s18131_s2 + $0x120] sm:$0x77] }
   0xe   :  { %642 = vmatpush1.bf16.msra.mxu1 %v11536_v11  ;;  %v11702_v45 = vld [vmem:[%s18131_s2 + $0x110] ss:$12 sps:$4 sm:$0xff]   ;;  %v11709_v46 = vld [vmem:[%s18131_s2 + $0x108] ss:$12 sps:$4 sm:$0xff]   ;;  %v11715_v48 = vcombine.high %v89_v44, %v89_v44  ;;  %v8692_v49 = vcombine.low %v89_v44, %v89_v44  ;;  %vm2146_vm3 = vcmask 1045504   ;;  %vm2142_vm4 = vcmask 359424  }
   0xf   :  { %601 = vmatpush1.bf16.msra.mxu0 %v11543_v12  ;;  %643 = vmatprep.subr.bf16.mxu1 %v18143_v0  ;;  %v10501_v47 = vld [vmem:[%s18131_s2 + $0x128] ss:$0 sps:$4 sm:$0x77]   ;;  %vm7517_vm5 = vcmask 1041408   ;;  %vm7513_vm6 = vcmask 302080   ;;  %vm8484_vm7 = vcmask 713728  }
  0x10   :  { %602 = vmatprep.subr.bf16.mxu0 %v11549_v13  ;;  %8696 = vmatprep.mubr.msk.bf16.mxu0 %vm580_vm0, %v378_v37  ;;  %v11720_v50 = vld.sshfl [vmem:[%s18132_s0 + $0x2] sm:$0x11 pattern:$0x75316420]  ;;  %v11726_v51 = vsel %vm584_vm1, %v10501_v47, 0  ;;  %v11731_v52 = vsel %vm584_vm1, %v8692_v49, 0 }
  0x11   :  { %8697 = vmatprep.mubr.msk.bf16.mxu1 %vm580_vm0, %v378_v37  ;;  %v691_v53 = vcombine.high %v11720_v50, %v11720_v50  ;;  %v11790_v56 = vld.sshfl [vmem:[%s18132_s0 + $0x4] sm:$0x11 pattern:$0x75316420]  ;;  %v698_v58 = vrot.slane %v11720_v50, %v11630_v31  ;;  %vm8497_vm8 = vcmask 1024  }
  0x12   :  { %644 = vmatpush1.bf16.msra.mxu1 %v11555_v14  ;;  %v807_v57 = vcombine.high %v11790_v56, %v11790_v56  ;;  %v11855_v60 = vld.sshfl [vmem:[%s18132_s0 + $0x6] sm:$0x11 pattern:$0x75316420]  ;;  %v814_v62 = vrot.slane %v11790_v56, %v11630_v31 }
  0x13   :  { %603 = vmatpush1.bf16.msra.mxu0 %v11562_v15  ;;  %645 = vmatprep.subr.bf16.mxu1 %v18143_v0  ;;  %v705_v55 = vrot.slane %v691_v53, %v11630_v31  ;;  %v923_v61 = vcombine.high %v11855_v60, %v11855_v60  ;;  %v11920_v20 = vld.sshfl [vmem:[%s18132_s0 + $0x8] sm:$0x11 pattern:$0x75316420]  ;;  %v930_v22 = vrot.slane %v11855_v60, %v11630_v31 }
  0x14   :  { %604 = vmatprep.subr.bf16.mxu0 %v11568_v16  ;;  %v821_v59 = vrot.slane %v807_v57, %v11630_v31  ;;  %v1039_v21 = vcombine.high %v11920_v20, %v11920_v20  ;;  %v11985_v32 = vld.sshfl [vmem:[%s18132_s0 + $0xa] sm:$0x11 pattern:$0x75316420]  ;;  %v1046_v37 = vrot.slane %v11920_v20, %v11630_v31 }
  0x15   :  { %v937_v63 = vrot.slane %v923_v61, %v11630_v31  ;;  %v1155_v34 = vcombine.high %v11985_v32, %v11985_v32  ;;  %v1162_v60 = vrot.slane %v11985_v32, %v11630_v31  ;;  %v12178_v32 = vld [vmem:[%s18131_s2 + $0x20] ss:$12 sps:$4 sm:$0xff]  }
  0x16   :  { %646 = vmatpush1.bf16.msra.mxu1 %v11574_v17  ;;  %v1053_v27 = vrot.slane %v1039_v21, %v11630_v31 }
  0x17   :  { %605 = vmatpush1.bf16.msra.mxu0 %v11581_v18  ;;  %647 = vmatprep.subr.bf16.mxu1 %v18143_v0  ;;  %v1169_v44 = vrot.slane %v1155_v34, %v11630_v31 }
  0x18   :  { %606 = vmatprep.subr.bf16.mxu0 %v11587_v19 }
  0x1a   :  { %648 = vmatpush1.bf16.msra.mxu1 %v11593_v23 }
  0x1b   :  { %607 = vmatpush1.bf16.msra.mxu0 %v11600_v24  ;;  %649 = vmatprep.subr.bf16.mxu1 %v18143_v0 }
  0x1c   :  { %608 = vmatprep.subr.bf16.mxu0 %v11606_v25 }
  0x1e   :  { %650 = vmatpush1.bf16.msra.mxu1 %v11614_v28 }
  0x1f   :  { %609 = vmatpush1.bf16.msra.mxu0 %v11621_v29  ;;  %651 = vmatprep.subr.bf16.mxu1 %v18143_v0 }
  0x20   :  { %610 = vmatprep.subr.bf16.mxu0 %v11627_v30 }
  0x22   :  { %652 = vmatpush1.bf16.msra.mxu1 %v11639_v33 }
  0x23   :  { %611 = vmatpush1.bf16.msra.mxu0 %v11646_v35  ;;  %653 = vmatprep.subr.bf16.mxu1 %v18143_v0 }
  0x24   :  { %612 = vmatprep.subr.bf16.mxu0 %v11652_v36 }
  0x26   :  { %654 = vmatpush1.bf16.msra.mxu1 %v11659_v38 }
  0x27   :  { %613 = vmatpush1.bf16.msra.mxu0 %v11667_v39  ;;  %655 = vmatprep.subr.bf16.mxu1 %v18143_v0 }
  0x28   :  { %614 = vmatprep.subr.bf16.mxu0 %v11673_v40 }
  0x2a   :  { %656 = vmatpush1.bf16.msra.mxu1 %v11680_v41 }
  0x2b   :  { %615 = vmatpush1.bf16.msra.mxu0 %v11687_v42  ;;  %657 = vmatprep.subr.bf16.mxu1 %v18143_v0 }
  0x2c   :  { %616 = vmatprep.subr.bf16.mxu0 %v11693_v43 }
  0x2e   :  { %658 = vmatpush1.bf16.msra.mxu1 %v11702_v45 }
  0x2f   :  { %617 = vmatpush1.bf16.msra.mxu0 %v11709_v46  ;;  %659 = vmatprep.subr.bf16.mxu1 %v18143_v0 }
  0x30   :  { %8695 = vmatprep.subr.msk.bf16.mxu0 %vm584_vm1, %v11715_v48 }
  0x32   :  { %660 = vmatpush1.bf16.msra.mxu1 %v11726_v51 }
  0x33   :  { %619 = vmatpush1.bf16.msra.mxu0 %v11731_v52  ;;  %751 = vmatprep.subr.bf16.mxu1 %v18143_v0 }
  0x34   :  { %710 = vmatprep.subr.bf16.mxu0 %v11476_v1 }
  0x35   :  { %668 = vmatmul.mubr.bf16.vlgmr.msra.gmra.mrb[0].mxu1 %v371_v54 }
  0x36   :  { %627 = vmatmul.mubr.bf16.vlgmr.msra.gmra.mrb[0].mxu0 %v371_v54  ;;  %752 = vmatpush1.bf16.msra.mxu1 %v11481_v2 }
  0x37   :  { %711 = vmatpush1.bf16.msra.mxu0 %v11487_v3  ;;  %753 = vmatprep.subr.bf16.mxu1 %v18143_v0 }
  0x38   :  { %712 = vmatprep.subr.bf16.mxu0 %v11493_v4  ;;  %8701 = vmatprep.mubr.msk.bf16.mxu0 %vm580_vm0, %v705_v55 }
  0x39   :  { %8702 = vmatprep.mubr.msk.bf16.mxu1 %vm580_vm0, %v705_v55 }
  0x3a   :  { %754 = vmatpush1.bf16.msra.mxu1 %v11500_v5 }
  0x3b   :  { %713 = vmatpush1.bf16.msra.mxu0 %v11505_v6  ;;  %755 = vmatprep.subr.bf16.mxu1 %v18143_v0 }
  0x3c   :  { %714 = vmatprep.subr.bf16.mxu0 %v11511_v7 }
  0x3e   :  { %756 = vmatpush1.bf16.msra.mxu1 %v11517_v8 }
  0x3f   :  { %715 = vmatpush1.bf16.msra.mxu0 %v11524_v9  ;;  %757 = vmatprep.subr.bf16.mxu1 %v18143_v0 }
  0x40   :  { %716 = vmatprep.subr.bf16.mxu0 %v11530_v10 }
  0x42   :  { %758 = vmatpush1.bf16.msra.mxu1 %v11536_v11 }
  0x43   :  { %717 = vmatpush1.bf16.msra.mxu0 %v11543_v12  ;;  %759 = vmatprep.subr.bf16.mxu1 %v18143_v0 }
  0x44   :  { %718 = vmatprep.subr.bf16.mxu0 %v11549_v13 }
  0x46   :  { %760 = vmatpush1.bf16.msra.mxu1 %v11555_v14 }
  0x47   :  { %719 = vmatpush1.bf16.msra.mxu0 %v11562_v15  ;;  %761 = vmatprep.subr.bf16.mxu1 %v18143_v0 }
  0x48   :  { %720 = vmatprep.subr.bf16.mxu0 %v11568_v16 }
  0x4a   :  { %762 = vmatpush1.bf16.msra.mxu1 %v11574_v17 }
  0x4b   :  { %721 = vmatpush1.bf16.msra.mxu0 %v11581_v18  ;;  %763 = vmatprep.subr.bf16.mxu1 %v18143_v0 }
  0x4c   :  { %722 = vmatprep.subr.bf16.mxu0 %v11587_v19 }
  0x4e   :  { %764 = vmatpush1.bf16.msra.mxu1 %v11593_v23 }
  0x4f   :  { %723 = vmatpush1.bf16.msra.mxu0 %v11600_v24  ;;  %765 = vmatprep.subr.bf16.mxu1 %v18143_v0 }
  0x50   :  { %724 = vmatprep.subr.bf16.mxu0 %v11606_v25 }
  0x52   :  { %766 = vmatpush1.bf16.msra.mxu1 %v11614_v28 }
  0x53   :  { %725 = vmatpush1.bf16.msra.mxu0 %v11621_v29  ;;  %767 = vmatprep.subr.bf16.mxu1 %v18143_v0 }
  0x54   :  { %726 = vmatprep.subr.bf16.mxu0 %v11627_v30 }
  0x56   :  { %768 = vmatpush1.bf16.msra.mxu1 %v11639_v33 }
  0x57   :  { %727 = vmatpush1.bf16.msra.mxu0 %v11646_v35  ;;  %769 = vmatprep.subr.bf16.mxu1 %v18143_v0 }
  0x58   :  { %728 = vmatprep.subr.bf16.mxu0 %v11652_v36 }
  0x5a   :  { %770 = vmatpush1.bf16.msra.mxu1 %v11659_v38 }
  0x5b   :  { %729 = vmatpush1.bf16.msra.mxu0 %v11667_v39  ;;  %771 = vmatprep.subr.bf16.mxu1 %v18143_v0 }
  0x5c   :  { %730 = vmatprep.subr.bf16.mxu0 %v11673_v40 }
  0x5e   :  { %772 = vmatpush1.bf16.msra.mxu1 %v11680_v41 }
  0x5f   :  { %731 = vmatpush1.bf16.msra.mxu0 %v11687_v42  ;;  %773 = vmatprep.subr.bf16.mxu1 %v18143_v0 }
  0x60   :  { %732 = vmatprep.subr.bf16.mxu0 %v11693_v43 }
  0x62   :  { %774 = vmatpush1.bf16.msra.mxu1 %v11702_v45 }
  0x63   :  { %733 = vmatpush1.bf16.msra.mxu0 %v11709_v46  ;;  %775 = vmatprep.subr.bf16.mxu1 %v18143_v0 }
  0x64   :  { %8700 = vmatprep.subr.msk.bf16.mxu0 %vm584_vm1, %v11715_v48 }
  0x66   :  { %776 = vmatpush1.bf16.msra.mxu1 %v11726_v51 }
  0x67   :  { %735 = vmatpush1.bf16.msra.mxu0 %v11731_v52  ;;  %867 = vmatprep.subr.bf16.mxu1 %v18143_v0 }
  0x68   :  { %826 = vmatprep.subr.bf16.mxu0 %v11476_v1 }
  0x69   :  { %784 = vmatmul.mubr.bf16.vlgmr.msra.gmra.mrb[4].mxu1 %v698_v58 }
  0x6a   :  { %743 = vmatmul.mubr.bf16.vlgmr.msra.gmra.mrb[4].mxu0 %v698_v58  ;;  %868 = vmatpush1.bf16.msra.mxu1 %v11481_v2  ;;  %v12056_v58 = vld.sshfl [vmem:[%s18132_s0 + $0xc] sm:$0x11 pattern:$0x75316420] }
  0x6b   :  { %827 = vmatpush1.bf16.msra.mxu0 %v11487_v3  ;;  %869 = vmatprep.subr.bf16.mxu1 %v18143_v0 }
  0x6c   :  { %828 = vmatprep.subr.bf16.mxu0 %v11493_v4  ;;  %8706 = vmatprep.mubr.msk.bf16.mxu0 %vm580_vm0, %v821_v59 }
  0x6d   :  { %8707 = vmatprep.mubr.msk.bf16.mxu1 %vm580_vm0, %v821_v59  ;;  %v1271_v59 = vcombine.high %v12056_v58, %v12056_v58 }
  0x6e   :  { %870 = vmatpush1.bf16.msra.mxu1 %v11500_v5 }
  0x6f   :  { %829 = vmatpush1.bf16.msra.mxu0 %v11505_v6  ;;  %871 = vmatprep.subr.bf16.mxu1 %v18143_v0  ;;  %v1285_v61 = vrot.slane %v1271_v59, %v11630_v31  ;;  %v12216_v59 = vld [vmem:[%s18131_s2 + $0x50] ss:$12 sps:$4 sm:$0xff]  }
  0x70   :  { %830 = vmatprep.subr.bf16.mxu0 %v11511_v7 }
  0x72   :  { %872 = vmatpush1.bf16.msra.mxu1 %v11517_v8 }
  0x73   :  { %831 = vmatpush1.bf16.msra.mxu0 %v11524_v9  ;;  %873 = vmatprep.subr.bf16.mxu1 %v18143_v0 }
  0x74   :  { %832 = vmatprep.subr.bf16.mxu0 %v11530_v10 }
  0x76   :  { %874 = vmatpush1.bf16.msra.mxu1 %v11536_v11 }
  0x77   :  { %833 = vmatpush1.bf16.msra.mxu0 %v11543_v12  ;;  %875 = vmatprep.subr.bf16.mxu1 %v18143_v0 }
  0x78   :  { %834 = vmatprep.subr.bf16.mxu0 %v11549_v13 }
  0x7a   :  { %876 = vmatpush1.bf16.msra.mxu1 %v11555_v14 }
  0x7b   :  { %835 = vmatpush1.bf16.msra.mxu0 %v11562_v15  ;;  %877 = vmatprep.subr.bf16.mxu1 %v18143_v0 }
  0x7c   :  { %836 = vmatprep.subr.bf16.mxu0 %v11568_v16 }
  0x7e   :  { %878 = vmatpush1.bf16.msra.mxu1 %v11574_v17 }
  0x7f   :  { %837 = vmatpush1.bf16.msra.mxu0 %v11581_v18  ;;  %879 = vmatprep.subr.bf16.mxu1 %v18143_v0 }
  0x80   :  { %838 = vmatprep.subr.bf16.mxu0 %v11587_v19 }
  0x82   :  { %880 = vmatpush1.bf16.msra.mxu1 %v11593_v23 }
  0x83   :  { %839 = vmatpush1.bf16.msra.mxu0 %v11600_v24  ;;  %881 = vmatprep.subr.bf16.mxu1 %v18143_v0 }
  0x84   :  { %840 = vmatprep.subr.bf16.mxu0 %v11606_v25 }
  0x86   :  { %882 = vmatpush1.bf16.msra.mxu1 %v11614_v28 }
  0x87   :  { %841 = vmatpush1.bf16.msra.mxu0 %v11621_v29  ;;  %883 = vmatprep.subr.bf16.mxu1 %v18143_v0 }
  0x88   :  { %842 = vmatprep.subr.bf16.mxu0 %v11627_v30 }
  0x8a   :  { %884 = vmatpush1.bf16.msra.mxu1 %v11639_v33 }
  0x8b   :  { %843 = vmatpush1.bf16.msra.mxu0 %v11646_v35  ;;  %885 = vmatprep.subr.bf16.mxu1 %v18143_v0 }
  0x8c   :  { %844 = vmatprep.subr.bf16.mxu0 %v11652_v36 }
  0x8e   :  { %886 = vmatpush1.bf16.msra.mxu1 %v11659_v38 }
  0x8f   :  { %845 = vmatpush1.bf16.msra.mxu0 %v11667_v39  ;;  %887 = vmatprep.subr.bf16.mxu1 %v18143_v0 }
  0x90   :  { %846 = vmatprep.subr.bf16.mxu0 %v11673_v40 }
  0x92   :  { %888 = vmatpush1.bf16.msra.mxu1 %v11680_v41 }
  0x93   :  { %847 = vmatpush1.bf16.msra.mxu0 %v11687_v42  ;;  %889 = vmatprep.subr.bf16.mxu1 %v18143_v0 }
  0x94   :  { %848 = vmatprep.subr.bf16.mxu0 %v11693_v43 }
  0x96   :  { %890 = vmatpush1.bf16.msra.mxu1 %v11702_v45 }
  0x97   :  { %849 = vmatpush1.bf16.msra.mxu0 %v11709_v46  ;;  %891 = vmatprep.subr.bf16.mxu1 %v18143_v0 }
  0x98   :  { %8705 = vmatprep.subr.msk.bf16.mxu0 %vm584_vm1, %v11715_v48 }
  0x9a   :  { %892 = vmatpush1.bf16.msra.mxu1 %v11726_v51 }
  0x9b   :  { %851 = vmatpush1.bf16.msra.mxu0 %v11731_v52  ;;  %983 = vmatprep.subr.bf16.mxu1 %v18143_v0 }
  0x9c   :  { %942 = vmatprep.subr.bf16.mxu0 %v11476_v1 }
  0x9d   :  { %900 = vmatmul.mubr.bf16.vlgmr.msra.gmra.mrb[8].mxu1 %v814_v62 }
  0x9e   :  { %859 = vmatmul.mubr.bf16.vlgmr.msra.gmra.mrb[8].mxu0 %v814_v62  ;;  %984 = vmatpush1.bf16.msra.mxu1 %v11481_v2 }
  0x9f   :  { %943 = vmatpush1.bf16.msra.mxu0 %v11487_v3  ;;  %985 = vmatprep.subr.bf16.mxu1 %v18143_v0 }
  0xa0   :  { %944 = vmatprep.subr.bf16.mxu0 %v11493_v4  ;;  %8711 = vmatprep.mubr.msk.bf16.mxu0 %vm580_vm0, %v937_v63 }
  0xa1   :  { %8712 = vmatprep.mubr.msk.bf16.mxu1 %vm580_vm0, %v937_v63 }
  0xa2   :  { %986 = vmatpush1.bf16.msra.mxu1 %v11500_v5 }
  0xa3   :  { %945 = vmatpush1.bf16.msra.mxu0 %v11505_v6  ;;  %987 = vmatprep.subr.bf16.mxu1 %v18143_v0 }
  0xa4   :  { %946 = vmatprep.subr.bf16.mxu0 %v11511_v7 }
  0xa6   :  { %988 = vmatpush1.bf16.msra.mxu1 %v11517_v8 }
  0xa7   :  { %947 = vmatpush1.bf16.msra.mxu0 %v11524_v9  ;;  %989 = vmatprep.subr.bf16.mxu1 %v18143_v0 }
  0xa8   :  { %948 = vmatprep.subr.bf16.mxu0 %v11530_v10 }
  0xaa   :  { %990 = vmatpush1.bf16.msra.mxu1 %v11536_v11 }
  0xab   :  { %949 = vmatpush1.bf16.msra.mxu0 %v11543_v12  ;;  %991 = vmatprep.subr.bf16.mxu1 %v18143_v0 }
  0xac   :  { %950 = vmatprep.subr.bf16.mxu0 %v11549_v13 }
  0xae   :  { %992 = vmatpush1.bf16.msra.mxu1 %v11555_v14 }
  0xaf   :  { %951 = vmatpush1.bf16.msra.mxu0 %v11562_v15  ;;  %993 = vmatprep.subr.bf16.mxu1 %v18143_v0 }
  0xb0   :  { %952 = vmatprep.subr.bf16.mxu0 %v11568_v16 }
  0xb2   :  { %994 = vmatpush1.bf16.msra.mxu1 %v11574_v17 }
  0xb3   :  { %953 = vmatpush1.bf16.msra.mxu0 %v11581_v18  ;;  %995 = vmatprep.subr.bf16.mxu1 %v18143_v0 }
  0xb4   :  { %954 = vmatprep.subr.bf16.mxu0 %v11587_v19 }
  0xb6   :  { %996 = vmatpush1.bf16.msra.mxu1 %v11593_v23 }
  0xb7   :  { %955 = vmatpush1.bf16.msra.mxu0 %v11600_v24  ;;  %997 = vmatprep.subr.bf16.mxu1 %v18143_v0 }
  0xb8   :  { %956 = vmatprep.subr.bf16.mxu0 %v11606_v25 }
  0xba   :  { %998 = vmatpush1.bf16.msra.mxu1 %v11614_v28 }
  0xbb   :  { %957 = vmatpush1.bf16.msra.mxu0 %v11621_v29  ;;  %999 = vmatprep.subr.bf16.mxu1 %v18143_v0 }
  0xbc   :  { %958 = vmatprep.subr.bf16.mxu0 %v11627_v30 }
  0xbe   :  { %1000 = vmatpush1.bf16.msra.mxu1 %v11639_v33 }
  0xbf   :  { %959 = vmatpush1.bf16.msra.mxu0 %v11646_v35  ;;  %1001 = vmatprep.subr.bf16.mxu1 %v18143_v0 }
  0xc0   :  { %960 = vmatprep.subr.bf16.mxu0 %v11652_v36 }
  0xc2   :  { %1002 = vmatpush1.bf16.msra.mxu1 %v11659_v38 }
  0xc3   :  { %961 = vmatpush1.bf16.msra.mxu0 %v11667_v39  ;;  %1003 = vmatprep.subr.bf16.mxu1 %v18143_v0 }
  0xc4   :  { %962 = vmatprep.subr.bf16.mxu0 %v11673_v40 }
  0xc6   :  { %1004 = vmatpush1.bf16.msra.mxu1 %v11680_v41 }
  0xc7   :  { %963 = vmatpush1.bf16.msra.mxu0 %v11687_v42  ;;  %1005 = vmatprep.subr.bf16.mxu1 %v18143_v0 }
  0xc8   :  { %964 = vmatprep.subr.bf16.mxu0 %v11693_v43 }
  0xca   :  { %1006 = vmatpush1.bf16.msra.mxu1 %v11702_v45 }
  0xcb   :  { %965 = vmatpush1.bf16.msra.mxu0 %v11709_v46  ;;  %1007 = vmatprep.subr.bf16.mxu1 %v18143_v0 }
  0xcc   :  { %8710 = vmatprep.subr.msk.bf16.mxu0 %vm584_vm1, %v11715_v48 }
  0xce   :  { %1008 = vmatpush1.bf16.msra.mxu1 %v11726_v51 }
  0xcf   :  { %967 = vmatpush1.bf16.msra.mxu0 %v11731_v52  ;;  %1099 = vmatprep.subr.bf16.mxu1 %v18143_v0 }
  0xd0   :  { %1058 = vmatprep.subr.bf16.mxu0 %v11476_v1 }
  0xd1   :  { %1016 = vmatmul.mubr.bf16.vlgmr.msra.gmra.mrb[12].mxu1 %v930_v22 }
  0xd2   :  { %975 = vmatmul.mubr.bf16.vlgmr.msra.gmra.mrb[12].mxu0 %v930_v22  ;;  %1100 = vmatpush1.bf16.msra.mxu1 %v11481_v2 }
  0xd3   :  { %1059 = vmatpush1.bf16.msra.mxu0 %v11487_v3  ;;  %1101 = vmatprep.subr.bf16.mxu1 %v18143_v0 }
  0xd4   :  { %1060 = vmatprep.subr.bf16.mxu0 %v11493_v4  ;;  %8716 = vmatprep.mubr.msk.bf16.mxu0 %vm580_vm0, %v1053_v27 }
  0xd5   :  { %8717 = vmatprep.mubr.msk.bf16.mxu1 %vm580_vm0, %v1053_v27 }
  0xd6   :  { %1102 = vmatpush1.bf16.msra.mxu1 %v11500_v5 }
  0xd7   :  { %1061 = vmatpush1.bf16.msra.mxu0 %v11505_v6  ;;  %1103 = vmatprep.subr.bf16.mxu1 %v18143_v0 }
  0xd8   :  { %1062 = vmatprep.subr.bf16.mxu0 %v11511_v7 }
  0xda   :  { %1104 = vmatpush1.bf16.msra.mxu1 %v11517_v8 }
  0xdb   :  { %1063 = vmatpush1.bf16.msra.mxu0 %v11524_v9  ;;  %1105 = vmatprep.subr.bf16.mxu1 %v18143_v0 }
  0xdc   :  { %1064 = vmatprep.subr.bf16.mxu0 %v11530_v10 }
  0xde   :  { %1106 = vmatpush1.bf16.msra.mxu1 %v11536_v11 }
  0xdf   :  { %1065 = vmatpush1.bf16.msra.mxu0 %v11543_v12  ;;  %1107 = vmatprep.subr.bf16.mxu1 %v18143_v0 }
  0xe0   :  { %1066 = vmatprep.subr.bf16.mxu0 %v11549_v13 }
  0xe2   :  { %1108 = vmatpush1.bf16.msra.mxu1 %v11555_v14 }
  0xe3   :  { %1067 = vmatpush1.bf16.msra.mxu0 %v11562_v15  ;;  %1109 = vmatprep.subr.bf16.mxu1 %v18143_v0 }
  0xe4   :  { %1068 = vmatprep.subr.bf16.mxu0 %v11568_v16 }
  0xe6   :  { %1110 = vmatpush1.bf16.msra.mxu1 %v11574_v17 }
  0xe7   :  { %1069 = vmatpush1.bf16.msra.mxu0 %v11581_v18  ;;  %1111 = vmatprep.subr.bf16.mxu1 %v18143_v0 }
  0xe8   :  { %1070 = vmatprep.subr.bf16.mxu0 %v11587_v19 }
  0xea   :  { %1112 = vmatpush1.bf16.msra.mxu1 %v11593_v23 }
  0xeb   :  { %1071 = vmatpush1.bf16.msra.mxu0 %v11600_v24  ;;  %1113 = vmatprep.subr.bf16.mxu1 %v18143_v0 }
  0xec   :  { %1072 = vmatprep.subr.bf16.mxu0 %v11606_v25 }
  0xee   :  { %1114 = vmatpush1.bf16.msra.mxu1 %v11614_v28 }
  0xef   :  { %1073 = vmatpush1.bf16.msra.mxu0 %v11621_v29  ;;  %1115 = vmatprep.subr.bf16.mxu1 %v18143_v0 }
  0xf0   :  { %1074 = vmatprep.subr.bf16.mxu0 %v11627_v30 }
  0xf2   :  { %1116 = vmatpush1.bf16.msra.mxu1 %v11639_v33 }
  0xf3   :  { %1075 = vmatpush1.bf16.msra.mxu0 %v11646_v35  ;;  %1117 = vmatprep.subr.bf16.mxu1 %v18143_v0 }
  0xf4   :  { %1076 = vmatprep.subr.bf16.mxu0 %v11652_v36 }
  0xf6   :  { %1118 = vmatpush1.bf16.msra.mxu1 %v11659_v38 }
  0xf7   :  { %1077 = vmatpush1.bf16.msra.mxu0 %v11667_v39  ;;  %1119 = vmatprep.subr.bf16.mxu1 %v18143_v0 }
  0xf8   :  { %1078 = vmatprep.subr.bf16.mxu0 %v11673_v40 }
  0xfa   :  { %1120 = vmatpush1.bf16.msra.mxu1 %v11680_v41 }
  0xfb   :  { %1079 = vmatpush1.bf16.msra.mxu0 %v11687_v42  ;;  %1121 = vmatprep.subr.bf16.mxu1 %v18143_v0 }
  0xfc   :  { %1080 = vmatprep.subr.bf16.mxu0 %v11693_v43 }
  0xfe   :  { %1122 = vmatpush1.bf16.msra.mxu1 %v11702_v45 }
  0xff   :  { %1081 = vmatpush1.bf16.msra.mxu0 %v11709_v46  ;;  %1123 = vmatprep.subr.bf16.mxu1 %v18143_v0 }
 0x100   :  { %8715 = vmatprep.subr.msk.bf16.mxu0 %vm584_vm1, %v11715_v48 }
 0x102   :  { %1124 = vmatpush1.bf16.msra.mxu1 %v11726_v51 }
 0x103   :  { %1083 = vmatpush1.bf16.msra.mxu0 %v11731_v52  ;;  %1215 = vmatprep.subr.bf16.mxu1 %v18143_v0 }
 0x104   :  { %1174 = vmatprep.subr.bf16.mxu0 %v11476_v1 }
 0x105   :  { %1132 = vmatmul.mubr.bf16.vlgmr.msra.gmra.mrb[16].mxu1 %v1046_v37 }
 0x106   :  { %1091 = vmatmul.mubr.bf16.vlgmr.msra.gmra.mrb[16].mxu0 %v1046_v37  ;;  %1216 = vmatpush1.bf16.msra.mxu1 %v11481_v2 }
 0x107   :  { %1175 = vmatpush1.bf16.msra.mxu0 %v11487_v3  ;;  %1217 = vmatprep.subr.bf16.mxu1 %v18143_v0 }
 0x108   :  { %1176 = vmatprep.subr.bf16.mxu0 %v11493_v4  ;;  %8721 = vmatprep.mubr.msk.bf16.mxu0 %vm580_vm0, %v1169_v44  ;;  %v12006_v47 = vpop.f32.mrb[0].mxu1 }
 0x109   :  { %v12008_v49 = vpop.f32.mrb[0].mxu0  ;;  %8722 = vmatprep.mubr.msk.bf16.mxu1 %vm580_vm0, %v1169_v44  ;;  %v671_v50 = vpop.f32.mrb[1].mxu1  ;;  %v12184_v44 = vld [vmem:[%s18131_s2 + $0x18] ss:$12 sps:$4 sm:$0xff]  }
 0x10a   :  { %v12011_v53 = vpop.f32.mrb[1].mxu0  ;;  %1218 = vmatpush1.bf16.msra.mxu1 %v11500_v5  ;;  %v672_v54 = vpop.f32.mrb[2].mxu1 }
 0x10b   :  { %v632_v55 = vpop.f32.mrb[2].mxu0  ;;  %1177 = vmatpush1.bf16.msra.mxu0 %v11505_v6  ;;  %1219 = vmatprep.subr.bf16.mxu1 %v18143_v0  ;;  %v673_v56 = vpop.f32.mrb[3].mxu1 }
 0x10c   :  { %v633_v57 = vpop.f32.mrb[3].mxu0  ;;  %1178 = vmatprep.subr.bf16.mxu0 %v11511_v7  ;;  %v12191_v55 = vld [vmem:[%s18131_s2 + $0x34] ss:$12 sps:$4 sm:$0xff]   ;;  %v12197_v56 = vld [vmem:[%s18131_s2 + $0x38] ss:$12 sps:$4 sm:$0xff]  }
 0x10d   :  { %v12203_v57 = vld [vmem:[%s18131_s2 + $0x30] ss:$12 sps:$4 sm:$0xff]  }
 0x10e   :  { %1220 = vmatpush1.bf16.msra.mxu1 %v11517_v8 }
 0x10f   :  { %1179 = vmatpush1.bf16.msra.mxu0 %v11524_v9  ;;  %1221 = vmatprep.subr.bf16.mxu1 %v18143_v0 }
 0x110   :  { %1180 = vmatprep.subr.bf16.mxu0 %v11530_v10 }
 0x112   :  { %1222 = vmatpush1.bf16.msra.mxu1 %v11536_v11 }
 0x113   :  { %1181 = vmatpush1.bf16.msra.mxu0 %v11543_v12  ;;  %1223 = vmatprep.subr.bf16.mxu1 %v18143_v0 }
 0x114   :  { %1182 = vmatprep.subr.bf16.mxu0 %v11549_v13 }
 0x116   :  { %1224 = vmatpush1.bf16.msra.mxu1 %v11555_v14 }
 0x117   :  { %1183 = vmatpush1.bf16.msra.mxu0 %v11562_v15  ;;  %1225 = vmatprep.subr.bf16.mxu1 %v18143_v0 }
 0x118   :  { %1184 = vmatprep.subr.bf16.mxu0 %v11568_v16 }
 0x11a   :  { %1226 = vmatpush1.bf16.msra.mxu1 %v11574_v17 }
 0x11b   :  { %1185 = vmatpush1.bf16.msra.mxu0 %v11581_v18  ;;  %1227 = vmatprep.subr.bf16.mxu1 %v18143_v0 }
 0x11c   :  { %1186 = vmatprep.subr.bf16.mxu0 %v11587_v19 }
 0x11e   :  { %1228 = vmatpush1.bf16.msra.mxu1 %v11593_v23 }
 0x11f   :  { %1187 = vmatpush1.bf16.msra.mxu0 %v11600_v24  ;;  %1229 = vmatprep.subr.bf16.mxu1 %v18143_v0 }
 0x120   :  { %1188 = vmatprep.subr.bf16.mxu0 %v11606_v25 }
 0x122   :  { %1230 = vmatpush1.bf16.msra.mxu1 %v11614_v28 }
 0x123   :  { %1189 = vmatpush1.bf16.msra.mxu0 %v11621_v29  ;;  %1231 = vmatprep.subr.bf16.mxu1 %v18143_v0 }
 0x124   :  { %1190 = vmatprep.subr.bf16.mxu0 %v11627_v30 }
 0x126   :  { %1232 = vmatpush1.bf16.msra.mxu1 %v11639_v33 }
 0x127   :  { %1191 = vmatpush1.bf16.msra.mxu0 %v11646_v35  ;;  %1233 = vmatprep.subr.bf16.mxu1 %v18143_v0 }
 0x128   :  { %1192 = vmatprep.subr.bf16.mxu0 %v11652_v36 }
 0x12a   :  { %1234 = vmatpush1.bf16.msra.mxu1 %v11659_v38 }
 0x12b   :  { %1193 = vmatpush1.bf16.msra.mxu0 %v11667_v39  ;;  %1235 = vmatprep.subr.bf16.mxu1 %v18143_v0 }
 0x12c   :  { %1194 = vmatprep.subr.bf16.mxu0 %v11673_v40 }
 0x12e   :  { %1236 = vmatpush1.bf16.msra.mxu1 %v11680_v41 }
 0x12f   :  { %1195 = vmatpush1.bf16.msra.mxu0 %v11687_v42  ;;  %1237 = vmatprep.subr.bf16.mxu1 %v18143_v0 }
 0x130   :  { %1196 = vmatprep.subr.bf16.mxu0 %v11693_v43 }
 0x132   :  { %1238 = vmatpush1.bf16.msra.mxu1 %v11702_v45 }
 0x133   :  { %1197 = vmatpush1.bf16.msra.mxu0 %v11709_v46  ;;  %1239 = vmatprep.subr.bf16.mxu1 %v18143_v0 }
 0x134   :  { %8720 = vmatprep.subr.msk.bf16.mxu0 %vm584_vm1, %v11715_v48 }
 0x136   :  { %1240 = vmatpush1.bf16.msra.mxu1 %v11726_v51 }
 0x137   :  { %1199 = vmatpush1.bf16.msra.mxu0 %v11731_v52  ;;  %1331 = vmatprep.subr.bf16.mxu1 %v18143_v0 }
 0x138   :  { %1290 = vmatprep.subr.bf16.mxu0 %v11476_v1 }
 0x139   :  { %1248 = vmatmul.mubr.bf16.vlgmr.msra.gmra.mrb[20].mxu1 %v1162_v60 }
 0x13a   :  { %1207 = vmatmul.mubr.bf16.vlgmr.msra.gmra.mrb[20].mxu0 %v1162_v60  ;;  %1332 = vmatpush1.bf16.msra.mxu1 %v11481_v2  ;;  %v12222_v60 = vld [vmem:[%s18131_s2 + $0x48] ss:$12 sps:$4 sm:$0xff]  }
 0x13b   :  { %1291 = vmatpush1.bf16.msra.mxu0 %v11487_v3  ;;  %1333 = vmatprep.subr.bf16.mxu1 %v18143_v0 }
 0x13c   :  { %1292 = vmatprep.subr.bf16.mxu0 %v11493_v4  ;;  %8726 = vmatprep.mubr.msk.bf16.mxu0 %vm580_vm0, %v1285_v61  ;;  %v12077_v62 = vpop.f32.mrb[4].mxu1 }
 0x13d   :  { %v12079_v63 = vpop.f32.mrb[4].mxu0  ;;  %8727 = vmatprep.mubr.msk.bf16.mxu1 %vm580_vm0, %v1285_v61  ;;  %v787_v1 = vpop.f32.mrb[5].mxu1  ;;  %v12229_v61 = vld [vmem:[%s18131_s2 + $0x64] ss:$12 sps:$4 sm:$0xff]  }
 0x13e   :  { %v12082_v20 = vpop.f32.mrb[5].mxu0  ;;  %1334 = vmatpush1.bf16.msra.mxu1 %v11500_v5  ;;  %v788_v2 = vpop.f32.mrb[6].mxu1  ;;  %v12127_v5 = vld.sshfl [vmem:[%s18132_s0 + $0xe] sm:$0x11 pattern:$0x75316420] }
 0x13f   :  { %v748_v21 = vpop.f32.mrb[6].mxu0  ;;  %1293 = vmatpush1.bf16.msra.mxu0 %v11505_v6  ;;  %1335 = vmatprep.subr.bf16.mxu1 %v18143_v0  ;;  %v789_v3 = vpop.f32.mrb[7].mxu1  ;;  %v1387_v6 = vcombine.high %v12127_v5, %v12127_v5  ;;  %v12235_v1 = vld [vmem:[%s18131_s2 + $0x68] ss:$12 sps:$4 sm:$0xff]   ;;  %v12376_v2 = vld [vmem:[%s18131_s2 + $0xc4] ss:$12 sps:$4 sm:$0xff]  }
 0x140   :  { %v749_v4 = vpop.f32.mrb[7].mxu0  ;;  %1294 = vmatprep.subr.bf16.mxu0 %v11511_v7  ;;  %v1278_v7 = vrot.slane %v12056_v58, %v11630_v31  ;;  %v12210_v58 = vld [vmem:[%s18131_s2 + $0x4c] ss:$12 sps:$4 sm:$0xff]   ;;  %v12382_v21 = vld [vmem:[%s18131_s2 + $0xc8] ss:$12 sps:$4 sm:$0xff]  }
 0x141   :  { %v12388_v3 = vld [vmem:[%s18131_s2 + $0xc0] ss:$12 sps:$4 sm:$0xff]   ;;  %v12395_v4 = vld [vmem:[%s18131_s2 + $0xdc] ss:$12 sps:$4 sm:$0xff]  }
 0x142   :  { %1336 = vmatpush1.bf16.msra.mxu1 %v11517_v8  ;;  %v12144_v8 = vld [vmem:[%s18131_s2 + $0x4] ss:$12 sps:$4 sm:$0xff]  }
 0x143   :  { %1295 = vmatpush1.bf16.msra.mxu0 %v11524_v9  ;;  %1337 = vmatprep.subr.bf16.mxu1 %v18143_v0  ;;  %v1401_v9 = vrot.slane %v1387_v6, %v11630_v31  ;;  %v12407_v6 = vld [vmem:[%s18131_s2 + $0xd8] ss:$12 sps:$4 sm:$0xff]  }
 0x144   :  { %1296 = vmatprep.subr.bf16.mxu0 %v11530_v10  ;;  %v12151_v10 = vld [vmem:[%s18131_s2 + $0x8] ss:$12 sps:$4 sm:$0xff]  }
 0x146   :  { %1338 = vmatpush1.bf16.msra.mxu1 %v11536_v11  ;;  %v12157_v11 = vld [vmem:[%s18131_s2] ss:$12 sps:$4 sm:$0xff]  }
 0x147   :  { %1297 = vmatpush1.bf16.msra.mxu0 %v11543_v12  ;;  %1339 = vmatprep.subr.bf16.mxu1 %v18143_v0  ;;  %v12164_v12 = vld [vmem:[%s18131_s2 + $0x1c] ss:$12 sps:$4 sm:$0xff]  }
 0x148   :  { %1298 = vmatprep.subr.bf16.mxu0 %v11549_v13 }
 0x14a   :  { %1340 = vmatpush1.bf16.msra.mxu1 %v11555_v14 }
 0x14b   :  { %1299 = vmatpush1.bf16.msra.mxu0 %v11562_v15  ;;  %1341 = vmatprep.subr.bf16.mxu1 %v18143_v0 }
 0x14c   :  { %1300 = vmatprep.subr.bf16.mxu0 %v11568_v16 }
 0x14e   :  { %1342 = vmatpush1.bf16.msra.mxu1 %v11574_v17 }
 0x14f   :  { %1301 = vmatpush1.bf16.msra.mxu0 %v11581_v18  ;;  %1343 = vmatprep.subr.bf16.mxu1 %v18143_v0 }
 0x150   :  { %1302 = vmatprep.subr.bf16.mxu0 %v11587_v19 }
 0x152   :  { %1344 = vmatpush1.bf16.msra.mxu1 %v11593_v23 }
 0x153   :  { %1303 = vmatpush1.bf16.msra.mxu0 %v11600_v24  ;;  %1345 = vmatprep.subr.bf16.mxu1 %v18143_v0 }
 0x154   :  { %1304 = vmatprep.subr.bf16.mxu0 %v11606_v25 }
 0x156   :  { %1346 = vmatpush1.bf16.msra.mxu1 %v11614_v28 }
 0x157   :  { %1305 = vmatpush1.bf16.msra.mxu0 %v11621_v29  ;;  %1347 = vmatprep.subr.bf16.mxu1 %v18143_v0 }
 0x158   :  { %1306 = vmatprep.subr.bf16.mxu0 %v11627_v30 }
 0x15a   :  { %1348 = vmatpush1.bf16.msra.mxu1 %v11639_v33 }
 0x15b   :  { %1307 = vmatpush1.bf16.msra.mxu0 %v11646_v35  ;;  %1349 = vmatprep.subr.bf16.mxu1 %v18143_v0 }
 0x15c   :  { %1308 = vmatprep.subr.bf16.mxu0 %v11652_v36 }
 0x15e   :  { %1350 = vmatpush1.bf16.msra.mxu1 %v11659_v38 }
 0x15f   :  { %1309 = vmatpush1.bf16.msra.mxu0 %v11667_v39  ;;  %1351 = vmatprep.subr.bf16.mxu1 %v18143_v0 }
 0x160   :  { %1310 = vmatprep.subr.bf16.mxu0 %v11673_v40 }
 0x162   :  { %1352 = vmatpush1.bf16.msra.mxu1 %v11680_v41 }
 0x163   :  { %1311 = vmatpush1.bf16.msra.mxu0 %v11687_v42  ;;  %1353 = vmatprep.subr.bf16.mxu1 %v18143_v0 }
 0x164   :  { %1312 = vmatprep.subr.bf16.mxu0 %v11693_v43 }
 0x166   :  { %1354 = vmatpush1.bf16.msra.mxu1 %v11702_v45 }
 0x167   :  { %1313 = vmatpush1.bf16.msra.mxu0 %v11709_v46  ;;  %1355 = vmatprep.subr.bf16.mxu1 %v18143_v0 }
 0x168   :  { %8725 = vmatprep.subr.msk.bf16.mxu0 %vm584_vm1, %v11715_v48 }
 0x16a   :  { %1356 = vmatpush1.bf16.msra.mxu1 %v11726_v51 }
 0x16b   :  { %1315 = vmatpush1.bf16.msra.mxu0 %v11731_v52  ;;  %1447 = vmatprep.subr.bf16.mxu1 %v18143_v0 }
 0x16c   :  { %1406 = vmatprep.subr.bf16.mxu0 %v12144_v8 }
 0x16d   :  { %1364 = vmatmul.mubr.bf16.vlgmr.msra.gmra.mrb[24].mxu1 %v1278_v7 }
 0x16e   :  { %1323 = vmatmul.mubr.bf16.vlgmr.msra.gmra.mrb[24].mxu0 %v1278_v7  ;;  %1448 = vmatpush1.bf16.msra.mxu1 %v12151_v10  ;;  %v12414_v7 = vld [vmem:[%s18131_s2 + $0xf4] ss:$12 sps:$4 sm:$0xff]  }
 0x16f   :  { %1407 = vmatpush1.bf16.msra.mxu0 %v12157_v11  ;;  %1449 = vmatprep.subr.bf16.mxu1 %v18143_v0 }
 0x170   :  { %1408 = vmatprep.subr.bf16.mxu0 %v12164_v12  ;;  %8731 = vmatprep.mubr.msk.bf16.mxu0 %vm580_vm0, %v1401_v9  ;;  %v12168_v13 = vpop.f32.mrb[8].mxu1 }
 0x171   :  { %v12170_v14 = vpop.f32.mrb[8].mxu0  ;;  %8732 = vmatprep.mubr.msk.bf16.mxu1 %vm580_vm0, %v1401_v9  ;;  %v903_v22 = vpop.f32.mrb[9].mxu1  ;;  %v12420_v9 = vld [vmem:[%s18131_s2 + $0xf8] ss:$12 sps:$4 sm:$0xff]  }
 0x172   :  { %v12173_v27 = vpop.f32.mrb[9].mxu0  ;;  %1450 = vmatpush1.bf16.msra.mxu1 %v12178_v32  ;;  %v904_v34 = vpop.f32.mrb[10].mxu1  ;;  %v12426_v22 = vld [vmem:[%s18131_s2 + $0xf0] ss:$12 sps:$4 sm:$0xff]  }
 0x173   :  { %v864_v37 = vpop.f32.mrb[10].mxu0  ;;  %1409 = vmatpush1.bf16.msra.mxu0 %v12184_v44  ;;  %1451 = vmatprep.subr.bf16.mxu1 %v18143_v0  ;;  %v905_v50 = vpop.f32.mrb[11].mxu1  ;;  %v12433_v34 = vld.sshfl [vmem:[%s18132_s0 + $0x12] sm:$0x11 pattern:$0x75316420] }
 0x174   :  { %v865_v54 = vpop.f32.mrb[11].mxu0  ;;  %1410 = vmatprep.subr.bf16.mxu0 %v12191_v55  ;;  %v12438_v37 = vld [vmem:[%s18131_s2 + $0x10c] ss:$12 sps:$4 sm:$0xff]   ;;  %v12444_v50 = vld [vmem:[%s18131_s2 + $0x110] ss:$12 sps:$4 sm:$0xff]  }
 0x175   :  { %v12450_v54 = vld [vmem:[%s18131_s2 + $0x108] ss:$12 sps:$4 sm:$0xff]  }
 0x176   :  { %1452 = vmatpush1.bf16.msra.mxu1 %v12197_v56 }
 0x177   :  { %1411 = vmatpush1.bf16.msra.mxu0 %v12203_v57  ;;  %1453 = vmatprep.subr.bf16.mxu1 %v18143_v0 }
 0x178   :  { %1412 = vmatprep.subr.bf16.mxu0 %v12210_v58 }
 0x17a   :  { %1454 = vmatpush1.bf16.msra.mxu1 %v12216_v59 }
 0x17b   :  { %1413 = vmatpush1.bf16.msra.mxu0 %v12222_v60  ;;  %1455 = vmatprep.subr.bf16.mxu1 %v18143_v0 }
 0x17c   :  { %1414 = vmatprep.subr.bf16.mxu0 %v12229_v61 }
 0x17e   :  { %1456 = vmatpush1.bf16.msra.mxu1 %v12235_v1 }
 0x17f   :  { %1415 = vmatpush1.bf16.msra.mxu0 %v11562_v15  ;;  %1457 = vmatprep.subr.bf16.mxu1 %v18143_v0  ;;  %v12268_v15 = vld.sshfl [vmem:[%s18132_s0 + $0x10] sm:$0x11 pattern:$0x75316420] }
 0x180   :  { %1416 = vmatprep.subr.bf16.mxu0 %v11568_v16  ;;  %v1503_v16 = vcombine.high %v12268_v15, %v12268_v15 }
 0x182   :  { %1458 = vmatpush1.bf16.msra.mxu1 %v11574_v17  ;;  %v1394_v17 = vrot.slane %v12127_v5, %v11630_v31  ;;  %v12401_v5 = vld [vmem:[%s18131_s2 + $0xe0] ss:$12 sps:$4 sm:$0xff]  }
 0x183   :  { %1417 = vmatpush1.bf16.msra.mxu0 %v11581_v18  ;;  %1459 = vmatprep.subr.bf16.mxu1 %v18143_v0  ;;  %v1517_v18 = vrot.slane %v1503_v16, %v11630_v31  ;;  %v1619_v16 = vcombine.high %v12433_v34, %v12433_v34 }
 0x184   :  { %1418 = vmatprep.subr.bf16.mxu0 %v11587_v19 }
 0x186   :  { %1460 = vmatpush1.bf16.msra.mxu1 %v11593_v23 }
 0x187   :  { %1419 = vmatpush1.bf16.msra.mxu0 %v11600_v24  ;;  %1461 = vmatprep.subr.bf16.mxu1 %v18143_v0 }
 0x188   :  { %1420 = vmatprep.subr.bf16.mxu0 %v11606_v25 }
 0x18a   :  { %1462 = vmatpush1.bf16.msra.mxu1 %v11614_v28 }
 0x18b   :  { %1421 = vmatpush1.bf16.msra.mxu0 %v11621_v29  ;;  %1463 = vmatprep.subr.bf16.mxu1 %v18143_v0 }
 0x18c   :  { %1422 = vmatprep.subr.bf16.mxu0 %v11627_v30 }
 0x18e   :  { %1464 = vmatpush1.bf16.msra.mxu1 %v11639_v33 }
 0x18f   :  { %1423 = vmatpush1.bf16.msra.mxu0 %v11646_v35  ;;  %1465 = vmatprep.subr.bf16.mxu1 %v18143_v0  ;;  %v12312_v35 = vld [vmem:[%s18131_s2 + $0x60] ss:$12 sps:$4 sm:$0xff]  }
 0x190   :  { %1424 = vmatprep.subr.bf16.mxu0 %v11652_v36  ;;  %v12319_v36 = vld [vmem:[%s18131_s2 + $0x7c] ss:$12 sps:$4 sm:$0xff]  }
 0x192   :  { %1466 = vmatpush1.bf16.msra.mxu1 %v11659_v38  ;;  %v12325_v38 = vld [vmem:[%s18131_s2 + $0x80] ss:$12 sps:$4 sm:$0xff]  }
 0x193   :  { %1425 = vmatpush1.bf16.msra.mxu0 %v11667_v39  ;;  %1467 = vmatprep.subr.bf16.mxu1 %v18143_v0  ;;  %v12331_v39 = vld [vmem:[%s18131_s2 + $0x78] ss:$12 sps:$4 sm:$0xff]  }
 0x194   :  { %1426 = vmatprep.subr.bf16.mxu0 %v11673_v40  ;;  %v12338_v40 = vld [vmem:[%s18131_s2 + $0x94] ss:$12 sps:$4 sm:$0xff]  }
 0x196   :  { %1468 = vmatpush1.bf16.msra.mxu1 %v11680_v41  ;;  %v12344_v41 = vld [vmem:[%s18131_s2 + $0x98] ss:$12 sps:$4 sm:$0xff]  }
 0x197   :  { %1427 = vmatpush1.bf16.msra.mxu0 %v11687_v42  ;;  %1469 = vmatprep.subr.bf16.mxu1 %v18143_v0  ;;  %v12350_v42 = vld [vmem:[%s18131_s2 + $0x90] ss:$12 sps:$4 sm:$0xff]  }
 0x198   :  { %1428 = vmatprep.subr.bf16.mxu0 %v11693_v43  ;;  %v12357_v43 = vld [vmem:[%s18131_s2 + $0xac] ss:$12 sps:$4 sm:$0xff]  }
 0x19a   :  { %1470 = vmatpush1.bf16.msra.mxu1 %v11702_v45  ;;  %v12363_v45 = vld [vmem:[%s18131_s2 + $0xb0] ss:$12 sps:$4 sm:$0xff]  }
 0x19b   :  { %1429 = vmatpush1.bf16.msra.mxu0 %v11709_v46  ;;  %1471 = vmatprep.subr.bf16.mxu1 %v18143_v0  ;;  %v12369_v46 = vld [vmem:[%s18131_s2 + $0xa8] ss:$12 sps:$4 sm:$0xff]  }
 0x19c   :  { %8730 = vmatprep.subr.msk.bf16.mxu0 %vm584_vm1, %v11715_v48 }
 0x19e   :  { %1472 = vmatpush1.bf16.msra.mxu1 %v11726_v51 }
 0x19f   :  { %1431 = vmatpush1.bf16.msra.mxu0 %v11731_v52  ;;  %1563 = vmatprep.subr.bf16.mxu1 %v18143_v0 }
 0x1a0   :  { %1522 = vmatprep.subr.bf16.mxu0 %v12144_v8 }
 0x1a1   :  { %1480 = vmatmul.mubr.bf16.vlgmr.msra.gmra.mrb[28].mxu1 %v1394_v17 }
 0x1a2   :  { %1439 = vmatmul.mubr.bf16.vlgmr.msra.gmra.mrb[28].mxu0 %v1394_v17  ;;  %1564 = vmatpush1.bf16.msra.mxu1 %v12151_v10  ;;  %v1510_v17 = vrot.slane %v12268_v15, %v11630_v31 }
 0x1a3   :  { %1523 = vmatpush1.bf16.msra.mxu0 %v12157_v11  ;;  %1565 = vmatprep.subr.bf16.mxu1 %v18143_v0 }
 0x1a4   :  { %1524 = vmatprep.subr.bf16.mxu0 %v12164_v12  ;;  %8736 = vmatprep.mubr.msk.bf16.mxu0 %vm580_vm0, %v1517_v18  ;;  %v12289_v19 = vpop.f32.mrb[12].mxu1 }
 0x1a5   :  { %18738 = vst [vmem:[#allocation4_spill] sm:$0xff] %v12289_v19  ;;  %v12291_v23 = vpop.f32.mrb[12].mxu0  ;;  %8737 = vmatprep.mubr.msk.bf16.mxu1 %vm580_vm0, %v1517_v18  ;;  %v1019_v24 = vpop.f32.mrb[13].mxu1  ;;  %v1633_v18 = vrot.slane %v1619_v16, %v11630_v31  ;;  %v12935_v19 = vld [vmem:[%s18133_s4 + $0x1e8] ss:$12 sps:$4 sm:$0xff]  }
 0x1a6   :  { %18739 = vst [vmem:[#allocation5_spill] sm:$0xff] %v12291_v23  ;;  %v12294_v25 = vpop.f32.mrb[13].mxu0  ;;  %1566 = vmatpush1.bf16.msra.mxu1 %v12178_v32  ;;  %v1020_v28 = vpop.f32.mrb[14].mxu1  ;;  %18775 = vst [vmem:[#allocation40_spill] sm:$0xff] %v12935_v19  ;;  %v12947_v23 = vld [vmem:[%s18133_s4 + $0x2c0] ss:$12 sps:$4 sm:$0xff]  }
 0x1a7   :  { %18740 = vst [vmem:[#allocation6_spill] sm:$0xff] %v12294_v25  ;;  %v980_v29 = vpop.f32.mrb[14].mxu0  ;;  %1525 = vmatpush1.bf16.msra.mxu0 %v12184_v44  ;;  %1567 = vmatprep.subr.bf16.mxu1 %v18143_v0  ;;  %v1021_v30 = vpop.f32.mrb[15].mxu1  ;;  %18776 = vst [vmem:[#allocation41_spill] sm:$0xff] %v12947_v23  ;;  %v12959_v25 = vld [vmem:[%s18133_s4 + $0x200] ss:$12 sps:$4 sm:$0xff]  }
 0x1a8   :  { %v981_v33 = vpop.f32.mrb[15].mxu0  ;;  %1526 = vmatprep.subr.bf16.mxu0 %v12191_v55  ;;  %18777 = vst [vmem:[#allocation42_spill] sm:$0xff] %v12959_v25 }
 0x1aa   :  { %1568 = vmatpush1.bf16.msra.mxu1 %v12197_v56 }
 0x1ab   :  { %1527 = vmatpush1.bf16.msra.mxu0 %v12203_v57  ;;  %1569 = vmatprep.subr.bf16.mxu1 %v18143_v0 }
 0x1ac   :  { %1528 = vmatprep.subr.bf16.mxu0 %v12210_v58 }
 0x1ae   :  { %1570 = vmatpush1.bf16.msra.mxu1 %v12216_v59 }
 0x1af   :  { %1529 = vmatpush1.bf16.msra.mxu0 %v12222_v60  ;;  %1571 = vmatprep.subr.bf16.mxu1 %v18143_v0 }
 0x1b0   :  { %1530 = vmatprep.subr.bf16.mxu0 %v12229_v61 }
 0x1b2   :  { %1572 = vmatpush1.bf16.msra.mxu1 %v12235_v1 }
 0x1b3   :  { %1531 = vmatpush1.bf16.msra.mxu0 %v12312_v35  ;;  %1573 = vmatprep.subr.bf16.mxu1 %v18143_v0 }
 0x1b4   :  { %1532 = vmatprep.subr.bf16.mxu0 %v12319_v36 }
 0x1b6   :  { %1574 = vmatpush1.bf16.msra.mxu1 %v12325_v38 }
 0x1b7   :  { %1533 = vmatpush1.bf16.msra.mxu0 %v12331_v39  ;;  %1575 = vmatprep.subr.bf16.mxu1 %v18143_v0 }
 0x1b8   :  { %1534 = vmatprep.subr.bf16.mxu0 %v12338_v40 }
 0x1ba   :  { %1576 = vmatpush1.bf16.msra.mxu1 %v12344_v41 }
 0x1bb   :  { %1535 = vmatpush1.bf16.msra.mxu0 %v12350_v42  ;;  %1577 = vmatprep.subr.bf16.mxu1 %v18143_v0 }
 0x1bc   :  { %1536 = vmatprep.subr.bf16.mxu0 %v12357_v43 }
 0x1be   :  { %1578 = vmatpush1.bf16.msra.mxu1 %v12363_v45 }
 0x1bf   :  { %1537 = vmatpush1.bf16.msra.mxu0 %v12369_v46  ;;  %1579 = vmatprep.subr.bf16.mxu1 %v18143_v0 }
 0x1c0   :  { %1538 = vmatprep.subr.bf16.mxu0 %v12376_v2 }
 0x1c2   :  { %1580 = vmatpush1.bf16.msra.mxu1 %v12382_v21 }
 0x1c3   :  { %1539 = vmatpush1.bf16.msra.mxu0 %v12388_v3  ;;  %1581 = vmatprep.subr.bf16.mxu1 %v18143_v0 }
 0x1c4   :  { %1540 = vmatprep.subr.bf16.mxu0 %v12395_v4 }
 0x1c6   :  { %1582 = vmatpush1.bf16.msra.mxu1 %v12401_v5 }
 0x1c7   :  { %1541 = vmatpush1.bf16.msra.mxu0 %v12407_v6  ;;  %1583 = vmatprep.subr.bf16.mxu1 %v18143_v0 }
 0x1c8   :  { %1542 = vmatprep.subr.bf16.mxu0 %v12414_v7 }
 0x1ca   :  { %1584 = vmatpush1.bf16.msra.mxu1 %v12420_v9 }
 0x1cb   :  { %1543 = vmatpush1.bf16.msra.mxu0 %v12426_v22  ;;  %1585 = vmatprep.subr.bf16.mxu1 %v18143_v0 }
 0x1cc   :  { %1544 = vmatprep.subr.bf16.mxu0 %v12438_v37 }
 0x1ce   :  { %1586 = vmatpush1.bf16.msra.mxu1 %v12444_v50 }
 0x1cf   :  { %1545 = vmatpush1.bf16.msra.mxu0 %v12450_v54  ;;  %1587 = vmatprep.subr.bf16.mxu1 %v18143_v0 }
 0x1d0   :  { %8735 = vmatprep.subr.msk.bf16.mxu0 %vm584_vm1, %v11715_v48 }
 0x1d2   :  { %1588 = vmatpush1.bf16.msra.mxu1 %v11726_v51 }
 0x1d3   :  { %1547 = vmatpush1.bf16.msra.mxu0 %v11731_v52  ;;  %1679 = vmatprep.subr.bf16.mxu1 %v18143_v0 }
 0x1d4   :  { %1638 = vmatprep.subr.bf16.mxu0 %v12144_v8 }
 0x1d5   :  { %1596 = vmatmul.mubr.bf16.vlgmr.msra.gmra.mrb[32].mxu1 %v1510_v17 }
 0x1d6   :  { %1555 = vmatmul.mubr.bf16.vlgmr.msra.gmra.mrb[32].mxu0 %v1510_v17  ;;  %1680 = vmatpush1.bf16.msra.mxu1 %v12151_v10 }
 0x1d7   :  { %1639 = vmatpush1.bf16.msra.mxu0 %v12157_v11  ;;  %1681 = vmatprep.subr.bf16.mxu1 %v18143_v0 }
 0x1d8   :  { %1640 = vmatprep.subr.bf16.mxu0 %v12164_v12  ;;  %8741 = vmatprep.mubr.msk.bf16.mxu0 %vm580_vm0, %v1633_v18  ;;  %v12470_v15 = vpop.f32.mrb[16].mxu1 }
 0x1d9   :  { %18741 = vst [vmem:[#allocation7_spill] sm:$0xff] %v12470_v15  ;;  %v12472_v24 = vpop.f32.mrb[16].mxu0  ;;  %8742 = vmatprep.mubr.msk.bf16.mxu1 %vm580_vm0, %v1633_v18  ;;  %v1135_v28 = vpop.f32.mrb[17].mxu1 }
 0x1da   :  { %18742 = vst [vmem:[#allocation8_spill] sm:$0xff] %v12472_v24  ;;  %v12475_v29 = vpop.f32.mrb[17].mxu0  ;;  %1682 = vmatpush1.bf16.msra.mxu1 %v12178_v32  ;;  %v1136_v30 = vpop.f32.mrb[18].mxu1  ;;  %v12918_v24 = vld [vmem:[%s18133_s4 + $0x2a8] ss:$12 sps:$4 sm:$0xff]  }
 0x1db   :  { %18743 = vst [vmem:[#allocation9_spill] sm:$0xff] %v12475_v29  ;;  %v1096_v33 = vpop.f32.mrb[18].mxu0  ;;  %1641 = vmatpush1.bf16.msra.mxu0 %v12184_v44  ;;  %1683 = vmatprep.subr.bf16.mxu1 %v18143_v0  ;;  %v1137_v16 = vpop.f32.mrb[19].mxu1  ;;  %v1626_v30 = vrot.slane %v12433_v34, %v11630_v31  ;;  %18774 = vst [vmem:[#allocation39_spill] sm:$0xff] %v12918_v24 }
 0x1dc   :  { %v1097_v17 = vpop.f32.mrb[19].mxu0  ;;  %1642 = vmatprep.subr.bf16.mxu0 %v12191_v55  ;;  %v12519_v18 = vld.sshfl [vmem:[%s18132_s0 + $0x14] sm:$0x11 pattern:$0x75316420] }
 0x1dd   :  { %v1735_v28 = vcombine.high %v12519_v18, %v12519_v18 }
 0x1de   :  { %1684 = vmatpush1.bf16.msra.mxu1 %v12197_v56 }
 0x1df   :  { %1643 = vmatpush1.bf16.msra.mxu0 %v12203_v57  ;;  %1685 = vmatprep.subr.bf16.mxu1 %v18143_v0  ;;  %v1749_v33 = vrot.slane %v1735_v28, %v11630_v31 }
 0x1e0   :  { %1644 = vmatprep.subr.bf16.mxu0 %v12210_v58 }
 0x1e2   :  { %1686 = vmatpush1.bf16.msra.mxu1 %v12216_v59 }
 0x1e3   :  { %1645 = vmatpush1.bf16.msra.mxu0 %v12222_v60  ;;  %1687 = vmatprep.subr.bf16.mxu1 %v18143_v0 }
 0x1e4   :  { %1646 = vmatprep.subr.bf16.mxu0 %v12229_v61 }
 0x1e6   :  { %1688 = vmatpush1.bf16.msra.mxu1 %v12235_v1 }
 0x1e7   :  { %1647 = vmatpush1.bf16.msra.mxu0 %v12312_v35  ;;  %1689 = vmatprep.subr.bf16.mxu1 %v18143_v0 }
 0x1e8   :  { %1648 = vmatprep.subr.bf16.mxu0 %v12319_v36 }
 0x1ea   :  { %1690 = vmatpush1.bf16.msra.mxu1 %v12325_v38 }
 0x1eb   :  { %1649 = vmatpush1.bf16.msra.mxu0 %v12331_v39  ;;  %1691 = vmatprep.subr.bf16.mxu1 %v18143_v0 }
 0x1ec   :  { %1650 = vmatprep.subr.bf16.mxu0 %v12338_v40 }
 0x1ee   :  { %1692 = vmatpush1.bf16.msra.mxu1 %v12344_v41 }
 0x1ef   :  { %1651 = vmatpush1.bf16.msra.mxu0 %v12350_v42  ;;  %1693 = vmatprep.subr.bf16.mxu1 %v18143_v0 }
 0x1f0   :  { %1652 = vmatprep.subr.bf16.mxu0 %v12357_v43 }
 0x1f2   :  { %1694 = vmatpush1.bf16.msra.mxu1 %v12363_v45 }
 0x1f3   :  { %1653 = vmatpush1.bf16.msra.mxu0 %v12369_v46  ;;  %1695 = vmatprep.subr.bf16.mxu1 %v18143_v0 }
 0x1f4   :  { %1654 = vmatprep.subr.bf16.mxu0 %v12376_v2 }
 0x1f6   :  { %1696 = vmatpush1.bf16.msra.mxu1 %v12382_v21 }
 0x1f7   :  { %1655 = vmatpush1.bf16.msra.mxu0 %v12388_v3  ;;  %1697 = vmatprep.subr.bf16.mxu1 %v18143_v0 }
 0x1f8   :  { %1656 = vmatprep.subr.bf16.mxu0 %v12395_v4 }
 0x1fa   :  { %1698 = vmatpush1.bf16.msra.mxu1 %v12401_v5 }
 0x1fb   :  { %1657 = vmatpush1.bf16.msra.mxu0 %v12407_v6  ;;  %1699 = vmatprep.subr.bf16.mxu1 %v18143_v0 }
 0x1fc   :  { %1658 = vmatprep.subr.bf16.mxu0 %v12414_v7 }
 0x1fe   :  { %1700 = vmatpush1.bf16.msra.mxu1 %v12420_v9 }
 0x1ff   :  { %1659 = vmatpush1.bf16.msra.mxu0 %v12426_v22  ;;  %1701 = vmatprep.subr.bf16.mxu1 %v18143_v0 }
 0x200   :  { %1660 = vmatprep.subr.bf16.mxu0 %v12438_v37 }
 0x202   :  { %1702 = vmatpush1.bf16.msra.mxu1 %v12444_v50 }
 0x203   :  { %1661 = vmatpush1.bf16.msra.mxu0 %v12450_v54  ;;  %1703 = vmatprep.subr.bf16.mxu1 %v18143_v0 }
 0x204   :  { %8740 = vmatprep.subr.msk.bf16.mxu0 %vm584_vm1, %v11715_v48 }
 0x206   :  { %1704 = vmatpush1.bf16.msra.mxu1 %v11726_v51 }
 0x207   :  { %1663 = vmatpush1.bf16.msra.mxu0 %v11731_v52  ;;  %1795 = vmatprep.subr.bf16.mxu1 %v18143_v0 }
 0x208   :  { %1754 = vmatprep.subr.bf16.mxu0 %v12144_v8 }
 0x209   :  { %1712 = vmatmul.mubr.bf16.vlgmr.msra.gmra.mrb[36].mxu1 %v1626_v30 }
 0x20a   :  { %1671 = vmatmul.mubr.bf16.vlgmr.msra.gmra.mrb[36].mxu0 %v1626_v30  ;;  %1796 = vmatpush1.bf16.msra.mxu1 %v12151_v10  ;;  %v12752_v30 = vld [vmem:[%s18133_s4 + $0x80] ss:$12 sps:$4 sm:$0xff]  }
 0x20b   :  { %1755 = vmatpush1.bf16.msra.mxu0 %v12157_v11  ;;  %1797 = vmatprep.subr.bf16.mxu1 %v18143_v0  ;;  %18760 = vst [vmem:[#allocation26_spill] sm:$0xff] %v12752_v30 }
 0x20c   :  { %1756 = vmatprep.subr.bf16.mxu0 %v12164_v12  ;;  %8747 = vmatprep.mubr.msk.bf16.mxu1 %vm580_vm0, %v1749_v33  ;;  %v12541_v34 = vpop.f32.mrb[20].mxu1 }
 0x20d   :  { %18744 = vst [vmem:[#allocation10_spill] sm:$0xff] %v12541_v34  ;;  %v12543_v16 = vpop.f32.mrb[20].mxu0  ;;  %8746 = vmatprep.mubr.msk.bf16.mxu0 %vm580_vm0, %v1749_v33  ;;  %v1251_v8 = vpop.f32.mrb[21].mxu1 }
 0x20e   :  { %18745 = vst [vmem:[#allocation11_spill] sm:$0xff] %v12543_v16  ;;  %v12546_v17 = vpop.f32.mrb[21].mxu0  ;;  %1798 = vmatpush1.bf16.msra.mxu1 %v12178_v32  ;;  %v1252_v10 = vpop.f32.mrb[22].mxu1  ;;  %v12581_v32 = vsub.s32 1, %v11608_v26  ;;  %v12763_v8 = vld [vmem:[%s18133_s4 + $0x78] ss:$12 sps:$4 sm:$0xff]  }
 0x20f   :  { %18746 = vst [vmem:[#allocation12_spill] sm:$0xff] %v12546_v17  ;;  %v1212_v28 = vpop.f32.mrb[22].mxu0  ;;  %1757 = vmatpush1.bf16.msra.mxu0 %v12184_v44  ;;  %1799 = vmatprep.subr.bf16.mxu1 %v18143_v0  ;;  %v1253_v11 = vpop.f32.mrb[23].mxu1  ;;  %v12586_v44 = vld [vmem:[%s18134_s3] sm:$0x7]  ;;  %v18770_v16 = vmov 0.0  }
 0x210   :  { %v1213_v12 = vpop.f32.mrb[23].mxu0  ;;  %1758 = vmatprep.subr.bf16.mxu0 %v12191_v55  ;;  %18747 = vst [vmem:[#allocation13_spill] sm:$0xff] %v12581_v32  ;;  %v12594_v55 = vrot.slane %v12586_v44, %v12581_v32  ;;  %v12768_v10 = vld [vmem:[%s18133_s4 + $0x158] ss:$12 sps:$4 sm:$0xff]   ;;  %v12774_v28 = vld [vmem:[%s18133_s4 + $0x94] ss:$12 sps:$4 sm:$0xff]  }
 0x211   :  { %18762 = vst [vmem:[#allocation28_spill] sm:$0xff] %v12768_v10  ;;  %v12780_v11 = vld [vmem:[%s18133_s4 + $0x98] ss:$12 sps:$4 sm:$0xff]   ;;  %v12892_v32 = vld [vmem:[%s18133_s4 + $0x290] ss:$12 sps:$4 sm:$0xff]  }
 0x212   :  { %1800 = vmatpush1.bf16.msra.mxu1 %v12197_v56  ;;  %18748 = vst [vmem:[#allocation14_spill] sm:$0xff] %v12594_v55  ;;  %v631_v56 = vadd.f32 %v12011_v53, %v12594_v55  ;;  %18763 = vst [vmem:[#allocation29_spill] sm:$0xff] %v12780_v11  ;;  %v747_v34 = vadd.f32 %v12082_v20, %v12594_v55  ;;  %v12887_v20 = vld [vmem:[%s18133_s4 + $0xf0] ss:$12 sps:$4 sm:$0xff]  }
 0x213   :  { %1759 = vmatpush1.bf16.msra.mxu0 %v12203_v57  ;;  %1801 = vmatprep.subr.bf16.mxu1 %v18143_v0  ;;  %v12608_v57 = vld [vmem:[%s18133_s4 + $0xc8] ss:$12 sps:$4 sm:$0xff]   ;;  %18772 = vst [vmem:[#allocation37_spill] sm:$0xff] %v12892_v32 }
 0x214   :  { %1760 = vmatprep.subr.bf16.mxu0 %v12210_v58  ;;  %v12615_v58 = vld [vmem:[%s18133_s4 + $0x4] ss:$12 sps:$4 sm:$0xff]   ;;  %v676_v53 = vmax.f32 %v631_v56, 0.0 }
 0x215   :  { %v12789_v56 = vld [vmem:[%s18133_s4 + $0x90] ss:$12 sps:$4 sm:$0xff]  }
 0x216   :  { %1802 = vmatpush1.bf16.msra.mxu1 %v12216_v59  ;;  %v1742_v59 = vrot.slane %v12519_v18, %v11630_v31  ;;  %v12636_v31 = vld [vmem:[%s18133_s4 + $0xe0] ss:$12 sps:$4 sm:$0xff]   ;;  %v12746_v18 = vld [vmem:[%s18133_s4 + $0x7c] ss:$12 sps:$4 sm:$0xff]  }
 0x217   :  { %1761 = vmatpush1.bf16.msra.mxu0 %v12222_v60  ;;  %1803 = vmatprep.subr.bf16.mxu1 %v18143_v0  ;;  %v12623_v60 = vld [vmem:[%s18133_s4 + $0x8] ss:$12 sps:$4 sm:$0xff]  }
 0x218   :  { %1762 = vmatprep.subr.bf16.mxu0 %v12229_v61  ;;  %v12647_v61 = vld [vmem:[%s18133_s4 + $0x20] ss:$12 sps:$4 sm:$0xff]  }
 0x21a   :  { %1804 = vmatpush1.bf16.msra.mxu1 %v12235_v1  ;;  %v12653_v1 = vld [vmem:[%s18133_s4 + $0x18] ss:$12 sps:$4 sm:$0xff]  }
 0x21b   :  { %1763 = vmatpush1.bf16.msra.mxu0 %v12312_v35  ;;  %1805 = vmatprep.subr.bf16.mxu1 %v18143_v0  ;;  %v12658_v35 = vld [vmem:[%s18133_s4 + $0xf8] ss:$12 sps:$4 sm:$0xff]  }
 0x21c   :  { %1764 = vmatprep.subr.bf16.mxu0 %v12319_v36  ;;  %18749 = vst [vmem:[#allocation15_spill] sm:$0xff] %v12658_v35  ;;  %v12664_v36 = vld [vmem:[%s18133_s4 + $0x34] ss:$12 sps:$4 sm:$0xff]  }
 0x21e   :  { %1806 = vmatpush1.bf16.msra.mxu1 %v12325_v38 }
 0x21f   :  { %1765 = vmatpush1.bf16.msra.mxu0 %v12331_v39  ;;  %1807 = vmatprep.subr.bf16.mxu1 %v18143_v0 }
 0x220   :  { %1766 = vmatprep.subr.bf16.mxu0 %v12338_v40 }
 0x222   :  { %1808 = vmatpush1.bf16.msra.mxu1 %v12344_v41 }
 0x223   :  { %1767 = vmatpush1.bf16.msra.mxu0 %v12350_v42  ;;  %1809 = vmatprep.subr.bf16.mxu1 %v18143_v0  ;;  %v12677_v42 = vld [vmem:[%s18133_s4 + $0x38] ss:$12 sps:$4 sm:$0xff]  }
 0x224   :  { %1768 = vmatprep.subr.bf16.mxu0 %v12357_v43  ;;  %18753 = vst [vmem:[#allocation19_spill] sm:$0xff] %v12677_v42 }
 0x226   :  { %1810 = vmatpush1.bf16.msra.mxu1 %v12363_v45 }
 0x227   :  { %1769 = vmatpush1.bf16.msra.mxu0 %v12369_v46  ;;  %1811 = vmatprep.subr.bf16.mxu1 %v18143_v0  ;;  %v12684_v46 = vld [vmem:[%s18133_s4 + $0x30] ss:$12 sps:$4 sm:$0xff]  }
 0x228   :  { %1770 = vmatprep.subr.bf16.mxu0 %v12376_v2  ;;  %v12689_v2 = vld [vmem:[%s18133_s4 + $0x110] ss:$12 sps:$4 sm:$0xff]  }
 0x229   :  { %18754 = vst [vmem:[#allocation20_spill] sm:$0xff] %v12689_v2 }
 0x22a   :  { %1812 = vmatpush1.bf16.msra.mxu1 %v12382_v21 }
 0x22b   :  { %1771 = vmatpush1.bf16.msra.mxu0 %v12388_v3  ;;  %1813 = vmatprep.subr.bf16.mxu1 %v18143_v0 }
 0x22c   :  { %1772 = vmatprep.subr.bf16.mxu0 %v12395_v4  ;;  %v12695_v4 = vld [vmem:[%s18133_s4 + $0x4c] ss:$12 sps:$4 sm:$0xff]  }
 0x22e   :  { %1814 = vmatpush1.bf16.msra.mxu1 %v12401_v5  ;;  %v12701_v5 = vld [vmem:[%s18133_s4 + $0x50] ss:$12 sps:$4 sm:$0xff]  }
 0x22f   :  { %1773 = vmatpush1.bf16.msra.mxu0 %v12407_v6  ;;  %1815 = vmatprep.subr.bf16.mxu1 %v18143_v0  ;;  %18755 = vst [vmem:[#allocation21_spill] sm:$0xff] %v12701_v5  ;;  %v12708_v6 = vld [vmem:[%s18133_s4 + $0x48] ss:$12 sps:$4 sm:$0xff]  }
 0x230   :  { %1774 = vmatprep.subr.bf16.mxu0 %v12414_v7  ;;  %v12713_v7 = vld [vmem:[%s18133_s4 + $0x128] ss:$12 sps:$4 sm:$0xff]  }
 0x231   :  { %18756 = vst [vmem:[#allocation22_spill] sm:$0xff] %v12713_v7 }
 0x232   :  { %1816 = vmatpush1.bf16.msra.mxu1 %v12420_v9  ;;  %v12719_v9 = vld [vmem:[%s18133_s4 + $0x64] ss:$12 sps:$4 sm:$0xff]  }
 0x233   :  { %1775 = vmatpush1.bf16.msra.mxu0 %v12426_v22  ;;  %1817 = vmatprep.subr.bf16.mxu1 %v18143_v0  ;;  %v12725_v22 = vld [vmem:[%s18133_s4 + $0x68] ss:$12 sps:$4 sm:$0xff]  }
 0x234   :  { %1776 = vmatprep.subr.bf16.mxu0 %v12438_v37  ;;  %18757 = vst [vmem:[#allocation23_spill] sm:$0xff] %v12725_v22  ;;  %v12728_v37 = vsub.s32 0, %v11608_v26 }
 0x236   :  { %1818 = vmatpush1.bf16.msra.mxu1 %v12444_v50  ;;  %18758 = vst [vmem:[#allocation24_spill] sm:$0xff] %v12728_v37  ;;  %v12735_v50 = vld [vmem:[%s18133_s4 + $0x60] ss:$12 sps:$4 sm:$0xff]   ;;  %v12756_v33 = vrot.slane %v12586_v44, %v12728_v37  ;;  %v792_v37 = vmax.f32 %v747_v34, 0.0  ;;  %v12913_v34 = vld [vmem:[%s18133_s4 + $0x108] ss:$12 sps:$4 sm:$0xff]  }
 0x237   :  { %1777 = vmatpush1.bf16.msra.mxu0 %v12450_v54  ;;  %1819 = vmatprep.subr.bf16.mxu1 %v18143_v0  ;;  %v12740_v54 = vld [vmem:[%s18133_s4 + $0x140] ss:$12 sps:$4 sm:$0xff]   ;;  %v18147_v0 = vmov 0.0  }
 0x238   :  { %8745 = vmatprep.subr.msk.bf16.mxu0 %vm584_vm1, %v11715_v48  ;;  %v12630_v48 = vld [vmem:[%s18133_s4] ss:$12 sps:$4 sm:$0xff]   ;;  %18759 = vst [vmem:[#allocation25_spill] sm:$0xff] %v12740_v54  ;;  %18761 = vst [vmem:[#allocation27_spill] sm:$0xff] %v12756_v33  ;;  %v629_v12 = vadd.f32 %v12008_v49, %v12756_v33  ;;  %v12920_v29 = vpack.c.bf16 %v792_v37, %v792_v37 }
 0x239   :  { %v12800_v49 = vld [vmem:[%s18133_s4 + $0xac] ss:$12 sps:$4 sm:$0xff]  }
 0x23a   :  { %1820 = vmatpush1.bf16.msra.mxu1 %v11726_v51  ;;  %v679_v51 = vpack.c.bf16 %v676_v53, %v676_v53  ;;  %v12794_v53 = vld [vmem:[%s18133_s4 + $0x170] ss:$12 sps:$4 sm:$0xff]   ;;  %v12942_v37 = vld [vmem:[%s18133_s4 + $0x120] ss:$12 sps:$4 sm:$0xff]  }
 0x23b   :  { %1779 = vmatpush1.bf16.msra.mxu0 %v11731_v52  ;;  %9119 = vmatprep.subr.bf16.mxu1 %v12608_v57  ;;  %v12641_v52 = vld [vmem:[%s18133_s4 + $0x1c] ss:$12 sps:$4 sm:$0xff]   ;;  %18764 = vst [vmem:[#allocation30_spill] sm:$0xff] %v12794_v53 }
 0x23c   :  { %2156 = vmatprep.subr.bf16.mxu0 %v12615_v58 }
 0x23d   :  { %1828 = vmatmul.mubr.bf16.vlgmr.msra.gmra.mrb[40].mxu1 %v1742_v59 }
 0x23e   :  { %1787 = vmatmul.mubr.bf16.vlgmr.msra.gmra.mrb[40].mxu0 %v1742_v59  ;;  %9120 = vmatpush3.bf16.msra.mxu1 %v12623_v60  ;;  %v12806_v59 = vld [vmem:[%s18133_s4 + $0xb0] ss:$12 sps:$4 sm:$0xff]  }
 0x23f   :  { %2270 = vmatprep.mubr.bf16.mxu1 %v679_v51  ;;  %2157 = vmatpush1.bf16.msra.mxu0 %v12630_v48  ;;  %18765 = vst [vmem:[#allocation31_spill] sm:$0xff] %v12806_v59 }
 0x240   :  { %2188 = vmatprep.mubr.bf16.mxu0 %v679_v51  ;;  %9121 = vmatprep.subr.bf16.mxu1 %v12636_v31  ;;  %v12666_v38 = vpop.f32.mrb[24].mxu1  ;;  %v675_v51 = vmax.f32 %v629_v12, 0.0 }
 0x241   :  { %18750 = vst [vmem:[#allocation16_spill] sm:$0xff] %v12666_v38  ;;  %v12668_v39 = vpop.f32.mrb[24].mxu0  ;;  %2158 = vmatprep.subr.bf16.mxu0 %v12641_v52  ;;  %v1367_v40 = vpop.f32.mrb[25].mxu1 }
 0x242   :  { %18751 = vst [vmem:[#allocation17_spill] sm:$0xff] %v12668_v39  ;;  %v12671_v41 = vpop.f32.mrb[25].mxu0  ;;  %9122 = vmatpush3.bf16.msra.mxu1 %v12647_v61  ;;  %v1368_v43 = vpop.f32.mrb[26].mxu1  ;;  %v12809_v40 = vsub.s32 2, %v11608_v26  ;;  %v12841_v26 = vld [vmem:[%s18133_s4 + $0xc0] ss:$12 sps:$4 sm:$0xff]  }
 0x243   :  { %18752 = vst [vmem:[#allocation18_spill] sm:$0xff] %v12671_v41  ;;  %v1328_v45 = vpop.f32.mrb[26].mxu0  ;;  %2159 = vmatpush1.bf16.msra.mxu0 %v12653_v1  ;;  %9123 = vmatprep.subr.bf16.mxu1 %v12658_v35  ;;  %v1369_v21 = vpop.f32.mrb[27].mxu1  ;;  %v12816_v43 = vld [vmem:[%s18133_s4 + $0xa8] ss:$12 sps:$4 sm:$0xff]  }
 0x244   :  { %v1329_v3 = vpop.f32.mrb[27].mxu0  ;;  %2160 = vmatprep.subr.bf16.mxu0 %v12664_v36  ;;  %18766 = vst [vmem:[#allocation32_spill] sm:$0xff] %v12809_v40  ;;  %v12822_v45 = vld [vmem:[%s18133_s4 + $0xc4] ss:$12 sps:$4 sm:$0xff]   ;;  %v12828_v21 = vld [vmem:[%s18133_s4 + $0x188] ss:$12 sps:$4 sm:$0xff]   ;;  %v12834_v12 = vrot.slane %v12586_v44, %v12809_v40 }
 0x245   :  { %18767 = vst [vmem:[#allocation33_spill] sm:$0xff] %v12828_v21  ;;  %v12830_v3 = vpack.c.bf16 %v675_v51, %v675_v51  ;;  %v12847_v51 = vld [vmem:[%s18133_s4 + $0xdc] ss:$12 sps:$4 sm:$0xff]   ;;  %v12854_v44 = vld [vmem:[%s18133_s4 + $0x1a0] ss:$12 sps:$4 sm:$0xff]  }
 0x246   :  { %9124 = vmatpush3.bf16.msra.mxu1 %v12677_v42  ;;  %18768 = vst [vmem:[#allocation34_spill] sm:$0xff] %v12834_v12  ;;  %18769 = vst [vmem:[#allocation35_spill] sm:$0xff] %v12854_v44  ;;  %v670_v38 = vadd.f32 %v12006_v47, %v12834_v12  ;;  %v12865_v39 = vld [vmem:[%s18133_s4 + $0xd8] ss:$12 sps:$4 sm:$0xff]   ;;  %v12876_v47 = vld [vmem:[%s18133_s4 + $0xf4] ss:$12 sps:$4 sm:$0xff]   ;;  %v861_v42 = vadd.f32 %v12170_v14, %v12756_v33 }
 0x247   :  { %2161 = vmatpush1.bf16.msra.mxu0 %v12684_v46  ;;  %9125 = vmatprep.subr.bf16.mxu1 %v12689_v2  ;;  %v10553_v41 = vld [vmem:[%s18133_s4 + $0x1b8] ss:$12 sps:$4 sm:$0x3f]   ;;  %v12953_v40 = vld [vmem:[%s18133_s4 + $0x13c] ss:$12 sps:$4 sm:$0xff]  }
 0x248   :  { %2162 = vmatprep.subr.bf16.mxu0 %v12695_v4  ;;  %v12882_v17 = vsel %vm2146_vm3, %v10553_v41, 0  ;;  %v12904_v41 = vld [vmem:[%s18133_s4 + $0x1d0] ss:$12 sps:$4 sm:$0xff]   ;;  %v13342_v2 = vld [vmem:[%s18133_s4 + $0x428] ss:$12 sps:$4 sm:$0xff]  }
 0x249   :  { %18771 = vst [vmem:[#allocation36_spill] sm:$0xff] %v12882_v17  ;;  %18773 = vst [vmem:[#allocation38_spill] sm:$0xff] %v12904_v41  ;;  %v13362_v14 = vld [vmem:[%s18133_s4 + $0x2bc] ss:$12 sps:$4 sm:$0xff]  }
 0x24a   :  { %9126 = vmatpush3.bf16.msra.mxu1 %v12701_v5  ;;  %18829 = vst [vmem:[#allocation93_spill] sm:$0xff] %v13342_v2 }
 0x24b   :  { %2163 = vmatpush1.bf16.msra.mxu0 %v12708_v6  ;;  %9127 = vmatprep.subr.bf16.mxu1 %v12713_v7 }
 0x24c   :  { %2164 = vmatprep.subr.bf16.mxu0 %v12719_v9 }
 0x24e   :  { %9128 = vmatpush3.bf16.msra.mxu1 %v12725_v22 }
 0x24f   :  { %2165 = vmatpush1.bf16.msra.mxu0 %v12735_v50  ;;  %9129 = vmatprep.subr.bf16.mxu1 %v12740_v54 }
 0x250   :  { %2166 = vmatprep.subr.bf16.mxu0 %v12746_v18 }
 0x252   :  { %9130 = vmatpush3.bf16.msra.mxu1 %v12752_v30  ;;  %v13092_v30 = vld [vmem:[%s18133_s4 + $0x278] ss:$12 sps:$4 sm:$0xff]  }
 0x253   :  { %2167 = vmatpush1.bf16.msra.mxu0 %v12763_v8  ;;  %9131 = vmatprep.subr.bf16.mxu1 %v12768_v10  ;;  %18791 = vst [vmem:[#allocation55_spill] sm:$0xff] %v13092_v30 }
 0x254   :  { %2168 = vmatprep.subr.bf16.mxu0 %v12774_v28 }
 0x256   :  { %9132 = vmatpush3.bf16.msra.mxu1 %v12780_v11  ;;  %v13013_v11 = vld [vmem:[%s18133_s4 + $0x230] ss:$12 sps:$4 sm:$0xff]  }
 0x257   :  { %2169 = vmatpush1.bf16.msra.mxu0 %v12789_v56  ;;  %9133 = vmatprep.subr.bf16.mxu1 %v12794_v53  ;;  %18784 = vst [vmem:[#allocation49_spill] sm:$0xff] %v13013_v11 }
 0x258   :  { %2170 = vmatprep.subr.bf16.mxu0 %v12800_v49 }
 0x25a   :  { %9134 = vmatpush3.bf16.msra.mxu1 %v12806_v59 }
 0x25b   :  { %2171 = vmatpush1.bf16.msra.mxu0 %v12816_v43  ;;  %9851 = vmatprep.subr.bf16.mxu1 %v18147_v0 }
 0x25c   :  { %2172 = vmatprep.subr.bf16.mxu0 %v12822_v45 }
 0x25d   :  { %2271 = vmatmul.mubr.bf16.vlgmr.msra.gmra.mrb[44].mxu1 %v12830_v3 }
 0x25e   :  { %9852 = vmatpush3.bf16.msra.mxu1 %v12828_v21  ;;  %9857 = vmatprep.mubr.msk.bf16.mxu1 %vm11410_vm2, %v18147_v0 }
 0x25f   :  { %2173 = vmatpush1.bf16.msra.mxu0 %v12841_v26  ;;  %9853 = vmatprep.subr.bf16.mxu1 %v18147_v0  ;;  %v677_v0 = vmax.f32 %v670_v38, 0.0  ;;  %v12898_v38 = vld [vmem:[%s18133_s4 + $0x10c] ss:$12 sps:$4 sm:$0xff]  }
 0x260   :  { %2174 = vmatprep.subr.bf16.mxu0 %v12847_v51 }
 0x261   :  { %v12906_v15 = vpack.c.bf16 %v677_v0, %v677_v0  ;;  %v12926_v0 = vld [vmem:[%s18133_s4 + $0x124] ss:$12 sps:$4 sm:$0xff]  }
 0x262   :  { %9854 = vmatpush3.bf16.msra.mxu1 %v12854_v44 }
 0x263   :  { %2175 = vmatpush1.bf16.msra.mxu0 %v12865_v39  ;;  %9855 = vmatprep.subr.bf16.mxu1 %v18770_v16 }
 0x264   :  { %2176 = vmatprep.subr.bf16.mxu0 %v12876_v47 }
 0x266   :  { %9856 = vmatpush3.bf16.msra.mxu1 %v12882_v17  ;;  %v12995_v17 = vld [vmem:[%s18133_s4 + $0x2f0] ss:$12 sps:$4 sm:$0xff]  }
 0x267   :  { %2177 = vmatpush1.bf16.msra.mxu0 %v12887_v20  ;;  %9145 = vmatprep.subr.bf16.mxu1 %v12892_v32  ;;  %v12990_v32 = vld [vmem:[%s18133_s4 + $0x150] ss:$12 sps:$4 sm:$0xff]   ;;  %18780 = vst [vmem:[#allocation45_spill] sm:$0xff] %v12995_v17 }
 0x268   :  { %2178 = vmatprep.subr.bf16.mxu0 %v12898_v38 }
 0x269   :  { %9858 = vmatmul.mubr.msk.bf16.vlgmr.msra.gmra.mrb[48].mxu1 %vm2142_vm4, %v12906_v15 }
 0x26a   :  { %9146 = vmatpush3.bf16.msra.mxu1 %v12904_v41  ;;  %2748 = vmatprep.mubr.bf16.mxu1 %v12920_v29  ;;  %v12971_v41 = vld [vmem:[%s18133_s4 + $0x2d8] ss:$12 sps:$4 sm:$0xff]  }
 0x26b   :  { %2179 = vmatpush1.bf16.msra.mxu0 %v12913_v34  ;;  %9147 = vmatprep.subr.bf16.mxu1 %v12918_v24  ;;  %v12966_v24 = vld [vmem:[%s18133_s4 + $0x138] ss:$12 sps:$4 sm:$0xff]   ;;  %18778 = vst [vmem:[#allocation43_spill] sm:$0xff] %v12971_v41 }
 0x26c   :  { %2180 = vmatprep.subr.bf16.mxu0 %v12926_v0 }
 0x26e   :  { %9148 = vmatpush3.bf16.msra.mxu1 %v12935_v19  ;;  %v12977_v19 = vld [vmem:[%s18133_s4 + $0x154] ss:$12 sps:$4 sm:$0xff]  }
 0x26f   :  { %2181 = vmatpush1.bf16.msra.mxu0 %v12942_v37  ;;  %9149 = vmatprep.subr.bf16.mxu1 %v12947_v23  ;;  %v12983_v23 = vld [vmem:[%s18133_s4 + $0x218] ss:$12 sps:$4 sm:$0xff]  }
 0x270   :  { %2182 = vmatprep.subr.bf16.mxu0 %v12953_v40  ;;  %18779 = vst [vmem:[#allocation44_spill] sm:$0xff] %v12983_v23 }
 0x272   :  { %9150 = vmatpush3.bf16.msra.mxu1 %v12959_v25  ;;  %v13001_v25 = vld [vmem:[%s18133_s4 + $0x16c] ss:$12 sps:$4 sm:$0xff]  }
 0x273   :  { %2183 = vmatpush1.bf16.msra.mxu0 %v12966_v24  ;;  %9151 = vmatprep.subr.bf16.mxu1 %v12971_v41 }
 0x274   :  { %2184 = vmatprep.subr.bf16.mxu0 %v12977_v19  ;;  %v13003_v59 = vpop.f32.mrb[28].mxu1 }
 0x275   :  { %18781 = vst [vmem:[#allocation46_spill] sm:$0xff] %v13003_v59  ;;  %v13005_v41 = vpop.f32.mrb[28].mxu0  ;;  %v1483_v53 = vpop.f32.mrb[29].mxu1  ;;  %v13020_v59 = vld [vmem:[%s18133_s4 + $0x168] ss:$12 sps:$4 sm:$0xff]  }
 0x276   :  { %18782 = vst [vmem:[#allocation47_spill] sm:$0xff] %v13005_v41  ;;  %v13007_v44 = vpop.f32.mrb[29].mxu0  ;;  %9152 = vmatpush3.bf16.msra.mxu1 %v12983_v23  ;;  %v1484_v10 = vpop.f32.mrb[30].mxu1  ;;  %v13025_v53 = vld [vmem:[%s18133_s4 + $0x308] ss:$12 sps:$4 sm:$0xff]  }
 0x277   :  { %18783 = vst [vmem:[#allocation48_spill] sm:$0xff] %v13007_v44  ;;  %v1444_v21 = vpop.f32.mrb[30].mxu0  ;;  %2185 = vmatpush1.bf16.msra.mxu0 %v12990_v32  ;;  %9153 = vmatprep.subr.bf16.mxu1 %v12995_v17  ;;  %18785 = vst [vmem:[#allocation50_spill] sm:$0xff] %v13025_v53  ;;  %v1485_v41 = vpop.f32.mrb[31].mxu1  ;;  %v13031_v10 = vld [vmem:[%s18133_s4 + $0x184] ss:$12 sps:$4 sm:$0xff]   ;;  %v745_v17 = vadd.f32 %v12079_v63, %v12756_v33  ;;  %v902_v33 = vadd.f32 %v12168_v13, %v12834_v12 }
 0x278   :  { %v1445_v44 = vpop.f32.mrb[31].mxu0  ;;  %2186 = vmatprep.subr.bf16.mxu0 %v13001_v25  ;;  %v13037_v21 = vld [vmem:[%s18133_s4 + $0x248] ss:$12 sps:$4 sm:$0xff]   ;;  %v13049_v41 = vld [vmem:[%s18133_s4 + $0x320] ss:$12 sps:$4 sm:$0xff]  }
 0x279   :  { %18786 = vst [vmem:[#allocation51_spill] sm:$0xff] %v13037_v21  ;;  %v13044_v44 = vld [vmem:[%s18133_s4 + $0x180] ss:$12 sps:$4 sm:$0xff]   ;;  %18787 = vst [vmem:[#allocation52_spill] sm:$0xff] %v13049_v41  ;;  %v13071_v23 = vld [vmem:[%s18133_s4 + $0x198] ss:$12 sps:$4 sm:$0xff]  }
 0x27a   :  { %9154 = vmatpush3.bf16.msra.mxu1 %v13013_v11  ;;  %v13055_v11 = vld [vmem:[%s18133_s4 + $0x19c] ss:$12 sps:$4 sm:$0xff]   ;;  %v13082_v63 = vld [vmem:[%s18133_s4 + $0x1b4] ss:$12 sps:$4 sm:$0x3f]   ;;  %v791_v54 = vmax.f32 %v745_v17, 0.0 }
 0x27b   :  { %2187 = vmatpush1.bf16.msra.mxu0 %v13020_v59  ;;  %9155 = vmatprep.subr.bf16.mxu1 %v13025_v53  ;;  %v13062_v53 = vld [vmem:[%s18133_s4 + $0x260] ss:$12 sps:$4 sm:$0xff]   ;;  %v13110_v17 = vld [vmem:[%s18133_s4 + $0x350] ss:$12 sps:$4 sm:$0xff]   ;;  %v909_v13 = vmax.f32 %v902_v33, 0.0 }
 0x27c   :  { %2197 = vmatprep.subr.bf16.mxu0 %v13031_v10  ;;  %18788 = vst [vmem:[#allocation53_spill] sm:$0xff] %v13062_v53  ;;  %18794 = vst [vmem:[#allocation58_spill] sm:$0xff] %v13110_v17  ;;  %v13112_v7 = vpack.c.bf16 %v791_v54, %v791_v54  ;;  %v13134_v54 = vld [vmem:[%s18133_s4 + $0x368] ss:$12 sps:$4 sm:$0xff]  }
 0x27d   :  { %18797 = vst [vmem:[#allocation61_spill] sm:$0xff] %v13134_v54  ;;  %v13449_v33 = vpack.c.bf16 %v909_v13, %v909_v13  ;;  %v13479_v13 = vld [vmem:[%s18133_s4 + $0x34c] ss:$12 sps:$4 sm:$0xff]  }
 0x27e   :  { %2189 = vmatmul.mubr.bf16.vlgmr.msra.gmra.mrb[44].mxu0 %v12830_v3  ;;  %9156 = vmatpush3.bf16.msra.mxu1 %v13037_v21  ;;  %v13076_v3 = vld [vmem:[%s18133_s4 + $0x338] ss:$12 sps:$4 sm:$0xff]   ;;  %v18790_v21 = vmov 0  }
 0x27f   :  { %2198 = vmatpush1.bf16.msra.mxu0 %v13044_v44  ;;  %9157 = vmatprep.subr.bf16.mxu1 %v13049_v41  ;;  %18789 = vst [vmem:[#allocation54_spill] sm:$0xff] %v13076_v3  ;;  %v10594_v41 = vld [vmem:[%s18133_s4 + $0x1b0] ss:$12 sps:$4 sm:$0x3f]  }
 0x280   :  { %2199 = vmatprep.subr.bf16.mxu0 %v13055_v11  ;;  %2229 = vmatprep.mubr.bf16.mxu0 %v18790_v21  ;;  %v13099_v22 = vsel %vm2146_vm3, %v10594_v41, 0  ;;  %v13119_v41 = vld [vmem:[%s18133_s4 + $0x1c8] ss:$12 sps:$4 sm:$0xff]  }
 0x281   :  { %18792 = vst [vmem:[#allocation56_spill] sm:$0xff] %v13099_v22  ;;  %18795 = vst [vmem:[#allocation59_spill] sm:$0xff] %v13119_v41 }
 0x282   :  { %9158 = vmatpush3.bf16.msra.mxu1 %v13062_v53  ;;  %v13104_v53 = vld [vmem:[%s18133_s4 + $0x1cc] ss:$12 sps:$4 sm:$0xff]  }
 0x283   :  { %2200 = vmatpush1.bf16.msra.mxu0 %v13071_v23  ;;  %9159 = vmatprep.subr.bf16.mxu1 %v13076_v3  ;;  %18793 = vst [vmem:[#allocation57_spill] sm:$0xff] %v13104_v53  ;;  %v786_v3 = vadd.f32 %v12077_v62, %v12834_v12  ;;  %v13155_v62 = vld [vmem:[%s18133_s4 + $0x1fc] ss:$12 sps:$4 sm:$0xff]  }
 0x284   :  { %8805 = vmatprep.subr.msk.bf16.mxu0 %vm2146_vm3, %v13082_v63  ;;  %18799 = vst [vmem:[#allocation63_spill] sm:$0xff] %v13155_v62 }
 0x286   :  { %9160 = vmatpush3.bf16.msra.mxu1 %v13092_v30  ;;  %v13125_v30 = vld [vmem:[%s18133_s4 + $0x1e4] ss:$12 sps:$4 sm:$0xff]  }
 0x287   :  { %2202 = vmatpush1.bf16.msra.mxu0 %v13099_v22  ;;  %9861 = vmatprep.subr.bf16.mxu1 %v18770_v16  ;;  %18796 = vst [vmem:[#allocation60_spill] sm:$0xff] %v13125_v30 }
 0x288   :  { %2634 = vmatprep.subr.bf16.mxu0 %v13104_v53  ;;  %v13143_v53 = vld [vmem:[%s18133_s4 + $0x1e0] ss:$12 sps:$4 sm:$0xff]  }
 0x289   :  { %2749 = vmatmul.mubr.bf16.vlgmr.msra.gmra.mrb[52].mxu1 %v13112_v7  ;;  %18798 = vst [vmem:[#allocation62_spill] sm:$0xff] %v13143_v53 }
 0x28a   :  { %8806 = vmatmul.mubr.msk.bf16.vlgmr.msra.gmra.mrb[44].mxu0 %vm2142_vm4, %v12906_v15  ;;  %9862 = vmatpush3.bf16.msra.mxu1 %v13110_v17  ;;  %v10605_v15 = vld [vmem:[%s18133_s4 + $0x380] ss:$12 sps:$4 sm:$0x3f]   ;;  %v863_v17 = vadd.f32 %v12173_v27, %v12594_v55  ;;  %v13168_v55 = vld [vmem:[%s18133_s4 + $0x1f8] ss:$12 sps:$4 sm:$0xff]  }
 0x28b   :  { %2635 = vmatpush1.bf16.msra.mxu0 %v13119_v41  ;;  %2666 = vmatprep.mubr.bf16.mxu0 %v12920_v29  ;;  %v793_v41 = vmax.f32 %v786_v3, 0.0  ;;  %v13163_v27 = vsel %vm2146_vm3, %v10605_v15, 0  ;;  %18801 = vst [vmem:[#allocation65_spill] sm:$0xff] %v13168_v55  ;;  %v13179_v3 = vld [vmem:[%s18133_s4 + $0x214] ss:$12 sps:$4 sm:$0xff]  }
 0x28c   :  { %9863 = vmatprep.subr.bf16.mxu1 %v18770_v16  ;;  %2636 = vmatprep.subr.bf16.mxu0 %v13125_v30  ;;  %18800 = vst [vmem:[#allocation64_spill] sm:$0xff] %v13163_v27  ;;  %v13173_v30 = vld [vmem:[%s18133_s4 + $0x458] ss:$12 sps:$4 sm:$0xff]   ;;  %v908_v5 = vmax.f32 %v863_v17, 0.0  ;;  %18803 = vst [vmem:[#allocation67_spill] sm:$0xff] %v13179_v3 }
 0x28d   :  { %9867 = vmatprep.mubr.msk.bf16.mxu1 %vm11410_vm2, %v18770_v16  ;;  %18802 = vst [vmem:[#allocation66_spill] sm:$0xff] %v13173_v30  ;;  %v13185_v15 = vld [vmem:[%s18133_s4 + $0x398] ss:$12 sps:$4 sm:$0xff]   ;;  %v13194_v17 = vld [vmem:[%s18133_s4 + $0x210] ss:$12 sps:$4 sm:$0xff]  }
 0x28e   :  { %9864 = vmatpush3.bf16.msra.mxu1 %v13134_v54  ;;  %18804 = vst [vmem:[#allocation68_spill] sm:$0xff] %v13185_v15  ;;  %v13187_v54 = vpack.c.bf16 %v793_v41, %v793_v41  ;;  %18805 = vst [vmem:[#allocation69_spill] sm:$0xff] %v13194_v17  ;;  %v13207_v41 = vld [vmem:[%s18133_s4 + $0x22c] ss:$12 sps:$4 sm:$0xff]  }
 0x28f   :  { %2637 = vmatpush1.bf16.msra.mxu0 %v13143_v53  ;;  %9865 = vmatprep.subr.bf16.mxu1 %v18770_v16  ;;  %18807 = vst [vmem:[#allocation71_spill] sm:$0xff] %v13207_v41 }
 0x290   :  { %2638 = vmatprep.subr.bf16.mxu0 %v13155_v62  ;;  %v13201_v62 = vpack.c.bf16 %v908_v5, %v908_v5  ;;  %v13223_v5 = vld [vmem:[%s18133_s4 + $0x228] ss:$12 sps:$4 sm:$0xff]  }
 0x291   :  { %18809 = vst [vmem:[#allocation73_spill] sm:$0xff] %v13223_v5 }
 0x292   :  { %9866 = vmatpush3.bf16.msra.mxu1 %v13163_v27  ;;  %v13199_v27 = vld [vmem:[%s18133_s4 + $0x470] ss:$12 sps:$4 sm:$0xff]  }
 0x293   :  { %2639 = vmatpush1.bf16.msra.mxu0 %v13168_v55  ;;  %9171 = vmatprep.subr.bf16.mxu1 %v13173_v30  ;;  %18806 = vst [vmem:[#allocation70_spill] sm:$0xff] %v13199_v27  ;;  %v13216_v30 = vld [vmem:[%s18133_s4 + $0x3b0] ss:$12 sps:$4 sm:$0xff]  }
 0x294   :  { %2640 = vmatprep.subr.bf16.mxu0 %v13179_v3  ;;  %18808 = vst [vmem:[#allocation72_spill] sm:$0xff] %v13216_v30  ;;  %v13234_v3 = vld [vmem:[%s18133_s4 + $0x244] ss:$12 sps:$4 sm:$0xff]  }
 0x295   :  { %9868 = vmatmul.mubr.msk.bf16.vlgmr.msra.gmra.mrb[48].mxu1 %vm2142_vm4, %v13187_v54  ;;  %18811 = vst [vmem:[#allocation75_spill] sm:$0xff] %v13234_v3 }
 0x296   :  { %9172 = vmatpush3.bf16.msra.mxu1 %v13185_v15  ;;  %3226 = vmatprep.mubr.bf16.mxu1 %v13201_v62  ;;  %v13228_v15 = vld [vmem:[%s18133_s4 + $0x488] ss:$12 sps:$4 sm:$0xff]  }
 0x297   :  { %2641 = vmatpush1.bf16.msra.mxu0 %v13194_v17  ;;  %9173 = vmatprep.subr.bf16.mxu1 %v13199_v27  ;;  %18810 = vst [vmem:[#allocation74_spill] sm:$0xff] %v13228_v15  ;;  %v13240_v27 = vld [vmem:[%s18133_s4 + $0x3c8] ss:$12 sps:$4 sm:$0xff]   ;;  %v13252_v17 = vld [vmem:[%s18133_s4 + $0x4a0] ss:$12 sps:$4 sm:$0xff]  }
 0x298   :  { %2642 = vmatprep.subr.bf16.mxu0 %v13207_v41  ;;  %18812 = vst [vmem:[#allocation76_spill] sm:$0xff] %v13240_v27  ;;  %v13247_v41 = vld [vmem:[%s18133_s4 + $0x240] ss:$12 sps:$4 sm:$0xff]   ;;  %18814 = vst [vmem:[#allocation78_spill] sm:$0xff] %v13252_v17 }
 0x299   :  { %18813 = vst [vmem:[#allocation77_spill] sm:$0xff] %v13247_v41 }
 0x29a   :  { %9174 = vmatpush3.bf16.msra.mxu1 %v13216_v30  ;;  %v13258_v30 = vld [vmem:[%s18133_s4 + $0x25c] ss:$12 sps:$4 sm:$0xff]  }
 0x29b   :  { %2643 = vmatpush1.bf16.msra.mxu0 %v13223_v5  ;;  %9175 = vmatprep.subr.bf16.mxu1 %v13228_v15  ;;  %18815 = vst [vmem:[#allocation79_spill] sm:$0xff] %v13258_v30  ;;  %v13264_v15 = vld [vmem:[%s18133_s4 + $0x3e0] ss:$12 sps:$4 sm:$0xff]   ;;  %v13276_v5 = vld [vmem:[%s18133_s4 + $0x4b8] ss:$12 sps:$4 sm:$0xff]  }
 0x29c   :  { %2644 = vmatprep.subr.bf16.mxu0 %v13234_v3  ;;  %18816 = vst [vmem:[#allocation80_spill] sm:$0xff] %v13264_v15  ;;  %v13271_v3 = vld [vmem:[%s18133_s4 + $0x258] ss:$12 sps:$4 sm:$0xff]   ;;  %18818 = vst [vmem:[#allocation82_spill] sm:$0xff] %v13276_v5 }
 0x29d   :  { %18817 = vst [vmem:[#allocation81_spill] sm:$0xff] %v13271_v3 }
 0x29e   :  { %9176 = vmatpush3.bf16.msra.mxu1 %v13240_v27  ;;  %v13282_v27 = vld [vmem:[%s18133_s4 + $0x274] ss:$12 sps:$4 sm:$0xff]  }
 0x29f   :  { %2645 = vmatpush1.bf16.msra.mxu0 %v13247_v41  ;;  %9177 = vmatprep.subr.bf16.mxu1 %v13252_v17  ;;  %18819 = vst [vmem:[#allocation83_spill] sm:$0xff] %v13282_v27  ;;  %v13288_v17 = vld [vmem:[%s18133_s4 + $0x3f8] ss:$12 sps:$4 sm:$0xff]   ;;  %v13300_v41 = vld [vmem:[%s18133_s4 + $0x4d0] ss:$12 sps:$4 sm:$0xff]  }
 0x2a0   :  { %2646 = vmatprep.subr.bf16.mxu0 %v13258_v30  ;;  %18820 = vst [vmem:[#allocation84_spill] sm:$0xff] %v13288_v17  ;;  %v13295_v30 = vld [vmem:[%s18133_s4 + $0x270] ss:$12 sps:$4 sm:$0xff]   ;;  %18822 = vst [vmem:[#allocation86_spill] sm:$0xff] %v13300_v41 }
 0x2a1   :  { %18821 = vst [vmem:[#allocation85_spill] sm:$0xff] %v13295_v30 }
 0x2a2   :  { %9178 = vmatpush3.bf16.msra.mxu1 %v13264_v15  ;;  %v13306_v15 = vld [vmem:[%s18133_s4 + $0x28c] ss:$12 sps:$4 sm:$0xff]  }
 0x2a3   :  { %2647 = vmatpush1.bf16.msra.mxu0 %v13271_v3  ;;  %9179 = vmatprep.subr.bf16.mxu1 %v13276_v5  ;;  %18823 = vst [vmem:[#allocation87_spill] sm:$0xff] %v13306_v15  ;;  %v13312_v5 = vld [vmem:[%s18133_s4 + $0x410] ss:$12 sps:$4 sm:$0xff]   ;;  %v13324_v3 = vld [vmem:[%s18133_s4 + $0x4e8] ss:$12 sps:$4 sm:$0xff]  }
 0x2a4   :  { %2648 = vmatprep.subr.bf16.mxu0 %v13282_v27  ;;  %18824 = vst [vmem:[#allocation88_spill] sm:$0xff] %v13312_v5  ;;  %v13319_v27 = vld [vmem:[%s18133_s4 + $0x288] ss:$12 sps:$4 sm:$0xff]   ;;  %18825 = vst [vmem:[#allocation89_spill] sm:$0xff] %v13324_v3 }
 0x2a6   :  { %9180 = vmatpush3.bf16.msra.mxu1 %v13288_v17  ;;  %v13330_v17 = vld [vmem:[%s18133_s4 + $0x2a4] ss:$12 sps:$4 sm:$0xff]  }
 0x2a7   :  { %2649 = vmatpush1.bf16.msra.mxu0 %v13295_v30  ;;  %9181 = vmatprep.subr.bf16.mxu1 %v13300_v41 }
 0x2a8   :  { %2650 = vmatprep.subr.bf16.mxu0 %v13306_v15  ;;  %v13332_v30 = vpop.f32.mrb[32].mxu1 }
 0x2a9   :  { %18826 = vst [vmem:[#allocation90_spill] sm:$0xff] %v13332_v30  ;;  %v13334_v41 = vpop.f32.mrb[32].mxu0  ;;  %v1599_v55 = vpop.f32.mrb[33].mxu1  ;;  %v13356_v30 = vld [vmem:[%s18133_s4 + $0x500] ss:$12 sps:$4 sm:$0xff]  }
 0x2aa   :  { %18827 = vst [vmem:[#allocation91_spill] sm:$0xff] %v13334_v41  ;;  %v13336_v53 = vpop.f32.mrb[33].mxu0  ;;  %9182 = vmatpush3.bf16.msra.mxu1 %v13312_v5  ;;  %v1600_v15 = vpop.f32.mrb[34].mxu1  ;;  %v13351_v55 = vld [vmem:[%s18133_s4 + $0x2a0] ss:$12 sps:$4 sm:$0xff]   ;;  %18830 = vst [vmem:[#allocation94_spill] sm:$0xff] %v13356_v30 }
 0x2ab   :  { %18828 = vst [vmem:[#allocation92_spill] sm:$0xff] %v13336_v53  ;;  %v1560_v35 = vpop.f32.mrb[34].mxu0  ;;  %2651 = vmatpush1.bf16.msra.mxu0 %v13319_v27  ;;  %9183 = vmatprep.subr.bf16.mxu1 %v13324_v3  ;;  %v1601_v41 = vpop.f32.mrb[35].mxu1  ;;  %v907_v53 = vmax.f32 %v861_v42, 0.0  ;;  %v13387_v42 = vld [vmem:[%s18133_s4 + $0x518] ss:$12 sps:$4 sm:$0xff]  }
 0x2ac   :  { %v1561_v15 = vpop.f32.mrb[35].mxu0  ;;  %2652 = vmatprep.subr.bf16.mxu0 %v13330_v17  ;;  %v13368_v35 = vld [vmem:[%s18133_s4 + $0x440] ss:$12 sps:$4 sm:$0xff]   ;;  %v13375_v41 = vld [vmem:[%s18133_s4 + $0x2b8] ss:$12 sps:$4 sm:$0xff]   ;;  %18832 = vst [vmem:[#allocation96_spill] sm:$0xff] %v13387_v42 }
 0x2ad   :  { %18831 = vst [vmem:[#allocation95_spill] sm:$0xff] %v13368_v35  ;;  %v13381_v15 = vld [vmem:[%s18133_s4 + $0x2d4] ss:$12 sps:$4 sm:$0xff]   ;;  %v13429_v5 = vld [vmem:[%s18133_s4 + $0x304] ss:$12 sps:$4 sm:$0xff]  }
 0x2ae   :  { %9184 = vmatpush3.bf16.msra.mxu1 %v13342_v2  ;;  %v13396_v2 = vld [vmem:[%s18133_s4 + $0x2d0] ss:$12 sps:$4 sm:$0xff]   ;;  %v13420_v3 = vld [vmem:[%s18133_s4 + $0x2e8] ss:$12 sps:$4 sm:$0xff]  }
 0x2af   :  { %2653 = vmatpush1.bf16.msra.mxu0 %v13351_v55  ;;  %9185 = vmatprep.subr.bf16.mxu1 %v13356_v30  ;;  %v13389_v30 = vpack.c.bf16 %v907_v53, %v907_v53  ;;  %18833 = vst [vmem:[#allocation97_spill] sm:$0xff] %v13396_v2  ;;  %v13409_v53 = vld [vmem:[%s18133_s4 + $0x530] ss:$12 sps:$4 sm:$0xff]  }
 0x2b0   :  { %2654 = vmatprep.subr.bf16.mxu0 %v13362_v14  ;;  %18835 = vst [vmem:[#allocation99_spill] sm:$0xff] %v13409_v53 }
 0x2b2   :  { %9186 = vmatpush3.bf16.msra.mxu1 %v13368_v35  ;;  %v13402_v35 = vld [vmem:[%s18133_s4 + $0x2ec] ss:$12 sps:$4 sm:$0xff]  }
 0x2b3   :  { %2655 = vmatpush1.bf16.msra.mxu0 %v13375_v41  ;;  %9871 = vmatprep.subr.bf16.mxu1 %v18770_v16  ;;  %18834 = vst [vmem:[#allocation98_spill] sm:$0xff] %v13402_v35 }
 0x2b4   :  { %2656 = vmatprep.subr.bf16.mxu0 %v13381_v15 }
 0x2b5   :  { %3227 = vmatmul.mubr.bf16.vlgmr.msra.gmra.mrb[56].mxu1 %v13389_v30 }
 0x2b6   :  { %9872 = vmatpush3.bf16.msra.mxu1 %v13387_v42  ;;  %9877 = vmatprep.mubr.msk.bf16.mxu1 %vm11410_vm2, %v18770_v16  ;;  %v10657_v42 = vld [vmem:[%s18133_s4 + $0x548] ss:$12 sps:$4 sm:$0x3f]  }
 0x2b7   :  { %2657 = vmatpush1.bf16.msra.mxu0 %v13396_v2  ;;  %9873 = vmatprep.subr.bf16.mxu1 %v18770_v16  ;;  %v13435_v12 = vsel %vm2146_vm3, %v10657_v42, 0  ;;  %v13440_v2 = vld [vmem:[%s18133_s4 + $0x300] ss:$12 sps:$4 sm:$0xff]   ;;  %v13456_v42 = vld [vmem:[%s18133_s4 + $0x318] ss:$12 sps:$4 sm:$0xff]  }
 0x2b8   :  { %2658 = vmatprep.subr.bf16.mxu0 %v13402_v35  ;;  %18836 = vst [vmem:[#allocation100_spill] sm:$0xff] %v13435_v12  ;;  %v13446_v35 = vld [vmem:[%s18133_s4 + $0x31c] ss:$12 sps:$4 sm:$0xff]  }
 0x2ba   :  { %9874 = vmatpush3.bf16.msra.mxu1 %v13409_v53  ;;  %v13462_v53 = vld [vmem:[%s18133_s4 + $0x334] ss:$12 sps:$4 sm:$0xff]  }
 0x2bb   :  { %2659 = vmatpush1.bf16.msra.mxu0 %v13420_v3  ;;  %9875 = vmatprep.subr.bf16.mxu1 %v18770_v16 }
 0x2bc   :  { %2660 = vmatprep.subr.bf16.mxu0 %v13429_v5 }
 0x2be   :  { %9876 = vmatpush3.bf16.msra.mxu1 %v13435_v12  ;;  %v13525_v12 = vld [vmem:[%s18133_s4 + $0x394] ss:$12 sps:$4 sm:$0xff]  }
 0x2bf   :  { %2661 = vmatpush1.bf16.msra.mxu0 %v13440_v2  ;;  %3283 = vmatprep.subr.bf16.mxu1 %v12615_v58  ;;  %v13473_v58 = vld [vmem:[%s18133_s4 + $0x330] ss:$12 sps:$4 sm:$0xff]   ;;  %18837 = vst [vmem:[#allocation101_spill] sm:$0xff] %v13525_v12 }
 0x2c0   :  { %2662 = vmatprep.subr.bf16.mxu0 %v13446_v35 }
 0x2c1   :  { %9878 = vmatmul.mubr.msk.bf16.vlgmr.msra.gmra.mrb[48].mxu1 %vm2142_vm4, %v13449_v33 }
 0x2c2   :  { %3284 = vmatpush1.bf16.msra.mxu1 %v12630_v48  ;;  %3315 = vmatprep.mubr.bf16.mxu1 %v12920_v29  ;;  %v13487_v48 = vld [vmem:[%s18133_s4 + $0x348] ss:$12 sps:$4 sm:$0xff]  }
 0x2c3   :  { %2663 = vmatpush1.bf16.msra.mxu0 %v13456_v42  ;;  %3285 = vmatprep.subr.bf16.mxu1 %v12641_v52  ;;  %v13493_v52 = vld [vmem:[%s18133_s4 + $0x364] ss:$12 sps:$4 sm:$0xff]  }
 0x2c4   :  { %2664 = vmatprep.subr.bf16.mxu0 %v13462_v53 }
 0x2c6   :  { %3286 = vmatpush1.bf16.msra.mxu1 %v12653_v1  ;;  %v13502_v1 = vld [vmem:[%s18133_s4 + $0x360] ss:$12 sps:$4 sm:$0xff]  }
 0x2c7   :  { %2665 = vmatpush1.bf16.msra.mxu0 %v13473_v58  ;;  %3287 = vmatprep.subr.bf16.mxu1 %v12664_v36  ;;  %v13508_v36 = vld [vmem:[%s18133_s4 + $0x37c] ss:$12 sps:$4 sm:$0x3f]  }
 0x2c8   :  { %2675 = vmatprep.subr.bf16.mxu0 %v13479_v13 }
 0x2ca   :  { %2667 = vmatmul.mubr.bf16.vlgmr.msra.gmra.mrb[44].mxu0 %v13112_v7  ;;  %3288 = vmatpush1.bf16.msra.mxu1 %v12684_v46  ;;  %v10673_v46 = vld [vmem:[%s18133_s4 + $0x378] ss:$12 sps:$4 sm:$0x3f]  }
 0x2cb   :  { %2676 = vmatpush1.bf16.msra.mxu0 %v13487_v48  ;;  %3289 = vmatprep.subr.bf16.mxu1 %v12695_v4  ;;  %v13520_v4 = vsel %vm2146_vm3, %v10673_v46, 0 }
 0x2cc   :  { %2677 = vmatprep.subr.bf16.mxu0 %v13493_v52  ;;  %2707 = vmatprep.mubr.bf16.mxu0 %v18790_v21 }
 0x2ce   :  { %3290 = vmatpush1.bf16.msra.mxu1 %v12708_v6  ;;  %v13533_v6 = vld [vmem:[%s18133_s4 + $0x390] ss:$12 sps:$4 sm:$0xff]  }
 0x2cf   :  { %2678 = vmatpush1.bf16.msra.mxu0 %v13502_v1  ;;  %3291 = vmatprep.subr.bf16.mxu1 %v12719_v9  ;;  %18838 = vst [vmem:[#allocation102_spill] sm:$0xff] %v13533_v6  ;;  %v13539_v9 = vld [vmem:[%s18133_s4 + $0x3ac] ss:$12 sps:$4 sm:$0xff]  }
 0x2d0   :  { %8865 = vmatprep.subr.msk.bf16.mxu0 %vm2146_vm3, %v13508_v36  ;;  %18839 = vst [vmem:[#allocation103_spill] sm:$0xff] %v13539_v9 }
 0x2d2   :  { %3292 = vmatpush1.bf16.msra.mxu1 %v12735_v50  ;;  %v13549_v50 = vld [vmem:[%s18133_s4 + $0x3a8] ss:$12 sps:$4 sm:$0xff]  }
 0x2d3   :  { %2680 = vmatpush1.bf16.msra.mxu0 %v13520_v4  ;;  %3293 = vmatprep.subr.bf16.mxu1 %v12746_v18  ;;  %18840 = vst [vmem:[#allocation104_spill] sm:$0xff] %v13549_v50  ;;  %v13556_v18 = vld [vmem:[%s18133_s4 + $0x3c4] ss:$12 sps:$4 sm:$0xff]  }
 0x2d4   :  { %3112 = vmatprep.subr.bf16.mxu0 %v13525_v12  ;;  %18841 = vst [vmem:[#allocation105_spill] sm:$0xff] %v13556_v18 }
 0x2d6   :  { %8866 = vmatmul.mubr.msk.bf16.vlgmr.msra.gmra.mrb[44].mxu0 %vm2142_vm4, %v13187_v54  ;;  %3294 = vmatpush1.bf16.msra.mxu1 %v12763_v8  ;;  %v13564_v8 = vld [vmem:[%s18133_s4 + $0x3c0] ss:$12 sps:$4 sm:$0xff]  }
 0x2d7   :  { %3113 = vmatpush1.bf16.msra.mxu0 %v13533_v6  ;;  %3144 = vmatprep.mubr.bf16.mxu0 %v13201_v62 }
 0x2d8   :  { %3295 = vmatprep.subr.bf16.mxu1 %v12774_v28  ;;  %3114 = vmatprep.subr.bf16.mxu0 %v13539_v9  ;;  %v13570_v28 = vld [vmem:[%s18133_s4 + $0x3dc] ss:$12 sps:$4 sm:$0xff]  }
 0x2da   :  { %3296 = vmatpush1.bf16.msra.mxu1 %v12789_v56 }
 0x2db   :  { %3115 = vmatpush1.bf16.msra.mxu0 %v13549_v50  ;;  %3297 = vmatprep.subr.bf16.mxu1 %v12800_v49 }
 0x2dc   :  { %3116 = vmatprep.subr.bf16.mxu0 %v13556_v18  ;;  %v13572_v46 = vpop.f32.mrb[36].mxu1  ;;  %v13584_v18 = vld [vmem:[%s18133_s4 + $0x3d8] ss:$12 sps:$4 sm:$0xff]  }
 0x2dd   :  { %18842 = vst [vmem:[#allocation106_spill] sm:$0xff] %v13572_v46  ;;  %v13574_v9 = vpop.f32.mrb[36].mxu0  ;;  %v1715_v56 = vpop.f32.mrb[37].mxu1 }
 0x2de   :  { %18843 = vst [vmem:[#allocation107_spill] sm:$0xff] %v13574_v9  ;;  %v13576_v50 = vpop.f32.mrb[37].mxu0  ;;  %3298 = vmatpush1.bf16.msra.mxu1 %v12816_v43  ;;  %v1716_v49 = vpop.f32.mrb[38].mxu1  ;;  %v13590_v56 = vld [vmem:[%s18133_s4 + $0x3f4] ss:$12 sps:$4 sm:$0xff]  }
 0x2df   :  { %18844 = vst [vmem:[#allocation108_spill] sm:$0xff] %v13576_v50  ;;  %v1676_v6 = vpop.f32.mrb[38].mxu0  ;;  %3117 = vmatpush1.bf16.msra.mxu0 %v13564_v8  ;;  %3299 = vmatprep.subr.bf16.mxu1 %v12822_v45  ;;  %v1717_v12 = vpop.f32.mrb[39].mxu1  ;;  %18845 = vst [vmem:[#allocation109_spill] sm:$0xff] %v13590_v56  ;;  %v13598_v43 = vld [vmem:[%s18133_s4 + $0x3f0] ss:$12 sps:$4 sm:$0xff]  }
 0x2e0   :  { %v1677_v46 = vpop.f32.mrb[39].mxu0  ;;  %3118 = vmatprep.subr.bf16.mxu0 %v13570_v28  ;;  %v13604_v45 = vld [vmem:[%s18133_s4 + $0x40c] ss:$12 sps:$4 sm:$0xff]   ;;  %v13618_v12 = vld [vmem:[%s18133_s4 + $0x424] ss:$12 sps:$4 sm:$0xff]  }
 0x2e1   :  { %18847 = vst [vmem:[#allocation111_spill] sm:$0xff] %v13618_v12  ;;  %v18870_v9 = vld [vmem:[#allocation15_spill] sm:$0xff]  ;;  %v13778_v50 = vld [vmem:[%s18133_s4 + $0x510] ss:$12 sps:$4 sm:$0xff]  }
 0x2e2   :  { %3300 = vmatpush1.bf16.msra.mxu1 %v12841_v26  ;;  %v13612_v26 = vld [vmem:[%s18133_s4 + $0x408] ss:$12 sps:$4 sm:$0xff]   ;;  %18871 = vst [vmem:[#allocation15_spill] sm:$0xff] %v13778_v50 }
 0x2e3   :  { %3119 = vmatpush1.bf16.msra.mxu0 %v13584_v18  ;;  %3301 = vmatprep.subr.bf16.mxu1 %v12847_v51  ;;  %18846 = vst [vmem:[#allocation110_spill] sm:$0xff] %v13612_v26  ;;  %v13632_v51 = vld [vmem:[%s18133_s4 + $0x43c] ss:$12 sps:$4 sm:$0xff]  }
 0x2e4   :  { %3120 = vmatprep.subr.bf16.mxu0 %v13590_v56  ;;  %18849 = vst [vmem:[#allocation113_spill] sm:$0xff] %v13632_v51 }
 0x2e6   :  { %3302 = vmatpush1.bf16.msra.mxu1 %v12865_v39  ;;  %v13626_v39 = vld [vmem:[%s18133_s4 + $0x420] ss:$12 sps:$4 sm:$0xff]  }
 0x2e7   :  { %3121 = vmatpush1.bf16.msra.mxu0 %v13598_v43  ;;  %3303 = vmatprep.subr.bf16.mxu1 %v12876_v47  ;;  %18848 = vst [vmem:[#allocation112_spill] sm:$0xff] %v13626_v39  ;;  %v13640_v47 = vld [vmem:[%s18133_s4 + $0x438] ss:$12 sps:$4 sm:$0xff]  }
 0x2e8   :  { %3122 = vmatprep.subr.bf16.mxu0 %v13604_v45 }
 0x2ea   :  { %3304 = vmatpush1.bf16.msra.mxu1 %v12887_v20  ;;  %v13646_v20 = vld [vmem:[%s18133_s4 + $0x454] ss:$12 sps:$4 sm:$0xff]  }
 0x2eb   :  { %3123 = vmatpush1.bf16.msra.mxu0 %v13612_v26  ;;  %3305 = vmatprep.subr.bf16.mxu1 %v12898_v38  ;;  %18850 = vst [vmem:[#allocation114_spill] sm:$0xff] %v13646_v20  ;;  %v13654_v38 = vld [vmem:[%s18133_s4 + $0x450] ss:$12 sps:$4 sm:$0xff]  }
 0x2ec   :  { %3124 = vmatprep.subr.bf16.mxu0 %v13618_v12  ;;  %18851 = vst [vmem:[#allocation115_spill] sm:$0xff] %v13654_v38 }
 0x2ee   :  { %3306 = vmatpush1.bf16.msra.mxu1 %v12913_v34  ;;  %v13660_v34 = vld [vmem:[%s18133_s4 + $0x46c] ss:$12 sps:$4 sm:$0xff]  }
 0x2ef   :  { %3125 = vmatpush1.bf16.msra.mxu0 %v13626_v39  ;;  %3307 = vmatprep.subr.bf16.mxu1 %v12926_v0  ;;  %18852 = vst [vmem:[#allocation116_spill] sm:$0xff] %v13660_v34  ;;  %v13674_v0 = vld [vmem:[%s18133_s4 + $0x484] ss:$12 sps:$4 sm:$0xff]  }
 0x2f0   :  { %3126 = vmatprep.subr.bf16.mxu0 %v13632_v51  ;;  %18854 = vst [vmem:[#allocation118_spill] sm:$0xff] %v13674_v0 }
 0x2f2   :  { %3308 = vmatpush1.bf16.msra.mxu1 %v12942_v37  ;;  %v13718_v37 = vld [vmem:[%s18133_s4 + $0x4cc] ss:$12 sps:$4 sm:$0xff]  }
 0x2f3   :  { %3127 = vmatpush1.bf16.msra.mxu0 %v13640_v47  ;;  %3309 = vmatprep.subr.bf16.mxu1 %v12953_v40  ;;  %v13668_v40 = vld [vmem:[%s18133_s4 + $0x468] ss:$12 sps:$4 sm:$0xff]   ;;  %18860 = vst [vmem:[#allocation124_spill] sm:$0xff] %v13718_v37 }
 0x2f4   :  { %3128 = vmatprep.subr.bf16.mxu0 %v13646_v20  ;;  %18853 = vst [vmem:[#allocation117_spill] sm:$0xff] %v13668_v40 }
 0x2f6   :  { %3310 = vmatpush1.bf16.msra.mxu1 %v12966_v24  ;;  %v13688_v24 = vld [vmem:[%s18133_s4 + $0x49c] ss:$12 sps:$4 sm:$0xff]  }
 0x2f7   :  { %3129 = vmatpush1.bf16.msra.mxu0 %v13654_v38  ;;  %3311 = vmatprep.subr.bf16.mxu1 %v12977_v19  ;;  %v13682_v19 = vld [vmem:[%s18133_s4 + $0x480] ss:$12 sps:$4 sm:$0xff]   ;;  %18856 = vst [vmem:[#allocation120_spill] sm:$0xff] %v13688_v24 }
 0x2f8   :  { %3130 = vmatprep.subr.bf16.mxu0 %v13660_v34  ;;  %18855 = vst [vmem:[#allocation119_spill] sm:$0xff] %v13682_v19 }
 0x2fa   :  { %3312 = vmatpush1.bf16.msra.mxu1 %v12990_v32  ;;  %v13702_v32 = vld [vmem:[%s18133_s4 + $0x4b4] ss:$12 sps:$4 sm:$0xff]  }
 0x2fb   :  { %3131 = vmatpush1.bf16.msra.mxu0 %v13668_v40  ;;  %3313 = vmatprep.subr.bf16.mxu1 %v13001_v25  ;;  %v13696_v25 = vld [vmem:[%s18133_s4 + $0x498] ss:$12 sps:$4 sm:$0xff]   ;;  %18858 = vst [vmem:[#allocation122_spill] sm:$0xff] %v13702_v32 }
 0x2fc   :  { %3132 = vmatprep.subr.bf16.mxu0 %v13674_v0  ;;  %18857 = vst [vmem:[#allocation121_spill] sm:$0xff] %v13696_v25 }
 0x2fe   :  { %3314 = vmatpush1.bf16.msra.mxu1 %v13020_v59  ;;  %v13712_v59 = vld [vmem:[%s18133_s4 + $0x4b0] ss:$12 sps:$4 sm:$0xff]  }
 0x2ff   :  { %3133 = vmatpush1.bf16.msra.mxu0 %v13682_v19  ;;  %3324 = vmatprep.subr.bf16.mxu1 %v13031_v10  ;;  %18859 = vst [vmem:[#allocation123_spill] sm:$0xff] %v13712_v59  ;;  %v13733_v10 = vld [vmem:[%s18133_s4 + $0x4e4] ss:$12 sps:$4 sm:$0xff]  }
 0x300   :  { %3134 = vmatprep.subr.bf16.mxu0 %v13688_v24  ;;  %18862 = vst [vmem:[#allocation126_spill] sm:$0xff] %v13733_v10 }
 0x301   :  { %3316 = vmatmul.mubr.bf16.vlgmr.msra.gmra.mrb[60].mxu1 %v13112_v7 }
 0x302   :  { %3325 = vmatpush1.bf16.msra.mxu1 %v13044_v44  ;;  %3356 = vmatprep.mubr.bf16.mxu1 %v18790_v21  ;;  %v13747_v44 = vld [vmem:[%s18133_s4 + $0x4fc] ss:$12 sps:$4 sm:$0xff]  }
 0x303   :  { %3135 = vmatpush1.bf16.msra.mxu0 %v13696_v25  ;;  %3326 = vmatprep.subr.bf16.mxu1 %v13055_v11  ;;  %v13727_v11 = vld [vmem:[%s18133_s4 + $0x4c8] ss:$12 sps:$4 sm:$0xff]   ;;  %18864 = vst [vmem:[#allocation128_spill] sm:$0xff] %v13747_v44 }
 0x304   :  { %3136 = vmatprep.subr.bf16.mxu0 %v13702_v32  ;;  %18861 = vst [vmem:[#allocation125_spill] sm:$0xff] %v13727_v11 }
 0x306   :  { %3327 = vmatpush1.bf16.msra.mxu1 %v13071_v23  ;;  %v13741_v23 = vld [vmem:[%s18133_s4 + $0x4e0] ss:$12 sps:$4 sm:$0xff]  }
 0x307   :  { %3137 = vmatpush1.bf16.msra.mxu0 %v13712_v59  ;;  %8928 = vmatprep.subr.msk.bf16.mxu1 %vm2146_vm3, %v13082_v63  ;;  %18863 = vst [vmem:[#allocation127_spill] sm:$0xff] %v13741_v23  ;;  %v13764_v63 = vld [vmem:[%s18133_s4 + $0x514] ss:$12 sps:$4 sm:$0xff]  }
 0x308   :  { %3138 = vmatprep.subr.bf16.mxu0 %v13718_v37  ;;  %18866 = vst [vmem:[#allocation130_spill] sm:$0xff] %v13764_v63 }
 0x30a   :  { %3329 = vmatpush1.bf16.msra.mxu1 %v13099_v22 }
 0x30b   :  { %3139 = vmatpush1.bf16.msra.mxu0 %v13727_v11  ;;  %9197 = vmatprep.subr.bf16.mxu1 %v12608_v57  ;;  %v13758_v57 = vld [vmem:[%s18133_s4 + $0x4f8] ss:$12 sps:$4 sm:$0xff]  }
 0x30c   :  { %3140 = vmatprep.subr.bf16.mxu0 %v13733_v10  ;;  %18865 = vst [vmem:[#allocation129_spill] sm:$0xff] %v13758_v57 }
 0x30d   :  { %8929 = vmatmul.mubr.msk.bf16.vlgmr.msra.gmra.mrb[60].mxu1 %vm2142_vm4, %v13187_v54 }
 0x30e   :  { %9198 = vmatpush3.bf16.msra.mxu1 %v12623_v60  ;;  %3397 = vmatprep.mubr.bf16.mxu1 %v12920_v29 }
 0x30f   :  { %3141 = vmatpush1.bf16.msra.mxu0 %v13741_v23  ;;  %9199 = vmatprep.subr.bf16.mxu1 %v12636_v31 }
 0x310   :  { %3142 = vmatprep.subr.bf16.mxu0 %v13747_v44  ;;  %v13766_v6 = vpop.f32.mrb[40].mxu1 }
 0x311   :  { %18867 = vst [vmem:[#allocation131_spill] sm:$0xff] %v13766_v6  ;;  %v13768_v60 = vpop.f32.mrb[40].mxu0  ;;  %v1831_v29 = vpop.f32.mrb[41].mxu1 }
 0x312   :  { %18868 = vst [vmem:[#allocation132_spill] sm:$0xff] %v13768_v60  ;;  %v13770_v46 = vpop.f32.mrb[41].mxu0  ;;  %9200 = vmatpush3.bf16.msra.mxu1 %v12647_v61  ;;  %v1832_v31 = vpop.f32.mrb[42].mxu1  ;;  %v13784_v29 = vld [vmem:[%s18133_s4 + $0x52c] ss:$12 sps:$4 sm:$0xff]   ;;  %v18873_v61 = vld [vmem:[#allocation19_spill] sm:$0xff] }
 0x313   :  { %18869 = vst [vmem:[#allocation133_spill] sm:$0xff] %v13770_v46  ;;  %v1792_v49 = vpop.f32.mrb[42].mxu0  ;;  %3143 = vmatpush1.bf16.msra.mxu0 %v13758_v57  ;;  %9201 = vmatprep.subr.bf16.mxu1 %v18870_v9  ;;  %v1833_v22 = vpop.f32.mrb[43].mxu1  ;;  %18872 = vst [vmem:[#allocation134_spill] sm:$0xff] %v13784_v29  ;;  %v18874_v9 = vld [vmem:[#allocation20_spill] sm:$0xff]  ;;  %v18880_v60 = vld [vmem:[#allocation23_spill] sm:$0xff] }
 0x314   :  { %v1793_v6 = vpop.f32.mrb[43].mxu0  ;;  %3153 = vmatprep.subr.bf16.mxu0 %v13764_v63  ;;  %v13793_v22 = vld [vmem:[%s18133_s4 + $0x528] ss:$12 sps:$4 sm:$0xff]   ;;  %v10730_v31 = vld [vmem:[%s18133_s4 + $0x540] ss:$12 sps:$4 sm:$0x3f]  }
 0x315   :  { %18875 = vst [vmem:[#allocation19_spill] sm:$0xff] %v13793_v22  ;;  %v13799_v6 = vld [vmem:[%s18133_s4 + $0x544] ss:$12 sps:$4 sm:$0x3f]   ;;  %v18901_v63 = vld [vmem:[#allocation42_spill] sm:$0xff] }
 0x316   :  { %3145 = vmatmul.mubr.bf16.vlgmr.msra.gmra.mrb[44].mxu0 %v13389_v30  ;;  %9202 = vmatpush3.bf16.msra.mxu1 %v18873_v61  ;;  %18876 = vst [vmem:[#allocation20_spill] sm:$0xff] %v13799_v6  ;;  %v18877_v49 = vld [vmem:[#allocation21_spill] sm:$0xff]  ;;  %v18878_v61 = vld [vmem:[#allocation22_spill] sm:$0xff]  ;;  %v18902_v57 = vld [vmem:[#allocation67_spill] sm:$0xff] }
 0x317   :  { %3154 = vmatpush1.bf16.msra.mxu0 %v13778_v50  ;;  %9203 = vmatprep.subr.bf16.mxu1 %v18874_v9  ;;  %v13811_v9 = vsel %vm2146_vm3, %v10730_v31, 0  ;;  %v18881_v46 = vld [vmem:[#allocation25_spill] sm:$0xff]  ;;  %v18886_v31 = vld [vmem:[#allocation35_spill] sm:$0xff] }
 0x318   :  { %3155 = vmatprep.subr.bf16.mxu0 %v13784_v29  ;;  %3185 = vmatprep.mubr.bf16.mxu0 %v18790_v21  ;;  %18879 = vst [vmem:[#allocation21_spill] sm:$0xff] %v13811_v9  ;;  %v18899_v50 = vld [vmem:[#allocation41_spill] sm:$0xff] }
 0x31a   :  { %9204 = vmatpush3.bf16.msra.mxu1 %v18877_v49  ;;  %v18882_v49 = vld [vmem:[#allocation26_spill] sm:$0xff] }
 0x31b   :  { %3156 = vmatpush1.bf16.msra.mxu0 %v13793_v22  ;;  %9205 = vmatprep.subr.bf16.mxu1 %v18878_v61  ;;  %v18883_v61 = vld [vmem:[#allocation33_spill] sm:$0xff]  ;;  %v18884_v22 = vld [vmem:[#allocation28_spill] sm:$0xff] }
 0x31c   :  { %8925 = vmatprep.subr.msk.bf16.mxu0 %vm2146_vm3, %v13799_v6 }
 0x31e   :  { %9206 = vmatpush3.bf16.msra.mxu1 %v18880_v60  ;;  %v18885_v60 = vld [vmem:[#allocation29_spill] sm:$0xff] }
 0x31f   :  { %3158 = vmatpush1.bf16.msra.mxu0 %v13811_v9  ;;  %9207 = vmatprep.subr.bf16.mxu1 %v18881_v46  ;;  %v18887_v46 = vld [vmem:[#allocation30_spill] sm:$0xff]  ;;  %v18888_v9 = vld [vmem:[#allocation31_spill] sm:$0xff] }
 0x320   :  { %9881 = vmatprep.subr.bf16.mxu0 %v18770_v16 }
 0x322   :  { %8926 = vmatmul.mubr.msk.bf16.vlgmr.msra.gmra.mrb[44].mxu0 %vm2142_vm4, %v13449_v33  ;;  %9208 = vmatpush3.bf16.msra.mxu1 %v18882_v49  ;;  %v18889_v49 = vld [vmem:[#allocation36_spill] sm:$0xff] }
 0x323   :  { %9882 = vmatpush3.bf16.msra.mxu0 %v18883_v61  ;;  %9209 = vmatprep.subr.bf16.mxu1 %v18884_v22  ;;  %v18890_v61 = vld [vmem:[#allocation57_spill] sm:$0xff] }
 0x324   :  { %9883 = vmatprep.subr.bf16.mxu0 %v18770_v16  ;;  %9887 = vmatprep.mubr.msk.bf16.mxu0 %vm11410_vm2, %v18770_v16  ;;  %v18891_v22 = vld [vmem:[#allocation37_spill] sm:$0xff] }
 0x326   :  { %9210 = vmatpush3.bf16.msra.mxu1 %v18885_v60  ;;  %v18892_v60 = vld [vmem:[#allocation59_spill] sm:$0xff] }
 0x327   :  { %9884 = vmatpush3.bf16.msra.mxu0 %v18886_v31  ;;  %9211 = vmatprep.subr.bf16.mxu1 %v18887_v46  ;;  %v18893_v31 = vld [vmem:[#allocation38_spill] sm:$0xff]  ;;  %v18894_v46 = vld [vmem:[#allocation60_spill] sm:$0xff] }
 0x328   :  { %9885 = vmatprep.subr.bf16.mxu0 %v18770_v16 }
 0x32a   :  { %9212 = vmatpush3.bf16.msra.mxu1 %v18888_v9 }
 0x32b   :  { %9886 = vmatpush3.bf16.msra.mxu0 %v18889_v49  ;;  %3448 = vmatprep.subr.bf16.mxu1 %v18890_v61  ;;  %v18895_v61 = vld [vmem:[#allocation39_spill] sm:$0xff] }
 0x32c   :  { %9223 = vmatprep.subr.bf16.mxu0 %v18891_v22 }
 0x32d   :  { %3398 = vmatmul.mubr.bf16.vlgmr.msra.gmra.mrb[64].mxu1 %v13112_v7  ;;  %v18896_v7 = vld [vmem:[#allocation62_spill] sm:$0xff] }
 0x32e   :  { %9888 = vmatmul.mubr.msk.bf16.vlgmr.msra.gmra.mrb[48].mxu0 %vm2142_vm4, %v13187_v54  ;;  %3449 = vmatpush1.bf16.msra.mxu1 %v18892_v60  ;;  %v18897_v54 = vld [vmem:[#allocation40_spill] sm:$0xff]  ;;  %v18898_v60 = vld [vmem:[#allocation63_spill] sm:$0xff] }
 0x32f   :  { %3480 = vmatprep.mubr.bf16.mxu1 %v13201_v62  ;;  %9224 = vmatpush3.bf16.msra.mxu0 %v18893_v31  ;;  %v18900_v31 = vld [vmem:[#allocation65_spill] sm:$0xff] }
 0x330   :  { %3562 = vmatprep.mubr.bf16.mxu0 %v13201_v62  ;;  %v9135_v9 = vpop.f32.mrb[44].mxu1  ;;  %3450 = vmatprep.subr.bf16.mxu1 %v18894_v46  ;;  %v18903_v46 = vld [vmem:[#allocation43_spill] sm:$0xff] }
 0x331   :  { %v9136_v49 = vpop.f32.mrb[45].mxu1  ;;  %9225 = vmatprep.subr.bf16.mxu0 %v18895_v61  ;;  %v18904_v61 = vld [vmem:[#allocation69_spill] sm:$0xff] }
 0x332   :  { %v9137_v22 = vadd.f32 %v9136_v49, %v9135_v9  ;;  %v9138_v6 = vpop.f32.mrb[46].mxu1  ;;  %3451 = vmatpush1.bf16.msra.mxu1 %v18896_v7  ;;  %v18906_v49 = vld [vmem:[#allocation71_spill] sm:$0xff]  ;;  %v18908_v9 = vld [vmem:[#allocation73_spill] sm:$0xff] }
 0x333   :  { %v9139_v29 = vpop.f32.mrb[47].mxu1  ;;  %9226 = vmatpush3.bf16.msra.mxu0 %v18897_v54  ;;  %3452 = vmatprep.subr.bf16.mxu1 %v18898_v60  ;;  %v18905_v6 = vld [vmem:[#allocation44_spill] sm:$0xff]  ;;  %v18909_v7 = vld [vmem:[#allocation49_spill] sm:$0xff]  ;;  %v18911_v54 = vld [vmem:[#allocation50_spill] sm:$0xff] }
 0x334   :  { %9227 = vmatprep.subr.bf16.mxu0 %v18899_v50  ;;  %v18907_v29 = vld [vmem:[#allocation45_spill] sm:$0xff]  ;;  %v18910_v50 = vld [vmem:[#allocation75_spill] sm:$0xff] }
 0x335   :  { %v18914_v60 = vld [vmem:[#allocation79_spill] sm:$0xff] }
 0x336   :  { %3453 = vmatpush1.bf16.msra.mxu1 %v18900_v31  ;;  %v18915_v31 = vld [vmem:[#allocation52_spill] sm:$0xff] }
 0x337   :  { %9228 = vmatpush3.bf16.msra.mxu0 %v18901_v63  ;;  %3454 = vmatprep.subr.bf16.mxu1 %v18902_v57  ;;  %v18912_v63 = vld [vmem:[#allocation77_spill] sm:$0xff]  ;;  %v18913_v57 = vld [vmem:[#allocation51_spill] sm:$0xff] }
 0x338   :  { %9229 = vmatprep.subr.bf16.mxu0 %v18903_v46  ;;  %v18916_v46 = vld [vmem:[#allocation81_spill] sm:$0xff] }
 0x33a   :  { %3455 = vmatpush1.bf16.msra.mxu1 %v18904_v61  ;;  %v18917_v61 = vld [vmem:[#allocation53_spill] sm:$0xff] }
 0x33b   :  { %9230 = vmatpush3.bf16.msra.mxu0 %v18905_v6  ;;  %3456 = vmatprep.subr.bf16.mxu1 %v18906_v49  ;;  %v18918_v6 = vld [vmem:[#allocation83_spill] sm:$0xff]  ;;  %v18919_v49 = vld [vmem:[#allocation54_spill] sm:$0xff] }
 0x33c   :  { %9231 = vmatprep.subr.bf16.mxu0 %v18907_v29  ;;  %v18920_v29 = vld [vmem:[#allocation85_spill] sm:$0xff] }
 0x33e   :  { %3457 = vmatpush1.bf16.msra.mxu1 %v18908_v9  ;;  %v18921_v9 = vld [vmem:[#allocation55_spill] sm:$0xff] }
 0x33f   :  { %9232 = vmatpush3.bf16.msra.mxu0 %v18909_v7  ;;  %3458 = vmatprep.subr.bf16.mxu1 %v18910_v50  ;;  %v18922_v7 = vld [vmem:[#allocation87_spill] sm:$0xff]  ;;  %v18923_v50 = vld [vmem:[#allocation58_spill] sm:$0xff] }
 0x340   :  { %9233 = vmatprep.subr.bf16.mxu0 %v18911_v54  ;;  %v18924_v54 = vld [vmem:[#allocation14_spill] sm:$0xff] }
 0x342   :  { %3459 = vmatpush1.bf16.msra.mxu1 %v18912_v63  ;;  %v18925_v63 = vld [vmem:[#allocation6_spill] sm:$0xff] }
 0x343   :  { %9234 = vmatpush3.bf16.msra.mxu0 %v18913_v57  ;;  %3460 = vmatprep.subr.bf16.mxu1 %v18914_v60  ;;  %v979_v57 = vadd.f32 %v18925_v63, %v18924_v54  ;;  %v18926_v60 = vld [vmem:[#allocation61_spill] sm:$0xff] }
 0x344   :  { %9235 = vmatprep.subr.bf16.mxu0 %v18915_v31  ;;  %v18928_v31 = vld [vmem:[#allocation64_spill] sm:$0xff] }
 0x346   :  { %3461 = vmatpush1.bf16.msra.mxu1 %v18916_v46  ;;  %v18929_v46 = vld [vmem:[#allocation66_spill] sm:$0xff] }
 0x347   :  { %9236 = vmatpush3.bf16.msra.mxu0 %v18917_v61  ;;  %3462 = vmatprep.subr.bf16.mxu1 %v18918_v6  ;;  %v18930_v61 = vld [vmem:[#allocation32_spill] sm:$0xff]  ;;  %v18931_v6 = vld [vmem:[#allocation97_spill] sm:$0xff] }
 0x348   :  { %9237 = vmatprep.subr.bf16.mxu0 %v18919_v49 }
 0x34a   :  { %3463 = vmatpush1.bf16.msra.mxu1 %v18920_v29  ;;  %v18933_v29 = vld [vmem:[#allocation98_spill] sm:$0xff] }
 0x34b   :  { %9238 = vmatpush3.bf16.msra.mxu0 %v18921_v9  ;;  %3464 = vmatprep.subr.bf16.mxu1 %v18922_v7 }
 0x34c   :  { %9891 = vmatprep.subr.bf16.mxu0 %v18770_v16 }
 0x34e   :  { %3465 = vmatpush1.bf16.msra.mxu1 %v13319_v27  ;;  %3563 = vmatmul.mubr.bf16.vlgmr.msra.gmra.mrb[52].mxu0 %v13389_v30  ;;  %v1024_v27 = vmax.f32 %v979_v57, 0.0 }
 0x34f   :  { %9892 = vmatpush3.bf16.msra.mxu0 %v18923_v50  ;;  %3466 = vmatprep.subr.bf16.mxu1 %v13330_v17  ;;  %v13887_v17 = vld [vmem:[%s18135_s5] sm:$0x7] }
 0x350   :  { %9893 = vmatprep.subr.bf16.mxu0 %v18770_v16  ;;  %9897 = vmatprep.mubr.msk.bf16.mxu0 %vm11410_vm2, %v18770_v16  ;;  %18927 = vst [vmem:[#allocation22_spill] sm:$0xff] %v13887_v17 }
 0x352   :  { %3467 = vmatpush1.bf16.msra.mxu1 %v13351_v55  ;;  %v13892_v55 = vpack.c.bf16 %v1024_v27, %v1024_v27 }
 0x353   :  { %9894 = vmatpush3.bf16.msra.mxu0 %v18926_v60  ;;  %3468 = vmatprep.subr.bf16.mxu1 %v13362_v14  ;;  %v13896_v14 = vrot.slane %v13887_v17, %v18930_v61  ;;  %v18935_v60 = vld [vmem:[#allocation72_spill] sm:$0xff] }
 0x354   :  { %9895 = vmatprep.subr.bf16.mxu0 %v18770_v16 }
 0x355   :  { %v10143_v7 = vadd.f32 %v9137_v22, %v13896_v14  ;;  %v18938_v22 = vld [vmem:[#allocation78_spill] sm:$0xff] }
 0x356   :  { %3469 = vmatpush1.bf16.msra.mxu1 %v13375_v41  ;;  %v18932_v41 = vld [vmem:[#allocation68_spill] sm:$0xff] }
 0x357   :  { %9896 = vmatpush3.bf16.msra.mxu0 %v18928_v31  ;;  %3470 = vmatprep.subr.bf16.mxu1 %v13381_v15  ;;  %v18934_v15 = vld [vmem:[#allocation70_spill] sm:$0xff] }
 0x358   :  { %9249 = vmatprep.subr.bf16.mxu0 %v18929_v46  ;;  %v18936_v46 = vld [vmem:[#allocation74_spill] sm:$0xff] }
 0x35a   :  { %3471 = vmatpush1.bf16.msra.mxu1 %v18931_v6  ;;  %9898 = vmatmul.mubr.msk.bf16.vlgmr.msra.gmra.mrb[48].mxu0 %vm2142_vm4, %v13449_v33  ;;  %v18937_v6 = vld [vmem:[#allocation76_spill] sm:$0xff] }
 0x35b   :  { %9250 = vmatpush3.bf16.msra.mxu0 %v18932_v41  ;;  %3730 = vmatprep.mubr.bf16.mxu0 %v13892_v55  ;;  %v18939_v41 = vld [vmem:[#allocation80_spill] sm:$0xff] }
 0x35c   :  { %v9161_v49 = vpop.f32.mrb[52].mxu1  ;;  %3472 = vmatprep.subr.bf16.mxu1 %v18933_v29  ;;  %9251 = vmatprep.subr.bf16.mxu0 %v18934_v15  ;;  %v18941_v29 = vld [vmem:[#allocation84_spill] sm:$0xff]  ;;  %v18942_v15 = vld [vmem:[#allocation86_spill] sm:$0xff] }
 0x35d   :  { %v9162_v9 = vpop.f32.mrb[53].mxu1 }
 0x35e   :  { %v9163_v50 = vadd.f32 %v9162_v9, %v9161_v49  ;;  %v9164_v63 = vpop.f32.mrb[54].mxu1  ;;  %3473 = vmatpush1.bf16.msra.mxu1 %v13420_v3  ;;  %v18940_v49 = vld [vmem:[#allocation82_spill] sm:$0xff]  ;;  %v18943_v9 = vld [vmem:[#allocation88_spill] sm:$0xff] }
 0x35f   :  { %v9165_v57 = vpop.f32.mrb[55].mxu1  ;;  %9252 = vmatpush3.bf16.msra.mxu0 %v18935_v60  ;;  %3474 = vmatprep.subr.bf16.mxu1 %v13429_v5  ;;  %v18946_v63 = vld [vmem:[#allocation5_spill] sm:$0xff] }
 0x360   :  { %v13909_v27 = vadd.f32 %v10143_v7, %v9163_v50  ;;  %9253 = vmatprep.subr.bf16.mxu0 %v18936_v46  ;;  %v18944_v7 = vld [vmem:[#allocation89_spill] sm:$0xff]  ;;  %v18945_v50 = vld [vmem:[#allocation27_spill] sm:$0xff]  ;;  %v18948_v46 = vld [vmem:[#allocation94_spill] sm:$0xff] }
 0x361   :  { %v977_v57 = vadd.f32 %v18946_v63, %v18945_v50  ;;  %v18947_v60 = vld [vmem:[#allocation93_spill] sm:$0xff]  ;;  %v18955_v63 = vld [vmem:[#allocation4_spill] sm:$0xff] }
 0x362   :  { %3475 = vmatpush1.bf16.msra.mxu1 %v13440_v2 }
 0x363   :  { %9254 = vmatpush3.bf16.msra.mxu0 %v18937_v6  ;;  %3476 = vmatprep.subr.bf16.mxu1 %v13446_v35  ;;  %v1023_v6 = vmax.f32 %v977_v57, 0.0 }
 0x364   :  { %9255 = vmatprep.subr.bf16.mxu0 %v18938_v22  ;;  %v18949_v22 = vld [vmem:[#allocation95_spill] sm:$0xff] }
 0x366   :  { %3477 = vmatpush1.bf16.msra.mxu1 %v13456_v42 }
 0x367   :  { %9256 = vmatpush3.bf16.msra.mxu0 %v18939_v41  ;;  %3478 = vmatprep.subr.bf16.mxu1 %v13462_v53  ;;  %v18950_v41 = vld [vmem:[#allocation101_spill] sm:$0xff] }
 0x368   :  { %9257 = vmatprep.subr.bf16.mxu0 %v18940_v49  ;;  %v13941_v49 = vpack.c.bf16 %v1023_v6, %v1023_v6  ;;  %v18958_v6 = vld [vmem:[#allocation99_spill] sm:$0xff] }
 0x36a   :  { %3479 = vmatpush1.bf16.msra.mxu1 %v13473_v58 }
 0x36b   :  { %9258 = vmatpush3.bf16.msra.mxu0 %v18941_v29  ;;  %3489 = vmatprep.subr.bf16.mxu1 %v13479_v13  ;;  %v18951_v29 = vld [vmem:[#allocation102_spill] sm:$0xff] }
 0x36c   :  { %9259 = vmatprep.subr.bf16.mxu0 %v18942_v15  ;;  %v18952_v15 = vld [vmem:[#allocation103_spill] sm:$0xff] }
 0x36d   :  { %3481 = vmatmul.mubr.bf16.vlgmr.msra.gmra.mrb[60].mxu1 %v13389_v30 }
 0x36e   :  { %3490 = vmatpush1.bf16.msra.mxu1 %v13487_v48  ;;  %3521 = vmatprep.mubr.bf16.mxu1 %v18790_v21 }
 0x36f   :  { %9260 = vmatpush3.bf16.msra.mxu0 %v18943_v9  ;;  %3491 = vmatprep.subr.bf16.mxu1 %v13493_v52  ;;  %v18953_v9 = vld [vmem:[#allocation96_spill] sm:$0xff] }
 0x370   :  { %9261 = vmatprep.subr.bf16.mxu0 %v18944_v7  ;;  %v18954_v7 = vld [vmem:[#allocation34_spill] sm:$0xff] }
 0x371   :  { %v1018_v57 = vadd.f32 %v18955_v63, %v18954_v7 }
 0x372   :  { %3492 = vmatpush1.bf16.msra.mxu1 %v13502_v1 }
 0x373   :  { %9262 = vmatpush3.bf16.msra.mxu0 %v18947_v60  ;;  %8931 = vmatprep.subr.msk.bf16.mxu1 %vm2146_vm3, %v13508_v36  ;;  %v18956_v60 = vld [vmem:[#allocation104_spill] sm:$0xff] }
 0x374   :  { %9263 = vmatprep.subr.bf16.mxu0 %v18948_v46  ;;  %v18957_v46 = vld [vmem:[#allocation105_spill] sm:$0xff] }
 0x376   :  { %3494 = vmatpush1.bf16.msra.mxu1 %v13520_v4 }
 0x377   :  { %9264 = vmatpush3.bf16.msra.mxu0 %v18949_v22  ;;  %3616 = vmatprep.subr.bf16.mxu1 %v18950_v41  ;;  %v1025_v22 = vmax.f32 %v1018_v57, 0.0  ;;  %v18959_v41 = vld [vmem:[#allocation100_spill] sm:$0xff] }
 0x378   :  { %9901 = vmatprep.subr.bf16.mxu0 %v18770_v16 }
 0x379   :  { %8932 = vmatmul.mubr.msk.bf16.vlgmr.msra.gmra.mrb[60].mxu1 %vm2142_vm4, %v13449_v33 }
 0x37a   :  { %3617 = vmatpush1.bf16.msra.mxu1 %v18951_v29  ;;  %3648 = vmatprep.mubr.bf16.mxu1 %v13892_v55  ;;  %v13962_v29 = vpack.c.bf16 %v1025_v22, %v1025_v22 }
 0x37b   :  { %3731 = vmatmul.mubr.bf16.vlgmr.msra.gmra.mrb[56].mxu0 %v13941_v49  ;;  %3618 = vmatprep.subr.bf16.mxu1 %v18952_v15  ;;  %v13967_v15 = vld [vmem:[%s18133_s4 + $0x4] ss:$12 sps:$4 sm:$0xff]  }
 0x37c   :  { %9902 = vmatpush3.bf16.msra.mxu0 %v18953_v9  ;;  %9907 = vmatprep.mubr.msk.bf16.mxu0 %vm11410_vm2, %v18770_v16  ;;  %v13977_v9 = vld [vmem:[%s18133_s4] ss:$12 sps:$4 sm:$0xff]  }
 0x37d   :  { %9903 = vmatprep.subr.bf16.mxu0 %v18770_v16 }
 0x37e   :  { %3619 = vmatpush1.bf16.msra.mxu1 %v18956_v60 }
 0x37f   :  { %3620 = vmatprep.subr.bf16.mxu1 %v18957_v46 }
 0x380   :  { %9904 = vmatpush3.bf16.msra.mxu0 %v18958_v6  ;;  %v13984_v6 = vld [vmem:[%s18133_s4 + $0x1c] ss:$12 sps:$4 sm:$0xff]  }
 0x381   :  { %9905 = vmatprep.subr.bf16.mxu0 %v18770_v16 }
 0x382   :  { %3621 = vmatpush1.bf16.msra.mxu1 %v13564_v8 }
 0x383   :  { %3622 = vmatprep.subr.bf16.mxu1 %v13570_v28 }
 0x384   :  { %9906 = vmatpush3.bf16.msra.mxu0 %v18959_v41  ;;  %v13992_v41 = vld [vmem:[%s18133_s4 + $0x18] ss:$12 sps:$4 sm:$0xff]  }
 0x385   :  { %3787 = vmatprep.subr.bf16.mxu0 %v13967_v15 }
 0x386   :  { %3623 = vmatpush1.bf16.msra.mxu1 %v13584_v18 }
 0x387   :  { %9908 = vmatmul.mubr.msk.bf16.vlgmr.msra.gmra.mrb[48].mxu0 %vm2142_vm4, %v13962_v29  ;;  %3624 = vmatprep.subr.bf16.mxu1 %v13590_v56  ;;  %v13999_v56 = vld [vmem:[%s18133_s4 + $0x34] ss:$12 sps:$4 sm:$0xff]  }
 0x388   :  { %3788 = vmatpush1.bf16.msra.mxu0 %v13977_v9  ;;  %3819 = vmatprep.mubr.bf16.mxu0 %v13201_v62  ;;  %v9187_v63 = vpop.f32.mrb[56].mxu1 }
 0x389   :  { %v9188_v57 = vpop.f32.mrb[57].mxu1  ;;  %3789 = vmatprep.subr.bf16.mxu0 %v13984_v6 }
 0x38a   :  { %v9189_v22 = vadd.f32 %v9188_v57, %v9187_v63  ;;  %v9190_v61 = vpop.f32.mrb[58].mxu1  ;;  %3625 = vmatpush1.bf16.msra.mxu1 %v13598_v43 }
 0x38b   :  { %v9191_v17 = vpop.f32.mrb[59].mxu1  ;;  %3626 = vmatprep.subr.bf16.mxu1 %v13604_v45  ;;  %v14013_v61 = vld [vmem:[%s18133_s4 + $0x4c] ss:$12 sps:$4 sm:$0xff]  }
 0x38c   :  { %3790 = vmatpush1.bf16.msra.mxu0 %v13992_v41  ;;  %v10145_v7 = vadd.f32 %v13909_v27, %v9189_v22  ;;  %v14007_v17 = vld [vmem:[%s18133_s4 + $0x30] ss:$12 sps:$4 sm:$0xff]   ;;  %v14021_v27 = vld [vmem:[%s18133_s4 + $0x48] ss:$12 sps:$4 sm:$0xff]  }
 0x38d   :  { %3791 = vmatprep.subr.bf16.mxu0 %v13999_v56 }
 0x38e   :  { %3627 = vmatpush1.bf16.msra.mxu1 %v13612_v26  ;;  %v14037_v26 = vld [vmem:[%s18133_s4 + $0x60] ss:$12 sps:$4 sm:$0xff]  }
 0x38f   :  { %3628 = vmatprep.subr.bf16.mxu1 %v13618_v12  ;;  %v14029_v12 = vld [vmem:[%s18133_s4 + $0x64] ss:$12 sps:$4 sm:$0xff]  }
 0x390   :  { %3792 = vmatpush1.bf16.msra.mxu0 %v14007_v17 }
 0x391   :  { %3793 = vmatprep.subr.bf16.mxu0 %v14013_v61 }
 0x392   :  { %3629 = vmatpush1.bf16.msra.mxu1 %v13626_v39 }
 0x393   :  { %3630 = vmatprep.subr.bf16.mxu1 %v13632_v51 }
 0x394   :  { %3794 = vmatpush1.bf16.msra.mxu0 %v14021_v27  ;;  %v3268_v63 = vpop.f32.mrb[48].mxu1 }
 0x395   :  { %v14024_v57 = vadd.f32 %v10145_v7, %v3268_v63  ;;  %v9879_v22 = vpop.f32.mrb[49].mxu1  ;;  %3795 = vmatprep.subr.bf16.mxu0 %v14029_v12  ;;  %v14043_v7 = vld [vmem:[%s18133_s4 + $0x7c] ss:$12 sps:$4 sm:$0xff]  }
 0x396   :  { %v3271_v39 = vpop.f32.mrb[50].mxu1  ;;  %3631 = vmatpush1.bf16.msra.mxu1 %v13640_v47  ;;  %v14065_v63 = vld [vmem:[%s18133_s4 + $0x90] ss:$12 sps:$4 sm:$0xff]   ;;  %v14071_v22 = vld [vmem:[%s18133_s4 + $0xac] ss:$12 sps:$4 sm:$0xff]  }
 0x397   :  { %18960 = vst [vmem:[#allocation23_spill] sm:$0xff] %v14024_v57  ;;  %v9880_v51 = vpop.f32.mrb[51].mxu1  ;;  %3632 = vmatprep.subr.bf16.mxu1 %v13646_v20  ;;  %v14051_v39 = vld [vmem:[%s18133_s4 + $0x78] ss:$12 sps:$4 sm:$0xff]  }
 0x398   :  { %3796 = vmatpush1.bf16.msra.mxu0 %v14037_v26  ;;  %v14057_v51 = vld [vmem:[%s18133_s4 + $0x94] ss:$12 sps:$4 sm:$0xff]   ;;  %v14085_v57 = vld [vmem:[%s18133_s4 + $0xc4] ss:$12 sps:$4 sm:$0xff]  }
 0x399   :  { %3797 = vmatprep.subr.bf16.mxu0 %v14043_v7 }
 0x39a   :  { %3633 = vmatpush1.bf16.msra.mxu1 %v13654_v38  ;;  %v18972_v38 = vld [vmem:[#allocation15_spill] sm:$0xff] }
 0x39b   :  { %3634 = vmatprep.subr.bf16.mxu1 %v13660_v34  ;;  %v18969_v34 = vld [vmem:[#allocation130_spill] sm:$0xff] }
 0x39c   :  { %3798 = vmatpush1.bf16.msra.mxu0 %v14051_v39 }
 0x39d   :  { %3799 = vmatprep.subr.bf16.mxu0 %v14057_v51 }
 0x39e   :  { %3635 = vmatpush1.bf16.msra.mxu1 %v13668_v40  ;;  %v18968_v40 = vld [vmem:[#allocation129_spill] sm:$0xff] }
 0x39f   :  { %3636 = vmatprep.subr.bf16.mxu1 %v13674_v0  ;;  %v14079_v0 = vld [vmem:[%s18133_s4 + $0xa8] ss:$12 sps:$4 sm:$0xff]  }
 0x3a0   :  { %3800 = vmatpush1.bf16.msra.mxu0 %v14065_v63 }
 0x3a1   :  { %3801 = vmatprep.subr.bf16.mxu0 %v14071_v22 }
 0x3a2   :  { %3637 = vmatpush1.bf16.msra.mxu1 %v13682_v19  ;;  %v14099_v19 = vld [vmem:[%s18133_s4 + $0xdc] ss:$12 sps:$4 sm:$0xff]  }
 0x3a3   :  { %3638 = vmatprep.subr.bf16.mxu1 %v13688_v24  ;;  %v14093_v24 = vld [vmem:[%s18133_s4 + $0xc0] ss:$12 sps:$4 sm:$0xff]   ;;  %18961 = vst [vmem:[#allocation25_spill] sm:$0xff] %v14099_v19 }
 0x3a4   :  { %3802 = vmatpush1.bf16.msra.mxu0 %v14079_v0 }
 0x3a5   :  { %3803 = vmatprep.subr.bf16.mxu0 %v14085_v57 }
 0x3a6   :  { %3639 = vmatpush1.bf16.msra.mxu1 %v13696_v25  ;;  %v14113_v25 = vld [vmem:[%s18133_s4 + $0xf4] ss:$12 sps:$4 sm:$0xff]  }
 0x3a7   :  { %3640 = vmatprep.subr.bf16.mxu1 %v13702_v32  ;;  %v14107_v32 = vld [vmem:[%s18133_s4 + $0xd8] ss:$12 sps:$4 sm:$0xff]   ;;  %18963 = vst [vmem:[#allocation33_spill] sm:$0xff] %v14113_v25 }
 0x3a8   :  { %3804 = vmatpush1.bf16.msra.mxu0 %v14093_v24  ;;  %18962 = vst [vmem:[#allocation26_spill] sm:$0xff] %v14107_v32 }
 0x3a9   :  { %3805 = vmatprep.subr.bf16.mxu0 %v14099_v19 }
 0x3aa   :  { %3641 = vmatpush1.bf16.msra.mxu1 %v13712_v59  ;;  %v14127_v59 = vld [vmem:[%s18133_s4 + $0x10c] ss:$12 sps:$4 sm:$0xff]  }
 0x3ab   :  { %3642 = vmatprep.subr.bf16.mxu1 %v13718_v37  ;;  %v14121_v37 = vld [vmem:[%s18133_s4 + $0xf0] ss:$12 sps:$4 sm:$0xff]   ;;  %18965 = vst [vmem:[#allocation29_spill] sm:$0xff] %v14127_v59 }
 0x3ac   :  { %3806 = vmatpush1.bf16.msra.mxu0 %v14107_v32  ;;  %18964 = vst [vmem:[#allocation28_spill] sm:$0xff] %v14121_v37 }
 0x3ad   :  { %3807 = vmatprep.subr.bf16.mxu0 %v14113_v25 }
 0x3ae   :  { %3643 = vmatpush1.bf16.msra.mxu1 %v13727_v11  ;;  %v14141_v11 = vld [vmem:[%s18133_s4 + $0x124] ss:$12 sps:$4 sm:$0xff]  }
 0x3af   :  { %3644 = vmatprep.subr.bf16.mxu1 %v13733_v10  ;;  %v14135_v10 = vld [vmem:[%s18133_s4 + $0x108] ss:$12 sps:$4 sm:$0xff]   ;;  %18967 = vst [vmem:[#allocation30_spill] sm:$0xff] %v14141_v11 }
 0x3b0   :  { %3808 = vmatpush1.bf16.msra.mxu0 %v14121_v37  ;;  %18966 = vst [vmem:[#allocation35_spill] sm:$0xff] %v14135_v10 }
 0x3b1   :  { %3809 = vmatprep.subr.bf16.mxu0 %v14127_v59 }
 0x3b2   :  { %3645 = vmatpush1.bf16.msra.mxu1 %v13741_v23  ;;  %v14156_v23 = vld [vmem:[%s18133_s4 + $0x13c] ss:$12 sps:$4 sm:$0xff]  }
 0x3b3   :  { %3646 = vmatprep.subr.bf16.mxu1 %v13747_v44  ;;  %v14149_v44 = vld [vmem:[%s18133_s4 + $0x120] ss:$12 sps:$4 sm:$0xff]   ;;  %18971 = vst [vmem:[#allocation57_spill] sm:$0xff] %v14156_v23 }
 0x3b4   :  { %3810 = vmatpush1.bf16.msra.mxu0 %v14135_v10  ;;  %18970 = vst [vmem:[#allocation31_spill] sm:$0xff] %v14149_v44 }
 0x3b5   :  { %3811 = vmatprep.subr.bf16.mxu0 %v14141_v11 }
 0x3b6   :  { %3647 = vmatpush1.bf16.msra.mxu1 %v18968_v40  ;;  %v14165_v40 = vld [vmem:[%s18133_s4 + $0x138] ss:$12 sps:$4 sm:$0xff]  }
 0x3b7   :  { %3657 = vmatprep.subr.bf16.mxu1 %v18969_v34  ;;  %v18973_v34 = vld [vmem:[#allocation134_spill] sm:$0xff]  ;;  %18974 = vst [vmem:[#allocation37_spill] sm:$0xff] %v14165_v40 }
 0x3b8   :  { %3812 = vmatpush1.bf16.msra.mxu0 %v14149_v44  ;;  %v14171_v44 = vld [vmem:[%s18133_s4 + $0x154] ss:$12 sps:$4 sm:$0xff]  }
 0x3b9   :  { %3649 = vmatmul.mubr.bf16.vlgmr.msra.gmra.mrb[60].mxu1 %v13941_v49  ;;  %3813 = vmatprep.subr.bf16.mxu0 %v14156_v23  ;;  %18975 = vst [vmem:[#allocation59_spill] sm:$0xff] %v14171_v44  ;;  %v18976_v23 = vld [vmem:[#allocation19_spill] sm:$0xff] }
 0x3ba   :  { %3658 = vmatpush1.bf16.msra.mxu1 %v18972_v38  ;;  %3689 = vmatprep.mubr.bf16.mxu1 %v18790_v21  ;;  %v18977_v38 = vld [vmem:[#allocation20_spill] sm:$0xff] }
 0x3bb   :  { %3659 = vmatprep.subr.bf16.mxu1 %v18973_v34  ;;  %v14180_v34 = vld [vmem:[%s18133_s4 + $0x150] ss:$12 sps:$4 sm:$0xff]  }
 0x3bc   :  { %3814 = vmatpush1.bf16.msra.mxu0 %v14165_v40  ;;  %18978 = vst [vmem:[#allocation38_spill] sm:$0xff] %v14180_v34  ;;  %v14186_v40 = vld [vmem:[%s18133_s4 + $0x16c] ss:$12 sps:$4 sm:$0xff]  }
 0x3bd   :  { %3815 = vmatprep.subr.bf16.mxu0 %v14171_v44  ;;  %18979 = vst [vmem:[#allocation60_spill] sm:$0xff] %v14186_v40  ;;  %v18980_v44 = vld [vmem:[#allocation21_spill] sm:$0xff] }
 0x3be   :  { %3660 = vmatpush1.bf16.msra.mxu1 %v18976_v23  ;;  %v14199_v23 = vld [vmem:[%s18133_s4 + $0x168] ss:$12 sps:$4 sm:$0xff]  }
 0x3bf   :  { %8934 = vmatprep.subr.msk.bf16.mxu1 %vm2146_vm3, %v18977_v38  ;;  %v14193_v38 = vld [vmem:[%s18133_s4 + $0xc8] ss:$12 sps:$4 sm:$0xff]   ;;  %18982 = vst [vmem:[#allocation62_spill] sm:$0xff] %v14199_v23 }
 0x3c0   :  { %3816 = vmatpush1.bf16.msra.mxu0 %v14180_v34  ;;  %18981 = vst [vmem:[#allocation39_spill] sm:$0xff] %v14193_v38  ;;  %v14575_v34 = vld [vmem:[%s18133_s4 + $0x458] ss:$12 sps:$4 sm:$0xff]  }
 0x3c1   :  { %3817 = vmatprep.subr.bf16.mxu0 %v14186_v40  ;;  %19044 = vst [vmem:[#allocation136_spill] sm:$0xff] %v14575_v34 }
 0x3c2   :  { %3662 = vmatpush1.bf16.msra.mxu1 %v18980_v44  ;;  %v14207_v44 = vld [vmem:[%s18133_s4 + $0x184] ss:$12 sps:$4 sm:$0xff]  }
 0x3c3   :  { %9275 = vmatprep.subr.bf16.mxu1 %v14193_v38  ;;  %18983 = vst [vmem:[#allocation40_spill] sm:$0xff] %v14207_v44  ;;  %v14213_v38 = vld [vmem:[%s18133_s4 + $0x8] ss:$12 sps:$4 sm:$0xff]  }
 0x3c4   :  { %3818 = vmatpush1.bf16.msra.mxu0 %v14199_v23  ;;  %18984 = vst [vmem:[#allocation63_spill] sm:$0xff] %v14213_v38  ;;  %v14221_v23 = vld [vmem:[%s18133_s4 + $0xe0] ss:$12 sps:$4 sm:$0xff]  }
 0x3c5   :  { %8935 = vmatmul.mubr.msk.bf16.vlgmr.msra.gmra.mrb[60].mxu1 %vm2142_vm4, %v13962_v29  ;;  %3828 = vmatprep.subr.bf16.mxu0 %v14207_v44  ;;  %18985 = vst [vmem:[#allocation41_spill] sm:$0xff] %v14221_v23  ;;  %v14227_v44 = vld [vmem:[%s18133_s4 + $0x180] ss:$12 sps:$4 sm:$0xff]  }
 0x3c6   :  { %9276 = vmatpush3.bf16.msra.mxu1 %v14213_v38  ;;  %3901 = vmatprep.mubr.bf16.mxu1 %v13201_v62  ;;  %18986 = vst [vmem:[#allocation65_spill] sm:$0xff] %v14227_v44  ;;  %v14234_v62 = vld [vmem:[%s18133_s4 + $0x19c] ss:$12 sps:$4 sm:$0xff]   ;;  %v14246_v38 = vld [vmem:[%s18133_s4 + $0xf8] ss:$12 sps:$4 sm:$0xff]  }
 0x3c7   :  { %3820 = vmatmul.mubr.bf16.vlgmr.msra.gmra.mrb[60].mxu0 %v13389_v30  ;;  %9277 = vmatprep.subr.bf16.mxu1 %v14221_v23  ;;  %18987 = vst [vmem:[#allocation42_spill] sm:$0xff] %v14234_v62  ;;  %v14240_v23 = vld [vmem:[%s18133_s4 + $0x20] ss:$12 sps:$4 sm:$0xff]   ;;  %18989 = vst [vmem:[#allocation43_spill] sm:$0xff] %v14246_v38 }
 0x3c8   :  { %3829 = vmatpush1.bf16.msra.mxu0 %v14227_v44  ;;  %3860 = vmatprep.mubr.bf16.mxu0 %v18790_v21  ;;  %18988 = vst [vmem:[#allocation67_spill] sm:$0xff] %v14240_v23  ;;  %v14252_v44 = vld [vmem:[%s18133_s4 + $0x198] ss:$12 sps:$4 sm:$0xff]  }
 0x3c9   :  { %3830 = vmatprep.subr.bf16.mxu0 %v14234_v62  ;;  %18990 = vst [vmem:[#allocation69_spill] sm:$0xff] %v14252_v44  ;;  %v14258_v62 = vld [vmem:[%s18133_s4 + $0x1b4] ss:$12 sps:$4 sm:$0x3f]  }
 0x3ca   :  { %9278 = vmatpush3.bf16.msra.mxu1 %v14240_v23  ;;  %18991 = vst [vmem:[#allocation44_spill] sm:$0xff] %v14258_v62  ;;  %v14265_v23 = vld [vmem:[%s18133_s4 + $0x38] ss:$12 sps:$4 sm:$0xff]  }
 0x3cb   :  { %9279 = vmatprep.subr.bf16.mxu1 %v14246_v38  ;;  %18992 = vst [vmem:[#allocation71_spill] sm:$0xff] %v14265_v23  ;;  %v14271_v38 = vld [vmem:[%s18133_s4 + $0x110] ss:$12 sps:$4 sm:$0xff]  }
 0x3cc   :  { %3831 = vmatpush1.bf16.msra.mxu0 %v14252_v44  ;;  %18993 = vst [vmem:[#allocation45_spill] sm:$0xff] %v14271_v38  ;;  %v18994_v44 = vld [vmem:[#allocation56_spill] sm:$0xff] }
 0x3cd   :  { %8937 = vmatprep.subr.msk.bf16.mxu0 %vm2146_vm3, %v14258_v62  ;;  %v14279_v62 = vld [vmem:[%s18133_s4 + $0x50] ss:$12 sps:$4 sm:$0xff]  }
 0x3ce   :  { %9280 = vmatpush3.bf16.msra.mxu1 %v14265_v23  ;;  %18995 = vst [vmem:[#allocation73_spill] sm:$0xff] %v14279_v62  ;;  %v14287_v23 = vld [vmem:[%s18133_s4 + $0x128] ss:$12 sps:$4 sm:$0xff]  }
 0x3cf   :  { %9281 = vmatprep.subr.bf16.mxu1 %v14271_v38  ;;  %18996 = vst [vmem:[#allocation49_spill] sm:$0xff] %v14287_v23  ;;  %v14293_v38 = vld [vmem:[%s18133_s4 + $0x188] ss:$12 sps:$4 sm:$0xff]  }
 0x3d0   :  { %3833 = vmatpush1.bf16.msra.mxu0 %v18994_v44  ;;  %18997 = vst [vmem:[#allocation75_spill] sm:$0xff] %v14293_v38  ;;  %v19003_v44 = vld [vmem:[#allocation36_spill] sm:$0xff] }
 0x3d1   :  { %9911 = vmatprep.subr.bf16.mxu0 %v18770_v16 }
 0x3d2   :  { %9282 = vmatpush3.bf16.msra.mxu1 %v14279_v62  ;;  %v14302_v62 = vld [vmem:[%s18133_s4 + $0x68] ss:$12 sps:$4 sm:$0xff]  }
 0x3d3   :  { %8938 = vmatmul.mubr.msk.bf16.vlgmr.msra.gmra.mrb[60].mxu0 %vm2142_vm4, %v13449_v33  ;;  %9283 = vmatprep.subr.bf16.mxu1 %v14287_v23  ;;  %18998 = vst [vmem:[#allocation50_spill] sm:$0xff] %v14302_v62  ;;  %v14308_v23 = vld [vmem:[%s18133_s4 + $0x140] ss:$12 sps:$4 sm:$0xff]  }
 0x3d4   :  { %9912 = vmatpush3.bf16.msra.mxu0 %v14293_v38  ;;  %9917 = vmatprep.mubr.msk.bf16.mxu0 %vm11410_vm2, %v18770_v16  ;;  %18999 = vst [vmem:[#allocation77_spill] sm:$0xff] %v14308_v23  ;;  %v14314_v38 = vld [vmem:[%s18133_s4 + $0x1a0] ss:$12 sps:$4 sm:$0xff]  }
 0x3d5   :  { %9913 = vmatprep.subr.bf16.mxu0 %v18770_v16  ;;  %19000 = vst [vmem:[#allocation51_spill] sm:$0xff] %v14314_v38 }
 0x3d6   :  { %9284 = vmatpush3.bf16.msra.mxu1 %v14302_v62  ;;  %v14321_v62 = vld [vmem:[%s18133_s4 + $0x80] ss:$12 sps:$4 sm:$0xff]  }
 0x3d7   :  { %9285 = vmatprep.subr.bf16.mxu1 %v14308_v23  ;;  %19001 = vst [vmem:[#allocation79_spill] sm:$0xff] %v14321_v62  ;;  %v14327_v23 = vld [vmem:[%s18133_s4 + $0x158] ss:$12 sps:$4 sm:$0xff]  }
 0x3d8   :  { %9914 = vmatpush3.bf16.msra.mxu0 %v14314_v38  ;;  %19002 = vst [vmem:[#allocation52_spill] sm:$0xff] %v14327_v23  ;;  %v14334_v38 = vld [vmem:[%s18133_s4 + $0x1cc] ss:$12 sps:$4 sm:$0xff]  }
 0x3d9   :  { %9915 = vmatprep.subr.bf16.mxu0 %v18770_v16  ;;  %19004 = vst [vmem:[#allocation81_spill] sm:$0xff] %v14334_v38 }
 0x3da   :  { %9286 = vmatpush3.bf16.msra.mxu1 %v14321_v62  ;;  %v14340_v62 = vld [vmem:[%s18133_s4 + $0x98] ss:$12 sps:$4 sm:$0xff]  }
 0x3db   :  { %9287 = vmatprep.subr.bf16.mxu1 %v14327_v23  ;;  %19005 = vst [vmem:[#allocation53_spill] sm:$0xff] %v14340_v62 }
 0x3dc   :  { %9916 = vmatpush3.bf16.msra.mxu0 %v19003_v44  ;;  %v14348_v44 = vld [vmem:[%s18133_s4 + $0x170] ss:$12 sps:$4 sm:$0xff]  }
 0x3dd   :  { %3952 = vmatprep.subr.bf16.mxu0 %v14334_v38  ;;  %19006 = vst [vmem:[#allocation83_spill] sm:$0xff] %v14348_v44  ;;  %v14354_v38 = vld [vmem:[%s18133_s4 + $0x1c8] ss:$12 sps:$4 sm:$0xff]  }
 0x3de   :  { %9288 = vmatpush3.bf16.msra.mxu1 %v14340_v62  ;;  %19007 = vst [vmem:[#allocation54_spill] sm:$0xff] %v14354_v38  ;;  %v14379_v62 = vld [vmem:[%s18133_s4 + $0x1e0] ss:$12 sps:$4 sm:$0xff]  }
 0x3df   :  { %9918 = vmatmul.mubr.msk.bf16.vlgmr.msra.gmra.mrb[64].mxu0 %vm2142_vm4, %v13449_v33  ;;  %9289 = vmatprep.subr.bf16.mxu1 %v14348_v44  ;;  %v14361_v33 = vld [vmem:[%s18133_s4 + $0x1e4] ss:$12 sps:$4 sm:$0xff]   ;;  %19011 = vst [vmem:[#allocation58_spill] sm:$0xff] %v14379_v62 }
 0x3e0   :  { %3953 = vmatpush1.bf16.msra.mxu0 %v14354_v38  ;;  %3984 = vmatprep.mubr.bf16.mxu0 %v13892_v55  ;;  %19008 = vst [vmem:[#allocation85_spill] sm:$0xff] %v14361_v33  ;;  %v14367_v44 = vld [vmem:[%s18133_s4 + $0xb0] ss:$12 sps:$4 sm:$0xff]  }
 0x3e1   :  { %3954 = vmatprep.subr.bf16.mxu0 %v14361_v33  ;;  %19009 = vst [vmem:[#allocation55_spill] sm:$0xff] %v14367_v44  ;;  %v14373_v38 = vld [vmem:[%s18133_s4 + $0x290] ss:$12 sps:$4 sm:$0xff]  }
 0x3e2   :  { %9290 = vmatpush3.bf16.msra.mxu1 %v14367_v44  ;;  %19010 = vst [vmem:[#allocation87_spill] sm:$0xff] %v14373_v38  ;;  %v14386_v33 = vld [vmem:[%s18133_s4 + $0x1fc] ss:$12 sps:$4 sm:$0xff]  }
 0x3e3   :  { %9301 = vmatprep.subr.bf16.mxu1 %v14373_v38  ;;  %19012 = vst [vmem:[#allocation6_spill] sm:$0xff] %v14386_v33  ;;  %v14392_v38 = vld [vmem:[%s18133_s4 + $0x1d0] ss:$12 sps:$4 sm:$0xff]  }
 0x3e4   :  { %3955 = vmatpush1.bf16.msra.mxu0 %v14379_v62  ;;  %19013 = vst [vmem:[#allocation61_spill] sm:$0xff] %v14392_v38  ;;  %v14417_v62 = vld [vmem:[%s18133_s4 + $0x1e8] ss:$12 sps:$4 sm:$0xff]  }
 0x3e5   :  { %3902 = vmatmul.mubr.bf16.vlgmr.msra.gmra.mrb[68].mxu1 %v13389_v30  ;;  %3956 = vmatprep.subr.bf16.mxu0 %v14386_v33  ;;  %v14399_v30 = vld [vmem:[%s18133_s4 + $0x2a8] ss:$12 sps:$4 sm:$0xff]   ;;  %v14405_v33 = vld [vmem:[%s18133_s4 + $0x1f8] ss:$12 sps:$4 sm:$0xff]   ;;  %19017 = vst [vmem:[#allocation98_spill] sm:$0xff] %v14417_v62 }
 0x3e6   :  { %9302 = vmatpush3.bf16.msra.mxu1 %v14392_v38  ;;  %4066 = vmatprep.mubr.bf16.mxu1 %v13892_v55  ;;  %19014 = vst [vmem:[#allocation66_spill] sm:$0xff] %v14399_v30  ;;  %19015 = vst [vmem:[#allocation97_spill] sm:$0xff] %v14405_v33  ;;  %v14411_v38 = vld [vmem:[%s18133_s4 + $0x214] ss:$12 sps:$4 sm:$0xff]  }
 0x3e7   :  { %9303 = vmatprep.subr.bf16.mxu1 %v14399_v30  ;;  %19016 = vst [vmem:[#allocation68_spill] sm:$0xff] %v14411_v38  ;;  %v14423_v30 = vld [vmem:[%s18133_s4 + $0x2c0] ss:$12 sps:$4 sm:$0xff]  }
 0x3e8   :  { %3957 = vmatpush1.bf16.msra.mxu0 %v14405_v33  ;;  %19018 = vst [vmem:[#allocation70_spill] sm:$0xff] %v14423_v30  ;;  %v14429_v33 = vld [vmem:[%s18133_s4 + $0x210] ss:$12 sps:$4 sm:$0xff]  }
 0x3e9   :  { %3958 = vmatprep.subr.bf16.mxu0 %v14411_v38  ;;  %19019 = vst [vmem:[#allocation72_spill] sm:$0xff] %v14429_v33  ;;  %v14435_v38 = vld [vmem:[%s18133_s4 + $0x22c] ss:$12 sps:$4 sm:$0xff]  }
 0x3ea   :  { %9304 = vmatpush3.bf16.msra.mxu1 %v14417_v62  ;;  %19020 = vst [vmem:[#allocation74_spill] sm:$0xff] %v14435_v38  ;;  %v14441_v62 = vld [vmem:[%s18133_s4 + $0x200] ss:$12 sps:$4 sm:$0xff]  }
 0x3eb   :  { %9305 = vmatprep.subr.bf16.mxu1 %v14423_v30  ;;  %19021 = vst [vmem:[#allocation76_spill] sm:$0xff] %v14441_v62  ;;  %v14447_v30 = vld [vmem:[%s18133_s4 + $0x2d8] ss:$12 sps:$4 sm:$0xff]  }
 0x3ec   :  { %3959 = vmatpush1.bf16.msra.mxu0 %v14429_v33  ;;  %19022 = vst [vmem:[#allocation78_spill] sm:$0xff] %v14447_v30  ;;  %v14453_v33 = vld [vmem:[%s18133_s4 + $0x228] ss:$12 sps:$4 sm:$0xff]  }
 0x3ed   :  { %3960 = vmatprep.subr.bf16.mxu0 %v14435_v38  ;;  %19023 = vst [vmem:[#allocation80_spill] sm:$0xff] %v14453_v33  ;;  %v14459_v38 = vld [vmem:[%s18133_s4 + $0x244] ss:$12 sps:$4 sm:$0xff]  }
 0x3ee   :  { %9306 = vmatpush3.bf16.msra.mxu1 %v14441_v62  ;;  %19024 = vst [vmem:[#allocation82_spill] sm:$0xff] %v14459_v38  ;;  %v14465_v62 = vld [vmem:[%s18133_s4 + $0x218] ss:$12 sps:$4 sm:$0xff]  }
 0x3ef   :  { %9307 = vmatprep.subr.bf16.mxu1 %v14447_v30  ;;  %19025 = vst [vmem:[#allocation84_spill] sm:$0xff] %v14465_v62  ;;  %v14471_v30 = vld [vmem:[%s18133_s4 + $0x2f0] ss:$12 sps:$4 sm:$0xff]  }
 0x3f0   :  { %3961 = vmatpush1.bf16.msra.mxu0 %v14453_v33  ;;  %19026 = vst [vmem:[#allocation86_spill] sm:$0xff] %v14471_v30  ;;  %v14477_v33 = vld [vmem:[%s18133_s4 + $0x240] ss:$12 sps:$4 sm:$0xff]  }
 0x3f1   :  { %3962 = vmatprep.subr.bf16.mxu0 %v14459_v38  ;;  %19027 = vst [vmem:[#allocation88_spill] sm:$0xff] %v14477_v33 }
 0x3f2   :  { %9308 = vmatpush3.bf16.msra.mxu1 %v14465_v62  ;;  %v14485_v62 = vld [vmem:[%s18133_s4 + $0x25c] ss:$12 sps:$4 sm:$0xff]  }
 0x3f3   :  { %9309 = vmatprep.subr.bf16.mxu1 %v14471_v30  ;;  %19029 = vst [vmem:[#allocation5_spill] sm:$0xff] %v14485_v62  ;;  %v14493_v30 = vld [vmem:[%s18133_s4 + $0x230] ss:$12 sps:$4 sm:$0xff]  }
 0x3f4   :  { %3963 = vmatpush1.bf16.msra.mxu0 %v14477_v33  ;;  %19031 = vst [vmem:[#allocation94_spill] sm:$0xff] %v14493_v30  ;;  %v14499_v33 = vld [vmem:[%s18133_s4 + $0x308] ss:$12 sps:$4 sm:$0xff]  }
 0x3f5   :  { %v14480_v38 = vpop.f32.mrb[44].mxu0  ;;  %3964 = vmatprep.subr.bf16.mxu0 %v14485_v62  ;;  %19032 = vst [vmem:[#allocation95_spill] sm:$0xff] %v14499_v33  ;;  %v14505_v62 = vld [vmem:[%s18133_s4 + $0x258] ss:$12 sps:$4 sm:$0xff]  }
 0x3f6   :  { %19028 = vst [vmem:[#allocation89_spill] sm:$0xff] %v14480_v38  ;;  %v14488_v44 = vpop.f32.mrb[45].mxu0  ;;  %9310 = vmatpush3.bf16.msra.mxu1 %v14493_v30  ;;  %19033 = vst [vmem:[#allocation101_spill] sm:$0xff] %v14505_v62  ;;  %v14511_v30 = vld [vmem:[%s18133_s4 + $0x274] ss:$12 sps:$4 sm:$0xff]  }
 0x3f7   :  { %19030 = vst [vmem:[#allocation93_spill] sm:$0xff] %v14488_v44  ;;  %v3191_v23 = vpop.f32.mrb[46].mxu0  ;;  %9311 = vmatprep.subr.bf16.mxu1 %v14499_v33  ;;  %19034 = vst [vmem:[#allocation102_spill] sm:$0xff] %v14511_v30  ;;  %v14523_v33 = vld [vmem:[%s18133_s4 + $0x320] ss:$12 sps:$4 sm:$0xff]  }
 0x3f8   :  { %3965 = vmatpush1.bf16.msra.mxu0 %v14505_v62  ;;  %v3192_v44 = vpop.f32.mrb[47].mxu0  ;;  %v14517_v23 = vld [vmem:[%s18133_s4 + $0x248] ss:$12 sps:$4 sm:$0xff]   ;;  %19036 = vst [vmem:[#allocation96_spill] sm:$0xff] %v14523_v33 }
 0x3f9   :  { %3966 = vmatprep.subr.bf16.mxu0 %v14511_v30  ;;  %19035 = vst [vmem:[#allocation103_spill] sm:$0xff] %v14517_v23  ;;  %v19037_v44 = vld [vmem:[#allocation9_spill] sm:$0xff] }
 0x3fa   :  { %9312 = vmatpush3.bf16.msra.mxu1 %v14517_v23  ;;  %v1095_v62 = vadd.f32 %v19037_v44, %v18924_v54  ;;  %v14531_v30 = vld [vmem:[%s18133_s4 + $0x270] ss:$12 sps:$4 sm:$0xff]   ;;  %v14537_v23 = vld [vmem:[%s18133_s4 + $0x28c] ss:$12 sps:$4 sm:$0xff]  }
 0x3fb   :  { %9313 = vmatprep.subr.bf16.mxu1 %v14523_v33  ;;  %19038 = vst [vmem:[#allocation4_spill] sm:$0xff] %v14531_v30  ;;  %19039 = vst [vmem:[#allocation104_spill] sm:$0xff] %v14537_v23  ;;  %v14543_v33 = vld [vmem:[%s18133_s4 + $0x260] ss:$12 sps:$4 sm:$0xff]   ;;  %v14549_v44 = vld [vmem:[%s18133_s4 + $0x338] ss:$12 sps:$4 sm:$0xff]  }
 0x3fc   :  { %3967 = vmatpush1.bf16.msra.mxu0 %v14531_v30  ;;  %19040 = vst [vmem:[#allocation105_spill] sm:$0xff] %v14543_v33  ;;  %19041 = vst [vmem:[#allocation99_spill] sm:$0xff] %v14549_v44  ;;  %v1140_v54 = vmax.f32 %v1095_v62, 0.0  ;;  %v14555_v30 = vld [vmem:[%s18133_s4 + $0x288] ss:$12 sps:$4 sm:$0xff]  }
 0x3fd   :  { %3968 = vmatprep.subr.bf16.mxu0 %v14537_v23  ;;  %19042 = vst [vmem:[#allocation9_spill] sm:$0xff] %v14555_v30  ;;  %v14569_v62 = vld [vmem:[%s18133_s4 + $0x278] ss:$12 sps:$4 sm:$0xff]  }
 0x3fe   :  { %9314 = vmatpush3.bf16.msra.mxu1 %v14543_v33  ;;  %v14561_v33 = vld [vmem:[%s18133_s4 + $0x2a4] ss:$12 sps:$4 sm:$0xff]   ;;  %19043 = vst [vmem:[#allocation135_spill] sm:$0xff] %v14569_v62  ;;  %v14578_v20 = vpack.c.bf16 %v1140_v54, %v1140_v54 }
 0x3ff   :  { %9315 = vmatprep.subr.bf16.mxu1 %v14549_v44  ;;  %v14596_v54 = vld [vmem:[%s18133_s4 + $0x398] ss:$12 sps:$4 sm:$0xff]  }
 0x400   :  { %3969 = vmatpush1.bf16.msra.mxu0 %v14555_v30  ;;  %v9213_v23 = vpop.f32.mrb[64].mxu1  ;;  %19047 = vst [vmem:[#allocation139_spill] sm:$0xff] %v14596_v54 }
 0x401   :  { %v9214_v38 = vpop.f32.mrb[65].mxu1  ;;  %3970 = vmatprep.subr.bf16.mxu0 %v14561_v33 }
 0x402   :  { %v14564_v40 = vadd.f32 %v9214_v38, %v9213_v23  ;;  %v9216_v44 = vpop.f32.mrb[66].mxu1  ;;  %9316 = vmatpush3.bf16.msra.mxu1 %v14569_v62  ;;  %v14583_v38 = vld [vmem:[%s18133_s4 + $0x2a0] ss:$12 sps:$4 sm:$0xff]   ;;  %v14603_v23 = vld [vmem:[%s18133_s4 + $0x470] ss:$12 sps:$4 sm:$0xff]  }
 0x403   :  { %v9217_v30 = vpop.f32.mrb[67].mxu1  ;;  %9327 = vmatprep.subr.bf16.mxu1 %v14575_v34  ;;  %19045 = vst [vmem:[#allocation137_spill] sm:$0xff] %v14583_v38  ;;  %19048 = vst [vmem:[#allocation140_spill] sm:$0xff] %v14603_v23  ;;  %v14609_v44 = vld [vmem:[%s18133_s4 + $0x2b8] ss:$12 sps:$4 sm:$0xff]  }
 0x404   :  { %3971 = vmatpush1.bf16.msra.mxu0 %v14583_v38  ;;  %v14590_v30 = vld [vmem:[%s18133_s4 + $0x2bc] ss:$12 sps:$4 sm:$0xff]   ;;  %19049 = vst [vmem:[#allocation141_spill] sm:$0xff] %v14609_v44 }
 0x405   :  { %4067 = vmatmul.mubr.bf16.vlgmr.msra.gmra.mrb[72].mxu1 %v13941_v49  ;;  %19046 = vst [vmem:[#allocation138_spill] sm:$0xff] %v14590_v30  ;;  %3972 = vmatprep.subr.bf16.mxu0 %v14590_v30  ;;  %v14621_v34 = vld [vmem:[%s18133_s4 + $0x3b0] ss:$12 sps:$4 sm:$0xff]  }
 0x406   :  { %9328 = vmatpush3.bf16.msra.mxu1 %v14596_v54  ;;  %4234 = vmatprep.mubr.bf16.mxu1 %v14578_v20  ;;  %v14615_v54 = vld [vmem:[%s18133_s4 + $0x2d4] ss:$12 sps:$4 sm:$0xff]   ;;  %19051 = vst [vmem:[#allocation143_spill] sm:$0xff] %v14621_v34 }
 0x407   :  { %9329 = vmatprep.subr.bf16.mxu1 %v14603_v23  ;;  %19050 = vst [vmem:[#allocation142_spill] sm:$0xff] %v14615_v54  ;;  %v14627_v23 = vld [vmem:[%s18133_s4 + $0x488] ss:$12 sps:$4 sm:$0xff]  }
 0x408   :  { %3973 = vmatpush1.bf16.msra.mxu0 %v14609_v44  ;;  %19052 = vst [vmem:[#allocation144_spill] sm:$0xff] %v14627_v23  ;;  %v14633_v44 = vld [vmem:[%s18133_s4 + $0x2d0] ss:$12 sps:$4 sm:$0xff]  }
 0x409   :  { %3974 = vmatprep.subr.bf16.mxu0 %v14615_v54  ;;  %19053 = vst [vmem:[#allocation145_spill] sm:$0xff] %v14633_v44  ;;  %v14639_v54 = vld [vmem:[%s18133_s4 + $0x2ec] ss:$12 sps:$4 sm:$0xff]  }
 0x40a   :  { %9330 = vmatpush3.bf16.msra.mxu1 %v14621_v34  ;;  %19054 = vst [vmem:[#allocation146_spill] sm:$0xff] %v14639_v54  ;;  %v14645_v34 = vld [vmem:[%s18133_s4 + $0x3c8] ss:$12 sps:$4 sm:$0xff]  }
 0x40b   :  { %9331 = vmatprep.subr.bf16.mxu1 %v14627_v23  ;;  %19055 = vst [vmem:[#allocation147_spill] sm:$0xff] %v14645_v34  ;;  %v14651_v23 = vld [vmem:[%s18133_s4 + $0x4a0] ss:$12 sps:$4 sm:$0xff]  }
 0x40c   :  { %3975 = vmatpush1.bf16.msra.mxu0 %v14633_v44  ;;  %19056 = vst [vmem:[#allocation148_spill] sm:$0xff] %v14651_v23 }
 0x40d   :  { %3976 = vmatprep.subr.bf16.mxu0 %v14639_v54  ;;  %v14659_v54 = vld [vmem:[%s18133_s4 + $0x3e0] ss:$12 sps:$4 sm:$0xff]  }
 0x40e   :  { %9332 = vmatpush3.bf16.msra.mxu1 %v14645_v34  ;;  %19057 = vst [vmem:[#allocation149_spill] sm:$0xff] %v14659_v54  ;;  %v14665_v34 = vld [vmem:[%s18133_s4 + $0x4b8] ss:$12 sps:$4 sm:$0xff]  }
 0x40f   :  { %9333 = vmatprep.subr.bf16.mxu1 %v14651_v23  ;;  %19058 = vst [vmem:[#allocation150_spill] sm:$0xff] %v14665_v34 }
 0x410   :  { %3977 = vmatpush1.bf16.msra.mxu0 %v13420_v3  ;;  %v14673_v3 = vld [vmem:[%s18133_s4 + $0x3f8] ss:$12 sps:$4 sm:$0xff]  }
 0x411   :  { %3978 = vmatprep.subr.bf16.mxu0 %v13429_v5  ;;  %19059 = vst [vmem:[#allocation151_spill] sm:$0xff] %v14673_v3  ;;  %v14679_v5 = vld [vmem:[%s18133_s4 + $0x4d0] ss:$12 sps:$4 sm:$0xff]  }
 0x412   :  { %9334 = vmatpush3.bf16.msra.mxu1 %v14659_v54  ;;  %19060 = vst [vmem:[#allocation152_spill] sm:$0xff] %v14679_v5 }
 0x413   :  { %9335 = vmatprep.subr.bf16.mxu1 %v14665_v34  ;;  %v14695_v34 = vld [vmem:[%s18133_s4 + $0x4e8] ss:$12 sps:$4 sm:$0xff]  }
 0x414   :  { %3979 = vmatpush1.bf16.msra.mxu0 %v13440_v2  ;;  %v14687_v2 = vld [vmem:[%s18133_s4 + $0x410] ss:$12 sps:$4 sm:$0xff]  }
 0x415   :  { %3980 = vmatprep.subr.bf16.mxu0 %v13446_v35  ;;  %v19061_v35 = vld [vmem:[#allocation8_spill] sm:$0xff] }
 0x416   :  { %9336 = vmatpush3.bf16.msra.mxu1 %v14673_v3  ;;  %v1093_v3 = vadd.f32 %v19061_v35, %v18945_v50  ;;  %19062 = vst [vmem:[#allocation8_spill] sm:$0xff] %v14695_v34  ;;  %v14710_v35 = vld [vmem:[%s18133_s4 + $0x500] ss:$12 sps:$4 sm:$0xff]  }
 0x417   :  { %9337 = vmatprep.subr.bf16.mxu1 %v14679_v5  ;;  %19064 = vst [vmem:[#allocation154_spill] sm:$0xff] %v14710_v35 }
 0x418   :  { %3981 = vmatpush1.bf16.msra.mxu0 %v13456_v42  ;;  %v1139_v42 = vmax.f32 %v1093_v3, 0.0  ;;  %v14719_v3 = vld [vmem:[%s18133_s4 + $0x440] ss:$12 sps:$4 sm:$0xff]  }
 0x419   :  { %3982 = vmatprep.subr.bf16.mxu0 %v13462_v53  ;;  %v14703_v53 = vld [vmem:[%s18133_s4 + $0x428] ss:$12 sps:$4 sm:$0xff]  }
 0x41a   :  { %9338 = vmatpush3.bf16.msra.mxu1 %v14687_v2  ;;  %19063 = vst [vmem:[#allocation153_spill] sm:$0xff] %v14703_v53 }
 0x41b   :  { %9339 = vmatprep.subr.bf16.mxu1 %v14695_v34 }
 0x41c   :  { %3983 = vmatpush1.bf16.msra.mxu0 %v13473_v58 }
 0x41d   :  { %3993 = vmatprep.subr.bf16.mxu0 %v13479_v13 }
 0x41e   :  { %9340 = vmatpush3.bf16.msra.mxu1 %v14703_v53  ;;  %v14722_v53 = vpack.c.bf16 %v1139_v42, %v1139_v42  ;;  %v14783_v42 = vld [vmem:[%s18133_s4 + $0x3ac] ss:$12 sps:$4 sm:$0xff]  }
 0x41f   :  { %3985 = vmatmul.mubr.bf16.vlgmr.msra.gmra.mrb[60].mxu0 %v13941_v49  ;;  %9341 = vmatprep.subr.bf16.mxu1 %v14710_v35  ;;  %v10149_v35 = vadd.f32 %v14564_v40, %v13896_v14  ;;  %v14776_v40 = vld [vmem:[%s18133_s4 + $0x390] ss:$12 sps:$4 sm:$0xff]  }
 0x420   :  { %3994 = vmatpush1.bf16.msra.mxu0 %v13487_v48  ;;  %4025 = vmatprep.mubr.bf16.mxu0 %v18790_v21 }
 0x421   :  { %v9239_v58 = vpop.f32.mrb[52].mxu0  ;;  %3995 = vmatprep.subr.bf16.mxu0 %v13493_v52 }
 0x422   :  { %v9240_v13 = vpop.f32.mrb[53].mxu0  ;;  %9342 = vmatpush3.bf16.msra.mxu1 %v14719_v3 }
 0x423   :  { %v9241_v34 = vadd.f32 %v9240_v13, %v9239_v58  ;;  %v9242_v48 = vpop.f32.mrb[54].mxu0  ;;  %4291 = vmatprep.subr.bf16.mxu1 %v13967_v15  ;;  %v19070_v13 = vld [vmem:[#allocation112_spill] sm:$0xff] }
 0x424   :  { %3996 = vmatpush1.bf16.msra.mxu0 %v13502_v1  ;;  %v9243_v52 = vpop.f32.mrb[55].mxu0  ;;  %v14745_v1 = vld [vmem:[%s18133_s4 + $0x350] ss:$12 sps:$4 sm:$0xff]  }
 0x425   :  { %v14728_v50 = vadd.f32 %v10149_v35, %v9241_v34  ;;  %4235 = vmatmul.mubr.bf16.vlgmr.msra.gmra.mrb[76].mxu1 %v14722_v53  ;;  %8940 = vmatprep.subr.msk.bf16.mxu0 %vm2146_vm3, %v13508_v36  ;;  %19065 = vst [vmem:[#allocation155_spill] sm:$0xff] %v14745_v1  ;;  %v14756_v36 = vld [vmem:[%s18133_s4 + $0x368] ss:$12 sps:$4 sm:$0xff]   ;;  %v19072_v52 = vld [vmem:[#allocation114_spill] sm:$0xff] }
 0x426   :  { %4292 = vmatpush1.bf16.msra.mxu1 %v13977_v9  ;;  %4323 = vmatprep.mubr.bf16.mxu1 %v13892_v55  ;;  %19066 = vst [vmem:[#allocation156_spill] sm:$0xff] %v14756_v36  ;;  %v14766_v34 = vld [vmem:[%s18133_s4 + $0x394] ss:$12 sps:$4 sm:$0xff]  }
 0x427   :  { %4293 = vmatprep.subr.bf16.mxu1 %v13984_v6  ;;  %v19067_v35 = vld [vmem:[#allocation109_spill] sm:$0xff] }
 0x428   :  { %3998 = vmatpush1.bf16.msra.mxu0 %v13520_v4 }
 0x429   :  { %9921 = vmatprep.subr.bf16.mxu0 %v18770_v16 }
 0x42a   :  { %4294 = vmatpush1.bf16.msra.mxu1 %v13992_v41 }
 0x42b   :  { %8941 = vmatmul.mubr.msk.bf16.vlgmr.msra.gmra.mrb[60].mxu0 %vm2142_vm4, %v13962_v29  ;;  %4295 = vmatprep.subr.bf16.mxu1 %v13999_v56 }
 0x42c   :  { %9922 = vmatpush3.bf16.msra.mxu0 %v14745_v1  ;;  %9927 = vmatprep.mubr.msk.bf16.mxu0 %vm11410_vm2, %v18770_v16 }
 0x42d   :  { %9923 = vmatprep.subr.bf16.mxu0 %v18770_v16 }
 0x42e   :  { %4296 = vmatpush1.bf16.msra.mxu1 %v14007_v17 }
 0x42f   :  { %4297 = vmatprep.subr.bf16.mxu1 %v14013_v61 }
 0x430   :  { %9924 = vmatpush3.bf16.msra.mxu0 %v14756_v36 }
 0x431   :  { %9925 = vmatprep.subr.bf16.mxu0 %v18770_v16 }
 0x432   :  { %4298 = vmatpush1.bf16.msra.mxu1 %v14021_v27 }
 0x433   :  { %4299 = vmatprep.subr.bf16.mxu1 %v14029_v12 }
 0x434   :  { %9926 = vmatpush3.bf16.msra.mxu0 %v18928_v31 }
 0x435   :  { %4120 = vmatprep.subr.bf16.mxu0 %v14766_v34 }
 0x436   :  { %4300 = vmatpush1.bf16.msra.mxu1 %v14037_v26 }
 0x437   :  { %9928 = vmatmul.mubr.msk.bf16.vlgmr.msra.gmra.mrb[64].mxu0 %vm2142_vm4, %v13962_v29  ;;  %4301 = vmatprep.subr.bf16.mxu1 %v14043_v7 }
 0x438   :  { %4121 = vmatpush1.bf16.msra.mxu0 %v14776_v40  ;;  %4152 = vmatprep.mubr.bf16.mxu0 %v14578_v20 }
 0x439   :  { %4122 = vmatprep.subr.bf16.mxu0 %v14783_v42 }
 0x43a   :  { %4302 = vmatpush1.bf16.msra.mxu1 %v14051_v39 }
 0x43b   :  { %4303 = vmatprep.subr.bf16.mxu1 %v14057_v51 }
 0x43c   :  { %4123 = vmatpush1.bf16.msra.mxu0 %v18956_v60 }
 0x43d   :  { %4124 = vmatprep.subr.bf16.mxu0 %v18957_v46 }
 0x43e   :  { %4304 = vmatpush1.bf16.msra.mxu1 %v14065_v63 }
 0x43f   :  { %4305 = vmatprep.subr.bf16.mxu1 %v14071_v22 }
 0x440   :  { %4125 = vmatpush1.bf16.msra.mxu0 %v13564_v8  ;;  %v19068_v8 = vld [vmem:[#allocation110_spill] sm:$0xff] }
 0x441   :  { %4126 = vmatprep.subr.bf16.mxu0 %v13570_v28  ;;  %v19069_v28 = vld [vmem:[#allocation111_spill] sm:$0xff] }
 0x442   :  { %4306 = vmatpush1.bf16.msra.mxu1 %v14079_v0 }
 0x443   :  { %4307 = vmatprep.subr.bf16.mxu1 %v14085_v57 }
 0x444   :  { %4127 = vmatpush1.bf16.msra.mxu0 %v13584_v18 }
 0x445   :  { %4128 = vmatprep.subr.bf16.mxu0 %v19067_v35  ;;  %v19073_v35 = vld [vmem:[#allocation31_spill] sm:$0xff] }
 0x446   :  { %4308 = vmatpush1.bf16.msra.mxu1 %v14093_v24 }
 0x447   :  { %4309 = vmatprep.subr.bf16.mxu1 %v14099_v19  ;;  %v19148_v19 = vld [vmem:[#allocation61_spill] sm:$0xff] }
 0x448   :  { %4129 = vmatpush1.bf16.msra.mxu0 %v13598_v43 }
 0x449   :  { %4130 = vmatprep.subr.bf16.mxu0 %v13604_v45  ;;  %v19071_v45 = vld [vmem:[#allocation113_spill] sm:$0xff] }
 0x44a   :  { %4310 = vmatpush1.bf16.msra.mxu1 %v14107_v32 }
 0x44b   :  { %4311 = vmatprep.subr.bf16.mxu1 %v14113_v25 }
 0x44c   :  { %4131 = vmatpush1.bf16.msra.mxu0 %v19068_v8  ;;  %v19074_v8 = vld [vmem:[#allocation57_spill] sm:$0xff] }
 0x44d   :  { %4132 = vmatprep.subr.bf16.mxu0 %v19069_v28  ;;  %v19075_v28 = vld [vmem:[#allocation115_spill] sm:$0xff] }
 0x44e   :  { %v9265_v60 = vpop.f32.mrb[56].mxu0  ;;  %4312 = vmatpush1.bf16.msra.mxu1 %v14121_v37 }
 0x44f   :  { %v9266_v18 = vpop.f32.mrb[57].mxu0  ;;  %4313 = vmatprep.subr.bf16.mxu1 %v14127_v59  ;;  %v19145_v59 = vld [vmem:[#allocation87_spill] sm:$0xff] }
 0x450   :  { %v9267_v46 = vadd.f32 %v9266_v18, %v9265_v60  ;;  %v9268_v58 = vpop.f32.mrb[58].mxu0  ;;  %4133 = vmatpush1.bf16.msra.mxu0 %v19070_v13  ;;  %v19076_v60 = vld [vmem:[#allocation116_spill] sm:$0xff] }
 0x451   :  { %v9269_v43 = vpop.f32.mrb[59].mxu0  ;;  %4134 = vmatprep.subr.bf16.mxu0 %v19071_v45  ;;  %v19077_v58 = vld [vmem:[#allocation37_spill] sm:$0xff] }
 0x452   :  { %4314 = vmatpush1.bf16.msra.mxu1 %v14135_v10  ;;  %v10151_v48 = vadd.f32 %v14728_v50, %v9267_v46  ;;  %v19078_v50 = vld [vmem:[#allocation59_spill] sm:$0xff]  ;;  %v19079_v45 = vld [vmem:[#allocation117_spill] sm:$0xff]  ;;  %v19081_v10 = vld [vmem:[#allocation118_spill] sm:$0xff] }
 0x453   :  { %4315 = vmatprep.subr.bf16.mxu1 %v14141_v11 }
 0x454   :  { %4135 = vmatpush1.bf16.msra.mxu0 %v13640_v47  ;;  %v19080_v47 = vld [vmem:[#allocation23_spill] sm:$0xff] }
 0x455   :  { %4136 = vmatprep.subr.bf16.mxu0 %v19072_v52  ;;  %v3279_v52 = vmax.f32 %v19080_v47, 0.0  ;;  %v19096_v47 = vld [vmem:[#allocation44_spill] sm:$0xff] }
 0x456   :  { %4316 = vmatpush1.bf16.msra.mxu1 %v19073_v35 }
 0x457   :  { %4317 = vmatprep.subr.bf16.mxu1 %v19074_v8  ;;  %v19082_v8 = vld [vmem:[#allocation38_spill] sm:$0xff] }
 0x458   :  { %4137 = vmatpush1.bf16.msra.mxu0 %v19075_v28 }
 0x459   :  { %4138 = vmatprep.subr.bf16.mxu0 %v19076_v60  ;;  %v19084_v60 = vld [vmem:[#allocation60_spill] sm:$0xff] }
 0x45a   :  { %v3772_v18 = vpop.f32.mrb[48].mxu0  ;;  %4318 = vmatpush1.bf16.msra.mxu1 %v19077_v58  ;;  %v19085_v58 = vld [vmem:[#allocation119_spill] sm:$0xff] }
 0x45b   :  { %v10152_v13 = vadd.f32 %v10151_v48, %v3772_v18  ;;  %v9909_v43 = vpop.f32.mrb[49].mxu0  ;;  %4319 = vmatprep.subr.bf16.mxu1 %v19078_v50  ;;  %v19086_v48 = vld [vmem:[#allocation120_spill] sm:$0xff]  ;;  %v19087_v18 = vld [vmem:[#allocation62_spill] sm:$0xff] }
 0x45c   :  { %v3775_v46 = vpop.f32.mrb[50].mxu0  ;;  %4139 = vmatpush1.bf16.msra.mxu0 %v19079_v45  ;;  %v19088_v43 = vld [vmem:[#allocation40_spill] sm:$0xff]  ;;  %v19095_v45 = vld [vmem:[#allocation69_spill] sm:$0xff]  ;;  %v19142_v50 = vld [vmem:[#allocation6_spill] sm:$0xff] }
 0x45d   :  { %v3783_v11 = vmax.f32 %v10152_v13, 0.0  ;;  %v9910_v35 = vpop.f32.mrb[51].mxu0  ;;  %4140 = vmatprep.subr.bf16.mxu0 %v19081_v10  ;;  %v19089_v46 = vld [vmem:[#allocation121_spill] sm:$0xff]  ;;  %v19093_v13 = vld [vmem:[#allocation123_spill] sm:$0xff] }
 0x45e   :  { %4320 = vmatpush1.bf16.msra.mxu1 %v19082_v8  ;;  %v19090_v35 = vld [vmem:[#allocation122_spill] sm:$0xff]  ;;  %v19091_v10 = vld [vmem:[#allocation65_spill] sm:$0xff] }
 0x45f   :  { %v14825_v28 = vadd.f32 %v3783_v11, %v3279_v52  ;;  %4321 = vmatprep.subr.bf16.mxu1 %v19084_v60  ;;  %v19092_v11 = vld [vmem:[#allocation42_spill] sm:$0xff]  ;;  %v19097_v52 = vld [vmem:[#allocation125_spill] sm:$0xff] }
 0x460   :  { %4141 = vmatpush1.bf16.msra.mxu0 %v19085_v58  ;;  %v19094_v58 = vld [vmem:[#allocation124_spill] sm:$0xff]  ;;  %v19119_v60 = vld [vmem:[#allocation21_spill] sm:$0xff] }
 0x461   :  { %19083 = vst [vmem:[#allocation109_spill] sm:$0xff] %v14825_v28  ;;  %4142 = vmatprep.subr.bf16.mxu0 %v19086_v48  ;;  %v19098_v48 = vld [vmem:[#allocation126_spill] sm:$0xff]  ;;  %v19101_v28 = vld [vmem:[#allocation127_spill] sm:$0xff] }
 0x462   :  { %4322 = vmatpush1.bf16.msra.mxu1 %v19087_v18 }
 0x463   :  { %4332 = vmatprep.subr.bf16.mxu1 %v19088_v43  ;;  %v19113_v43 = vld [vmem:[#allocation71_spill] sm:$0xff] }
 0x464   :  { %4143 = vmatpush1.bf16.msra.mxu0 %v19089_v46  ;;  %v19099_v46 = vld [vmem:[#allocation56_spill] sm:$0xff] }
 0x465   :  { %4324 = vmatmul.mubr.bf16.vlgmr.msra.gmra.mrb[80].mxu1 %v13941_v49  ;;  %4144 = vmatprep.subr.bf16.mxu0 %v19090_v35  ;;  %v19100_v35 = vld [vmem:[#allocation39_spill] sm:$0xff] }
 0x466   :  { %4333 = vmatpush1.bf16.msra.mxu1 %v19091_v10  ;;  %4364 = vmatprep.mubr.bf16.mxu1 %v18790_v21 }
 0x467   :  { %4334 = vmatprep.subr.bf16.mxu1 %v19092_v11  ;;  %v19111_v11 = vld [vmem:[#allocation7_spill] sm:$0xff] }
 0x468   :  { %4145 = vmatpush1.bf16.msra.mxu0 %v19093_v13  ;;  %v19102_v13 = vld [vmem:[#allocation128_spill] sm:$0xff] }
 0x469   :  { %4146 = vmatprep.subr.bf16.mxu0 %v19094_v58  ;;  %v19103_v58 = vld [vmem:[#allocation63_spill] sm:$0xff] }
 0x46a   :  { %4335 = vmatpush1.bf16.msra.mxu1 %v19095_v45  ;;  %v19109_v45 = vld [vmem:[#allocation15_spill] sm:$0xff] }
 0x46b   :  { %8946 = vmatprep.subr.msk.bf16.mxu1 %vm2146_vm3, %v19096_v47  ;;  %v19104_v47 = vld [vmem:[#allocation41_spill] sm:$0xff] }
 0x46c   :  { %4147 = vmatpush1.bf16.msra.mxu0 %v19097_v52  ;;  %v19105_v52 = vld [vmem:[#allocation129_spill] sm:$0xff] }
 0x46d   :  { %4148 = vmatprep.subr.bf16.mxu0 %v19098_v48  ;;  %v19106_v48 = vld [vmem:[#allocation130_spill] sm:$0xff] }
 0x46e   :  { %4337 = vmatpush1.bf16.msra.mxu1 %v19099_v46  ;;  %v19107_v46 = vld [vmem:[#allocation67_spill] sm:$0xff] }
 0x46f   :  { %9353 = vmatprep.subr.bf16.mxu1 %v19100_v35 }
 0x470   :  { %4149 = vmatpush1.bf16.msra.mxu0 %v19101_v28  ;;  %v19108_v28 = vld [vmem:[#allocation43_spill] sm:$0xff] }
 0x471   :  { %8947 = vmatmul.mubr.msk.bf16.vlgmr.msra.gmra.mrb[80].mxu1 %vm2142_vm4, %v13962_v29  ;;  %4150 = vmatprep.subr.bf16.mxu0 %v19102_v13  ;;  %v19110_v13 = vld [vmem:[#allocation34_spill] sm:$0xff] }
 0x472   :  { %9354 = vmatpush3.bf16.msra.mxu1 %v19103_v58  ;;  %4405 = vmatprep.mubr.bf16.mxu1 %v13892_v55  ;;  %v1134_v10 = vadd.f32 %v19111_v11, %v19110_v13  ;;  %v19112_v55 = vld [vmem:[#allocation134_spill] sm:$0xff] }
 0x473   :  { %9355 = vmatprep.subr.bf16.mxu1 %v19104_v47  ;;  %v19120_v11 = vld [vmem:[#allocation50_spill] sm:$0xff]  ;;  %v19139_v47 = vld [vmem:[#allocation51_spill] sm:$0xff] }
 0x474   :  { %4151 = vmatpush1.bf16.msra.mxu0 %v19105_v52  ;;  %v19114_v52 = vld [vmem:[#allocation45_spill] sm:$0xff]  ;;  %v1141_v18 = vmax.f32 %v1134_v10, 0.0 }
 0x475   :  { %4161 = vmatprep.subr.bf16.mxu0 %v19106_v48  ;;  %v19115_v48 = vld [vmem:[#allocation19_spill] sm:$0xff] }
 0x476   :  { %9356 = vmatpush3.bf16.msra.mxu1 %v19107_v46  ;;  %v19116_v46 = vld [vmem:[#allocation20_spill] sm:$0xff]  ;;  %v14872_v8 = vpack.c.bf16 %v1141_v18, %v1141_v18  ;;  %v14882_v10 = vld [vmem:[%s18133_s4 + $0x518] ss:$12 sps:$4 sm:$0xff]  }
 0x477   :  { %4153 = vmatmul.mubr.bf16.vlgmr.msra.gmra.mrb[60].mxu0 %v14722_v53  ;;  %9357 = vmatprep.subr.bf16.mxu1 %v19108_v28  ;;  %v19117_v28 = vld [vmem:[#allocation73_spill] sm:$0xff]  ;;  %19122 = vst [vmem:[#allocation110_spill] sm:$0xff] %v14882_v10  ;;  %v19123_v18 = vld [vmem:[#allocation79_spill] sm:$0xff] }
 0x478   :  { %4162 = vmatpush1.bf16.msra.mxu0 %v19109_v45  ;;  %4193 = vmatprep.mubr.bf16.mxu0 %v18790_v21  ;;  %v19118_v45 = vld [vmem:[#allocation49_spill] sm:$0xff] }
 0x479   :  { %4163 = vmatprep.subr.bf16.mxu0 %v19112_v55  ;;  %v19121_v55 = vld [vmem:[#allocation77_spill] sm:$0xff] }
 0x47a   :  { %9358 = vmatpush3.bf16.msra.mxu1 %v19113_v43  ;;  %v19136_v43 = vld [vmem:[#allocation85_spill] sm:$0xff] }
 0x47b   :  { %9359 = vmatprep.subr.bf16.mxu1 %v19114_v52 }
 0x47c   :  { %4164 = vmatpush1.bf16.msra.mxu0 %v19115_v48  ;;  %v14893_v48 = vld [vmem:[%s18133_s4 + $0x530] ss:$12 sps:$4 sm:$0xff]  }
 0x47d   :  { %8943 = vmatprep.subr.msk.bf16.mxu0 %vm2146_vm3, %v19116_v46  ;;  %v19124_v46 = vld [vmem:[#allocation52_spill] sm:$0xff]  ;;  %19125 = vst [vmem:[#allocation111_spill] sm:$0xff] %v14893_v48 }
 0x47e   :  { %9360 = vmatpush3.bf16.msra.mxu1 %v19117_v28  ;;  %v19131_v28 = vld [vmem:[#allocation75_spill] sm:$0xff] }
 0x47f   :  { %9361 = vmatprep.subr.bf16.mxu1 %v19118_v45  ;;  %v19128_v45 = vld [vmem:[#allocation100_spill] sm:$0xff] }
 0x480   :  { %4166 = vmatpush1.bf16.msra.mxu0 %v19119_v60  ;;  %v19144_v60 = vld [vmem:[#allocation36_spill] sm:$0xff] }
 0x481   :  { %9931 = vmatprep.subr.bf16.mxu0 %v18770_v16 }
 0x482   :  { %9362 = vmatpush3.bf16.msra.mxu1 %v19120_v11  ;;  %v19127_v11 = vld [vmem:[#allocation83_spill] sm:$0xff] }
 0x483   :  { %8944 = vmatmul.mubr.msk.bf16.vlgmr.msra.gmra.mrb[60].mxu0 %vm2142_vm4, %v14872_v8  ;;  %9363 = vmatprep.subr.bf16.mxu1 %v19121_v55  ;;  %v19126_v55 = vld [vmem:[#allocation53_spill] sm:$0xff] }
 0x484   :  { %9932 = vmatpush3.bf16.msra.mxu0 %v14882_v10  ;;  %9937 = vmatprep.mubr.msk.bf16.mxu0 %vm11410_vm2, %v18770_v16 }
 0x485   :  { %9933 = vmatprep.subr.bf16.mxu0 %v18770_v16 }
 0x486   :  { %9364 = vmatpush3.bf16.msra.mxu1 %v19123_v18  ;;  %v19129_v18 = vld [vmem:[#allocation55_spill] sm:$0xff] }
 0x487   :  { %9365 = vmatprep.subr.bf16.mxu1 %v19124_v46  ;;  %v19130_v46 = vld [vmem:[#allocation81_spill] sm:$0xff] }
 0x488   :  { %9934 = vmatpush3.bf16.msra.mxu0 %v14893_v48 }
 0x489   :  { %9935 = vmatprep.subr.bf16.mxu0 %v18770_v16 }
 0x48a   :  { %9366 = vmatpush3.bf16.msra.mxu1 %v19126_v55  ;;  %v19133_v55 = vld [vmem:[#allocation24_spill] sm:$0xff] }
 0x48b   :  { %9367 = vmatprep.subr.bf16.mxu1 %v19127_v11  ;;  %v19132_v11 = vld [vmem:[#allocation54_spill] sm:$0xff] }
 0x48c   :  { %9936 = vmatpush3.bf16.msra.mxu0 %v19128_v45 }
 0x48d   :  { %9941 = vmatprep.subr.bf16.mxu0 %v18770_v16 }
 0x48e   :  { %9368 = vmatpush3.bf16.msra.mxu1 %v19129_v18  ;;  %v19134_v18 = vld [vmem:[#allocation22_spill] sm:$0xff] }
 0x48f   :  { %9938 = vmatmul.mubr.msk.bf16.vlgmr.msra.gmra.mrb[64].mxu0 %vm2142_vm4, %v14872_v8  ;;  %4456 = vmatprep.subr.bf16.mxu1 %v19130_v46  ;;  %v14914_v52 = vrot.slane %v19134_v18, %v19133_v55  ;;  %v19137_v46 = vld [vmem:[#allocation13_spill] sm:$0xff] }
 0x490   :  { %9942 = vmatpush3.bf16.msra.mxu0 %v19131_v28  ;;  %9947 = vmatprep.mubr.msk.bf16.mxu0 %vm11410_vm2, %v18770_v16  ;;  %v14919_v28 = vrot.slane %v19134_v18, %v19137_v46  ;;  %v19143_v55 = vld [vmem:[#allocation93_spill] sm:$0xff] }
 0x491   :  { %4406 = vmatmul.mubr.bf16.vlgmr.msra.gmra.mrb[84].mxu1 %v13941_v49  ;;  %9943 = vmatprep.subr.bf16.mxu0 %v18770_v16  ;;  %19135 = vst [vmem:[#allocation112_spill] sm:$0xff] %v14914_v52  ;;  %v19140_v49 = vld [vmem:[#allocation58_spill] sm:$0xff] }
 0x492   :  { %4457 = vmatpush1.bf16.msra.mxu1 %v19132_v11  ;;  %4488 = vmatprep.mubr.bf16.mxu1 %v14578_v20  ;;  %19138 = vst [vmem:[#allocation113_spill] sm:$0xff] %v14919_v28  ;;  %v19141_v11 = vld [vmem:[#allocation89_spill] sm:$0xff]  ;;  %v10142_v35 = vadd.f32 %v19143_v55, %v14919_v28  ;;  %v19147_v55 = vld [vmem:[#allocation68_spill] sm:$0xff] }
 0x493   :  { %4458 = vmatprep.subr.bf16.mxu1 %v19136_v43  ;;  %v10141_v58 = vadd.f32 %v19141_v11, %v14914_v52 }
 0x494   :  { %9944 = vmatpush3.bf16.msra.mxu0 %v19139_v47 }
 0x495   :  { %9945 = vmatprep.subr.bf16.mxu0 %v18770_v16  ;;  %v3277_v25 = vmax.f32 %v10141_v58, 0.0  ;;  %v19152_v58 = vld [vmem:[#allocation72_spill] sm:$0xff] }
 0x496   :  { %4459 = vmatpush1.bf16.msra.mxu1 %v19140_v49  ;;  %v19146_v49 = vld [vmem:[#allocation97_spill] sm:$0xff] }
 0x497   :  { %4460 = vmatprep.subr.bf16.mxu1 %v19142_v50 }
 0x498   :  { %9946 = vmatpush3.bf16.msra.mxu0 %v19144_v60  ;;  %v3691_v43 = vpop.f32.mrb[60].mxu1  ;;  %v3278_v60 = vmax.f32 %v10142_v35, 0.0  ;;  %v19156_v35 = vld [vmem:[#allocation80_spill] sm:$0xff] }
 0x499   :  { %v10147_v18 = vadd.f32 %v3691_v43, %v14914_v52  ;;  %v3693_v46 = vpop.f32.mrb[61].mxu1  ;;  %9379 = vmatprep.subr.bf16.mxu0 %v19145_v59  ;;  %v19169_v52 = vld [vmem:[#allocation104_spill] sm:$0xff] }
 0x49a   :  { %v10148_v47 = vadd.f32 %v3693_v46, %v14919_v28  ;;  %v3695_v37 = vpop.f32.mrb[62].mxu1  ;;  %4461 = vmatpush1.bf16.msra.mxu1 %v19146_v49  ;;  %v19150_v46 = vld [vmem:[#allocation66_spill] sm:$0xff]  ;;  %v19158_v28 = vld [vmem:[#allocation76_spill] sm:$0xff] }
 0x49b   :  { %v3781_v11 = vmax.f32 %v10147_v18, 0.0  ;;  %9948 = vmatmul.mubr.msk.bf16.vlgmr.msra.gmra.mrb[68].mxu0 %vm2142_vm4, %v13962_v29  ;;  %v3696_v50 = vpop.f32.mrb[63].mxu1  ;;  %4462 = vmatprep.subr.bf16.mxu1 %v19147_v55  ;;  %v19153_v18 = vld [vmem:[#allocation74_spill] sm:$0xff]  ;;  %v19170_v55 = vld [vmem:[#allocation103_spill] sm:$0xff] }
 0x49c   :  { %v3782_v32 = vmax.f32 %v10148_v47, 0.0  ;;  %9380 = vmatpush3.bf16.msra.mxu0 %v19148_v19  ;;  %4570 = vmatprep.mubr.bf16.mxu0 %v14578_v20  ;;  %v19154_v29 = vld [vmem:[#allocation98_spill] sm:$0xff] }
 0x49d   :  { %v14939_v43 = vadd.f32 %v3781_v11, %v3277_v25  ;;  %9381 = vmatprep.subr.bf16.mxu0 %v19150_v46  ;;  %v19155_v50 = vld [vmem:[#allocation70_spill] sm:$0xff]  ;;  %v19160_v11 = vld [vmem:[#allocation88_spill] sm:$0xff] }
 0x49e   :  { %v14942_v37 = vadd.f32 %v3782_v32, %v3278_v60  ;;  %4463 = vmatpush1.bf16.msra.mxu1 %v19152_v58  ;;  %v19157_v47 = vld [vmem:[#allocation82_spill] sm:$0xff]  ;;  %v19161_v32 = vld [vmem:[#allocation5_spill] sm:$0xff]  ;;  %v19162_v60 = vld [vmem:[#allocation84_spill] sm:$0xff] }
 0x49f   :  { %19149 = vst [vmem:[#allocation114_spill] sm:$0xff] %v14939_v43  ;;  %4464 = vmatprep.subr.bf16.mxu1 %v19153_v18  ;;  %v19159_v25 = vld [vmem:[#allocation78_spill] sm:$0xff]  ;;  %v19164_v43 = vld [vmem:[#allocation101_spill] sm:$0xff] }
 0x4a0   :  { %19151 = vst [vmem:[#allocation115_spill] sm:$0xff] %v14942_v37  ;;  %9382 = vmatpush3.bf16.msra.mxu0 %v19154_v29  ;;  %v19163_v37 = vld [vmem:[#allocation86_spill] sm:$0xff] }
 0x4a1   :  { %9383 = vmatprep.subr.bf16.mxu0 %v19155_v50  ;;  %v19165_v18 = vld [vmem:[#allocation102_spill] sm:$0xff] }
 0x4a2   :  { %4465 = vmatpush1.bf16.msra.mxu1 %v19156_v35  ;;  %v19166_v58 = vld [vmem:[#allocation94_spill] sm:$0xff]  ;;  %v19167_v35 = vld [vmem:[#allocation95_spill] sm:$0xff] }
 0x4a3   :  { %4466 = vmatprep.subr.bf16.mxu1 %v19157_v47  ;;  %v19168_v47 = vld [vmem:[#allocation4_spill] sm:$0xff] }
 0x4a4   :  { %9384 = vmatpush3.bf16.msra.mxu0 %v19158_v28 }
 0x4a5   :  { %9385 = vmatprep.subr.bf16.mxu0 %v19159_v25 }
 0x4a6   :  { %4467 = vmatpush1.bf16.msra.mxu1 %v19160_v11  ;;  %v19171_v11 = vld [vmem:[#allocation96_spill] sm:$0xff] }
 0x4a7   :  { %4468 = vmatprep.subr.bf16.mxu1 %v19161_v32  ;;  %v19172_v32 = vld [vmem:[#allocation9_spill] sm:$0xff] }
 0x4a8   :  { %9386 = vmatpush3.bf16.msra.mxu0 %v19162_v60 }
 0x4a9   :  { %9387 = vmatprep.subr.bf16.mxu0 %v19163_v37  ;;  %v19173_v37 = vld [vmem:[#allocation105_spill] sm:$0xff] }
 0x4aa   :  { %4469 = vmatpush1.bf16.msra.mxu1 %v19164_v43  ;;  %v19174_v43 = vld [vmem:[#allocation99_spill] sm:$0xff] }
 0x4ab   :  { %4470 = vmatprep.subr.bf16.mxu1 %v19165_v18 }
 0x4ac   :  { %9388 = vmatpush3.bf16.msra.mxu0 %v19166_v58 }
 0x4ad   :  { %9389 = vmatprep.subr.bf16.mxu0 %v19167_v35 }
 0x4ae   :  { %4471 = vmatpush1.bf16.msra.mxu1 %v19168_v47 }
 0x4af   :  { %4472 = vmatprep.subr.bf16.mxu1 %v19169_v52 }
 0x4b0   :  { %9390 = vmatpush3.bf16.msra.mxu0 %v19170_v55  ;;  %v19175_v55 = vld [vmem:[#allocation141_spill] sm:$0xff] }
 0x4b1   :  { %9391 = vmatprep.subr.bf16.mxu0 %v19171_v11 }
 0x4b2   :  { %4473 = vmatpush1.bf16.msra.mxu1 %v19172_v32  ;;  %v19176_v32 = vld [vmem:[#allocation142_spill] sm:$0xff] }
 0x4b3   :  { %4474 = vmatprep.subr.bf16.mxu1 %v14561_v33 }
 0x4b4   :  { %9392 = vmatpush3.bf16.msra.mxu0 %v19173_v37 }
 0x4b5   :  { %9393 = vmatprep.subr.bf16.mxu0 %v19174_v43 }
 0x4b6   :  { %4475 = vmatpush1.bf16.msra.mxu1 %v14583_v38  ;;  %v19178_v38 = vld [vmem:[#allocation12_spill] sm:$0xff] }
 0x4b7   :  { %4476 = vmatprep.subr.bf16.mxu1 %v14590_v30  ;;  %v19177_v30 = vld [vmem:[#allocation14_spill] sm:$0xff] }
 0x4b8   :  { %9394 = vmatpush3.bf16.msra.mxu0 %v14569_v62  ;;  %v9291_v47 = vpop.f32.mrb[68].mxu1  ;;  %v1211_v62 = vadd.f32 %v19178_v38, %v19177_v30  ;;  %v14994_v38 = vld [vmem:[%s18133_s4 + $0x304] ss:$12 sps:$4 sm:$0xff]  }
 0x4b9   :  { %v9292_v52 = vpop.f32.mrb[69].mxu1  ;;  %9951 = vmatprep.subr.bf16.mxu0 %v18770_v16  ;;  %19181 = vst [vmem:[#allocation117_spill] sm:$0xff] %v14994_v38 }
 0x4ba   :  { %v9293_v18 = vadd.f32 %v9292_v52, %v9291_v47  ;;  %v9294_v11 = vpop.f32.mrb[70].mxu1  ;;  %4477 = vmatpush1.bf16.msra.mxu1 %v19175_v55  ;;  %v1256_v47 = vmax.f32 %v1211_v62, 0.0  ;;  %v14988_v52 = vld [vmem:[%s18133_s4 + $0x2e8] ss:$12 sps:$4 sm:$0xff]   ;;  %v15004_v62 = vld [vmem:[%s18133_s4 + $0x300] ss:$12 sps:$4 sm:$0xff]  }
 0x4bb   :  { %4571 = vmatmul.mubr.bf16.vlgmr.msra.gmra.mrb[72].mxu0 %v14722_v53  ;;  %v9295_v33 = vpop.f32.mrb[71].mxu1  ;;  %4478 = vmatprep.subr.bf16.mxu1 %v19176_v32  ;;  %v19179_v11 = vld [vmem:[#allocation146_spill] sm:$0xff]  ;;  %19180 = vst [vmem:[#allocation116_spill] sm:$0xff] %v14988_v52  ;;  %19183 = vst [vmem:[#allocation23_spill] sm:$0xff] %v15004_v62 }
 0x4bc   :  { %9952 = vmatpush3.bf16.msra.mxu0 %v14745_v1  ;;  %9957 = vmatprep.mubr.msk.bf16.mxu0 %vm11410_vm2, %v18770_v16  ;;  %v19182_v33 = vld [vmem:[#allocation136_spill] sm:$0xff] }
 0x4bd   :  { %9953 = vmatprep.subr.bf16.mxu0 %v18770_v16  ;;  %v15012_v1 = vld [vmem:[%s18133_s4 + $0x31c] ss:$12 sps:$4 sm:$0xff]   ;;  %v15065_v32 = vld [vmem:[%s18133_s4 + $0x360] ss:$12 sps:$4 sm:$0xff]  }
 0x4be   :  { %4479 = vmatpush1.bf16.msra.mxu1 %v14633_v44  ;;  %19184 = vst [vmem:[#allocation118_spill] sm:$0xff] %v15012_v1  ;;  %v19193_v44 = vld [vmem:[#allocation147_spill] sm:$0xff]  ;;  %19197 = vst [vmem:[#allocation125_spill] sm:$0xff] %v15065_v32 }
 0x4bf   :  { %4480 = vmatprep.subr.bf16.mxu1 %v19179_v11  ;;  %v15035_v11 = vld [vmem:[%s18133_s4 + $0x330] ss:$12 sps:$4 sm:$0xff]  }
 0x4c0   :  { %9954 = vmatpush3.bf16.msra.mxu0 %v14756_v36  ;;  %v14999_v36 = vpack.c.bf16 %v1256_v47, %v1256_v47  ;;  %v19186_v47 = vld [vmem:[#allocation140_spill] sm:$0xff]  ;;  %19191 = vst [vmem:[#allocation121_spill] sm:$0xff] %v15035_v11 }
 0x4c1   :  { %9955 = vmatprep.subr.bf16.mxu0 %v18770_v16 }
 0x4c2   :  { %4481 = vmatpush1.bf16.msra.mxu1 %v14988_v52  ;;  %v19190_v52 = vld [vmem:[#allocation144_spill] sm:$0xff] }
 0x4c3   :  { %4482 = vmatprep.subr.bf16.mxu1 %v14994_v38  ;;  %v15027_v38 = vld [vmem:[%s18133_s4 + $0x334] ss:$12 sps:$4 sm:$0xff]  }
 0x4c4   :  { %9956 = vmatpush3.bf16.msra.mxu0 %v18928_v31  ;;  %v19185_v31 = vld [vmem:[#allocation139_spill] sm:$0xff]  ;;  %19188 = vst [vmem:[#allocation120_spill] sm:$0xff] %v15027_v38 }
 0x4c5   :  { %9405 = vmatprep.subr.bf16.mxu0 %v19182_v33 }
 0x4c6   :  { %4483 = vmatpush1.bf16.msra.mxu1 %v15004_v62  ;;  %v15021_v62 = vld [vmem:[%s18133_s4 + $0x318] ss:$12 sps:$4 sm:$0xff]  }
 0x4c7   :  { %9958 = vmatmul.mubr.msk.bf16.vlgmr.msra.gmra.mrb[68].mxu0 %vm2142_vm4, %v14872_v8  ;;  %4484 = vmatprep.subr.bf16.mxu1 %v15012_v1  ;;  %19187 = vst [vmem:[#allocation119_spill] sm:$0xff] %v15021_v62  ;;  %v19189_v1 = vld [vmem:[#allocation143_spill] sm:$0xff] }
 0x4c8   :  { %9406 = vmatpush3.bf16.msra.mxu0 %v19185_v31  ;;  %4738 = vmatprep.mubr.bf16.mxu0 %v14999_v36 }
 0x4c9   :  { %9407 = vmatprep.subr.bf16.mxu0 %v19186_v47 }
 0x4ca   :  { %4485 = vmatpush1.bf16.msra.mxu1 %v15021_v62  ;;  %v15041_v62 = vld [vmem:[%s18133_s4 + $0x34c] ss:$12 sps:$4 sm:$0xff]  }
 0x4cb   :  { %4486 = vmatprep.subr.bf16.mxu1 %v15027_v38  ;;  %19192 = vst [vmem:[#allocation122_spill] sm:$0xff] %v15041_v62  ;;  %v15050_v38 = vld [vmem:[%s18133_s4 + $0x348] ss:$12 sps:$4 sm:$0xff]  }
 0x4cc   :  { %9408 = vmatpush3.bf16.msra.mxu0 %v19189_v1  ;;  %19194 = vst [vmem:[#allocation123_spill] sm:$0xff] %v15050_v38  ;;  %v19201_v1 = vld [vmem:[#allocation11_spill] sm:$0xff] }
 0x4cd   :  { %9409 = vmatprep.subr.bf16.mxu0 %v19190_v52 }
 0x4ce   :  { %4487 = vmatpush1.bf16.msra.mxu1 %v15035_v11  ;;  %v15057_v11 = vld [vmem:[%s18133_s4 + $0x364] ss:$12 sps:$4 sm:$0xff]  }
 0x4cf   :  { %4497 = vmatprep.subr.bf16.mxu1 %v15041_v62  ;;  %19195 = vst [vmem:[#allocation124_spill] sm:$0xff] %v15057_v11  ;;  %v19196_v62 = vld [vmem:[#allocation150_spill] sm:$0xff] }
 0x4d0   :  { %9410 = vmatpush3.bf16.msra.mxu0 %v19193_v44 }
 0x4d1   :  { %4489 = vmatmul.mubr.bf16.vlgmr.msra.gmra.mrb[80].mxu1 %v14722_v53  ;;  %9411 = vmatprep.subr.bf16.mxu0 %v14651_v23 }
 0x4d2   :  { %4498 = vmatpush1.bf16.msra.mxu1 %v15050_v38  ;;  %4529 = vmatprep.mubr.bf16.mxu1 %v18790_v21  ;;  %v15071_v38 = vld [vmem:[%s18133_s4 + $0x37c] ss:$12 sps:$4 sm:$0x3f]  }
 0x4d3   :  { %4499 = vmatprep.subr.bf16.mxu1 %v15057_v11  ;;  %19198 = vst [vmem:[#allocation126_spill] sm:$0xff] %v15071_v38  ;;  %v19199_v11 = vld [vmem:[#allocation151_spill] sm:$0xff] }
 0x4d4   :  { %9412 = vmatpush3.bf16.msra.mxu0 %v14659_v54 }
 0x4d5   :  { %9413 = vmatprep.subr.bf16.mxu0 %v19196_v62  ;;  %v10155_v62 = vadd.f32 %v9293_v18, %v13896_v14 }
 0x4d6   :  { %4500 = vmatpush1.bf16.msra.mxu1 %v15065_v32 }
 0x4d7   :  { %8949 = vmatprep.subr.msk.bf16.mxu1 %vm2146_vm3, %v15071_v38  ;;  %v19200_v38 = vld [vmem:[#allocation27_spill] sm:$0xff] }
 0x4d8   :  { %9414 = vmatpush3.bf16.msra.mxu0 %v19199_v11  ;;  %v9317_v54 = vpop.f32.mrb[72].mxu1  ;;  %v1209_v11 = vadd.f32 %v19201_v1, %v19200_v38  ;;  %v15096_v1 = vld [vmem:[%s18133_s4 + $0x3a8] ss:$12 sps:$4 sm:$0xff]  }
 0x4d9   :  { %v9318_v55 = vpop.f32.mrb[73].mxu1  ;;  %9415 = vmatprep.subr.bf16.mxu0 %v14679_v5  ;;  %v19202_v5 = vld [vmem:[#allocation8_spill] sm:$0xff] }
 0x4da   :  { %v9319_v23 = vadd.f32 %v9318_v55, %v9317_v54  ;;  %v9320_v44 = vpop.f32.mrb[74].mxu1  ;;  %4502 = vmatpush1.bf16.msra.mxu1 %v13520_v4  ;;  %v19203_v54 = vld [vmem:[#allocation153_spill] sm:$0xff] }
 0x4db   :  { %v9321_v32 = vpop.f32.mrb[75].mxu1  ;;  %4624 = vmatprep.subr.bf16.mxu1 %v14766_v34  ;;  %v19204_v44 = vld [vmem:[#allocation154_spill] sm:$0xff]  ;;  %v15102_v55 = vld [vmem:[%s18133_s4 + $0x3c4] ss:$12 sps:$4 sm:$0xff]  }
 0x4dc   :  { %v15080_v52 = vadd.f32 %v10155_v62, %v9319_v23  ;;  %9416 = vmatpush3.bf16.msra.mxu0 %v14687_v2  ;;  %v1255_v23 = vmax.f32 %v1209_v11, 0.0  ;;  %v15112_v32 = vld [vmem:[%s18133_s4 + $0x3c0] ss:$12 sps:$4 sm:$0xff]   ;;  %v15119_v11 = vld [vmem:[%s18133_s4 + $0x3dc] ss:$12 sps:$4 sm:$0xff]  }
 0x4dd   :  { %8950 = vmatmul.mubr.msk.bf16.vlgmr.msra.gmra.mrb[80].mxu1 %vm2142_vm4, %v14872_v8  ;;  %9417 = vmatprep.subr.bf16.mxu0 %v19202_v5  ;;  %19205 = vst [vmem:[#allocation127_spill] sm:$0xff] %v15112_v32  ;;  %19206 = vst [vmem:[#allocation128_spill] sm:$0xff] %v15119_v11  ;;  %v19207_v62 = vld [vmem:[#allocation10_spill] sm:$0xff] }
 0x4de   :  { %4625 = vmatpush1.bf16.msra.mxu1 %v14776_v40  ;;  %4656 = vmatprep.mubr.bf16.mxu1 %v14999_v36  ;;  %v15106_v18 = vpack.c.bf16 %v1255_v23, %v1255_v23  ;;  %v1250_v23 = vadd.f32 %v19207_v62, %v19110_v13  ;;  %v15145_v62 = vld [vmem:[%s18133_s4 + $0x3f0] ss:$12 sps:$4 sm:$0xff]   ;;  %v15151_v13 = vld [vmem:[%s18133_s4 + $0x40c] ss:$12 sps:$4 sm:$0xff]  }
 0x4df   :  { %4626 = vmatprep.subr.bf16.mxu1 %v14783_v42  ;;  %19208 = vst [vmem:[#allocation129_spill] sm:$0xff] %v15151_v13 }
 0x4e0   :  { %9418 = vmatpush3.bf16.msra.mxu0 %v19203_v54 }
 0x4e1   :  { %9419 = vmatprep.subr.bf16.mxu0 %v19204_v44 }
 0x4e2   :  { %4627 = vmatpush1.bf16.msra.mxu1 %v15096_v1 }
 0x4e3   :  { %4628 = vmatprep.subr.bf16.mxu1 %v15102_v55 }
 0x4e4   :  { %9420 = vmatpush3.bf16.msra.mxu0 %v14719_v3 }
 0x4e5   :  { %9961 = vmatprep.subr.bf16.mxu0 %v18770_v16 }
 0x4e6   :  { %4629 = vmatpush1.bf16.msra.mxu1 %v15112_v32  ;;  %v15131_v32 = vld [vmem:[%s18133_s4 + $0x3d8] ss:$12 sps:$4 sm:$0xff]  }
 0x4e7   :  { %4739 = vmatmul.mubr.bf16.vlgmr.msra.gmra.mrb[76].mxu0 %v15106_v18  ;;  %4630 = vmatprep.subr.bf16.mxu1 %v15119_v11  ;;  %v15137_v11 = vld [vmem:[%s18133_s4 + $0x3f4] ss:$12 sps:$4 sm:$0xff]  }
 0x4e8   :  { %9962 = vmatpush3.bf16.msra.mxu0 %v14882_v10  ;;  %9967 = vmatprep.mubr.msk.bf16.mxu0 %vm11410_vm2, %v18770_v16  ;;  %v1257_v10 = vmax.f32 %v1250_v23, 0.0  ;;  %v15161_v23 = vld [vmem:[%s18133_s4 + $0x408] ss:$12 sps:$4 sm:$0xff]  }
 0x4e9   :  { %9963 = vmatprep.subr.bf16.mxu0 %v18770_v16  ;;  %19209 = vst [vmem:[#allocation130_spill] sm:$0xff] %v15161_v23 }
 0x4ea   :  { %4631 = vmatpush1.bf16.msra.mxu1 %v15131_v32 }
 0x4eb   :  { %4632 = vmatprep.subr.bf16.mxu1 %v15137_v11 }
 0x4ec   :  { %9964 = vmatpush3.bf16.msra.mxu0 %v14893_v48  ;;  %v15155_v48 = vpack.c.bf16 %v1257_v10, %v1257_v10  ;;  %v15184_v10 = vld [vmem:[%s18133_s4 + $0x43c] ss:$12 sps:$4 sm:$0xff]  }
 0x4ed   :  { %9965 = vmatprep.subr.bf16.mxu0 %v18770_v16  ;;  %19212 = vst [vmem:[#allocation134_spill] sm:$0xff] %v15184_v10 }
 0x4ee   :  { %4633 = vmatpush1.bf16.msra.mxu1 %v15145_v62 }
 0x4ef   :  { %4634 = vmatprep.subr.bf16.mxu1 %v15151_v13  ;;  %v15169_v13 = vld [vmem:[%s18133_s4 + $0x424] ss:$12 sps:$4 sm:$0xff]  }
 0x4f0   :  { %9966 = vmatpush3.bf16.msra.mxu0 %v19128_v45  ;;  %19210 = vst [vmem:[#allocation15_spill] sm:$0xff] %v15169_v13 }
 0x4f1   :  { %4795 = vmatprep.subr.bf16.mxu0 %v13967_v15  ;;  %v15178_v15 = vld [vmem:[%s18133_s4 + $0x420] ss:$12 sps:$4 sm:$0xff]  }
 0x4f2   :  { %4635 = vmatpush1.bf16.msra.mxu1 %v15161_v23  ;;  %19211 = vst [vmem:[#allocation7_spill] sm:$0xff] %v15178_v15  ;;  %v15192_v23 = vld [vmem:[%s18133_s4 + $0x438] ss:$12 sps:$4 sm:$0xff]  }
 0x4f3   :  { %9968 = vmatmul.mubr.msk.bf16.vlgmr.msra.gmra.mrb[68].mxu0 %vm2142_vm4, %v15155_v48  ;;  %4636 = vmatprep.subr.bf16.mxu1 %v15169_v13 }
 0x4f4   :  { %4796 = vmatpush1.bf16.msra.mxu0 %v13977_v9  ;;  %4827 = vmatprep.mubr.bf16.mxu0 %v14578_v20 }
 0x4f5   :  { %4797 = vmatprep.subr.bf16.mxu0 %v13984_v6 }
 0x4f6   :  { %4637 = vmatpush1.bf16.msra.mxu1 %v15178_v15 }
 0x4f7   :  { %4638 = vmatprep.subr.bf16.mxu1 %v15184_v10  ;;  %v15198_v10 = vld [vmem:[%s18133_s4 + $0x454] ss:$12 sps:$4 sm:$0xff]  }
 0x4f8   :  { %4798 = vmatpush1.bf16.msra.mxu0 %v13992_v41  ;;  %v9343_v9 = vpop.f32.mrb[76].mxu1  ;;  %v15209_v41 = vld [vmem:[%s18133_s4 + $0x450] ss:$12 sps:$4 sm:$0xff]  }
 0x4f9   :  { %v9344_v45 = vpop.f32.mrb[77].mxu1  ;;  %4799 = vmatprep.subr.bf16.mxu0 %v13999_v56 }
 0x4fa   :  { %v9345_v6 = vadd.f32 %v9344_v45, %v9343_v9  ;;  %v9346_v13 = vpop.f32.mrb[78].mxu1  ;;  %4639 = vmatpush1.bf16.msra.mxu1 %v15192_v23  ;;  %v19215_v45 = vld [vmem:[#allocation25_spill] sm:$0xff] }
 0x4fb   :  { %v9347_v15 = vpop.f32.mrb[79].mxu1  ;;  %4640 = vmatprep.subr.bf16.mxu1 %v15198_v10  ;;  %v15215_v13 = vld [vmem:[%s18133_s4 + $0x46c] ss:$12 sps:$4 sm:$0xff]   ;;  %v15313_v9 = vld [vmem:[%s18133_s4 + $0x514] ss:$12 sps:$4 sm:$0xff]  }
 0x4fc   :  { %4800 = vmatpush1.bf16.msra.mxu0 %v14007_v17  ;;  %v15203_v56 = vadd.f32 %v15080_v52, %v9345_v6  ;;  %v15223_v17 = vld [vmem:[%s18133_s4 + $0x468] ss:$12 sps:$4 sm:$0xff]   ;;  %v19218_v52 = vld [vmem:[#allocation26_spill] sm:$0xff]  ;;  %19221 = vst [vmem:[#allocation87_spill] sm:$0xff] %v15313_v9 }
 0x4fd   :  { %4801 = vmatprep.subr.bf16.mxu0 %v14013_v61  ;;  %v15229_v61 = vld [vmem:[%s18133_s4 + $0x484] ss:$12 sps:$4 sm:$0xff]  }
 0x4fe   :  { %4641 = vmatpush1.bf16.msra.mxu1 %v15209_v41  ;;  %v19219_v15 = vld [vmem:[#allocation33_spill] sm:$0xff]  ;;  %v19222_v6 = vld [vmem:[#allocation28_spill] sm:$0xff] }
 0x4ff   :  { %4642 = vmatprep.subr.bf16.mxu1 %v15215_v13 }
 0x500   :  { %4802 = vmatpush1.bf16.msra.mxu0 %v14021_v27  ;;  %v15243_v27 = vld [vmem:[%s18133_s4 + $0x49c] ss:$12 sps:$4 sm:$0xff]  }
 0x501   :  { %4803 = vmatprep.subr.bf16.mxu0 %v14029_v12  ;;  %v15237_v12 = vld [vmem:[%s18133_s4 + $0x480] ss:$12 sps:$4 sm:$0xff]  }
 0x502   :  { %4643 = vmatpush1.bf16.msra.mxu1 %v15223_v17 }
 0x503   :  { %4644 = vmatprep.subr.bf16.mxu1 %v15229_v61 }
 0x504   :  { %4804 = vmatpush1.bf16.msra.mxu0 %v14037_v26  ;;  %v15251_v26 = vld [vmem:[%s18133_s4 + $0x498] ss:$12 sps:$4 sm:$0xff]  }
 0x505   :  { %4805 = vmatprep.subr.bf16.mxu0 %v14043_v7  ;;  %v15257_v7 = vld [vmem:[%s18133_s4 + $0x4b4] ss:$12 sps:$4 sm:$0xff]  }
 0x506   :  { %4645 = vmatpush1.bf16.msra.mxu1 %v15237_v12 }
 0x507   :  { %4646 = vmatprep.subr.bf16.mxu1 %v15243_v27 }
 0x508   :  { %4806 = vmatpush1.bf16.msra.mxu0 %v14051_v39  ;;  %v15265_v39 = vld [vmem:[%s18133_s4 + $0x4b0] ss:$12 sps:$4 sm:$0xff]  }
 0x509   :  { %4807 = vmatprep.subr.bf16.mxu0 %v14057_v51  ;;  %v15271_v51 = vld [vmem:[%s18133_s4 + $0x4cc] ss:$12 sps:$4 sm:$0xff]  }
 0x50a   :  { %4647 = vmatpush1.bf16.msra.mxu1 %v15251_v26 }
 0x50b   :  { %4648 = vmatprep.subr.bf16.mxu1 %v15257_v7 }
 0x50c   :  { %4808 = vmatpush1.bf16.msra.mxu0 %v14065_v63  ;;  %v15279_v63 = vld [vmem:[%s18133_s4 + $0x4c8] ss:$12 sps:$4 sm:$0xff]  }
 0x50d   :  { %4809 = vmatprep.subr.bf16.mxu0 %v14071_v22  ;;  %19213 = vst [vmem:[#allocation19_spill] sm:$0xff] %v15279_v63  ;;  %v15285_v22 = vld [vmem:[%s18133_s4 + $0x4e4] ss:$12 sps:$4 sm:$0xff]  }
 0x50e   :  { %4649 = vmatpush1.bf16.msra.mxu1 %v15265_v39  ;;  %19214 = vst [vmem:[#allocation20_spill] sm:$0xff] %v15285_v22 }
 0x50f   :  { %4650 = vmatprep.subr.bf16.mxu1 %v15271_v51 }
 0x510   :  { %4810 = vmatpush1.bf16.msra.mxu0 %v14079_v0  ;;  %v15293_v0 = vld [vmem:[%s18133_s4 + $0x4e0] ss:$12 sps:$4 sm:$0xff]  }
 0x511   :  { %4811 = vmatprep.subr.bf16.mxu0 %v14085_v57  ;;  %19216 = vst [vmem:[#allocation22_spill] sm:$0xff] %v15293_v0  ;;  %v15299_v57 = vld [vmem:[%s18133_s4 + $0x4fc] ss:$12 sps:$4 sm:$0xff]  }
 0x512   :  { %4651 = vmatpush1.bf16.msra.mxu1 %v15279_v63  ;;  %19217 = vst [vmem:[#allocation89_spill] sm:$0xff] %v15299_v57  ;;  %v19244_v63 = vld [vmem:[#allocation71_spill] sm:$0xff] }
 0x513   :  { %4652 = vmatprep.subr.bf16.mxu1 %v15285_v22  ;;  %v19243_v22 = vld [vmem:[#allocation40_spill] sm:$0xff] }
 0x514   :  { %4812 = vmatpush1.bf16.msra.mxu0 %v14093_v24  ;;  %v15307_v24 = vld [vmem:[%s18133_s4 + $0x4f8] ss:$12 sps:$4 sm:$0xff]  }
 0x515   :  { %4813 = vmatprep.subr.bf16.mxu0 %v19215_v45  ;;  %19220 = vst [vmem:[#allocation93_spill] sm:$0xff] %v15307_v24  ;;  %v19223_v45 = vld [vmem:[#allocation29_spill] sm:$0xff] }
 0x516   :  { %4653 = vmatpush1.bf16.msra.mxu1 %v15293_v0  ;;  %v19236_v0 = vld [vmem:[#allocation63_spill] sm:$0xff] }
 0x517   :  { %4654 = vmatprep.subr.bf16.mxu1 %v15299_v57  ;;  %v19234_v57 = vld [vmem:[#allocation37_spill] sm:$0xff] }
 0x518   :  { %4814 = vmatpush1.bf16.msra.mxu0 %v19218_v52  ;;  %v15322_v52 = vld [vmem:[%s18133_s4 + $0x510] ss:$12 sps:$4 sm:$0xff]  }
 0x519   :  { %4815 = vmatprep.subr.bf16.mxu0 %v19219_v15  ;;  %19224 = vst [vmem:[#allocation97_spill] sm:$0xff] %v15322_v52  ;;  %v15329_v15 = vld [vmem:[%s18133_s4 + $0x52c] ss:$12 sps:$4 sm:$0xff]  }
 0x51a   :  { %4655 = vmatpush1.bf16.msra.mxu1 %v15307_v24  ;;  %19225 = vst [vmem:[#allocation61_spill] sm:$0xff] %v15329_v15  ;;  %v19233_v24 = vld [vmem:[#allocation39_spill] sm:$0xff] }
 0x51b   :  { %4665 = vmatprep.subr.bf16.mxu1 %v15313_v9  ;;  %v19227_v9 = vld [vmem:[#allocation30_spill] sm:$0xff] }
 0x51c   :  { %4816 = vmatpush1.bf16.msra.mxu0 %v19222_v6  ;;  %v19226_v6 = vld [vmem:[#allocation35_spill] sm:$0xff] }
 0x51d   :  { %4657 = vmatmul.mubr.bf16.vlgmr.msra.gmra.mrb[80].mxu1 %v15106_v18  ;;  %4817 = vmatprep.subr.bf16.mxu0 %v19223_v45  ;;  %v15337_v45 = vld [vmem:[%s18133_s4 + $0x528] ss:$12 sps:$4 sm:$0xff]  }
 0x51e   :  { %4666 = vmatpush1.bf16.msra.mxu1 %v15322_v52  ;;  %4697 = vmatprep.mubr.bf16.mxu1 %v18790_v21  ;;  %19228 = vst [vmem:[#allocation66_spill] sm:$0xff] %v15337_v45  ;;  %v15343_v52 = vld [vmem:[%s18133_s4 + $0x544] ss:$12 sps:$4 sm:$0x3f]  }
 0x51f   :  { %4667 = vmatprep.subr.bf16.mxu1 %v15329_v15  ;;  %19229 = vst [vmem:[#allocation98_spill] sm:$0xff] %v15343_v52  ;;  %v19230_v15 = vld [vmem:[#allocation31_spill] sm:$0xff] }
 0x520   :  { %4818 = vmatpush1.bf16.msra.mxu0 %v19226_v6  ;;  %v19231_v6 = vld [vmem:[#allocation57_spill] sm:$0xff] }
 0x521   :  { %4819 = vmatprep.subr.bf16.mxu0 %v19227_v9  ;;  %v19232_v9 = vld [vmem:[#allocation21_spill] sm:$0xff] }
 0x522   :  { %4668 = vmatpush1.bf16.msra.mxu1 %v15337_v45  ;;  %v19235_v45 = vld [vmem:[#allocation59_spill] sm:$0xff] }
 0x523   :  { %8952 = vmatprep.subr.msk.bf16.mxu1 %vm2146_vm3, %v15343_v52  ;;  %v19237_v52 = vld [vmem:[#allocation41_spill] sm:$0xff] }
 0x524   :  { %4820 = vmatpush1.bf16.msra.mxu0 %v19230_v15  ;;  %v19238_v15 = vld [vmem:[#allocation38_spill] sm:$0xff] }
 0x525   :  { %4821 = vmatprep.subr.bf16.mxu0 %v19231_v6  ;;  %v19239_v6 = vld [vmem:[#allocation60_spill] sm:$0xff] }
 0x526   :  { %4670 = vmatpush1.bf16.msra.mxu1 %v19232_v9  ;;  %v19240_v9 = vld [vmem:[#allocation67_spill] sm:$0xff] }
 0x527   :  { %9431 = vmatprep.subr.bf16.mxu1 %v19233_v24  ;;  %v19241_v24 = vld [vmem:[#allocation43_spill] sm:$0xff] }
 0x528   :  { %4822 = vmatpush1.bf16.msra.mxu0 %v19234_v57  ;;  %v19242_v57 = vld [vmem:[#allocation62_spill] sm:$0xff] }
 0x529   :  { %8953 = vmatmul.mubr.msk.bf16.vlgmr.msra.gmra.mrb[80].mxu1 %vm2142_vm4, %v15155_v48  ;;  %4823 = vmatprep.subr.bf16.mxu0 %v19235_v45  ;;  %v19248_v45 = vld [vmem:[#allocation73_spill] sm:$0xff] }
 0x52a   :  { %9432 = vmatpush3.bf16.msra.mxu1 %v19236_v0  ;;  %4909 = vmatprep.mubr.bf16.mxu1 %v14578_v20  ;;  %v19245_v0 = vld [vmem:[#allocation45_spill] sm:$0xff] }
 0x52b   :  { %9433 = vmatprep.subr.bf16.mxu1 %v19237_v52  ;;  %v19246_v20 = vld [vmem:[#allocation65_spill] sm:$0xff]  ;;  %v19247_v52 = vld [vmem:[#allocation42_spill] sm:$0xff] }
 0x52c   :  { %4824 = vmatpush1.bf16.msra.mxu0 %v19238_v15  ;;  %v19250_v15 = vld [vmem:[#allocation69_spill] sm:$0xff] }
 0x52d   :  { %4825 = vmatprep.subr.bf16.mxu0 %v19239_v6  ;;  %v19251_v6 = vld [vmem:[#allocation44_spill] sm:$0xff] }
 0x52e   :  { %9434 = vmatpush3.bf16.msra.mxu1 %v19240_v9  ;;  %v19249_v9 = vld [vmem:[#allocation49_spill] sm:$0xff] }
 0x52f   :  { %9435 = vmatprep.subr.bf16.mxu1 %v19241_v24  ;;  %v19254_v24 = vld [vmem:[#allocation56_spill] sm:$0xff] }
 0x530   :  { %4826 = vmatpush1.bf16.msra.mxu0 %v19242_v57  ;;  %v19255_v57 = vld [vmem:[#allocation79_spill] sm:$0xff] }
 0x531   :  { %4836 = vmatprep.subr.bf16.mxu0 %v19243_v22  ;;  %v19253_v22 = vld [vmem:[#allocation77_spill] sm:$0xff] }
 0x532   :  { %9436 = vmatpush3.bf16.msra.mxu1 %v19244_v63  ;;  %v19252_v63 = vld [vmem:[#allocation50_spill] sm:$0xff] }
 0x533   :  { %4828 = vmatmul.mubr.bf16.vlgmr.msra.gmra.mrb[80].mxu0 %v14722_v53  ;;  %9437 = vmatprep.subr.bf16.mxu1 %v19245_v0  ;;  %v19256_v0 = vld [vmem:[#allocation52_spill] sm:$0xff] }
 0x534   :  { %4837 = vmatpush1.bf16.msra.mxu0 %v19246_v20  ;;  %4868 = vmatprep.mubr.bf16.mxu0 %v18790_v21  ;;  %v19257_v20 = vld [vmem:[#allocation75_spill] sm:$0xff] }
 0x535   :  { %4838 = vmatprep.subr.bf16.mxu0 %v19247_v52  ;;  %v19258_v52 = vld [vmem:[#allocation53_spill] sm:$0xff] }
 0x536   :  { %9438 = vmatpush3.bf16.msra.mxu1 %v19248_v45  ;;  %v19259_v45 = vld [vmem:[#allocation83_spill] sm:$0xff] }
 0x537   :  { %9439 = vmatprep.subr.bf16.mxu1 %v19249_v9  ;;  %v19260_v9 = vld [vmem:[#allocation51_spill] sm:$0xff] }
 0x538   :  { %4839 = vmatpush1.bf16.msra.mxu0 %v19250_v15  ;;  %v19261_v15 = vld [vmem:[#allocation55_spill] sm:$0xff] }
 0x539   :  { %8955 = vmatprep.subr.msk.bf16.mxu0 %vm2146_vm3, %v19251_v6  ;;  %v19262_v6 = vld [vmem:[#allocation36_spill] sm:$0xff] }
 0x53a   :  { %9440 = vmatpush3.bf16.msra.mxu1 %v19252_v63  ;;  %v19263_v63 = vld [vmem:[#allocation81_spill] sm:$0xff] }
 0x53b   :  { %9441 = vmatprep.subr.bf16.mxu1 %v19253_v22  ;;  %v19264_v22 = vld [vmem:[#allocation54_spill] sm:$0xff] }
 0x53c   :  { %4841 = vmatpush1.bf16.msra.mxu0 %v19254_v24 }
 0x53d   :  { %9971 = vmatprep.subr.bf16.mxu0 %v18770_v16 }
 0x53e   :  { %9442 = vmatpush3.bf16.msra.mxu1 %v19255_v57  ;;  %v19269_v57 = vld [vmem:[#allocation112_spill] sm:$0xff] }
 0x53f   :  { %8956 = vmatmul.mubr.msk.bf16.vlgmr.msra.gmra.mrb[80].mxu0 %vm2142_vm4, %v14872_v8  ;;  %9443 = vmatprep.subr.bf16.mxu1 %v19256_v0 }
 0x540   :  { %9972 = vmatpush3.bf16.msra.mxu0 %v19257_v20  ;;  %9977 = vmatprep.mubr.msk.bf16.mxu0 %vm11410_vm2, %v18770_v16  ;;  %v19270_v20 = vld [vmem:[#allocation86_spill] sm:$0xff] }
 0x541   :  { %9973 = vmatprep.subr.bf16.mxu0 %v18770_v16 }
 0x542   :  { %9444 = vmatpush3.bf16.msra.mxu1 %v19258_v52 }
 0x543   :  { %9445 = vmatprep.subr.bf16.mxu1 %v19259_v45 }
 0x544   :  { %9974 = vmatpush3.bf16.msra.mxu0 %v19260_v9  ;;  %v19272_v9 = vld [vmem:[#allocation72_spill] sm:$0xff] }
 0x545   :  { %9975 = vmatprep.subr.bf16.mxu0 %v18770_v16 }
 0x546   :  { %9446 = vmatpush3.bf16.msra.mxu1 %v19261_v15 }
 0x547   :  { %9457 = vmatprep.subr.bf16.mxu1 %v19145_v59  ;;  %v19265_v59 = vld [vmem:[#allocation85_spill] sm:$0xff] }
 0x548   :  { %9976 = vmatpush3.bf16.msra.mxu0 %v19262_v6 }
 0x549   :  { %4910 = vmatmul.mubr.bf16.vlgmr.msra.gmra.mrb[88].mxu1 %v14722_v53  ;;  %4960 = vmatprep.subr.bf16.mxu0 %v19263_v63  ;;  %v19266_v53 = vld [vmem:[#allocation58_spill] sm:$0xff] }
 0x54a   :  { %9458 = vmatpush3.bf16.msra.mxu1 %v19148_v19  ;;  %5074 = vmatprep.mubr.bf16.mxu1 %v14999_v36  ;;  %v19267_v19 = vld [vmem:[#allocation6_spill] sm:$0xff] }
 0x54b   :  { %9978 = vmatmul.mubr.msk.bf16.vlgmr.msra.gmra.mrb[84].mxu0 %vm2142_vm4, %v14872_v8  ;;  %9459 = vmatprep.subr.bf16.mxu1 %v19150_v46  ;;  %v19268_v8 = vld [vmem:[#allocation68_spill] sm:$0xff]  ;;  %v19274_v63 = vld [vmem:[#allocation114_spill] sm:$0xff] }
 0x54c   :  { %4961 = vmatpush1.bf16.msra.mxu0 %v19264_v22  ;;  %4992 = vmatprep.mubr.bf16.mxu0 %v14999_v36 }
 0x54d   :  { %4962 = vmatprep.subr.bf16.mxu0 %v19265_v59 }
 0x54e   :  { %9460 = vmatpush3.bf16.msra.mxu1 %v19154_v29 }
 0x54f   :  { %9461 = vmatprep.subr.bf16.mxu1 %v19155_v50  ;;  %v19271_v50 = vld [vmem:[#allocation113_spill] sm:$0xff] }
 0x550   :  { %4963 = vmatpush1.bf16.msra.mxu0 %v19266_v53  ;;  %v19276_v53 = vld [vmem:[#allocation80_spill] sm:$0xff] }
 0x551   :  { %4964 = vmatprep.subr.bf16.mxu0 %v19267_v19  ;;  %v19277_v19 = vld [vmem:[#allocation82_spill] sm:$0xff] }
 0x552   :  { %9462 = vmatpush3.bf16.msra.mxu1 %v19158_v28 }
 0x553   :  { %9463 = vmatprep.subr.bf16.mxu1 %v19159_v25  ;;  %v19273_v25 = vld [vmem:[#allocation74_spill] sm:$0xff] }
 0x554   :  { %4965 = vmatpush1.bf16.msra.mxu0 %v19146_v49 }
 0x555   :  { %4966 = vmatprep.subr.bf16.mxu0 %v19268_v8  ;;  %v19278_v8 = vld [vmem:[#allocation103_spill] sm:$0xff] }
 0x556   :  { %v4195_v46 = vpop.f32.mrb[60].mxu0  ;;  %9464 = vmatpush3.bf16.msra.mxu1 %v19162_v60  ;;  %v19275_v60 = vld [vmem:[#allocation115_spill] sm:$0xff] }
 0x557   :  { %v10153_v0 = vadd.f32 %v4195_v46, %v19269_v57  ;;  %v4197_v29 = vpop.f32.mrb[61].mxu0  ;;  %9465 = vmatprep.subr.bf16.mxu1 %v19270_v20  ;;  %v19279_v46 = vld [vmem:[#allocation96_spill] sm:$0xff]  ;;  %v19282_v20 = vld [vmem:[#allocation5_spill] sm:$0xff] }
 0x558   :  { %v10154_v52 = vadd.f32 %v4197_v29, %v19271_v50  ;;  %v4199_v45 = vpop.f32.mrb[62].mxu0  ;;  %4967 = vmatpush1.bf16.msra.mxu0 %v19272_v9 }
 0x559   :  { %v4285_v28 = vmax.f32 %v10153_v0, 0.0  ;;  %v4200_v15 = vpop.f32.mrb[63].mxu0  ;;  %4968 = vmatprep.subr.bf16.mxu0 %v19273_v25  ;;  %v19280_v0 = vld [vmem:[#allocation18_spill] sm:$0xff] }
 0x55a   :  { %v4286_v49 = vmax.f32 %v10154_v52, 0.0  ;;  %9466 = vmatpush3.bf16.msra.mxu1 %v19166_v58  ;;  %v1327_v29 = vadd.f32 %v19280_v0, %v19177_v30  ;;  %v19281_v58 = vld [vmem:[#allocation88_spill] sm:$0xff]  ;;  %v19283_v15 = vld [vmem:[#allocation101_spill] sm:$0xff] }
 0x55b   :  { %v15420_v22 = vadd.f32 %v4285_v28, %v19274_v63  ;;  %9467 = vmatprep.subr.bf16.mxu1 %v19167_v35 }
 0x55c   :  { %v15424_v59 = vadd.f32 %v4286_v49, %v19275_v60  ;;  %4969 = vmatpush1.bf16.msra.mxu0 %v19276_v53  ;;  %v1372_v9 = vmax.f32 %v1327_v29, 0.0  ;;  %v19284_v53 = vld [vmem:[#allocation102_spill] sm:$0xff] }
 0x55d   :  { %4970 = vmatprep.subr.bf16.mxu0 %v19277_v19  ;;  %v15451_v29 = vld [vmem:[%s18133_s4 + $0x270] ss:$12 sps:$4 sm:$0xff]  }
 0x55e   :  { %9468 = vmatpush3.bf16.msra.mxu1 %v19278_v8 }
 0x55f   :  { %9469 = vmatprep.subr.bf16.mxu1 %v19279_v46  ;;  %v19285_v46 = vld [vmem:[#allocation135_spill] sm:$0xff] }
 0x560   :  { %4971 = vmatpush1.bf16.msra.mxu0 %v19281_v58  ;;  %v15458_v58 = vld [vmem:[%s18133_s4 + $0x28c] ss:$12 sps:$4 sm:$0xff]  }
 0x561   :  { %4972 = vmatprep.subr.bf16.mxu0 %v19282_v20  ;;  %v15473_v20 = vld [vmem:[%s18133_s4 + $0x2a4] ss:$12 sps:$4 sm:$0xff]  }
 0x562   :  { %v4276_v52 = vpop.f32.mrb[64].mxu0  ;;  %9470 = vmatpush3.bf16.msra.mxu1 %v19173_v37  ;;  %v19286_v37 = vld [vmem:[#allocation109_spill] sm:$0xff] }
 0x563   :  { %v10158_v35 = vadd.f32 %v15203_v56, %v4276_v52  ;;  %v9939_v45 = vpop.f32.mrb[65].mxu0  ;;  %9471 = vmatprep.subr.bf16.mxu1 %v19174_v43  ;;  %v15446_v43 = vpack.c.bf16 %v1372_v9, %v1372_v9  ;;  %v19287_v52 = vld [vmem:[#allocation143_spill] sm:$0xff]  ;;  %v19292_v9 = vld [vmem:[#allocation148_spill] sm:$0xff] }
 0x564   :  { %v4279_v28 = vpop.f32.mrb[66].mxu0  ;;  %4973 = vmatpush1.bf16.msra.mxu0 %v19283_v15  ;;  %v9369_v25 = vpop.f32.mrb[84].mxu1  ;;  %v19291_v45 = vld [vmem:[#allocation147_spill] sm:$0xff]  ;;  %v19294_v15 = vld [vmem:[#allocation142_spill] sm:$0xff] }
 0x565   :  { %v4287_v49 = vmax.f32 %v10158_v35, 0.0  ;;  %v9940_v63 = vpop.f32.mrb[67].mxu0  ;;  %v9370_v60 = vpop.f32.mrb[85].mxu1  ;;  %4974 = vmatprep.subr.bf16.mxu0 %v19284_v53  ;;  %v19289_v35 = vld [vmem:[#allocation137_spill] sm:$0xff]  ;;  %v19299_v53 = vld [vmem:[#allocation151_spill] sm:$0xff] }
 0x566   :  { %v15439_v19 = vadd.f32 %v9370_v60, %v9369_v25  ;;  %v9372_v8 = vpop.f32.mrb[86].mxu1  ;;  %9472 = vmatpush3.bf16.msra.mxu1 %v19285_v46  ;;  %v19293_v28 = vld [vmem:[#allocation141_spill] sm:$0xff]  ;;  %v19298_v60 = vld [vmem:[#allocation146_spill] sm:$0xff]  ;;  %v19301_v46 = vld [vmem:[#allocation116_spill] sm:$0xff] }
 0x567   :  { %v15443_v56 = vadd.f32 %v4287_v49, %v19286_v37  ;;  %v9373_v0 = vpop.f32.mrb[87].mxu1  ;;  %9483 = vmatprep.subr.bf16.mxu1 %v19182_v33  ;;  %v15467_v33 = vld [vmem:[%s18133_s4 + $0x288] ss:$12 sps:$4 sm:$0xff]   ;;  %v19296_v49 = vld [vmem:[#allocation150_spill] sm:$0xff] }
 0x568   :  { %4975 = vmatpush1.bf16.msra.mxu0 %v15451_v29  ;;  %v19295_v25 = vld [vmem:[#allocation149_spill] sm:$0xff]  ;;  %v19300_v8 = vld [vmem:[#allocation152_spill] sm:$0xff] }
 0x569   :  { %5075 = vmatmul.mubr.bf16.vlgmr.msra.gmra.mrb[92].mxu1 %v15106_v18  ;;  %4976 = vmatprep.subr.bf16.mxu0 %v15458_v58  ;;  %v19297_v63 = vld [vmem:[#allocation145_spill] sm:$0xff] }
 0x56a   :  { %9484 = vmatpush3.bf16.msra.mxu1 %v19185_v31  ;;  %5242 = vmatprep.mubr.bf16.mxu1 %v15446_v43  ;;  %v19288_v31 = vld [vmem:[#allocation144_spill] sm:$0xff]  ;;  %v19302_v37 = vld [vmem:[#allocation117_spill] sm:$0xff] }
 0x56b   :  { %9485 = vmatprep.subr.bf16.mxu1 %v19186_v47  ;;  %v19290_v47 = vld [vmem:[#allocation138_spill] sm:$0xff]  ;;  %v19303_v0 = vld [vmem:[#allocation17_spill] sm:$0xff] }
 0x56c   :  { %4977 = vmatpush1.bf16.msra.mxu0 %v15467_v33 }
 0x56d   :  { %4978 = vmatprep.subr.bf16.mxu0 %v15473_v20 }
 0x56e   :  { %9486 = vmatpush3.bf16.msra.mxu1 %v19287_v52  ;;  %v1325_v52 = vadd.f32 %v19303_v0, %v19200_v38 }
 0x56f   :  { %9487 = vmatprep.subr.bf16.mxu1 %v19288_v31  ;;  %v19304_v31 = vld [vmem:[#allocation23_spill] sm:$0xff] }
 0x570   :  { %4979 = vmatpush1.bf16.msra.mxu0 %v19289_v35  ;;  %v19305_v35 = vld [vmem:[#allocation118_spill] sm:$0xff] }
 0x571   :  { %4980 = vmatprep.subr.bf16.mxu0 %v19290_v47  ;;  %v1371_v47 = vmax.f32 %v1325_v52, 0.0 }
 0x572   :  { %9488 = vmatpush3.bf16.msra.mxu1 %v19291_v45  ;;  %v19306_v45 = vld [vmem:[#allocation119_spill] sm:$0xff] }
 0x573   :  { %9489 = vmatprep.subr.bf16.mxu1 %v19292_v9  ;;  %v19307_v9 = vld [vmem:[#allocation120_spill] sm:$0xff] }
 0x574   :  { %4981 = vmatpush1.bf16.msra.mxu0 %v19293_v28  ;;  %v19308_v28 = vld [vmem:[#allocation121_spill] sm:$0xff] }
 0x575   :  { %4982 = vmatprep.subr.bf16.mxu0 %v19294_v15  ;;  %v19312_v15 = vld [vmem:[#allocation123_spill] sm:$0xff] }
 0x576   :  { %9490 = vmatpush3.bf16.msra.mxu1 %v19295_v25  ;;  %v19313_v25 = vld [vmem:[#allocation124_spill] sm:$0xff] }
 0x577   :  { %9491 = vmatprep.subr.bf16.mxu1 %v19296_v49 }
 0x578   :  { %4983 = vmatpush1.bf16.msra.mxu0 %v19297_v63  ;;  %v15534_v63 = vld [vmem:[%s18133_s4 + $0x18] ss:$12 sps:$4 sm:$0xff]  }
 0x579   :  { %4984 = vmatprep.subr.bf16.mxu0 %v19298_v60 }
 0x57a   :  { %9492 = vmatpush3.bf16.msra.mxu1 %v19299_v53  ;;  %v15540_v53 = vld [vmem:[%s18133_s4 + $0x34] ss:$12 sps:$4 sm:$0xff]  }
 0x57b   :  { %9493 = vmatprep.subr.bf16.mxu1 %v19300_v8  ;;  %v10161_v8 = vadd.f32 %v15439_v19, %v13896_v14  ;;  %v15559_v19 = vld [vmem:[%s18133_s4 + $0x4c] ss:$12 sps:$4 sm:$0xff]  }
 0x57c   :  { %4985 = vmatpush1.bf16.msra.mxu0 %v19301_v46 }
 0x57d   :  { %4986 = vmatprep.subr.bf16.mxu0 %v19302_v37 }
 0x57e   :  { %9494 = vmatpush3.bf16.msra.mxu1 %v14687_v2  ;;  %v15503_v2 = vpack.c.bf16 %v1371_v47, %v1371_v47  ;;  %v19314_v47 = vld [vmem:[#allocation125_spill] sm:$0xff] }
 0x57f   :  { %9495 = vmatprep.subr.bf16.mxu1 %v19202_v5  ;;  %v15508_v5 = vld [vmem:[%s18133_s4 + $0x4] ss:$12 sps:$4 sm:$0xff]  }
 0x580   :  { %4987 = vmatpush1.bf16.msra.mxu0 %v19304_v31 }
 0x581   :  { %4988 = vmatprep.subr.bf16.mxu0 %v19305_v35 }
 0x582   :  { %9496 = vmatpush3.bf16.msra.mxu1 %v19203_v54  ;;  %v19309_v54 = vld [vmem:[#allocation122_spill] sm:$0xff] }
 0x583   :  { %9497 = vmatprep.subr.bf16.mxu1 %v19204_v44  ;;  %v15517_v44 = vld [vmem:[%s18133_s4] ss:$12 sps:$4 sm:$0xff]  }
 0x584   :  { %4989 = vmatpush1.bf16.msra.mxu0 %v19306_v45  ;;  %19310 = vst [vmem:[#allocation70_spill] sm:$0xff] %v15517_v44 }
 0x585   :  { %4990 = vmatprep.subr.bf16.mxu0 %v19307_v9 }
 0x586   :  { %9498 = vmatpush3.bf16.msra.mxu1 %v14719_v3  ;;  %v15525_v3 = vld [vmem:[%s18133_s4 + $0x1c] ss:$12 sps:$4 sm:$0xff]  }
 0x587   :  { %5299 = vmatprep.subr.bf16.mxu1 %v15508_v5  ;;  %19311 = vst [vmem:[#allocation76_spill] sm:$0xff] %v15525_v3 }
 0x588   :  { %4991 = vmatpush1.bf16.msra.mxu0 %v19308_v28 }
 0x589   :  { %5243 = vmatmul.mubr.bf16.vlgmr.msra.gmra.mrb[96].mxu1 %v15503_v2  ;;  %5001 = vmatprep.subr.bf16.mxu0 %v19309_v54  ;;  %v19315_v54 = vld [vmem:[#allocation126_spill] sm:$0xff] }
 0x58a   :  { %5300 = vmatpush1.bf16.msra.mxu1 %v15517_v44  ;;  %5331 = vmatprep.mubr.bf16.mxu1 %v14999_v36 }
 0x58b   :  { %4993 = vmatmul.mubr.bf16.vlgmr.msra.gmra.mrb[80].mxu0 %v15106_v18  ;;  %5301 = vmatprep.subr.bf16.mxu1 %v15525_v3 }
 0x58c   :  { %5002 = vmatpush1.bf16.msra.mxu0 %v19312_v15  ;;  %5033 = vmatprep.mubr.bf16.mxu0 %v18790_v21 }
 0x58d   :  { %5003 = vmatprep.subr.bf16.mxu0 %v19313_v25  ;;  %v15553_v25 = vld [vmem:[%s18133_s4 + $0x30] ss:$12 sps:$4 sm:$0xff]  }
 0x58e   :  { %v9395_v49 = vpop.f32.mrb[72].mxu0  ;;  %5302 = vmatpush1.bf16.msra.mxu1 %v15534_v63 }
 0x58f   :  { %v9396_v60 = vpop.f32.mrb[73].mxu0  ;;  %5303 = vmatprep.subr.bf16.mxu1 %v15540_v53 }
 0x590   :  { %v9397_v0 = vadd.f32 %v9396_v60, %v9395_v49  ;;  %v9398_v52 = vpop.f32.mrb[74].mxu0  ;;  %5004 = vmatpush1.bf16.msra.mxu0 %v19314_v47  ;;  %v15567_v49 = vld [vmem:[%s18133_s4 + $0x48] ss:$12 sps:$4 sm:$0xff]   ;;  %v15575_v60 = vld [vmem:[%s18133_s4 + $0x64] ss:$12 sps:$4 sm:$0xff]  }
 0x591   :  { %v9399_v28 = vpop.f32.mrb[75].mxu0  ;;  %8958 = vmatprep.subr.msk.bf16.mxu0 %vm2146_vm3, %v19315_v54  ;;  %19316 = vst [vmem:[#allocation78_spill] sm:$0xff] %v15567_v49  ;;  %19317 = vst [vmem:[#allocation84_spill] sm:$0xff] %v15575_v60  ;;  %v15591_v52 = vld [vmem:[%s18133_s4 + $0x7c] ss:$12 sps:$4 sm:$0xff]  }
 0x592   :  { %v15548_v15 = vadd.f32 %v10161_v8, %v9397_v0  ;;  %5304 = vmatpush1.bf16.msra.mxu1 %v15553_v25  ;;  %v19318_v8 = vld [vmem:[#allocation155_spill] sm:$0xff]  ;;  %19320 = vst [vmem:[#allocation95_spill] sm:$0xff] %v15591_v52  ;;  %v19321_v47 = vld [vmem:[#allocation156_spill] sm:$0xff] }
 0x593   :  { %5305 = vmatprep.subr.bf16.mxu1 %v15559_v19  ;;  %v15585_v0 = vld [vmem:[%s18133_s4 + $0x60] ss:$12 sps:$4 sm:$0xff]   ;;  %v15599_v28 = vld [vmem:[%s18133_s4 + $0x78] ss:$12 sps:$4 sm:$0xff]  }
 0x594   :  { %5006 = vmatpush1.bf16.msra.mxu0 %v13520_v4  ;;  %19319 = vst [vmem:[#allocation94_spill] sm:$0xff] %v15585_v0  ;;  %19322 = vst [vmem:[#allocation4_spill] sm:$0xff] %v15599_v28  ;;  %v15605_v54 = vld [vmem:[%s18133_s4 + $0x94] ss:$12 sps:$4 sm:$0xff]  }
 0x595   :  { %9981 = vmatprep.subr.bf16.mxu0 %v18770_v16  ;;  %19323 = vst [vmem:[#allocation104_spill] sm:$0xff] %v15605_v54 }
 0x596   :  { %5306 = vmatpush1.bf16.msra.mxu1 %v15567_v49 }
 0x597   :  { %8959 = vmatmul.mubr.msk.bf16.vlgmr.msra.gmra.mrb[80].mxu0 %vm2142_vm4, %v15155_v48  ;;  %5307 = vmatprep.subr.bf16.mxu1 %v15575_v60 }
 0x598   :  { %9982 = vmatpush3.bf16.msra.mxu0 %v19318_v8  ;;  %9987 = vmatprep.mubr.msk.bf16.mxu0 %vm11410_vm2, %v18770_v16  ;;  %v19324_v8 = vld [vmem:[#allocation64_spill] sm:$0xff] }
 0x599   :  { %9983 = vmatprep.subr.bf16.mxu0 %v18770_v16 }
 0x59a   :  { %5308 = vmatpush1.bf16.msra.mxu1 %v15585_v0 }
 0x59b   :  { %5309 = vmatprep.subr.bf16.mxu1 %v15591_v52 }
 0x59c   :  { %9984 = vmatpush3.bf16.msra.mxu0 %v19321_v47  ;;  %v15613_v47 = vld [vmem:[%s18133_s4 + $0x90] ss:$12 sps:$4 sm:$0xff]  }
 0x59d   :  { %9985 = vmatprep.subr.bf16.mxu0 %v18770_v16  ;;  %19325 = vst [vmem:[#allocation9_spill] sm:$0xff] %v15613_v47 }
 0x59e   :  { %5310 = vmatpush1.bf16.msra.mxu1 %v15599_v28  ;;  %v15621_v28 = vld [vmem:[%s18133_s4 + $0xac] ss:$12 sps:$4 sm:$0xff]  }
 0x59f   :  { %5311 = vmatprep.subr.bf16.mxu1 %v15605_v54  ;;  %19326 = vst [vmem:[#allocation105_spill] sm:$0xff] %v15621_v28 }
 0x5a0   :  { %9986 = vmatpush3.bf16.msra.mxu0 %v19324_v8  ;;  %v15636_v8 = vld [vmem:[%s18133_s4 + $0xc4] ss:$12 sps:$4 sm:$0xff]  }
 0x5a1   :  { %5128 = vmatprep.subr.bf16.mxu0 %v14766_v34  ;;  %v15630_v34 = vld [vmem:[%s18133_s4 + $0xa8] ss:$12 sps:$4 sm:$0xff]   ;;  %19328 = vst [vmem:[#allocation12_spill] sm:$0xff] %v15636_v8 }
 0x5a2   :  { %5312 = vmatpush1.bf16.msra.mxu1 %v15613_v47  ;;  %19327 = vst [vmem:[#allocation99_spill] sm:$0xff] %v15630_v34 }
 0x5a3   :  { %9988 = vmatmul.mubr.msk.bf16.vlgmr.msra.gmra.mrb[84].mxu0 %vm2142_vm4, %v15155_v48  ;;  %5313 = vmatprep.subr.bf16.mxu1 %v15621_v28  ;;  %v15714_v28 = vld [vmem:[%s18133_s4 + $0x138] ss:$12 sps:$4 sm:$0xff]  }
 0x5a4   :  { %5129 = vmatpush1.bf16.msra.mxu0 %v14776_v40  ;;  %5160 = vmatprep.mubr.bf16.mxu0 %v15446_v43  ;;  %v15644_v40 = vld [vmem:[%s18133_s4 + $0xc0] ss:$12 sps:$4 sm:$0xff]   ;;  %19346 = vst [vmem:[#allocation33_spill] sm:$0xff] %v15714_v28 }
 0x5a5   :  { %5130 = vmatprep.subr.bf16.mxu0 %v14783_v42  ;;  %19329 = vst [vmem:[#allocation136_spill] sm:$0xff] %v15644_v40  ;;  %v15650_v42 = vld [vmem:[%s18133_s4 + $0xdc] ss:$12 sps:$4 sm:$0xff]  }
 0x5a6   :  { %5314 = vmatpush1.bf16.msra.mxu1 %v15630_v34  ;;  %19330 = vst [vmem:[#allocation139_spill] sm:$0xff] %v15650_v42  ;;  %v19331_v34 = vld [vmem:[#allocation127_spill] sm:$0xff] }
 0x5a7   :  { %5315 = vmatprep.subr.bf16.mxu1 %v15636_v8  ;;  %v19332_v8 = vld [vmem:[#allocation128_spill] sm:$0xff] }
 0x5a8   :  { %5131 = vmatpush1.bf16.msra.mxu0 %v15096_v1  ;;  %v15658_v1 = vld [vmem:[%s18133_s4 + $0xd8] ss:$12 sps:$4 sm:$0xff]  }
 0x5a9   :  { %5132 = vmatprep.subr.bf16.mxu0 %v15102_v55  ;;  %19333 = vst [vmem:[#allocation140_spill] sm:$0xff] %v15658_v1  ;;  %v15664_v55 = vld [vmem:[%s18133_s4 + $0xf4] ss:$12 sps:$4 sm:$0xff]  }
 0x5aa   :  { %5316 = vmatpush1.bf16.msra.mxu1 %v15644_v40  ;;  %19334 = vst [vmem:[#allocation11_spill] sm:$0xff] %v15664_v55  ;;  %v19345_v40 = vld [vmem:[#allocation134_spill] sm:$0xff] }
 0x5ab   :  { %5317 = vmatprep.subr.bf16.mxu1 %v15650_v42  ;;  %v19344_v42 = vld [vmem:[#allocation7_spill] sm:$0xff] }
 0x5ac   :  { %5133 = vmatpush1.bf16.msra.mxu0 %v19331_v34  ;;  %v15678_v34 = vld [vmem:[%s18133_s4 + $0x10c] ss:$12 sps:$4 sm:$0xff]  }
 0x5ad   :  { %5134 = vmatprep.subr.bf16.mxu0 %v19332_v8  ;;  %v15672_v8 = vld [vmem:[%s18133_s4 + $0xf0] ss:$12 sps:$4 sm:$0xff]   ;;  %19336 = vst [vmem:[#allocation153_spill] sm:$0xff] %v15678_v34 }
 0x5ae   :  { %5318 = vmatpush1.bf16.msra.mxu1 %v15658_v1  ;;  %19335 = vst [vmem:[#allocation8_spill] sm:$0xff] %v15672_v8  ;;  %v15706_v1 = vld [vmem:[%s18133_s4 + $0x13c] ss:$12 sps:$4 sm:$0xff]  }
 0x5af   :  { %5319 = vmatprep.subr.bf16.mxu1 %v15664_v55  ;;  %v19337_v55 = vld [vmem:[#allocation129_spill] sm:$0xff]  ;;  %19343 = vst [vmem:[#allocation26_spill] sm:$0xff] %v15706_v1 }
 0x5b0   :  { %5135 = vmatpush1.bf16.msra.mxu0 %v15131_v32  ;;  %v15686_v32 = vld [vmem:[%s18133_s4 + $0x108] ss:$12 sps:$4 sm:$0xff]  }
 0x5b1   :  { %5136 = vmatprep.subr.bf16.mxu0 %v15137_v11  ;;  %19338 = vst [vmem:[#allocation154_spill] sm:$0xff] %v15686_v32  ;;  %v15692_v11 = vld [vmem:[%s18133_s4 + $0x124] ss:$12 sps:$4 sm:$0xff]  }
 0x5b2   :  { %5320 = vmatpush1.bf16.msra.mxu1 %v15672_v8  ;;  %19339 = vst [vmem:[#allocation10_spill] sm:$0xff] %v15692_v11  ;;  %v19340_v8 = vld [vmem:[#allocation130_spill] sm:$0xff] }
 0x5b3   :  { %5321 = vmatprep.subr.bf16.mxu1 %v15678_v34  ;;  %v19341_v34 = vld [vmem:[#allocation15_spill] sm:$0xff] }
 0x5b4   :  { %5137 = vmatpush1.bf16.msra.mxu0 %v15145_v62 }
 0x5b5   :  { %5138 = vmatprep.subr.bf16.mxu0 %v19337_v55  ;;  %v15700_v55 = vld [vmem:[%s18133_s4 + $0x120] ss:$12 sps:$4 sm:$0xff]  }
 0x5b6   :  { %5322 = vmatpush1.bf16.msra.mxu1 %v15686_v32  ;;  %19342 = vst [vmem:[#allocation25_spill] sm:$0xff] %v15700_v55 }
 0x5b7   :  { %5323 = vmatprep.subr.bf16.mxu1 %v15692_v11 }
 0x5b8   :  { %5139 = vmatpush1.bf16.msra.mxu0 %v19340_v8 }
 0x5b9   :  { %5140 = vmatprep.subr.bf16.mxu0 %v19341_v34 }
 0x5ba   :  { %v9421_v62 = vpop.f32.mrb[76].mxu0  ;;  %5324 = vmatpush1.bf16.msra.mxu1 %v15700_v55 }
 0x5bb   :  { %v9422_v32 = vpop.f32.mrb[77].mxu0  ;;  %5325 = vmatprep.subr.bf16.mxu1 %v15706_v1  ;;  %v15721_v1 = vld [vmem:[%s18133_s4 + $0x154] ss:$12 sps:$4 sm:$0xff]  }
 0x5bc   :  { %v9423_v11 = vadd.f32 %v9422_v32, %v9421_v62  ;;  %v9424_v8 = vpop.f32.mrb[78].mxu0  ;;  %5141 = vmatpush1.bf16.msra.mxu0 %v19344_v42  ;;  %19347 = vst [vmem:[#allocation28_spill] sm:$0xff] %v15721_v1 }
 0x5bd   :  { %v9425_v34 = vpop.f32.mrb[79].mxu0  ;;  %5142 = vmatprep.subr.bf16.mxu0 %v19345_v40  ;;  %v15729_v40 = vld [vmem:[%s18133_s4 + $0x150] ss:$12 sps:$4 sm:$0xff]  }
 0x5be   :  { %5326 = vmatpush1.bf16.msra.mxu1 %v15714_v28  ;;  %v10163_v55 = vadd.f32 %v15548_v15, %v9423_v11  ;;  %v15735_v15 = vld [vmem:[%s18133_s4 + $0x16c] ss:$12 sps:$4 sm:$0xff]   ;;  %v15749_v11 = vld [vmem:[%s18133_s4 + $0x184] ss:$12 sps:$4 sm:$0xff]  }
 0x5bf   :  { %5327 = vmatprep.subr.bf16.mxu1 %v15721_v1  ;;  %19348 = vst [vmem:[#allocation29_spill] sm:$0xff] %v15735_v15  ;;  %19349 = vst [vmem:[#allocation35_spill] sm:$0xff] %v15749_v11 }
 0x5c0   :  { %5143 = vmatpush1.bf16.msra.mxu0 %v15192_v23 }
 0x5c1   :  { %5144 = vmatprep.subr.bf16.mxu0 %v15198_v10  ;;  %v15743_v10 = vld [vmem:[%s18133_s4 + $0x168] ss:$12 sps:$4 sm:$0xff]  }
 0x5c2   :  { %5328 = vmatpush1.bf16.msra.mxu1 %v15729_v40 }
 0x5c3   :  { %5329 = vmatprep.subr.bf16.mxu1 %v15735_v15 }
 0x5c4   :  { %5145 = vmatpush1.bf16.msra.mxu0 %v15209_v41 }
 0x5c5   :  { %5146 = vmatprep.subr.bf16.mxu0 %v15215_v13 }
 0x5c6   :  { %v4780_v23 = vpop.f32.mrb[68].mxu0  ;;  %5330 = vmatpush1.bf16.msra.mxu1 %v15743_v10 }
 0x5c7   :  { %v10164_v42 = vadd.f32 %v10163_v55, %v4780_v23  ;;  %v9969_v32 = vpop.f32.mrb[69].mxu0  ;;  %5340 = vmatprep.subr.bf16.mxu1 %v15749_v11  ;;  %v15758_v55 = vld [vmem:[%s18133_s4 + $0x180] ss:$12 sps:$4 sm:$0xff]  }
 0x5c8   :  { %v4783_v62 = vpop.f32.mrb[70].mxu0  ;;  %5147 = vmatpush1.bf16.msra.mxu0 %v15223_v17  ;;  %19350 = vst [vmem:[#allocation30_spill] sm:$0xff] %v15758_v55  ;;  %v15768_v17 = vld [vmem:[%s18133_s4 + $0x19c] ss:$12 sps:$4 sm:$0xff]   ;;  %v15831_v32 = vld [vmem:[%s18133_s4 + $0x38] ss:$12 sps:$4 sm:$0xff]  }
 0x5c9   :  { %v4791_v13 = vmax.f32 %v10164_v42, 0.0  ;;  %v9970_v8 = vpop.f32.mrb[71].mxu0  ;;  %5332 = vmatmul.mubr.bf16.vlgmr.msra.gmra.mrb[100].mxu1 %v15106_v18  ;;  %5148 = vmatprep.subr.bf16.mxu0 %v15229_v61  ;;  %19352 = vst [vmem:[#allocation57_spill] sm:$0xff] %v15768_v17  ;;  %v15776_v61 = vld [vmem:[%s18133_s4 + $0x198] ss:$12 sps:$4 sm:$0xff]   ;;  %19364 = vst [vmem:[#allocation67_spill] sm:$0xff] %v15831_v32 }
 0x5ca   :  { %5341 = vmatpush1.bf16.msra.mxu1 %v15758_v55  ;;  %5372 = vmatprep.mubr.bf16.mxu1 %v18790_v21  ;;  %19353 = vst [vmem:[#allocation39_spill] sm:$0xff] %v15776_v61  ;;  %v19362_v23 = vld [vmem:[#allocation22_spill] sm:$0xff]  ;;  %v19363_v42 = vld [vmem:[#allocation89_spill] sm:$0xff]  ;;  %v19367_v8 = vld [vmem:[#allocation87_spill] sm:$0xff] }
 0x5cb   :  { %v15763_v34 = vadd.f32 %v4791_v13, %v15443_v56  ;;  %5342 = vmatprep.subr.bf16.mxu1 %v15768_v17  ;;  %v15782_v56 = vld [vmem:[%s18133_s4 + $0x1b4] ss:$12 sps:$4 sm:$0x3f]   ;;  %v15837_v62 = vld [vmem:[%s18133_s4 + $0x110] ss:$12 sps:$4 sm:$0xff]  }
 0x5cc   :  { %5149 = vmatpush1.bf16.msra.mxu0 %v15237_v12  ;;  %19354 = vst [vmem:[#allocation37_spill] sm:$0xff] %v15782_v56  ;;  %v15792_v12 = vld [vmem:[%s18133_s4 + $0xc8] ss:$12 sps:$4 sm:$0xff]   ;;  %19365 = vst [vmem:[#allocation43_spill] sm:$0xff] %v15837_v62 }
 0x5cd   :  { %19351 = vst [vmem:[#allocation31_spill] sm:$0xff] %v15763_v34  ;;  %5150 = vmatprep.subr.bf16.mxu0 %v15243_v27  ;;  %19355 = vst [vmem:[#allocation59_spill] sm:$0xff] %v15792_v12  ;;  %v15802_v27 = vld [vmem:[%s18133_s4 + $0x8] ss:$12 sps:$4 sm:$0xff]  }
 0x5ce   :  { %5343 = vmatpush1.bf16.msra.mxu1 %v15776_v61  ;;  %19356 = vst [vmem:[#allocation63_spill] sm:$0xff] %v15802_v27  ;;  %v19366_v13 = vld [vmem:[#allocation93_spill] sm:$0xff] }
 0x5cf   :  { %8964 = vmatprep.subr.msk.bf16.mxu1 %vm2146_vm3, %v15782_v56  ;;  %v19373_v34 = vld [vmem:[#allocation61_spill] sm:$0xff] }
 0x5d0   :  { %5151 = vmatpush1.bf16.msra.mxu0 %v15251_v26  ;;  %v15809_v26 = vld [vmem:[%s18133_s4 + $0xe0] ss:$12 sps:$4 sm:$0xff]  }
 0x5d1   :  { %5152 = vmatprep.subr.bf16.mxu0 %v15257_v7  ;;  %19357 = vst [vmem:[#allocation41_spill] sm:$0xff] %v15809_v26  ;;  %v19358_v7 = vld [vmem:[#allocation19_spill] sm:$0xff] }
 0x5d2   :  { %5345 = vmatpush1.bf16.msra.mxu1 %v19254_v24 }
 0x5d3   :  { %9509 = vmatprep.subr.bf16.mxu1 %v15792_v12 }
 0x5d4   :  { %5153 = vmatpush1.bf16.msra.mxu0 %v15265_v39  ;;  %v19359_v39 = vld [vmem:[#allocation20_spill] sm:$0xff] }
 0x5d5   :  { %8965 = vmatmul.mubr.msk.bf16.vlgmr.msra.gmra.mrb[100].mxu1 %vm2142_vm4, %v15155_v48  ;;  %5154 = vmatprep.subr.bf16.mxu0 %v15271_v51  ;;  %v15817_v51 = vld [vmem:[%s18133_s4 + $0x20] ss:$12 sps:$4 sm:$0xff]  }
 0x5d6   :  { %9510 = vmatpush3.bf16.msra.mxu1 %v15802_v27  ;;  %5413 = vmatprep.mubr.bf16.mxu1 %v14999_v36  ;;  %19360 = vst [vmem:[#allocation38_spill] sm:$0xff] %v15817_v51  ;;  %v15823_v36 = vld [vmem:[%s18133_s4 + $0xf8] ss:$12 sps:$4 sm:$0xff]  }
 0x5d7   :  { %9511 = vmatprep.subr.bf16.mxu1 %v15809_v26  ;;  %19361 = vst [vmem:[#allocation60_spill] sm:$0xff] %v15823_v36 }
 0x5d8   :  { %5155 = vmatpush1.bf16.msra.mxu0 %v19358_v7  ;;  %v15845_v7 = vld [vmem:[%s18133_s4 + $0x50] ss:$12 sps:$4 sm:$0xff]  }
 0x5d9   :  { %5156 = vmatprep.subr.bf16.mxu0 %v19359_v39  ;;  %19368 = vst [vmem:[#allocation62_spill] sm:$0xff] %v15845_v7  ;;  %v15852_v39 = vld [vmem:[%s18133_s4 + $0x128] ss:$12 sps:$4 sm:$0xff]  }
 0x5da   :  { %9512 = vmatpush3.bf16.msra.mxu1 %v15817_v51  ;;  %19369 = vst [vmem:[#allocation40_spill] sm:$0xff] %v15852_v39 }
 0x5db   :  { %9513 = vmatprep.subr.bf16.mxu1 %v15823_v36 }
 0x5dc   :  { %5157 = vmatpush1.bf16.msra.mxu0 %v19362_v23  ;;  %v19370_v23 = vld [vmem:[#allocation97_spill] sm:$0xff] }
 0x5dd   :  { %5158 = vmatprep.subr.bf16.mxu0 %v19363_v42  ;;  %v19371_v42 = vld [vmem:[#allocation34_spill] sm:$0xff] }
 0x5de   :  { %9514 = vmatpush3.bf16.msra.mxu1 %v15831_v32  ;;  %v15963_v32 = vld [vmem:[%s18133_s4 + $0x1cc] ss:$12 sps:$4 sm:$0xff]  }
 0x5df   :  { %9515 = vmatprep.subr.bf16.mxu1 %v15837_v62  ;;  %19392 = vst [vmem:[#allocation75_spill] sm:$0xff] %v15963_v32 }
 0x5e0   :  { %5159 = vmatpush1.bf16.msra.mxu0 %v19366_v13  ;;  %v19372_v13 = vld [vmem:[#allocation16_spill] sm:$0xff] }
 0x5e1   :  { %5169 = vmatprep.subr.bf16.mxu0 %v19367_v8  ;;  %v1366_v8 = vadd.f32 %v19372_v13, %v19371_v42  ;;  %v19377_v13 = vld [vmem:[#allocation98_spill] sm:$0xff] }
 0x5e2   :  { %9516 = vmatpush3.bf16.msra.mxu1 %v15845_v7  ;;  %v15863_v7 = vld [vmem:[%s18133_s4 + $0x68] ss:$12 sps:$4 sm:$0xff]   ;;  %v15884_v42 = vld [vmem:[%s18133_s4 + $0x158] ss:$12 sps:$4 sm:$0xff]  }
 0x5e3   :  { %5161 = vmatmul.mubr.bf16.vlgmr.msra.gmra.mrb[80].mxu0 %v15503_v2  ;;  %9517 = vmatprep.subr.bf16.mxu1 %v15852_v39  ;;  %19374 = vst [vmem:[#allocation71_spill] sm:$0xff] %v15863_v7  ;;  %v15869_v39 = vld [vmem:[%s18133_s4 + $0x140] ss:$12 sps:$4 sm:$0xff]   ;;  %v1373_v62 = vmax.f32 %v1366_v8, 0.0  ;;  %19379 = vst [vmem:[#allocation42_spill] sm:$0xff] %v15884_v42 }
 0x5e4   :  { %5170 = vmatpush1.bf16.msra.mxu0 %v19370_v23  ;;  %5201 = vmatprep.mubr.bf16.mxu0 %v18790_v21  ;;  %19375 = vst [vmem:[#allocation45_spill] sm:$0xff] %v15869_v39  ;;  %v19376_v23 = vld [vmem:[#allocation66_spill] sm:$0xff] }
 0x5e5   :  { %5171 = vmatprep.subr.bf16.mxu0 %v19373_v34  ;;  %v15878_v34 = vld [vmem:[%s18133_s4 + $0x80] ss:$12 sps:$4 sm:$0xff]   ;;  %v15888_v8 = vpack.c.bf16 %v1373_v62, %v1373_v62 }
 0x5e6   :  { %9518 = vmatpush3.bf16.msra.mxu1 %v15863_v7  ;;  %19378 = vst [vmem:[#allocation65_spill] sm:$0xff] %v15878_v34  ;;  %v19383_v62 = vld [vmem:[#allocation110_spill] sm:$0xff] }
 0x5e7   :  { %9519 = vmatprep.subr.bf16.mxu1 %v15869_v39  ;;  %v19380_v39 = vld [vmem:[#allocation21_spill] sm:$0xff] }
 0x5e8   :  { %5172 = vmatpush1.bf16.msra.mxu0 %v19376_v23  ;;  %v15894_v23 = vld [vmem:[%s18133_s4 + $0x98] ss:$12 sps:$4 sm:$0xff]  }
 0x5e9   :  { %8961 = vmatprep.subr.msk.bf16.mxu0 %vm2146_vm3, %v19377_v13  ;;  %19381 = vst [vmem:[#allocation73_spill] sm:$0xff] %v15894_v23  ;;  %v15902_v13 = vld [vmem:[%s18133_s4 + $0x170] ss:$12 sps:$4 sm:$0xff]  }
 0x5ea   :  { %9520 = vmatpush3.bf16.msra.mxu1 %v15878_v34  ;;  %19382 = vst [vmem:[#allocation49_spill] sm:$0xff] %v15902_v13 }
 0x5eb   :  { %9521 = vmatprep.subr.bf16.mxu1 %v15884_v42 }
 0x5ec   :  { %5174 = vmatpush1.bf16.msra.mxu0 %v19380_v39  ;;  %v15912_v39 = vld [vmem:[%s18133_s4 + $0xb0] ss:$12 sps:$4 sm:$0xff]  }
 0x5ed   :  { %9991 = vmatprep.subr.bf16.mxu0 %v18770_v16  ;;  %19384 = vst [vmem:[#allocation69_spill] sm:$0xff] %v15912_v39 }
 0x5ee   :  { %9522 = vmatpush3.bf16.msra.mxu1 %v15894_v23  ;;  %v19385_v23 = vld [vmem:[#allocation111_spill] sm:$0xff] }
 0x5ef   :  { %8962 = vmatmul.mubr.msk.bf16.vlgmr.msra.gmra.mrb[80].mxu0 %vm2142_vm4, %v15888_v8  ;;  %9523 = vmatprep.subr.bf16.mxu1 %v15902_v13 }
 0x5f0   :  { %9992 = vmatpush3.bf16.msra.mxu0 %v19383_v62  ;;  %9997 = vmatprep.mubr.msk.bf16.mxu0 %vm11410_vm2, %v18770_v16  ;;  %v15922_v62 = vld [vmem:[%s18133_s4 + $0x188] ss:$12 sps:$4 sm:$0xff]  }
 0x5f1   :  { %9993 = vmatprep.subr.bf16.mxu0 %v18770_v16  ;;  %19386 = vst [vmem:[#allocation44_spill] sm:$0xff] %v15922_v62 }
 0x5f2   :  { %9524 = vmatpush3.bf16.msra.mxu1 %v15912_v39  ;;  %v19387_v39 = vld [vmem:[#allocation100_spill] sm:$0xff] }
 0x5f3   :  { %10001 = vmatprep.subr.bf16.mxu1 %v18770_v16 }
 0x5f4   :  { %9994 = vmatpush3.bf16.msra.mxu0 %v19385_v23  ;;  %v15938_v23 = vld [vmem:[%s18133_s4 + $0x1a0] ss:$12 sps:$4 sm:$0xff]  }
 0x5f5   :  { %5414 = vmatmul.mubr.bf16.vlgmr.msra.gmra.mrb[104].mxu1 %v15106_v18  ;;  %9995 = vmatprep.subr.bf16.mxu0 %v18770_v16  ;;  %v15932_v18 = vld [vmem:[%s18133_s4 + $0x290] ss:$12 sps:$4 sm:$0xff]   ;;  %19389 = vst [vmem:[#allocation77_spill] sm:$0xff] %v15938_v23 }
 0x5f6   :  { %10002 = vmatpush3.bf16.msra.mxu1 %v15922_v62  ;;  %10007 = vmatprep.mubr.msk.bf16.mxu1 %vm11410_vm2, %v18770_v16  ;;  %19388 = vst [vmem:[#allocation50_spill] sm:$0xff] %v15932_v18 }
 0x5f7   :  { %10003 = vmatprep.subr.bf16.mxu1 %v18770_v16 }
 0x5f8   :  { %9996 = vmatpush3.bf16.msra.mxu0 %v19387_v39  ;;  %v15947_v39 = vld [vmem:[%s18133_s4 + $0x1d0] ss:$12 sps:$4 sm:$0xff]  }
 0x5f9   :  { %9535 = vmatprep.subr.bf16.mxu0 %v15932_v18  ;;  %19390 = vst [vmem:[#allocation79_spill] sm:$0xff] %v15947_v39 }
 0x5fa   :  { %10004 = vmatpush3.bf16.msra.mxu1 %v15938_v23  ;;  %v15955_v23 = vld [vmem:[%s18133_s4 + $0x2a8] ss:$12 sps:$4 sm:$0xff]  }
 0x5fb   :  { %9998 = vmatmul.mubr.msk.bf16.vlgmr.msra.gmra.mrb[84].mxu0 %vm2142_vm4, %v15888_v8  ;;  %10005 = vmatprep.subr.bf16.mxu1 %v18770_v16  ;;  %19391 = vst [vmem:[#allocation52_spill] sm:$0xff] %v15955_v23 }
 0x5fc   :  { %9536 = vmatpush3.bf16.msra.mxu0 %v15947_v39  ;;  %5578 = vmatprep.mubr.bf16.mxu0 %v15446_v43  ;;  %v4699_v18 = vpop.f32.mrb[80].mxu1 }
 0x5fd   :  { %v10159_v62 = vadd.f32 %v4699_v18, %v19269_v57  ;;  %v4701_v13 = vpop.f32.mrb[81].mxu1  ;;  %9537 = vmatprep.subr.bf16.mxu0 %v15955_v23  ;;  %v15969_v57 = vld [vmem:[%s18133_s4 + $0x1e8] ss:$12 sps:$4 sm:$0xff]  }
 0x5fe   :  { %v10160_v42 = vadd.f32 %v4701_v13, %v19271_v50  ;;  %v4703_v34 = vpop.f32.mrb[82].mxu1  ;;  %10006 = vmatpush3.bf16.msra.mxu1 %v19262_v6  ;;  %19393 = vst [vmem:[#allocation53_spill] sm:$0xff] %v15969_v57  ;;  %v15989_v13 = vld [vmem:[%s18133_s4 + $0x1c8] ss:$12 sps:$4 sm:$0xff]  }
 0x5ff   :  { %v4789_v7 = vmax.f32 %v10159_v62, 0.0  ;;  %v4704_v39 = vpop.f32.mrb[83].mxu1  ;;  %5464 = vmatprep.subr.bf16.mxu1 %v15963_v32  ;;  %19397 = vst [vmem:[#allocation81_spill] sm:$0xff] %v15989_v13  ;;  %v16020_v62 = vld [vmem:[%s18133_s4 + $0x1fc] ss:$12 sps:$4 sm:$0xff]  }
 0x600   :  { %v4790_v18 = vmax.f32 %v10160_v42, 0.0  ;;  %9538 = vmatpush3.bf16.msra.mxu0 %v15969_v57  ;;  %v15980_v39 = vld [vmem:[%s18133_s4 + $0x2c0] ss:$12 sps:$4 sm:$0xff]   ;;  %19402 = vst [vmem:[#allocation68_spill] sm:$0xff] %v16020_v62 }
 0x601   :  { %v15973_v34 = vadd.f32 %v4789_v7, %v15420_v22  ;;  %10008 = vmatmul.mubr.msk.bf16.vlgmr.msra.gmra.mrb[108].mxu1 %vm2142_vm4, %v15155_v48  ;;  %19395 = vst [vmem:[#allocation51_spill] sm:$0xff] %v15980_v39  ;;  %9539 = vmatprep.subr.bf16.mxu0 %v15980_v39  ;;  %v15996_v48 = vld [vmem:[%s18133_s4 + $0x1e4] ss:$12 sps:$4 sm:$0xff]   ;;  %v16002_v22 = vld [vmem:[%s18133_s4 + $0x200] ss:$12 sps:$4 sm:$0xff]  }
 0x602   :  { %v15984_v42 = vadd.f32 %v4790_v18, %v15424_v59  ;;  %5465 = vmatpush1.bf16.msra.mxu1 %v15989_v13  ;;  %5496 = vmatprep.mubr.bf16.mxu1 %v15446_v43  ;;  %19398 = vst [vmem:[#allocation54_spill] sm:$0xff] %v15996_v48  ;;  %19399 = vst [vmem:[#allocation85_spill] sm:$0xff] %v16002_v22  ;;  %v16008_v59 = vld [vmem:[%s18133_s4 + $0x2d8] ss:$12 sps:$4 sm:$0xff]   ;;  %v16014_v7 = vld [vmem:[%s18133_s4 + $0x1e0] ss:$12 sps:$4 sm:$0xff]  }
 0x603   :  { %19394 = vst [vmem:[#allocation83_spill] sm:$0xff] %v15973_v34  ;;  %5466 = vmatprep.subr.bf16.mxu1 %v15996_v48  ;;  %19400 = vst [vmem:[#allocation58_spill] sm:$0xff] %v16008_v59  ;;  %v16026_v18 = vld [vmem:[%s18133_s4 + $0x218] ss:$12 sps:$4 sm:$0xff]   ;;  %v16044_v50 = vld [vmem:[%s18133_s4 + $0x214] ss:$12 sps:$4 sm:$0xff]  }
 0x604   :  { %19396 = vst [vmem:[#allocation55_spill] sm:$0xff] %v15984_v42  ;;  %9540 = vmatpush3.bf16.msra.mxu0 %v16002_v22  ;;  %19401 = vst [vmem:[#allocation6_spill] sm:$0xff] %v16014_v7  ;;  %v16032_v42 = vld [vmem:[%s18133_s4 + $0x2f0] ss:$12 sps:$4 sm:$0xff]   ;;  %v16038_v34 = vld [vmem:[%s18133_s4 + $0x1f8] ss:$12 sps:$4 sm:$0xff]  }
 0x605   :  { %9541 = vmatprep.subr.bf16.mxu0 %v16008_v59  ;;  %19403 = vst [vmem:[#allocation86_spill] sm:$0xff] %v16026_v18  ;;  %19404 = vst [vmem:[#allocation72_spill] sm:$0xff] %v16032_v42 }
 0x606   :  { %5467 = vmatpush1.bf16.msra.mxu1 %v16014_v7  ;;  %19405 = vst [vmem:[#allocation74_spill] sm:$0xff] %v16038_v34  ;;  %19406 = vst [vmem:[#allocation114_spill] sm:$0xff] %v16044_v50  ;;  %v16172_v7 = vld [vmem:[%s18133_s4 + $0x488] ss:$12 sps:$4 sm:$0xff]  }
 0x607   :  { %5468 = vmatprep.subr.bf16.mxu1 %v16020_v62  ;;  %19425 = vst [vmem:[#allocation148_spill] sm:$0xff] %v16172_v7 }
 0x608   :  { %9542 = vmatpush3.bf16.msra.mxu0 %v16026_v18  ;;  %v16050_v18 = vld [vmem:[%s18133_s4 + $0x230] ss:$12 sps:$4 sm:$0xff]  }
 0x609   :  { %9543 = vmatprep.subr.bf16.mxu0 %v16032_v42  ;;  %19407 = vst [vmem:[#allocation115_spill] sm:$0xff] %v16050_v18  ;;  %v16056_v42 = vld [vmem:[%s18133_s4 + $0x308] ss:$12 sps:$4 sm:$0xff]  }
 0x60a   :  { %5469 = vmatpush1.bf16.msra.mxu1 %v16038_v34  ;;  %19408 = vst [vmem:[#allocation80_spill] sm:$0xff] %v16056_v42  ;;  %v16062_v34 = vld [vmem:[%s18133_s4 + $0x210] ss:$12 sps:$4 sm:$0xff]  }
 0x60b   :  { %5470 = vmatprep.subr.bf16.mxu1 %v16044_v50  ;;  %19409 = vst [vmem:[#allocation82_spill] sm:$0xff] %v16062_v34  ;;  %v16068_v50 = vld [vmem:[%s18133_s4 + $0x22c] ss:$12 sps:$4 sm:$0xff]  }
 0x60c   :  { %9544 = vmatpush3.bf16.msra.mxu0 %v16050_v18  ;;  %19410 = vst [vmem:[#allocation103_spill] sm:$0xff] %v16068_v50  ;;  %v16074_v18 = vld [vmem:[%s18133_s4 + $0x248] ss:$12 sps:$4 sm:$0xff]  }
 0x60d   :  { %9545 = vmatprep.subr.bf16.mxu0 %v16056_v42  ;;  %19411 = vst [vmem:[#allocation96_spill] sm:$0xff] %v16074_v18  ;;  %v16080_v42 = vld [vmem:[%s18133_s4 + $0x320] ss:$12 sps:$4 sm:$0xff]  }
 0x60e   :  { %5471 = vmatpush1.bf16.msra.mxu1 %v16062_v34  ;;  %19412 = vst [vmem:[#allocation18_spill] sm:$0xff] %v16080_v42  ;;  %v19413_v34 = vld [vmem:[#allocation48_spill] sm:$0xff] }
 0x60f   :  { %5472 = vmatprep.subr.bf16.mxu1 %v16068_v50  ;;  %v1443_v59 = vadd.f32 %v19413_v34, %v19177_v30  ;;  %v16088_v50 = vld [vmem:[%s18133_s4 + $0x228] ss:$12 sps:$4 sm:$0xff]   ;;  %v16106_v34 = vld [vmem:[%s18133_s4 + $0x338] ss:$12 sps:$4 sm:$0xff]  }
 0x610   :  { %9546 = vmatpush3.bf16.msra.mxu0 %v16074_v18  ;;  %19414 = vst [vmem:[#allocation88_spill] sm:$0xff] %v16088_v50  ;;  %v16094_v18 = vld [vmem:[%s18133_s4 + $0x244] ss:$12 sps:$4 sm:$0xff]   ;;  %19417 = vst [vmem:[#allocation102_spill] sm:$0xff] %v16106_v34 }
 0x611   :  { %9547 = vmatprep.subr.bf16.mxu0 %v16080_v42  ;;  %19415 = vst [vmem:[#allocation5_spill] sm:$0xff] %v16094_v18  ;;  %v16100_v42 = vld [vmem:[%s18133_s4 + $0x260] ss:$12 sps:$4 sm:$0xff]   ;;  %v1488_v30 = vmax.f32 %v1443_v59, 0.0  ;;  %v16130_v59 = vld [vmem:[%s18133_s4 + $0x458] ss:$12 sps:$4 sm:$0xff]  }
 0x612   :  { %5473 = vmatpush1.bf16.msra.mxu1 %v16088_v50  ;;  %19416 = vst [vmem:[#allocation101_spill] sm:$0xff] %v16100_v42  ;;  %v16112_v50 = vld [vmem:[%s18133_s4 + $0x240] ss:$12 sps:$4 sm:$0xff]   ;;  %19421 = vst [vmem:[#allocation144_spill] sm:$0xff] %v16130_v59 }
 0x613   :  { %5474 = vmatprep.subr.bf16.mxu1 %v16094_v18  ;;  %19418 = vst [vmem:[#allocation135_spill] sm:$0xff] %v16112_v50  ;;  %v16118_v18 = vld [vmem:[%s18133_s4 + $0x25c] ss:$12 sps:$4 sm:$0xff]  }
 0x614   :  { %9548 = vmatpush3.bf16.msra.mxu0 %v16100_v42  ;;  %19419 = vst [vmem:[#allocation109_spill] sm:$0xff] %v16118_v18  ;;  %v16124_v42 = vld [vmem:[%s18133_s4 + $0x278] ss:$12 sps:$4 sm:$0xff]  }
 0x615   :  { %9549 = vmatprep.subr.bf16.mxu0 %v16106_v34  ;;  %19420 = vst [vmem:[#allocation143_spill] sm:$0xff] %v16124_v42  ;;  %v16133_v34 = vpack.c.bf16 %v1488_v30, %v1488_v30  ;;  %v16151_v30 = vld [vmem:[%s18133_s4 + $0x398] ss:$12 sps:$4 sm:$0xff]  }
 0x616   :  { %5475 = vmatpush1.bf16.msra.mxu1 %v16112_v50  ;;  %19424 = vst [vmem:[#allocation147_spill] sm:$0xff] %v16151_v30  ;;  %v16158_v50 = vld [vmem:[%s18133_s4 + $0x470] ss:$12 sps:$4 sm:$0xff]  }
 0x617   :  { %5476 = vmatprep.subr.bf16.mxu1 %v16118_v18  ;;  %v16138_v18 = vld [vmem:[%s18133_s4 + $0x258] ss:$12 sps:$4 sm:$0xff]  }
 0x618   :  { %9550 = vmatpush3.bf16.msra.mxu0 %v16124_v42  ;;  %19422 = vst [vmem:[#allocation137_spill] sm:$0xff] %v16138_v18  ;;  %v16145_v42 = vld [vmem:[%s18133_s4 + $0x274] ss:$12 sps:$4 sm:$0xff]  }
 0x619   :  { %9561 = vmatprep.subr.bf16.mxu0 %v16130_v59  ;;  %19423 = vst [vmem:[#allocation138_spill] sm:$0xff] %v16145_v42 }
 0x61a   :  { %5477 = vmatpush1.bf16.msra.mxu1 %v16138_v18 }
 0x61b   :  { %5579 = vmatmul.mubr.bf16.vlgmr.msra.gmra.mrb[88].mxu0 %v15503_v2  ;;  %5478 = vmatprep.subr.bf16.mxu1 %v16145_v42 }
 0x61c   :  { %9562 = vmatpush3.bf16.msra.mxu0 %v16151_v30  ;;  %5746 = vmatprep.mubr.bf16.mxu0 %v16133_v34  ;;  %v9447_v59 = vpop.f32.mrb[88].mxu1  ;;  %v16166_v30 = vld [vmem:[%s18133_s4 + $0x3b0] ss:$12 sps:$4 sm:$0xff]  }
 0x61d   :  { %v9448_v18 = vpop.f32.mrb[89].mxu1  ;;  %9563 = vmatprep.subr.bf16.mxu0 %v16158_v50 }
 0x61e   :  { %v9449_v22 = vadd.f32 %v9448_v18, %v9447_v59  ;;  %v9450_v42 = vpop.f32.mrb[90].mxu1  ;;  %5479 = vmatpush1.bf16.msra.mxu1 %v15451_v29  ;;  %v16192_v18 = vld [vmem:[%s18133_s4 + $0x2a0] ss:$12 sps:$4 sm:$0xff]   ;;  %v16198_v59 = vld [vmem:[%s18133_s4 + $0x2bc] ss:$12 sps:$4 sm:$0xff]  }
 0x61f   :  { %v9451_v62 = vpop.f32.mrb[91].mxu1  ;;  %5480 = vmatprep.subr.bf16.mxu1 %v15458_v58  ;;  %v16180_v42 = vld [vmem:[%s18133_s4 + $0x3c8] ss:$12 sps:$4 sm:$0xff]   ;;  %19428 = vst [vmem:[#allocation149_spill] sm:$0xff] %v16192_v18  ;;  %19429 = vst [vmem:[#allocation150_spill] sm:$0xff] %v16198_v59 }
 0x620   :  { %9564 = vmatpush3.bf16.msra.mxu0 %v16166_v30  ;;  %19426 = vst [vmem:[#allocation141_spill] sm:$0xff] %v16180_v42  ;;  %v16186_v62 = vld [vmem:[%s18133_s4 + $0x4a0] ss:$12 sps:$4 sm:$0xff]  }
 0x621   :  { %9565 = vmatprep.subr.bf16.mxu0 %v16172_v7  ;;  %19427 = vst [vmem:[#allocation142_spill] sm:$0xff] %v16186_v62 }
 0x622   :  { %5481 = vmatpush1.bf16.msra.mxu1 %v15467_v33 }
 0x623   :  { %5482 = vmatprep.subr.bf16.mxu1 %v15473_v20 }
 0x624   :  { %9566 = vmatpush3.bf16.msra.mxu0 %v16180_v42  ;;  %v16204_v42 = vld [vmem:[%s18133_s4 + $0x3e0] ss:$12 sps:$4 sm:$0xff]  }
 0x625   :  { %9567 = vmatprep.subr.bf16.mxu0 %v16186_v62  ;;  %19430 = vst [vmem:[#allocation145_spill] sm:$0xff] %v16204_v42  ;;  %v16210_v62 = vld [vmem:[%s18133_s4 + $0x4b8] ss:$12 sps:$4 sm:$0xff]  }
 0x626   :  { %5483 = vmatpush1.bf16.msra.mxu1 %v16192_v18  ;;  %19431 = vst [vmem:[#allocation146_spill] sm:$0xff] %v16210_v62  ;;  %v16216_v18 = vld [vmem:[%s18133_s4 + $0x2b8] ss:$12 sps:$4 sm:$0xff]  }
 0x627   :  { %5484 = vmatprep.subr.bf16.mxu1 %v16198_v59  ;;  %19432 = vst [vmem:[#allocation151_spill] sm:$0xff] %v16216_v18  ;;  %v16222_v59 = vld [vmem:[%s18133_s4 + $0x2d4] ss:$12 sps:$4 sm:$0xff]  }
 0x628   :  { %9568 = vmatpush3.bf16.msra.mxu0 %v16204_v42  ;;  %19433 = vst [vmem:[#allocation152_spill] sm:$0xff] %v16222_v59  ;;  %v16228_v42 = vld [vmem:[%s18133_s4 + $0x3f8] ss:$12 sps:$4 sm:$0xff]  }
 0x629   :  { %9569 = vmatprep.subr.bf16.mxu0 %v16210_v62  ;;  %19434 = vst [vmem:[#allocation116_spill] sm:$0xff] %v16228_v42  ;;  %v16234_v62 = vld [vmem:[%s18133_s4 + $0x4d0] ss:$12 sps:$4 sm:$0xff]  }
 0x62a   :  { %5485 = vmatpush1.bf16.msra.mxu1 %v16216_v18  ;;  %19435 = vst [vmem:[#allocation117_spill] sm:$0xff] %v16234_v62  ;;  %v16240_v18 = vld [vmem:[%s18133_s4 + $0x2d0] ss:$12 sps:$4 sm:$0xff]  }
 0x62b   :  { %5486 = vmatprep.subr.bf16.mxu1 %v16222_v59  ;;  %19436 = vst [vmem:[#allocation17_spill] sm:$0xff] %v16240_v18  ;;  %v16246_v59 = vld [vmem:[%s18133_s4 + $0x2ec] ss:$12 sps:$4 sm:$0xff]  }
 0x62c   :  { %9570 = vmatpush3.bf16.msra.mxu0 %v16228_v42  ;;  %19437 = vst [vmem:[#allocation23_spill] sm:$0xff] %v16246_v59  ;;  %v16252_v42 = vld [vmem:[%s18133_s4 + $0x410] ss:$12 sps:$4 sm:$0xff]  }
 0x62d   :  { %9571 = vmatprep.subr.bf16.mxu0 %v16234_v62  ;;  %19438 = vst [vmem:[#allocation118_spill] sm:$0xff] %v16252_v42  ;;  %v19439_v62 = vld [vmem:[#allocation47_spill] sm:$0xff] }
 0x62e   :  { %5487 = vmatpush1.bf16.msra.mxu1 %v16240_v18  ;;  %v1441_v7 = vadd.f32 %v19439_v62, %v19200_v38  ;;  %v16260_v18 = vld [vmem:[%s18133_s4 + $0x4e8] ss:$12 sps:$4 sm:$0xff]   ;;  %v16274_v62 = vld [vmem:[%s18133_s4 + $0x500] ss:$12 sps:$4 sm:$0xff]  }
 0x62f   :  { %5488 = vmatprep.subr.bf16.mxu1 %v16246_v59  ;;  %19440 = vst [vmem:[#allocation119_spill] sm:$0xff] %v16260_v18  ;;  %v16268_v59 = vld [vmem:[%s18133_s4 + $0x428] ss:$12 sps:$4 sm:$0xff]   ;;  %19442 = vst [vmem:[#allocation121_spill] sm:$0xff] %v16274_v62 }
 0x630   :  { %9572 = vmatpush3.bf16.msra.mxu0 %v16252_v42  ;;  %19441 = vst [vmem:[#allocation120_spill] sm:$0xff] %v16268_v59  ;;  %v1487_v42 = vmax.f32 %v1441_v7, 0.0  ;;  %v10167_v7 = vadd.f32 %v9449_v22, %v13896_v14  ;;  %v16313_v22 = vld [vmem:[%s18133_s4 + $0x348] ss:$12 sps:$4 sm:$0xff]  }
 0x631   :  { %9573 = vmatprep.subr.bf16.mxu0 %v16260_v18 }
 0x632   :  { %5489 = vmatpush1.bf16.msra.mxu1 %v19301_v46  ;;  %v16282_v46 = vld [vmem:[%s18133_s4 + $0x440] ss:$12 sps:$4 sm:$0xff]  }
 0x633   :  { %5490 = vmatprep.subr.bf16.mxu1 %v19302_v37  ;;  %19443 = vst [vmem:[#allocation122_spill] sm:$0xff] %v16282_v46  ;;  %v16285_v37 = vpack.c.bf16 %v1487_v42, %v1487_v42 }
 0x634   :  { %9574 = vmatpush3.bf16.msra.mxu0 %v16268_v59 }
 0x635   :  { %9575 = vmatprep.subr.bf16.mxu0 %v16274_v62 }
 0x636   :  { %5491 = vmatpush1.bf16.msra.mxu1 %v19304_v31 }
 0x637   :  { %5492 = vmatprep.subr.bf16.mxu1 %v19305_v35 }
 0x638   :  { %9576 = vmatpush3.bf16.msra.mxu0 %v16282_v46 }
 0x639   :  { %5803 = vmatprep.subr.bf16.mxu0 %v15508_v5 }
 0x63a   :  { %5493 = vmatpush1.bf16.msra.mxu1 %v19306_v45  ;;  %v16298_v45 = vld [vmem:[%s18133_s4 + $0x330] ss:$12 sps:$4 sm:$0xff]  }
 0x63b   :  { %5747 = vmatmul.mubr.bf16.vlgmr.msra.gmra.mrb[92].mxu0 %v16285_v37  ;;  %5494 = vmatprep.subr.bf16.mxu1 %v19307_v9 }
 0x63c   :  { %5804 = vmatpush1.bf16.msra.mxu0 %v15517_v44  ;;  %5835 = vmatprep.mubr.bf16.mxu0 %v15446_v43  ;;  %v9473_v31 = vpop.f32.mrb[92].mxu1  ;;  %v16304_v44 = vld [vmem:[%s18133_s4 + $0x34c] ss:$12 sps:$4 sm:$0xff]  }
 0x63d   :  { %v9474_v35 = vpop.f32.mrb[93].mxu1  ;;  %5805 = vmatprep.subr.bf16.mxu0 %v15525_v3 }
 0x63e   :  { %v9475_v42 = vadd.f32 %v9474_v35, %v9473_v31  ;;  %v9476_v46 = vpop.f32.mrb[94].mxu1  ;;  %5495 = vmatpush1.bf16.msra.mxu1 %v16298_v45  ;;  %v16328_v31 = vld [vmem:[%s18133_s4 + $0x360] ss:$12 sps:$4 sm:$0xff]   ;;  %v16334_v35 = vld [vmem:[%s18133_s4 + $0x37c] ss:$12 sps:$4 sm:$0x3f]  }
 0x63f   :  { %v9477_v9 = vpop.f32.mrb[95].mxu1  ;;  %5505 = vmatprep.subr.bf16.mxu1 %v16304_v44  ;;  %v16320_v46 = vld [vmem:[%s18133_s4 + $0x364] ss:$12 sps:$4 sm:$0xff]  }
 0x640   :  { %v10168_v3 = vadd.f32 %v10167_v7, %v9475_v42  ;;  %5806 = vmatpush1.bf16.msra.mxu0 %v15534_v63  ;;  %v16349_v7 = vld [vmem:[%s18133_s4 + $0x350] ss:$12 sps:$4 sm:$0xff]   ;;  %v16360_v9 = vld [vmem:[%s18133_s4 + $0x368] ss:$12 sps:$4 sm:$0xff]  }
 0x641   :  { %5497 = vmatmul.mubr.bf16.vlgmr.msra.gmra.mrb[100].mxu1 %v15503_v2  ;;  %5807 = vmatprep.subr.bf16.mxu0 %v15540_v53  ;;  %19444 = vst [vmem:[#allocation123_spill] sm:$0xff] %v16349_v7  ;;  %v19445_v42 = vld [vmem:[#allocation4_spill] sm:$0xff]  ;;  %19446 = vst [vmem:[#allocation124_spill] sm:$0xff] %v16360_v9 }
 0x642   :  { %5506 = vmatpush1.bf16.msra.mxu1 %v16313_v22  ;;  %5537 = vmatprep.mubr.bf16.mxu1 %v18790_v21 }
 0x643   :  { %5507 = vmatprep.subr.bf16.mxu1 %v16320_v46 }
 0x644   :  { %5808 = vmatpush1.bf16.msra.mxu0 %v15553_v25 }
 0x645   :  { %5809 = vmatprep.subr.bf16.mxu0 %v15559_v19 }
 0x646   :  { %5508 = vmatpush1.bf16.msra.mxu1 %v16328_v31 }
 0x647   :  { %8967 = vmatprep.subr.msk.bf16.mxu1 %vm2146_vm3, %v16334_v35 }
 0x648   :  { %5810 = vmatpush1.bf16.msra.mxu0 %v15567_v49 }
 0x649   :  { %5811 = vmatprep.subr.bf16.mxu0 %v15575_v60 }
 0x64a   :  { %5510 = vmatpush1.bf16.msra.mxu1 %v13520_v4 }
 0x64b   :  { %10011 = vmatprep.subr.bf16.mxu1 %v18770_v16 }
 0x64c   :  { %5812 = vmatpush1.bf16.msra.mxu0 %v15585_v0  ;;  %v19448_v0 = vld [vmem:[#allocation64_spill] sm:$0xff] }
 0x64d   :  { %8968 = vmatmul.mubr.msk.bf16.vlgmr.msra.gmra.mrb[100].mxu1 %vm2142_vm4, %v15888_v8  ;;  %5813 = vmatprep.subr.bf16.mxu0 %v15591_v52  ;;  %v19447_v52 = vld [vmem:[#allocation105_spill] sm:$0xff] }
 0x64e   :  { %10012 = vmatpush3.bf16.msra.mxu1 %v16349_v7  ;;  %10017 = vmatprep.mubr.msk.bf16.mxu1 %vm11410_vm2, %v18770_v16 }
 0x64f   :  { %10013 = vmatprep.subr.bf16.mxu1 %v18770_v16 }
 0x650   :  { %5814 = vmatpush1.bf16.msra.mxu0 %v19445_v42  ;;  %v16370_v42 = vld [vmem:[%s18133_s4 + $0x394] ss:$12 sps:$4 sm:$0xff]  }
 0x651   :  { %5815 = vmatprep.subr.bf16.mxu0 %v15605_v54  ;;  %19449 = vst [vmem:[#allocation125_spill] sm:$0xff] %v16370_v42  ;;  %v19450_v54 = vld [vmem:[#allocation99_spill] sm:$0xff] }
 0x652   :  { %10014 = vmatpush3.bf16.msra.mxu1 %v16360_v9  ;;  %v19451_v9 = vld [vmem:[#allocation12_spill] sm:$0xff] }
 0x653   :  { %10015 = vmatprep.subr.bf16.mxu1 %v18770_v16 }
 0x654   :  { %5816 = vmatpush1.bf16.msra.mxu0 %v15613_v47  ;;  %v16387_v47 = vld [vmem:[%s18133_s4 + $0x3ac] ss:$12 sps:$4 sm:$0xff]  }
 0x655   :  { %5817 = vmatprep.subr.bf16.mxu0 %v19447_v52  ;;  %v16380_v52 = vld [vmem:[%s18133_s4 + $0x390] ss:$12 sps:$4 sm:$0xff]   ;;  %19453 = vst [vmem:[#allocation155_spill] sm:$0xff] %v16387_v47 }
 0x656   :  { %10016 = vmatpush3.bf16.msra.mxu1 %v19448_v0  ;;  %19452 = vst [vmem:[#allocation126_spill] sm:$0xff] %v16380_v52  ;;  %v19455_v0 = vld [vmem:[#allocation139_spill] sm:$0xff] }
 0x657   :  { %5632 = vmatprep.subr.bf16.mxu1 %v16370_v42 }
 0x658   :  { %5818 = vmatpush1.bf16.msra.mxu0 %v19450_v54  ;;  %v19454_v54 = vld [vmem:[#allocation136_spill] sm:$0xff] }
 0x659   :  { %10018 = vmatmul.mubr.msk.bf16.vlgmr.msra.gmra.mrb[108].mxu1 %vm2142_vm4, %v15888_v8  ;;  %5819 = vmatprep.subr.bf16.mxu0 %v19451_v9 }
 0x65a   :  { %5633 = vmatpush1.bf16.msra.mxu1 %v16380_v52  ;;  %5664 = vmatprep.mubr.bf16.mxu1 %v16133_v34  ;;  %v16395_v52 = vld [vmem:[%s18133_s4 + $0x3a8] ss:$12 sps:$4 sm:$0xff]  }
 0x65b   :  { %5634 = vmatprep.subr.bf16.mxu1 %v16387_v47  ;;  %v16401_v47 = vld [vmem:[%s18133_s4 + $0x3c4] ss:$12 sps:$4 sm:$0xff]  }
 0x65c   :  { %5820 = vmatpush1.bf16.msra.mxu0 %v19454_v54  ;;  %v9499_v42 = vpop.f32.mrb[96].mxu1  ;;  %v19456_v54 = vld [vmem:[#allocation140_spill] sm:$0xff] }
 0x65d   :  { %v9500_v9 = vpop.f32.mrb[97].mxu1  ;;  %5821 = vmatprep.subr.bf16.mxu0 %v19455_v0 }
 0x65e   :  { %v9501_v7 = vadd.f32 %v9500_v9, %v9499_v42  ;;  %v9502_v60 = vpop.f32.mrb[98].mxu1  ;;  %5635 = vmatpush1.bf16.msra.mxu1 %v16395_v52  ;;  %v16411_v42 = vld [vmem:[%s18133_s4 + $0x3c0] ss:$12 sps:$4 sm:$0xff]  }
 0x65f   :  { %v9503_v49 = vpop.f32.mrb[99].mxu1  ;;  %5636 = vmatprep.subr.bf16.mxu1 %v16401_v47  ;;  %v19457_v60 = vld [vmem:[#allocation11_spill] sm:$0xff]  ;;  %v19459_v9 = vld [vmem:[#allocation8_spill] sm:$0xff] }
 0x660   :  { %5822 = vmatpush1.bf16.msra.mxu0 %v19456_v54  ;;  %v16405_v0 = vadd.f32 %v10168_v3, %v9501_v7  ;;  %v16417_v49 = vld [vmem:[%s18133_s4 + $0x3dc] ss:$12 sps:$4 sm:$0xff]   ;;  %v19460_v3 = vld [vmem:[#allocation153_spill] sm:$0xff] }
 0x661   :  { %5823 = vmatprep.subr.bf16.mxu0 %v19457_v60  ;;  %19458 = vst [vmem:[#allocation156_spill] sm:$0xff] %v16417_v49  ;;  %v16425_v7 = vld [vmem:[%s18133_s4 + $0x3d8] ss:$12 sps:$4 sm:$0xff]   ;;  %v16431_v60 = vld [vmem:[%s18133_s4 + $0x3f4] ss:$12 sps:$4 sm:$0xff]  }
 0x662   :  { %5637 = vmatpush1.bf16.msra.mxu1 %v16411_v42  ;;  %19461 = vst [vmem:[#allocation127_spill] sm:$0xff] %v16425_v7  ;;  %19462 = vst [vmem:[#allocation128_spill] sm:$0xff] %v16431_v60  ;;  %v19463_v54 = vld [vmem:[#allocation154_spill] sm:$0xff] }
 0x663   :  { %5638 = vmatprep.subr.bf16.mxu1 %v16417_v49  ;;  %v19464_v49 = vld [vmem:[#allocation10_spill] sm:$0xff] }
 0x664   :  { %5824 = vmatpush1.bf16.msra.mxu0 %v19459_v9  ;;  %v16445_v9 = vld [vmem:[%s18133_s4 + $0x40c] ss:$12 sps:$4 sm:$0xff]  }
 0x665   :  { %5825 = vmatprep.subr.bf16.mxu0 %v19460_v3  ;;  %v16439_v3 = vld [vmem:[%s18133_s4 + $0x3f0] ss:$12 sps:$4 sm:$0xff]  }
 0x666   :  { %5639 = vmatpush1.bf16.msra.mxu1 %v16425_v7  ;;  %v19465_v7 = vld [vmem:[#allocation25_spill] sm:$0xff] }
 0x667   :  { %5640 = vmatprep.subr.bf16.mxu1 %v16431_v60  ;;  %v19466_v60 = vld [vmem:[#allocation26_spill] sm:$0xff] }
 0x668   :  { %5826 = vmatpush1.bf16.msra.mxu0 %v19463_v54  ;;  %v16459_v54 = vld [vmem:[%s18133_s4 + $0x424] ss:$12 sps:$4 sm:$0xff]  }
 0x669   :  { %5827 = vmatprep.subr.bf16.mxu0 %v19464_v49  ;;  %v16453_v49 = vld [vmem:[%s18133_s4 + $0x408] ss:$12 sps:$4 sm:$0xff]  }
 0x66a   :  { %5641 = vmatpush1.bf16.msra.mxu1 %v16439_v3 }
 0x66b   :  { %5642 = vmatprep.subr.bf16.mxu1 %v16445_v9 }
 0x66c   :  { %5828 = vmatpush1.bf16.msra.mxu0 %v19465_v7  ;;  %v16473_v7 = vld [vmem:[%s18133_s4 + $0x43c] ss:$12 sps:$4 sm:$0xff]  }
 0x66d   :  { %5829 = vmatprep.subr.bf16.mxu0 %v19466_v60  ;;  %v16467_v60 = vld [vmem:[%s18133_s4 + $0x420] ss:$12 sps:$4 sm:$0xff]  }
 0x66e   :  { %5643 = vmatpush1.bf16.msra.mxu1 %v16453_v49 }
 0x66f   :  { %5644 = vmatprep.subr.bf16.mxu1 %v16459_v54 }
 0x670   :  { %5830 = vmatpush1.bf16.msra.mxu0 %v15714_v28  ;;  %v16487_v28 = vld [vmem:[%s18133_s4 + $0x454] ss:$12 sps:$4 sm:$0xff]  }
 0x671   :  { %5831 = vmatprep.subr.bf16.mxu0 %v15721_v1  ;;  %v16481_v1 = vld [vmem:[%s18133_s4 + $0x438] ss:$12 sps:$4 sm:$0xff]   ;;  %19467 = vst [vmem:[#allocation129_spill] sm:$0xff] %v16487_v28 }
 0x672   :  { %5645 = vmatpush1.bf16.msra.mxu1 %v16467_v60 }
 0x673   :  { %5646 = vmatprep.subr.bf16.mxu1 %v16473_v7 }
 0x674   :  { %5832 = vmatpush1.bf16.msra.mxu0 %v15729_v40 }
 0x675   :  { %5833 = vmatprep.subr.bf16.mxu0 %v15735_v15  ;;  %v16497_v15 = vld [vmem:[%s18133_s4 + $0x46c] ss:$12 sps:$4 sm:$0xff]  }
 0x676   :  { %5647 = vmatpush1.bf16.msra.mxu1 %v16481_v1  ;;  %19468 = vst [vmem:[#allocation130_spill] sm:$0xff] %v16497_v15 }
 0x677   :  { %5648 = vmatprep.subr.bf16.mxu1 %v16487_v28 }
 0x678   :  { %5834 = vmatpush1.bf16.msra.mxu0 %v15743_v10 }
 0x679   :  { %5844 = vmatprep.subr.bf16.mxu0 %v15749_v11  ;;  %v16506_v11 = vld [vmem:[%s18133_s4 + $0x468] ss:$12 sps:$4 sm:$0xff]  }
 0x67a   :  { %5649 = vmatpush1.bf16.msra.mxu1 %v15209_v41  ;;  %19469 = vst [vmem:[#allocation15_spill] sm:$0xff] %v16506_v11  ;;  %v16512_v41 = vld [vmem:[%s18133_s4 + $0x484] ss:$12 sps:$4 sm:$0xff]  }
 0x67b   :  { %5836 = vmatmul.mubr.bf16.vlgmr.msra.gmra.mrb[96].mxu0 %v15503_v2  ;;  %5650 = vmatprep.subr.bf16.mxu1 %v16497_v15  ;;  %19470 = vst [vmem:[#allocation7_spill] sm:$0xff] %v16512_v41 }
 0x67c   :  { %5845 = vmatpush1.bf16.msra.mxu0 %v15758_v55  ;;  %5876 = vmatprep.mubr.bf16.mxu0 %v18790_v21  ;;  %v16527_v55 = vld [vmem:[%s18133_s4 + $0x49c] ss:$12 sps:$4 sm:$0xff]  }
 0x67d   :  { %5846 = vmatprep.subr.bf16.mxu0 %v15768_v17  ;;  %v16521_v17 = vld [vmem:[%s18133_s4 + $0x480] ss:$12 sps:$4 sm:$0xff]   ;;  %19472 = vst [vmem:[#allocation19_spill] sm:$0xff] %v16527_v55 }
 0x67e   :  { %5651 = vmatpush1.bf16.msra.mxu1 %v16506_v11  ;;  %19471 = vst [vmem:[#allocation134_spill] sm:$0xff] %v16521_v17 }
 0x67f   :  { %5652 = vmatprep.subr.bf16.mxu1 %v16512_v41 }
 0x680   :  { %5847 = vmatpush1.bf16.msra.mxu0 %v15776_v61  ;;  %v16543_v61 = vld [vmem:[%s18133_s4 + $0x4b4] ss:$12 sps:$4 sm:$0xff]  }
 0x681   :  { %8973 = vmatprep.subr.msk.bf16.mxu0 %vm2146_vm3, %v15782_v56  ;;  %v16535_v56 = vld [vmem:[%s18133_s4 + $0x498] ss:$12 sps:$4 sm:$0xff]   ;;  %19474 = vst [vmem:[#allocation22_spill] sm:$0xff] %v16543_v61 }
 0x682   :  { %5653 = vmatpush1.bf16.msra.mxu1 %v16521_v17  ;;  %19473 = vst [vmem:[#allocation20_spill] sm:$0xff] %v16535_v56 }
 0x683   :  { %5654 = vmatprep.subr.bf16.mxu1 %v16527_v55  ;;  %v19530_v55 = vld [vmem:[#allocation55_spill] sm:$0xff] }
 0x684   :  { %5849 = vmatpush1.bf16.msra.mxu0 %v19254_v24  ;;  %v16558_v24 = vld [vmem:[%s18133_s4 + $0x4cc] ss:$12 sps:$4 sm:$0xff]  }
 0x685   :  { %9587 = vmatprep.subr.bf16.mxu0 %v15792_v12  ;;  %v16552_v12 = vld [vmem:[%s18133_s4 + $0x4b0] ss:$12 sps:$4 sm:$0xff]   ;;  %19476 = vst [vmem:[#allocation93_spill] sm:$0xff] %v16558_v24 }
 0x686   :  { %5655 = vmatpush1.bf16.msra.mxu1 %v16535_v56  ;;  %19475 = vst [vmem:[#allocation89_spill] sm:$0xff] %v16552_v12 }
 0x687   :  { %8974 = vmatmul.mubr.msk.bf16.vlgmr.msra.gmra.mrb[96].mxu0 %vm2142_vm4, %v15888_v8  ;;  %5656 = vmatprep.subr.bf16.mxu1 %v16543_v61 }
 0x688   :  { %9588 = vmatpush3.bf16.msra.mxu0 %v15802_v27  ;;  %5917 = vmatprep.mubr.bf16.mxu0 %v15446_v43  ;;  %v16566_v43 = vld [vmem:[%s18133_s4 + $0x4c8] ss:$12 sps:$4 sm:$0xff]  }
 0x689   :  { %9589 = vmatprep.subr.bf16.mxu0 %v15809_v26  ;;  %19477 = vst [vmem:[#allocation87_spill] sm:$0xff] %v16566_v43  ;;  %v16572_v26 = vld [vmem:[%s18133_s4 + $0x4e4] ss:$12 sps:$4 sm:$0xff]  }
 0x68a   :  { %5657 = vmatpush1.bf16.msra.mxu1 %v16552_v12  ;;  %19478 = vst [vmem:[#allocation97_spill] sm:$0xff] %v16572_v26  ;;  %v19479_v27 = vld [vmem:[#allocation67_spill] sm:$0xff] }
 0x68b   :  { %5658 = vmatprep.subr.bf16.mxu1 %v16558_v24  ;;  %v19480_v24 = vld [vmem:[#allocation43_spill] sm:$0xff] }
 0x68c   :  { %9590 = vmatpush3.bf16.msra.mxu0 %v15817_v51  ;;  %v16586_v51 = vld [vmem:[%s18133_s4 + $0x4fc] ss:$12 sps:$4 sm:$0xff]  }
 0x68d   :  { %9591 = vmatprep.subr.bf16.mxu0 %v15823_v36  ;;  %v16580_v36 = vld [vmem:[%s18133_s4 + $0x4e0] ss:$12 sps:$4 sm:$0xff]   ;;  %19482 = vst [vmem:[#allocation61_spill] sm:$0xff] %v16586_v51 }
 0x68e   :  { %5659 = vmatpush1.bf16.msra.mxu1 %v16566_v43  ;;  %19481 = vst [vmem:[#allocation16_spill] sm:$0xff] %v16580_v36  ;;  %v19483_v43 = vld [vmem:[#allocation62_spill] sm:$0xff] }
 0x68f   :  { %5660 = vmatprep.subr.bf16.mxu1 %v16572_v26  ;;  %v19484_v26 = vld [vmem:[#allocation40_spill] sm:$0xff] }
 0x690   :  { %9592 = vmatpush3.bf16.msra.mxu0 %v19479_v27  ;;  %v16600_v27 = vld [vmem:[%s18133_s4 + $0x514] ss:$12 sps:$4 sm:$0xff]  }
 0x691   :  { %9593 = vmatprep.subr.bf16.mxu0 %v19480_v24  ;;  %v16594_v24 = vld [vmem:[%s18133_s4 + $0x4f8] ss:$12 sps:$4 sm:$0xff]   ;;  %19486 = vst [vmem:[#allocation98_spill] sm:$0xff] %v16600_v27 }
 0x692   :  { %5661 = vmatpush1.bf16.msra.mxu1 %v16580_v36  ;;  %19485 = vst [vmem:[#allocation66_spill] sm:$0xff] %v16594_v24  ;;  %v19487_v36 = vld [vmem:[#allocation71_spill] sm:$0xff] }
 0x693   :  { %5662 = vmatprep.subr.bf16.mxu1 %v16586_v51  ;;  %v19491_v51 = vld [vmem:[#allocation46_spill] sm:$0xff] }
 0x694   :  { %9594 = vmatpush3.bf16.msra.mxu0 %v19483_v43  ;;  %v19488_v43 = vld [vmem:[#allocation45_spill] sm:$0xff] }
 0x695   :  { %9595 = vmatprep.subr.bf16.mxu0 %v19484_v26  ;;  %v16609_v26 = vld [vmem:[%s18133_s4 + $0x510] ss:$12 sps:$4 sm:$0xff]  }
 0x696   :  { %5663 = vmatpush1.bf16.msra.mxu1 %v16594_v24  ;;  %19489 = vst [vmem:[#allocation110_spill] sm:$0xff] %v16609_v26  ;;  %v19490_v24 = vld [vmem:[#allocation34_spill] sm:$0xff] }
 0x697   :  { %5673 = vmatprep.subr.bf16.mxu1 %v16600_v27  ;;  %v1482_v12 = vadd.f32 %v19491_v51, %v19490_v24  ;;  %v19494_v27 = vld [vmem:[#allocation42_spill] sm:$0xff]  ;;  %v16632_v51 = vld [vmem:[%s18133_s4 + $0x544] ss:$12 sps:$4 sm:$0x3f]  }
 0x698   :  { %9596 = vmatpush3.bf16.msra.mxu0 %v19487_v36  ;;  %v16618_v36 = vld [vmem:[%s18133_s4 + $0x52c] ss:$12 sps:$4 sm:$0xff]   ;;  %19496 = vst [vmem:[#allocation47_spill] sm:$0xff] %v16632_v51 }
 0x699   :  { %5665 = vmatmul.mubr.bf16.vlgmr.msra.gmra.mrb[100].mxu1 %v16285_v37  ;;  %9597 = vmatprep.subr.bf16.mxu0 %v19488_v43  ;;  %19492 = vst [vmem:[#allocation111_spill] sm:$0xff] %v16618_v36  ;;  %v19493_v43 = vld [vmem:[#allocation65_spill] sm:$0xff]  ;;  %v1489_v61 = vmax.f32 %v1482_v12, 0.0 }
 0x69a   :  { %5674 = vmatpush1.bf16.msra.mxu1 %v16609_v26  ;;  %5705 = vmatprep.mubr.bf16.mxu1 %v18790_v21  ;;  %v16626_v26 = vld [vmem:[%s18133_s4 + $0x528] ss:$12 sps:$4 sm:$0xff]   ;;  %v16649_v12 = vld [vmem:[%s18133_s4 + $0x518] ss:$12 sps:$4 sm:$0xff]  }
 0x69b   :  { %5675 = vmatprep.subr.bf16.mxu1 %v16618_v36  ;;  %19495 = vst [vmem:[#allocation48_spill] sm:$0xff] %v16626_v26  ;;  %v19497_v36 = vld [vmem:[#allocation73_spill] sm:$0xff]  ;;  %v16639_v24 = vpack.c.bf16 %v1489_v61, %v1489_v61  ;;  %19501 = vst [vmem:[#allocation46_spill] sm:$0xff] %v16649_v12  ;;  %v19502_v61 = vld [vmem:[#allocation44_spill] sm:$0xff] }
 0x69c   :  { %9598 = vmatpush3.bf16.msra.mxu0 %v19493_v43  ;;  %v19498_v43 = vld [vmem:[#allocation49_spill] sm:$0xff] }
 0x69d   :  { %9599 = vmatprep.subr.bf16.mxu0 %v19494_v27  ;;  %v19499_v27 = vld [vmem:[#allocation21_spill] sm:$0xff] }
 0x69e   :  { %5676 = vmatpush1.bf16.msra.mxu1 %v16626_v26  ;;  %v19500_v26 = vld [vmem:[#allocation69_spill] sm:$0xff] }
 0x69f   :  { %8970 = vmatprep.subr.msk.bf16.mxu1 %vm2146_vm3, %v16632_v51  ;;  %v19524_v51 = vld [vmem:[#allocation96_spill] sm:$0xff] }
 0x6a0   :  { %9600 = vmatpush3.bf16.msra.mxu0 %v19497_v36 }
 0x6a1   :  { %9601 = vmatprep.subr.bf16.mxu0 %v19498_v43  ;;  %v19507_v43 = vld [vmem:[#allocation79_spill] sm:$0xff] }
 0x6a2   :  { %5678 = vmatpush1.bf16.msra.mxu1 %v19499_v27 }
 0x6a3   :  { %10021 = vmatprep.subr.bf16.mxu1 %v18770_v16 }
 0x6a4   :  { %9602 = vmatpush3.bf16.msra.mxu0 %v19500_v26  ;;  %v16663_v26 = vld [vmem:[%s18133_s4 + $0x530] ss:$12 sps:$4 sm:$0xff]  }
 0x6a5   :  { %8971 = vmatmul.mubr.msk.bf16.vlgmr.msra.gmra.mrb[100].mxu1 %vm2142_vm4, %v16639_v24  ;;  %10031 = vmatprep.subr.bf16.mxu0 %v18770_v16  ;;  %19503 = vst [vmem:[#allocation157_spill] sm:$0xff] %v16663_v26 }
 0x6a6   :  { %10022 = vmatpush3.bf16.msra.mxu1 %v16649_v12  ;;  %10027 = vmatprep.mubr.msk.bf16.mxu1 %vm11410_vm2, %v18770_v16  ;;  %v19504_v12 = vld [vmem:[#allocation77_spill] sm:$0xff] }
 0x6a7   :  { %5918 = vmatmul.mubr.bf16.vlgmr.msra.gmra.mrb[100].mxu0 %v15503_v2  ;;  %10023 = vmatprep.subr.bf16.mxu1 %v18770_v16  ;;  %v19505_v2 = vld [vmem:[#allocation100_spill] sm:$0xff] }
 0x6a8   :  { %10032 = vmatpush3.bf16.msra.mxu0 %v19502_v61  ;;  %10037 = vmatprep.mubr.msk.bf16.mxu0 %vm11410_vm2, %v18770_v16  ;;  %v19506_v61 = vld [vmem:[#allocation50_spill] sm:$0xff] }
 0x6a9   :  { %10033 = vmatprep.subr.bf16.mxu0 %v18770_v16 }
 0x6aa   :  { %10024 = vmatpush3.bf16.msra.mxu1 %v16663_v26  ;;  %v19520_v26 = vld [vmem:[#allocation80_spill] sm:$0xff] }
 0x6ab   :  { %10025 = vmatprep.subr.bf16.mxu1 %v18770_v16 }
 0x6ac   :  { %10034 = vmatpush3.bf16.msra.mxu0 %v19504_v12  ;;  %v19511_v12 = vld [vmem:[#allocation58_spill] sm:$0xff] }
 0x6ad   :  { %10035 = vmatprep.subr.bf16.mxu0 %v18770_v16 }
 0x6ae   :  { %10026 = vmatpush3.bf16.msra.mxu1 %v19505_v2 }
 0x6af   :  { %9613 = vmatprep.subr.bf16.mxu1 %v19506_v61  ;;  %v19515_v61 = vld [vmem:[#allocation72_spill] sm:$0xff] }
 0x6b0   :  { %10036 = vmatpush3.bf16.msra.mxu0 %v19262_v6  ;;  %v19509_v6 = vld [vmem:[#allocation68_spill] sm:$0xff] }
 0x6b1   :  { %10028 = vmatmul.mubr.msk.bf16.vlgmr.msra.gmra.mrb[108].mxu1 %vm2142_vm4, %v16639_v24  ;;  %5968 = vmatprep.subr.bf16.mxu0 %v15963_v32  ;;  %v19508_v32 = vld [vmem:[#allocation6_spill] sm:$0xff] }
 0x6b2   :  { %9614 = vmatpush3.bf16.msra.mxu1 %v19507_v43  ;;  %6082 = vmatprep.mubr.bf16.mxu1 %v16133_v34  ;;  %v19510_v43 = vld [vmem:[#allocation85_spill] sm:$0xff] }
 0x6b3   :  { %10038 = vmatmul.mubr.msk.bf16.vlgmr.msra.gmra.mrb[104].mxu0 %vm2142_vm4, %v15888_v8  ;;  %9615 = vmatprep.subr.bf16.mxu1 %v15955_v23  ;;  %v19512_v8 = vld [vmem:[#allocation74_spill] sm:$0xff] }
 0x6b4   :  { %5969 = vmatpush1.bf16.msra.mxu0 %v15989_v13  ;;  %6000 = vmatprep.mubr.bf16.mxu0 %v16133_v34  ;;  %v19513_v23 = vld [vmem:[#allocation114_spill] sm:$0xff] }
 0x6b5   :  { %5970 = vmatprep.subr.bf16.mxu0 %v15996_v48  ;;  %v19514_v13 = vld [vmem:[#allocation86_spill] sm:$0xff] }
 0x6b6   :  { %9616 = vmatpush3.bf16.msra.mxu1 %v15969_v57  ;;  %v19516_v48 = vld [vmem:[#allocation82_spill] sm:$0xff]  ;;  %v19517_v57 = vld [vmem:[#allocation103_spill] sm:$0xff] }
 0x6b7   :  { %9617 = vmatprep.subr.bf16.mxu1 %v15980_v39 }
 0x6b8   :  { %5971 = vmatpush1.bf16.msra.mxu0 %v19508_v32  ;;  %v19518_v32 = vld [vmem:[#allocation115_spill] sm:$0xff] }
 0x6b9   :  { %5972 = vmatprep.subr.bf16.mxu0 %v19509_v6  ;;  %v19519_v6 = vld [vmem:[#allocation112_spill] sm:$0xff] }
 0x6ba   :  { %9618 = vmatpush3.bf16.msra.mxu1 %v19510_v43 }
 0x6bb   :  { %9619 = vmatprep.subr.bf16.mxu1 %v19511_v12  ;;  %v19521_v12 = vld [vmem:[#allocation113_spill] sm:$0xff] }
 0x6bc   :  { %5973 = vmatpush1.bf16.msra.mxu0 %v19512_v8 }
 0x6bd   :  { %5974 = vmatprep.subr.bf16.mxu0 %v19513_v23  ;;  %v19522_v23 = vld [vmem:[#allocation88_spill] sm:$0xff] }
 0x6be   :  { %9620 = vmatpush3.bf16.msra.mxu1 %v19514_v13 }
 0x6bf   :  { %9621 = vmatprep.subr.bf16.mxu1 %v19515_v61  ;;  %v19523_v61 = vld [vmem:[#allocation5_spill] sm:$0xff] }
 0x6c0   :  { %5975 = vmatpush1.bf16.msra.mxu0 %v19516_v48 }
 0x6c1   :  { %5976 = vmatprep.subr.bf16.mxu0 %v19517_v57  ;;  %v19525_v57 = vld [vmem:[#allocation83_spill] sm:$0xff] }
 0x6c2   :  { %v5203_v39 = vpop.f32.mrb[80].mxu0  ;;  %9622 = vmatpush3.bf16.msra.mxu1 %v19518_v32  ;;  %v19527_v32 = vld [vmem:[#allocation18_spill] sm:$0xff] }
 0x6c3   :  { %v10165_v2 = vadd.f32 %v5203_v39, %v19519_v6  ;;  %v5205_v43 = vpop.f32.mrb[81].mxu0  ;;  %9623 = vmatprep.subr.bf16.mxu1 %v19520_v26  ;;  %v19528_v39 = vld [vmem:[#allocation14_spill] sm:$0xff]  ;;  %v19529_v6 = vld [vmem:[#allocation92_spill] sm:$0xff] }
 0x6c4   :  { %v10166_v8 = vadd.f32 %v5205_v43, %v19521_v12  ;;  %v5207_v36 = vpop.f32.mrb[82].mxu0  ;;  %5977 = vmatpush1.bf16.msra.mxu0 %v19522_v23  ;;  %v1559_v26 = vadd.f32 %v19529_v6, %v19528_v39  ;;  %v19533_v23 = vld [vmem:[#allocation109_spill] sm:$0xff]  ;;  %v19537_v6 = vld [vmem:[#allocation138_spill] sm:$0xff] }
 0x6c5   :  { %v5293_v13 = vmax.f32 %v10165_v2, 0.0  ;;  %v5208_v27 = vpop.f32.mrb[83].mxu0  ;;  %5978 = vmatprep.subr.bf16.mxu0 %v19523_v61  ;;  %v19532_v36 = vld [vmem:[#allocation135_spill] sm:$0xff]  ;;  %v19534_v12 = vld [vmem:[#allocation101_spill] sm:$0xff] }
 0x6c6   :  { %v5294_v48 = vmax.f32 %v10166_v8, 0.0  ;;  %9624 = vmatpush3.bf16.msra.mxu1 %v19524_v51 }
 0x6c7   :  { %v16703_v56 = vadd.f32 %v5293_v13, %v19525_v57  ;;  %9625 = vmatprep.subr.bf16.mxu1 %v19527_v32  ;;  %v19535_v13 = vld [vmem:[#allocation102_spill] sm:$0xff]  ;;  %v19536_v32 = vld [vmem:[#allocation137_spill] sm:$0xff] }
 0x6c8   :  { %v16709_v43 = vadd.f32 %v5294_v48, %v19530_v55  ;;  %5979 = vmatpush1.bf16.msra.mxu0 %v19532_v36  ;;  %v9525_v2 = vpop.f32.mrb[104].mxu1  ;;  %v19538_v48 = vld [vmem:[#allocation143_spill] sm:$0xff] }
 0x6c9   :  { %19526 = vst [vmem:[#allocation96_spill] sm:$0xff] %v16703_v56  ;;  %v9526_v27 = vpop.f32.mrb[105].mxu1  ;;  %5980 = vmatprep.subr.bf16.mxu0 %v19533_v23  ;;  %v1604_v56 = vmax.f32 %v1559_v26, 0.0  ;;  %v19539_v23 = vld [vmem:[#allocation144_spill] sm:$0xff]  ;;  %v19540_v26 = vld [vmem:[#allocation147_spill] sm:$0xff] }
 0x6ca   :  { %19531 = vst [vmem:[#allocation83_spill] sm:$0xff] %v16709_v43  ;;  %v16713_v8 = vadd.f32 %v9526_v27, %v9525_v2  ;;  %v9528_v61 = vpop.f32.mrb[106].mxu1  ;;  %9626 = vmatpush3.bf16.msra.mxu1 %v19534_v12 }
 0x6cb   :  { %v9529_v57 = vpop.f32.mrb[107].mxu1  ;;  %9627 = vmatprep.subr.bf16.mxu1 %v19535_v13  ;;  %v16722_v2 = vpack.c.bf16 %v1604_v56, %v1604_v56  ;;  %v19543_v56 = vld [vmem:[#allocation149_spill] sm:$0xff] }
 0x6cc   :  { %5981 = vmatpush1.bf16.msra.mxu0 %v19536_v32 }
 0x6cd   :  { %5982 = vmatprep.subr.bf16.mxu0 %v19537_v6  ;;  %v19541_v6 = vld [vmem:[#allocation31_spill] sm:$0xff] }
 0x6ce   :  { %v5284_v55 = vpop.f32.mrb[84].mxu0  ;;  %9628 = vmatpush3.bf16.msra.mxu1 %v19538_v48 }
 0x6cf   :  { %v10170_v36 = vadd.f32 %v16405_v0, %v5284_v55  ;;  %v9999_v43 = vpop.f32.mrb[85].mxu0  ;;  %9639 = vmatprep.subr.bf16.mxu1 %v19539_v23  ;;  %v19548_v55 = vld [vmem:[#allocation152_spill] sm:$0xff] }
 0x6d0   :  { %v5287_v61 = vpop.f32.mrb[86].mxu0  ;;  %5983 = vmatpush1.bf16.msra.mxu0 %v15451_v29  ;;  %v19542_v29 = vld [vmem:[#allocation148_spill] sm:$0xff]  ;;  %v19545_v43 = vld [vmem:[#allocation141_spill] sm:$0xff] }
 0x6d1   :  { %v5295_v27 = vmax.f32 %v10170_v36, 0.0  ;;  %v10000_v57 = vpop.f32.mrb[87].mxu0  ;;  %6083 = vmatmul.mubr.bf16.vlgmr.msra.gmra.mrb[112].mxu1 %v16285_v37  ;;  %5984 = vmatprep.subr.bf16.mxu0 %v15458_v58  ;;  %v19544_v58 = vld [vmem:[#allocation150_spill] sm:$0xff]  ;;  %v19549_v61 = vld [vmem:[#allocation145_spill] sm:$0xff] }
 0x6d2   :  { %9640 = vmatpush3.bf16.msra.mxu1 %v19540_v26  ;;  %6250 = vmatprep.mubr.bf16.mxu1 %v16722_v2  ;;  %v19546_v36 = vld [vmem:[#allocation142_spill] sm:$0xff]  ;;  %v19553_v57 = vld [vmem:[#allocation116_spill] sm:$0xff] }
 0x6d3   :  { %v16730_v0 = vadd.f32 %v5295_v27, %v19541_v6  ;;  %9641 = vmatprep.subr.bf16.mxu1 %v16158_v50  ;;  %v19547_v6 = vld [vmem:[#allocation151_spill] sm:$0xff] }
 0x6d4   :  { %5985 = vmatpush1.bf16.msra.mxu0 %v15467_v33  ;;  %v19550_v33 = vld [vmem:[#allocation146_spill] sm:$0xff]  ;;  %v19552_v27 = vld [vmem:[#allocation23_spill] sm:$0xff] }
 0x6d5   :  { %5986 = vmatprep.subr.bf16.mxu0 %v15473_v20  ;;  %v19551_v20 = vld [vmem:[#allocation17_spill] sm:$0xff] }
 0x6d6   :  { %9642 = vmatpush3.bf16.msra.mxu1 %v16166_v30 }
 0x6d7   :  { %9643 = vmatprep.subr.bf16.mxu1 %v19542_v29 }
 0x6d8   :  { %5987 = vmatpush1.bf16.msra.mxu0 %v19543_v56  ;;  %v19554_v56 = vld [vmem:[#allocation117_spill] sm:$0xff] }
 0x6d9   :  { %5988 = vmatprep.subr.bf16.mxu0 %v19544_v58  ;;  %v16752_v58 = vld [vmem:[%s18133_s4 + $0x2e8] ss:$12 sps:$4 sm:$0xff]  }
 0x6da   :  { %9644 = vmatpush3.bf16.msra.mxu1 %v19545_v43  ;;  %19555 = vst [vmem:[#allocation14_spill] sm:$0xff] %v16752_v58 }
 0x6db   :  { %9645 = vmatprep.subr.bf16.mxu1 %v19546_v36 }
 0x6dc   :  { %5989 = vmatpush1.bf16.msra.mxu0 %v19547_v6  ;;  %v19564_v6 = vld [vmem:[#allocation70_spill] sm:$0xff] }
 0x6dd   :  { %5990 = vmatprep.subr.bf16.mxu0 %v19548_v55  ;;  %v16758_v55 = vld [vmem:[%s18133_s4 + $0x304] ss:$12 sps:$4 sm:$0xff]  }
 0x6de   :  { %9646 = vmatpush3.bf16.msra.mxu1 %v19549_v61  ;;  %19556 = vst [vmem:[#allocation92_spill] sm:$0xff] %v16758_v55 }
 0x6df   :  { %9647 = vmatprep.subr.bf16.mxu1 %v19550_v33 }
 0x6e0   :  { %5991 = vmatpush1.bf16.msra.mxu0 %v19551_v20  ;;  %v19557_v20 = vld [vmem:[#allocation118_spill] sm:$0xff] }
 0x6e1   :  { %5992 = vmatprep.subr.bf16.mxu0 %v19552_v27  ;;  %v19558_v27 = vld [vmem:[#allocation91_spill] sm:$0xff] }
 0x6e2   :  { %9648 = vmatpush3.bf16.msra.mxu1 %v19553_v57  ;;  %v1557_v57 = vadd.f32 %v19558_v27, %v19200_v38  ;;  %v16782_v27 = vld [vmem:[%s18133_s4 + $0x318] ss:$12 sps:$4 sm:$0xff]  }
 0x6e3   :  { %9649 = vmatprep.subr.bf16.mxu1 %v19554_v56  ;;  %v16768_v56 = vld [vmem:[%s18133_s4 + $0x300] ss:$12 sps:$4 sm:$0xff]   ;;  %19561 = vst [vmem:[#allocation102_spill] sm:$0xff] %v16782_v27 }
 0x6e4   :  { %5993 = vmatpush1.bf16.msra.mxu0 %v16752_v58  ;;  %19559 = vst [vmem:[#allocation55_spill] sm:$0xff] %v16768_v56  ;;  %v16774_v58 = vld [vmem:[%s18133_s4 + $0x31c] ss:$12 sps:$4 sm:$0xff]  }
 0x6e5   :  { %5994 = vmatprep.subr.bf16.mxu0 %v16758_v55  ;;  %19560 = vst [vmem:[#allocation101_spill] sm:$0xff] %v16774_v58  ;;  %v1603_v55 = vmax.f32 %v1557_v57, 0.0 }
 0x6e6   :  { %9650 = vmatpush3.bf16.msra.mxu1 %v19557_v20 }
 0x6e7   :  { %9651 = vmatprep.subr.bf16.mxu1 %v16260_v18  ;;  %v19563_v18 = vld [vmem:[#allocation122_spill] sm:$0xff]  ;;  %v16792_v57 = vpack.c.bf16 %v1603_v55, %v1603_v55  ;;  %v19576_v55 = vld [vmem:[#allocation9_spill] sm:$0xff] }
 0x6e8   :  { %5995 = vmatpush1.bf16.msra.mxu0 %v16768_v56  ;;  %v16788_v56 = vld [vmem:[%s18133_s4 + $0x334] ss:$12 sps:$4 sm:$0xff]  }
 0x6e9   :  { %5996 = vmatprep.subr.bf16.mxu0 %v16774_v58  ;;  %19562 = vst [vmem:[#allocation137_spill] sm:$0xff] %v16788_v56 }
 0x6ea   :  { %9652 = vmatpush3.bf16.msra.mxu1 %v16268_v59  ;;  %v10173_v59 = vadd.f32 %v16713_v8, %v13896_v14  ;;  %v19573_v8 = vld [vmem:[#allocation104_spill] sm:$0xff] }
 0x6eb   :  { %9653 = vmatprep.subr.bf16.mxu1 %v16274_v62 }
 0x6ec   :  { %5997 = vmatpush1.bf16.msra.mxu0 %v16782_v27 }
 0x6ed   :  { %5998 = vmatprep.subr.bf16.mxu0 %v16788_v56 }
 0x6ee   :  { %v9551_v58 = vpop.f32.mrb[88].mxu0  ;;  %9654 = vmatpush3.bf16.msra.mxu1 %v19563_v18 }
 0x6ef   :  { %v9552_v62 = vpop.f32.mrb[89].mxu0  ;;  %6307 = vmatprep.subr.bf16.mxu1 %v15508_v5  ;;  %v19565_v5 = vld [vmem:[#allocation76_spill] sm:$0xff] }
 0x6f0   :  { %v9553_v38 = vadd.f32 %v9552_v62, %v9551_v58  ;;  %v9554_v27 = vpop.f32.mrb[90].mxu0  ;;  %5999 = vmatpush1.bf16.msra.mxu0 %v16298_v45  ;;  %v19572_v62 = vld [vmem:[#allocation4_spill] sm:$0xff] }
 0x6f1   :  { %v9555_v20 = vpop.f32.mrb[91].mxu0  ;;  %6251 = vmatmul.mubr.bf16.vlgmr.msra.gmra.mrb[116].mxu1 %v16792_v57  ;;  %6009 = vmatprep.subr.bf16.mxu0 %v16304_v44  ;;  %v19574_v58 = vld [vmem:[#allocation64_spill] sm:$0xff]  ;;  %v19578_v27 = vld [vmem:[#allocation126_spill] sm:$0xff] }
 0x6f2   :  { %v10174_v56 = vadd.f32 %v10173_v59, %v9553_v38  ;;  %6308 = vmatpush1.bf16.msra.mxu1 %v19564_v6  ;;  %6339 = vmatprep.mubr.bf16.mxu1 %v16133_v34  ;;  %v19566_v38 = vld [vmem:[#allocation78_spill] sm:$0xff]  ;;  %v19571_v59 = vld [vmem:[#allocation124_spill] sm:$0xff]  ;;  %v19575_v6 = vld [vmem:[#allocation125_spill] sm:$0xff] }
 0x6f3   :  { %6001 = vmatmul.mubr.bf16.vlgmr.msra.gmra.mrb[96].mxu0 %v16285_v37  ;;  %6309 = vmatprep.subr.bf16.mxu1 %v19565_v5  ;;  %v19577_v20 = vld [vmem:[#allocation105_spill] sm:$0xff]  ;;  %v19579_v5 = vld [vmem:[#allocation155_spill] sm:$0xff] }
 0x6f4   :  { %6010 = vmatpush1.bf16.msra.mxu0 %v16313_v22  ;;  %6041 = vmatprep.mubr.bf16.mxu0 %v18790_v21 }
 0x6f5   :  { %6011 = vmatprep.subr.bf16.mxu0 %v16320_v46 }
 0x6f6   :  { %6310 = vmatpush1.bf16.msra.mxu1 %v15534_v63  ;;  %v19567_v63 = vld [vmem:[#allocation84_spill] sm:$0xff] }
 0x6f7   :  { %6311 = vmatprep.subr.bf16.mxu1 %v15540_v53  ;;  %v19568_v53 = vld [vmem:[#allocation123_spill] sm:$0xff] }
 0x6f8   :  { %6012 = vmatpush1.bf16.msra.mxu0 %v16328_v31 }
 0x6f9   :  { %8976 = vmatprep.subr.msk.bf16.mxu0 %vm2146_vm3, %v16334_v35 }
 0x6fa   :  { %6312 = vmatpush1.bf16.msra.mxu1 %v15553_v25  ;;  %v19569_v25 = vld [vmem:[#allocation94_spill] sm:$0xff] }
 0x6fb   :  { %6313 = vmatprep.subr.bf16.mxu1 %v15559_v19  ;;  %v19570_v19 = vld [vmem:[#allocation95_spill] sm:$0xff] }
 0x6fc   :  { %6014 = vmatpush1.bf16.msra.mxu0 %v13520_v4 }
 0x6fd   :  { %10041 = vmatprep.subr.bf16.mxu0 %v18770_v16 }
 0x6fe   :  { %6314 = vmatpush1.bf16.msra.mxu1 %v19566_v38 }
 0x6ff   :  { %8977 = vmatmul.mubr.msk.bf16.vlgmr.msra.gmra.mrb[96].mxu0 %vm2142_vm4, %v16639_v24  ;;  %6315 = vmatprep.subr.bf16.mxu1 %v19567_v63  ;;  %v19580_v63 = vld [vmem:[#allocation99_spill] sm:$0xff] }
 0x700   :  { %10042 = vmatpush3.bf16.msra.mxu0 %v19568_v53  ;;  %10047 = vmatprep.mubr.msk.bf16.mxu0 %vm11410_vm2, %v18770_v16 }
 0x701   :  { %10043 = vmatprep.subr.bf16.mxu0 %v18770_v16 }
 0x702   :  { %6316 = vmatpush1.bf16.msra.mxu1 %v19569_v25 }
 0x703   :  { %6317 = vmatprep.subr.bf16.mxu1 %v19570_v19  ;;  %v19581_v19 = vld [vmem:[#allocation12_spill] sm:$0xff] }
 0x704   :  { %10044 = vmatpush3.bf16.msra.mxu0 %v19571_v59 }
 0x705   :  { %10045 = vmatprep.subr.bf16.mxu0 %v18770_v16 }
 0x706   :  { %6318 = vmatpush1.bf16.msra.mxu1 %v19572_v62 }
 0x707   :  { %6319 = vmatprep.subr.bf16.mxu1 %v19573_v8 }
 0x708   :  { %10046 = vmatpush3.bf16.msra.mxu0 %v19574_v58 }
 0x709   :  { %6136 = vmatprep.subr.bf16.mxu0 %v19575_v6  ;;  %v19583_v6 = vld [vmem:[#allocation139_spill] sm:$0xff] }
 0x70a   :  { %6320 = vmatpush1.bf16.msra.mxu1 %v19576_v55 }
 0x70b   :  { %10048 = vmatmul.mubr.msk.bf16.vlgmr.msra.gmra.mrb[104].mxu0 %vm2142_vm4, %v16639_v24  ;;  %6321 = vmatprep.subr.bf16.mxu1 %v19577_v20  ;;  %v19582_v20 = vld [vmem:[#allocation136_spill] sm:$0xff] }
 0x70c   :  { %6137 = vmatpush1.bf16.msra.mxu0 %v19578_v27  ;;  %6168 = vmatprep.mubr.bf16.mxu0 %v16722_v2 }
 0x70d   :  { %6138 = vmatprep.subr.bf16.mxu0 %v19579_v5  ;;  %v19584_v5 = vld [vmem:[#allocation156_spill] sm:$0xff] }
 0x70e   :  { %v9577_v38 = vpop.f32.mrb[92].mxu0  ;;  %6322 = vmatpush1.bf16.msra.mxu1 %v19580_v63  ;;  %v19585_v63 = vld [vmem:[#allocation140_spill] sm:$0xff] }
 0x70f   :  { %v9578_v25 = vpop.f32.mrb[93].mxu0  ;;  %6323 = vmatprep.subr.bf16.mxu1 %v19581_v19  ;;  %v19586_v19 = vld [vmem:[#allocation11_spill] sm:$0xff] }
 0x710   :  { %v9579_v62 = vadd.f32 %v9578_v25, %v9577_v38  ;;  %v9580_v8 = vpop.f32.mrb[94].mxu0  ;;  %6139 = vmatpush1.bf16.msra.mxu0 %v16395_v52  ;;  %v19587_v38 = vld [vmem:[#allocation127_spill] sm:$0xff]  ;;  %v19588_v25 = vld [vmem:[#allocation128_spill] sm:$0xff] }
 0x711   :  { %v9581_v55 = vpop.f32.mrb[95].mxu0  ;;  %6140 = vmatprep.subr.bf16.mxu0 %v16401_v47  ;;  %v19589_v8 = vld [vmem:[#allocation8_spill] sm:$0xff] }
 0x712   :  { %6324 = vmatpush1.bf16.msra.mxu1 %v19582_v20  ;;  %v16844_v27 = vadd.f32 %v10174_v56, %v9579_v62  ;;  %v19590_v55 = vld [vmem:[#allocation153_spill] sm:$0xff]  ;;  %v19591_v56 = vld [vmem:[#allocation154_spill] sm:$0xff] }
 0x713   :  { %6325 = vmatprep.subr.bf16.mxu1 %v19583_v6  ;;  %v19592_v6 = vld [vmem:[#allocation10_spill] sm:$0xff]  ;;  %v19593_v62 = vld [vmem:[#allocation25_spill] sm:$0xff] }
 0x714   :  { %6141 = vmatpush1.bf16.msra.mxu0 %v16411_v42  ;;  %v19594_v20 = vld [vmem:[#allocation26_spill] sm:$0xff] }
 0x715   :  { %6142 = vmatprep.subr.bf16.mxu0 %v19584_v5 }
 0x716   :  { %6326 = vmatpush1.bf16.msra.mxu1 %v19585_v63  ;;  %v19595_v63 = vld [vmem:[#allocation33_spill] sm:$0xff] }
 0x717   :  { %6327 = vmatprep.subr.bf16.mxu1 %v19586_v19  ;;  %v19596_v19 = vld [vmem:[#allocation28_spill] sm:$0xff] }
 0x718   :  { %6143 = vmatpush1.bf16.msra.mxu0 %v19587_v38 }
 0x719   :  { %6144 = vmatprep.subr.bf16.mxu0 %v19588_v25 }
 0x71a   :  { %6328 = vmatpush1.bf16.msra.mxu1 %v19589_v8  ;;  %v19597_v8 = vld [vmem:[#allocation29_spill] sm:$0xff] }
 0x71b   :  { %6329 = vmatprep.subr.bf16.mxu1 %v19590_v55  ;;  %v16874_v55 = vld [vmem:[%s18133_s4 + $0x450] ss:$12 sps:$4 sm:$0xff]  }
 0x71c   :  { %6145 = vmatpush1.bf16.msra.mxu0 %v16439_v3  ;;  %19598 = vst [vmem:[#allocation143_spill] sm:$0xff] %v16874_v55 }
 0x71d   :  { %6146 = vmatprep.subr.bf16.mxu0 %v16445_v9 }
 0x71e   :  { %6330 = vmatpush1.bf16.msra.mxu1 %v19591_v56  ;;  %v19599_v56 = vld [vmem:[#allocation35_spill] sm:$0xff] }
 0x71f   :  { %6331 = vmatprep.subr.bf16.mxu1 %v19592_v6  ;;  %v19601_v6 = vld [vmem:[#allocation57_spill] sm:$0xff] }
 0x720   :  { %6147 = vmatpush1.bf16.msra.mxu0 %v16453_v49 }
 0x721   :  { %6148 = vmatprep.subr.bf16.mxu0 %v16459_v54 }
 0x722   :  { %6332 = vmatpush1.bf16.msra.mxu1 %v19593_v62  ;;  %v19602_v62 = vld [vmem:[#allocation19_spill] sm:$0xff] }
 0x723   :  { %6333 = vmatprep.subr.bf16.mxu1 %v19594_v20  ;;  %v19603_v20 = vld [vmem:[#allocation39_spill] sm:$0xff] }
 0x724   :  { %6149 = vmatpush1.bf16.msra.mxu0 %v16467_v60 }
 0x725   :  { %6150 = vmatprep.subr.bf16.mxu0 %v16473_v7 }
 0x726   :  { %6334 = vmatpush1.bf16.msra.mxu1 %v19595_v63  ;;  %v19605_v63 = vld [vmem:[#allocation20_spill] sm:$0xff] }
 0x727   :  { %6335 = vmatprep.subr.bf16.mxu1 %v19596_v19  ;;  %v19606_v19 = vld [vmem:[#allocation22_spill] sm:$0xff] }
 0x728   :  { %6151 = vmatpush1.bf16.msra.mxu0 %v16481_v1 }
 0x729   :  { %6152 = vmatprep.subr.bf16.mxu0 %v16487_v28 }
 0x72a   :  { %6336 = vmatpush1.bf16.msra.mxu1 %v15729_v40  ;;  %v19600_v40 = vld [vmem:[#allocation30_spill] sm:$0xff] }
 0x72b   :  { %6337 = vmatprep.subr.bf16.mxu1 %v19597_v8  ;;  %v19607_v8 = vld [vmem:[#allocation56_spill] sm:$0xff] }
 0x72c   :  { %6153 = vmatpush1.bf16.msra.mxu0 %v16874_v55  ;;  %v19670_v55 = vld [vmem:[#allocation5_spill] sm:$0xff] }
 0x72d   :  { %6154 = vmatprep.subr.bf16.mxu0 %v16497_v15 }
 0x72e   :  { %6338 = vmatpush1.bf16.msra.mxu1 %v15743_v10  ;;  %v19604_v10 = vld [vmem:[#allocation37_spill] sm:$0xff] }
 0x72f   :  { %6348 = vmatprep.subr.bf16.mxu1 %v19599_v56  ;;  %v19608_v56 = vld [vmem:[#allocation59_spill] sm:$0xff] }
 0x730   :  { %6155 = vmatpush1.bf16.msra.mxu0 %v16506_v11 }
 0x731   :  { %6340 = vmatmul.mubr.bf16.vlgmr.msra.gmra.mrb[120].mxu1 %v16285_v37  ;;  %6156 = vmatprep.subr.bf16.mxu0 %v16512_v41  ;;  %v19635_v41 = vld [vmem:[#allocation21_spill] sm:$0xff] }
 0x732   :  { %6349 = vmatpush1.bf16.msra.mxu1 %v19600_v40  ;;  %6380 = vmatprep.mubr.bf16.mxu1 %v18790_v21  ;;  %v19609_v40 = vld [vmem:[#allocation89_spill] sm:$0xff] }
 0x733   :  { %6350 = vmatprep.subr.bf16.mxu1 %v19601_v6  ;;  %v19610_v6 = vld [vmem:[#allocation93_spill] sm:$0xff] }
 0x734   :  { %6157 = vmatpush1.bf16.msra.mxu0 %v16521_v17  ;;  %v19619_v17 = vld [vmem:[#allocation67_spill] sm:$0xff] }
 0x735   :  { %6158 = vmatprep.subr.bf16.mxu0 %v19602_v62  ;;  %v19611_v62 = vld [vmem:[#allocation63_spill] sm:$0xff] }
 0x736   :  { %6351 = vmatpush1.bf16.msra.mxu1 %v19603_v20  ;;  %v19612_v20 = vld [vmem:[#allocation41_spill] sm:$0xff] }
 0x737   :  { %8982 = vmatprep.subr.msk.bf16.mxu1 %vm2146_vm3, %v19604_v10  ;;  %v19613_v10 = vld [vmem:[#allocation87_spill] sm:$0xff] }
 0x738   :  { %6159 = vmatpush1.bf16.msra.mxu0 %v19605_v63  ;;  %v19615_v63 = vld [vmem:[#allocation38_spill] sm:$0xff] }
 0x739   :  { %6160 = vmatprep.subr.bf16.mxu0 %v19606_v19  ;;  %v19614_v19 = vld [vmem:[#allocation97_spill] sm:$0xff] }
 0x73a   :  { %6353 = vmatpush1.bf16.msra.mxu1 %v19607_v8  ;;  %v19618_v8 = vld [vmem:[#allocation61_spill] sm:$0xff] }
 0x73b   :  { %9665 = vmatprep.subr.bf16.mxu1 %v19608_v56  ;;  %v19616_v56 = vld [vmem:[#allocation60_spill] sm:$0xff] }
 0x73c   :  { %6161 = vmatpush1.bf16.msra.mxu0 %v19609_v40  ;;  %v19617_v40 = vld [vmem:[#allocation16_spill] sm:$0xff] }
 0x73d   :  { %8983 = vmatmul.mubr.msk.bf16.vlgmr.msra.gmra.mrb[120].mxu1 %vm2142_vm4, %v16639_v24  ;;  %6162 = vmatprep.subr.bf16.mxu0 %v19610_v6  ;;  %v19620_v6 = vld [vmem:[#allocation43_spill] sm:$0xff] }
 0x73e   :  { %9666 = vmatpush3.bf16.msra.mxu1 %v19611_v62  ;;  %6421 = vmatprep.mubr.bf16.mxu1 %v16133_v34  ;;  %v19621_v62 = vld [vmem:[#allocation66_spill] sm:$0xff] }
 0x73f   :  { %9667 = vmatprep.subr.bf16.mxu1 %v19612_v20  ;;  %v19622_v34 = vld [vmem:[#allocation98_spill] sm:$0xff] }
 0x740   :  { %6163 = vmatpush1.bf16.msra.mxu0 %v19613_v10  ;;  %v19623_v20 = vld [vmem:[#allocation62_spill] sm:$0xff]  ;;  %v19632_v10 = vld [vmem:[#allocation47_spill] sm:$0xff] }
 0x741   :  { %6164 = vmatprep.subr.bf16.mxu0 %v19614_v19  ;;  %v19624_v19 = vld [vmem:[#allocation40_spill] sm:$0xff] }
 0x742   :  { %9668 = vmatpush3.bf16.msra.mxu1 %v19615_v63  ;;  %v19625_v63 = vld [vmem:[#allocation110_spill] sm:$0xff] }
 0x743   :  { %9669 = vmatprep.subr.bf16.mxu1 %v19616_v56  ;;  %v19626_v56 = vld [vmem:[#allocation34_spill] sm:$0xff] }
 0x744   :  { %6165 = vmatpush1.bf16.msra.mxu0 %v19617_v40 }
 0x745   :  { %6166 = vmatprep.subr.bf16.mxu0 %v19618_v8  ;;  %v19627_v8 = vld [vmem:[#allocation90_spill] sm:$0xff] }
 0x746   :  { %9670 = vmatpush3.bf16.msra.mxu1 %v19619_v17  ;;  %v1598_v40 = vadd.f32 %v19627_v8, %v19626_v56  ;;  %v19628_v17 = vld [vmem:[#allocation111_spill] sm:$0xff]  ;;  %v19636_v8 = vld [vmem:[#allocation73_spill] sm:$0xff] }
 0x747   :  { %9671 = vmatprep.subr.bf16.mxu1 %v19620_v6  ;;  %v19629_v6 = vld [vmem:[#allocation71_spill] sm:$0xff] }
 0x748   :  { %6167 = vmatpush1.bf16.msra.mxu0 %v19621_v62  ;;  %v19630_v62 = vld [vmem:[#allocation45_spill] sm:$0xff] }
 0x749   :  { %6177 = vmatprep.subr.bf16.mxu0 %v19622_v34  ;;  %v19631_v34 = vld [vmem:[#allocation48_spill] sm:$0xff] }
 0x74a   :  { %9672 = vmatpush3.bf16.msra.mxu1 %v19623_v20  ;;  %v1605_v20 = vmax.f32 %v1598_v40, 0.0  ;;  %v19638_v40 = vld [vmem:[#allocation46_spill] sm:$0xff] }
 0x74b   :  { %6169 = vmatmul.mubr.bf16.vlgmr.msra.gmra.mrb[96].mxu0 %v16792_v57  ;;  %9673 = vmatprep.subr.bf16.mxu1 %v19624_v19  ;;  %v19633_v19 = vld [vmem:[#allocation65_spill] sm:$0xff] }
 0x74c   :  { %6178 = vmatpush1.bf16.msra.mxu0 %v19625_v63  ;;  %6209 = vmatprep.mubr.bf16.mxu0 %v18790_v21  ;;  %v19634_v63 = vld [vmem:[#allocation42_spill] sm:$0xff]  ;;  %v16928_v11 = vpack.c.bf16 %v1605_v20, %v1605_v20  ;;  %v19641_v20 = vld [vmem:[#allocation44_spill] sm:$0xff] }
 0x74d   :  { %6179 = vmatprep.subr.bf16.mxu0 %v19628_v17 }
 0x74e   :  { %9674 = vmatpush3.bf16.msra.mxu1 %v19629_v6  ;;  %v19640_v6 = vld [vmem:[#allocation157_spill] sm:$0xff] }
 0x74f   :  { %9675 = vmatprep.subr.bf16.mxu1 %v19630_v62  ;;  %v19637_v62 = vld [vmem:[#allocation49_spill] sm:$0xff] }
 0x750   :  { %6180 = vmatpush1.bf16.msra.mxu0 %v19631_v34  ;;  %v19666_v34 = vld [vmem:[#allocation18_spill] sm:$0xff] }
 0x751   :  { %8979 = vmatprep.subr.msk.bf16.mxu0 %vm2146_vm3, %v19632_v10  ;;  %v19662_v10 = vld [vmem:[#allocation80_spill] sm:$0xff] }
 0x752   :  { %9676 = vmatpush3.bf16.msra.mxu1 %v19633_v19  ;;  %v19642_v19 = vld [vmem:[#allocation100_spill] sm:$0xff] }
 0x753   :  { %9677 = vmatprep.subr.bf16.mxu1 %v19634_v63  ;;  %v19639_v63 = vld [vmem:[#allocation69_spill] sm:$0xff] }
 0x754   :  { %6182 = vmatpush1.bf16.msra.mxu0 %v19635_v41  ;;  %v19658_v41 = vld [vmem:[#allocation72_spill] sm:$0xff] }
 0x755   :  { %10051 = vmatprep.subr.bf16.mxu0 %v18770_v16 }
 0x756   :  { %9678 = vmatpush3.bf16.msra.mxu1 %v19636_v8  ;;  %v19643_v8 = vld [vmem:[#allocation50_spill] sm:$0xff] }
 0x757   :  { %8980 = vmatmul.mubr.msk.bf16.vlgmr.msra.gmra.mrb[96].mxu0 %vm2142_vm4, %v16928_v11  ;;  %9679 = vmatprep.subr.bf16.mxu1 %v19637_v62  ;;  %v19644_v62 = vld [vmem:[#allocation77_spill] sm:$0xff] }
 0x758   :  { %10052 = vmatpush3.bf16.msra.mxu0 %v19638_v40  ;;  %10057 = vmatprep.mubr.msk.bf16.mxu0 %vm11410_vm2, %v18770_v16  ;;  %v19653_v40 = vld [vmem:[#allocation85_spill] sm:$0xff] }
 0x759   :  { %10053 = vmatprep.subr.bf16.mxu0 %v18770_v16 }
 0x75a   :  { %9680 = vmatpush3.bf16.msra.mxu1 %v19639_v63  ;;  %v19646_v63 = vld [vmem:[#allocation52_spill] sm:$0xff] }
 0x75b   :  { %10061 = vmatprep.subr.bf16.mxu1 %v18770_v16 }
 0x75c   :  { %10054 = vmatpush3.bf16.msra.mxu0 %v19640_v6  ;;  %v19648_v6 = vld [vmem:[#allocation75_spill] sm:$0xff] }
 0x75d   :  { %6422 = vmatmul.mubr.bf16.vlgmr.msra.gmra.mrb[124].mxu1 %v16285_v37  ;;  %10055 = vmatprep.subr.bf16.mxu0 %v18770_v16  ;;  %v19645_v37 = vld [vmem:[#allocation79_spill] sm:$0xff] }
 0x75e   :  { %10062 = vmatpush3.bf16.msra.mxu1 %v19641_v20  ;;  %10067 = vmatprep.mubr.msk.bf16.mxu1 %vm11410_vm2, %v18770_v16  ;;  %v19647_v20 = vld [vmem:[#allocation36_spill] sm:$0xff] }
 0x75f   :  { %10063 = vmatprep.subr.bf16.mxu1 %v18770_v16 }
 0x760   :  { %10056 = vmatpush3.bf16.msra.mxu0 %v19642_v19  ;;  %v19649_v19 = vld [vmem:[#allocation53_spill] sm:$0xff] }
 0x761   :  { %9691 = vmatprep.subr.bf16.mxu0 %v19643_v8  ;;  %v19650_v8 = vld [vmem:[#allocation51_spill] sm:$0xff] }
 0x762   :  { %10064 = vmatpush3.bf16.msra.mxu1 %v19644_v62  ;;  %v19651_v62 = vld [vmem:[#allocation81_spill] sm:$0xff] }
 0x763   :  { %10058 = vmatmul.mubr.msk.bf16.vlgmr.msra.gmra.mrb[104].mxu0 %vm2142_vm4, %v16928_v11  ;;  %10065 = vmatprep.subr.bf16.mxu1 %v18770_v16 }
 0x764   :  { %9692 = vmatpush3.bf16.msra.mxu0 %v19645_v37  ;;  %6586 = vmatprep.mubr.bf16.mxu0 %v16722_v2  ;;  %v19652_v37 = vld [vmem:[#allocation54_spill] sm:$0xff] }
 0x765   :  { %9693 = vmatprep.subr.bf16.mxu0 %v19646_v63  ;;  %v19654_v63 = vld [vmem:[#allocation58_spill] sm:$0xff] }
 0x766   :  { %10066 = vmatpush3.bf16.msra.mxu1 %v19647_v20  ;;  %v19655_v20 = vld [vmem:[#allocation6_spill] sm:$0xff] }
 0x767   :  { %6472 = vmatprep.subr.bf16.mxu1 %v19648_v6  ;;  %v19656_v6 = vld [vmem:[#allocation68_spill] sm:$0xff] }
 0x768   :  { %9694 = vmatpush3.bf16.msra.mxu0 %v19649_v19  ;;  %v19657_v19 = vld [vmem:[#allocation86_spill] sm:$0xff] }
 0x769   :  { %10068 = vmatmul.mubr.msk.bf16.vlgmr.msra.gmra.mrb[128].mxu1 %vm2142_vm4, %v16639_v24  ;;  %9695 = vmatprep.subr.bf16.mxu0 %v19650_v8  ;;  %v19659_v24 = vld [vmem:[#allocation74_spill] sm:$0xff] }
 0x76a   :  { %6473 = vmatpush1.bf16.msra.mxu1 %v19651_v62  ;;  %6504 = vmatprep.mubr.bf16.mxu1 %v16722_v2  ;;  %v19660_v8 = vld [vmem:[#allocation114_spill] sm:$0xff]  ;;  %v19661_v62 = vld [vmem:[#allocation115_spill] sm:$0xff] }
 0x76b   :  { %6474 = vmatprep.subr.bf16.mxu1 %v19652_v37  ;;  %v19663_v37 = vld [vmem:[#allocation82_spill] sm:$0xff] }
 0x76c   :  { %9696 = vmatpush3.bf16.msra.mxu0 %v19653_v40  ;;  %v19664_v40 = vld [vmem:[#allocation103_spill] sm:$0xff] }
 0x76d   :  { %9697 = vmatprep.subr.bf16.mxu0 %v19654_v63  ;;  %v19665_v63 = vld [vmem:[#allocation112_spill] sm:$0xff] }
 0x76e   :  { %6475 = vmatpush1.bf16.msra.mxu1 %v19655_v20 }
 0x76f   :  { %6476 = vmatprep.subr.bf16.mxu1 %v19656_v6 }
 0x770   :  { %9698 = vmatpush3.bf16.msra.mxu0 %v19657_v19 }
 0x771   :  { %9699 = vmatprep.subr.bf16.mxu0 %v19658_v41  ;;  %v19667_v41 = vld [vmem:[#allocation108_spill] sm:$0xff] }
 0x772   :  { %6477 = vmatpush1.bf16.msra.mxu1 %v19659_v24  ;;  %v1675_v24 = vadd.f32 %v19667_v41, %v19528_v39 }
 0x773   :  { %6478 = vmatprep.subr.bf16.mxu1 %v19660_v8  ;;  %v19668_v8 = vld [vmem:[#allocation113_spill] sm:$0xff] }
 0x774   :  { %9700 = vmatpush3.bf16.msra.mxu0 %v19661_v62 }
 0x775   :  { %9701 = vmatprep.subr.bf16.mxu0 %v19662_v10  ;;  %v19669_v10 = vld [vmem:[#allocation88_spill] sm:$0xff] }
 0x776   :  { %6479 = vmatpush1.bf16.msra.mxu1 %v19663_v37 }
 0x777   :  { %6480 = vmatprep.subr.bf16.mxu1 %v19664_v40 }
 0x778   :  { %9702 = vmatpush3.bf16.msra.mxu0 %v19524_v51  ;;  %v5707_v20 = vpop.f32.mrb[100].mxu1 }
 0x779   :  { %v10171_v6 = vadd.f32 %v5707_v20, %v19665_v63  ;;  %v5709_v19 = vpop.f32.mrb[101].mxu1  ;;  %9703 = vmatprep.subr.bf16.mxu0 %v19666_v34  ;;  %v19671_v34 = vld [vmem:[#allocation96_spill] sm:$0xff] }
 0x77a   :  { %v10172_v17 = vadd.f32 %v5709_v19, %v19668_v8  ;;  %v9603_v62 = vpop.f32.mrb[100].mxu0  ;;  %v5711_v56 = vpop.f32.mrb[102].mxu1  ;;  %6481 = vmatpush1.bf16.msra.mxu1 %v19669_v10  ;;  %v19672_v19 = vld [vmem:[#allocation83_spill] sm:$0xff] }
 0x77b   :  { %v5797_v37 = vmax.f32 %v10171_v6, 0.0  ;;  %v9604_v15 = vpop.f32.mrb[101].mxu0  ;;  %v5712_v40 = vpop.f32.mrb[103].mxu1  ;;  %6482 = vmatprep.subr.bf16.mxu1 %v19670_v55  ;;  %v1720_v56 = vmax.f32 %v1675_v24, 0.0  ;;  %v19673_v6 = vld [vmem:[#allocation135_spill] sm:$0xff] }
 0x77c   :  { %v5798_v51 = vmax.f32 %v10172_v17, 0.0  ;;  %v16986_v28 = vadd.f32 %v9604_v15, %v9603_v62  ;;  %v9606_v20 = vpop.f32.mrb[102].mxu0  ;;  %9704 = vmatpush3.bf16.msra.mxu0 %v19534_v12  ;;  %v19674_v40 = vld [vmem:[#allocation109_spill] sm:$0xff]  ;;  %v19675_v12 = vld [vmem:[#allocation138_spill] sm:$0xff] }
 0x77d   :  { %v16990_v63 = vadd.f32 %v5797_v37, %v19671_v34  ;;  %v9607_v41 = vpop.f32.mrb[103].mxu0  ;;  %9705 = vmatprep.subr.bf16.mxu0 %v19535_v13  ;;  %v17000_v15 = vpack.c.bf16 %v1720_v56, %v1720_v56  ;;  %v17035_v62 = vld [vmem:[%s18133_s4 + $0x2a4] ss:$12 sps:$4 sm:$0xff]  }
 0x77e   :  { %v16994_v10 = vadd.f32 %v5798_v51, %v19672_v19  ;;  %6483 = vmatpush1.bf16.msra.mxu1 %v19673_v6  ;;  %v19679_v37 = vld [vmem:[#allocation152_spill] sm:$0xff]  ;;  %v19681_v20 = vld [vmem:[#allocation117_spill] sm:$0xff]  ;;  %v19685_v41 = vld [vmem:[#allocation27_spill] sm:$0xff] }
 0x77f   :  { %6484 = vmatprep.subr.bf16.mxu1 %v19674_v40  ;;  %v19680_v51 = vld [vmem:[#allocation116_spill] sm:$0xff]  ;;  %v19682_v34 = vld [vmem:[#allocation17_spill] sm:$0xff]  ;;  %v19686_v56 = vld [vmem:[#allocation107_spill] sm:$0xff] }
 0x780   :  { %9706 = vmatpush3.bf16.msra.mxu0 %v19538_v48  ;;  %v1673_v19 = vadd.f32 %v19686_v56, %v19685_v41  ;;  %v19689_v6 = vld [vmem:[#allocation92_spill] sm:$0xff]  ;;  %v11256_v56 = vld [vmem:[%s18133_s4 + $0x18] ss:$12 sps:$4 sm:$0xff]  }
 0x781   :  { %9717 = vmatprep.subr.bf16.mxu0 %v19539_v23  ;;  %v17012_v23 = vld [vmem:[%s18133_s4 + $0x270] ss:$12 sps:$4 sm:$0xff]  }
 0x782   :  { %6485 = vmatpush1.bf16.msra.mxu1 %v19536_v32  ;;  %v19690_v40 = vld [vmem:[#allocation120_spill] sm:$0xff] }
 0x783   :  { %6587 = vmatmul.mubr.bf16.vlgmr.msra.gmra.mrb[108].mxu0 %v16792_v57  ;;  %6486 = vmatprep.subr.bf16.mxu1 %v19675_v12  ;;  %v1719_v12 = vmax.f32 %v1673_v19, 0.0  ;;  %v11257_v19 = vld [vmem:[%s18133_s4 + $0x34] ss:$12 sps:$4 sm:$0xff]  }
 0x784   :  { %9718 = vmatpush3.bf16.msra.mxu0 %v19540_v26  ;;  %6754 = vmatprep.mubr.bf16.mxu0 %v17000_v15  ;;  %v5788_v13 = vpop.f32.mrb[108].mxu1  ;;  %v17018_v26 = vld [vmem:[%s18133_s4 + $0x28c] ss:$12 sps:$4 sm:$0xff]  }
 0x785   :  { %v10176_v55 = vadd.f32 %v16844_v27, %v5788_v13  ;;  %v10029_v17 = vpop.f32.mrb[109].mxu1  ;;  %9719 = vmatprep.subr.bf16.mxu0 %v16158_v50  ;;  %v17029_v27 = vld [vmem:[%s18133_s4 + $0x288] ss:$12 sps:$4 sm:$0xff]  }
 0x786   :  { %v5791_v48 = vpop.f32.mrb[110].mxu1  ;;  %6487 = vmatpush1.bf16.msra.mxu1 %v17012_v23  ;;  %v19691_v13 = vld [vmem:[#allocation121_spill] sm:$0xff] }
 0x787   :  { %v5799_v32 = vmax.f32 %v10176_v55, 0.0  ;;  %v10030_v24 = vpop.f32.mrb[111].mxu1  ;;  %6488 = vmatprep.subr.bf16.mxu1 %v17018_v26  ;;  %v19692_v55 = vld [vmem:[#allocation55_spill] sm:$0xff]  ;;  %v19693_v17 = vld [vmem:[#allocation101_spill] sm:$0xff]  ;;  %v17061_v48 = vpack.c.bf16 %v1719_v12, %v1719_v12 }
 0x788   :  { %9720 = vmatpush3.bf16.msra.mxu0 %v16166_v30  ;;  %v19676_v30 = vld [vmem:[#allocation149_spill] sm:$0xff]  ;;  %v19694_v24 = vld [vmem:[#allocation102_spill] sm:$0xff] }
 0x789   :  { %v17023_v50 = vadd.f32 %v5799_v32, %v16730_v0  ;;  %9721 = vmatprep.subr.bf16.mxu0 %v19542_v29  ;;  %v19677_v0 = vld [vmem:[#allocation150_spill] sm:$0xff]  ;;  %v19678_v29 = vld [vmem:[#allocation151_spill] sm:$0xff]  ;;  %v19696_v12 = vld [vmem:[#allocation125_spill] sm:$0xff] }
 0x78a   :  { %6489 = vmatpush1.bf16.msra.mxu1 %v17029_v27  ;;  %v11253_v32 = vld [vmem:[%s18133_s4 + $0x4] ss:$12 sps:$4 sm:$0xff]  }
 0x78b   :  { %6490 = vmatprep.subr.bf16.mxu1 %v17035_v62 }
 0x78c   :  { %9722 = vmatpush3.bf16.msra.mxu0 %v19545_v43  ;;  %v19683_v43 = vld [vmem:[#allocation23_spill] sm:$0xff] }
 0x78d   :  { %9723 = vmatprep.subr.bf16.mxu0 %v19546_v36  ;;  %v19684_v36 = vld [vmem:[#allocation118_spill] sm:$0xff] }
 0x78e   :  { %6491 = vmatpush1.bf16.msra.mxu1 %v19676_v30  ;;  %v19695_v30 = vld [vmem:[#allocation137_spill] sm:$0xff] }
 0x78f   :  { %6492 = vmatprep.subr.bf16.mxu1 %v19677_v0  ;;  %v11254_v0 = vld [vmem:[%s18133_s4] ss:$12 sps:$4 sm:$0xff]  }
 0x790   :  { %9724 = vmatpush3.bf16.msra.mxu0 %v19549_v61  ;;  %v19687_v61 = vld [vmem:[#allocation119_spill] sm:$0xff] }
 0x791   :  { %9725 = vmatprep.subr.bf16.mxu0 %v19550_v33  ;;  %v19688_v33 = vld [vmem:[#allocation14_spill] sm:$0xff] }
 0x792   :  { %6493 = vmatpush1.bf16.msra.mxu1 %v19678_v29 }
 0x793   :  { %6494 = vmatprep.subr.bf16.mxu1 %v19679_v37  ;;  %v11255_v37 = vld [vmem:[%s18133_s4 + $0x1c] ss:$12 sps:$4 sm:$0xff]  }
 0x794   :  { %9726 = vmatpush3.bf16.msra.mxu0 %v19680_v51  ;;  %v10179_v51 = vadd.f32 %v16986_v28, %v13896_v14  ;;  %v11259_v28 = vld [vmem:[%s18133_s4 + $0x4c] ss:$12 sps:$4 sm:$0xff]  }
 0x795   :  { %9727 = vmatprep.subr.bf16.mxu0 %v19681_v20 }
 0x796   :  { %6495 = vmatpush1.bf16.msra.mxu1 %v19682_v34 }
 0x797   :  { %6496 = vmatprep.subr.bf16.mxu1 %v19683_v43 }
 0x798   :  { %9728 = vmatpush3.bf16.msra.mxu0 %v19684_v36 }
 0x799   :  { %9729 = vmatprep.subr.bf16.mxu0 %v19687_v61  ;;  %v11265_v61 = vld [vmem:[%s18133_s4 + $0x94] ss:$12 sps:$4 sm:$0xff]  }
 0x79a   :  { %6497 = vmatpush1.bf16.msra.mxu1 %v19688_v33 }
 0x79b   :  { %6498 = vmatprep.subr.bf16.mxu1 %v19689_v6 }
 0x79c   :  { %9730 = vmatpush3.bf16.msra.mxu0 %v19690_v40  ;;  %v11267_v40 = vld [vmem:[%s18133_s4 + $0xac] ss:$12 sps:$4 sm:$0xff]  }
 0x79d   :  { %9731 = vmatprep.subr.bf16.mxu0 %v19691_v13  ;;  %v11269_v13 = vld [vmem:[%s18133_s4 + $0xc4] ss:$12 sps:$4 sm:$0xff]  }
 0x79e   :  { %6499 = vmatpush1.bf16.msra.mxu1 %v19692_v55 }
 0x79f   :  { %6500 = vmatprep.subr.bf16.mxu1 %v19693_v17 }
 0x7a0   :  { %9732 = vmatpush3.bf16.msra.mxu0 %v19563_v18 }
 0x7a1   :  { %6811 = vmatprep.subr.bf16.mxu0 %v11253_v32  ;;  %v19697_v32 = vld [vmem:[#allocation126_spill] sm:$0xff] }
 0x7a2   :  { %6501 = vmatpush1.bf16.msra.mxu1 %v19694_v24 }
 0x7a3   :  { %6755 = vmatmul.mubr.bf16.vlgmr.msra.gmra.mrb[112].mxu0 %v17061_v48  ;;  %6502 = vmatprep.subr.bf16.mxu1 %v19695_v30 }
 0x7a4   :  { %6812 = vmatpush1.bf16.msra.mxu0 %v11254_v0  ;;  %6843 = vmatprep.mubr.bf16.mxu0 %v16722_v2  ;;  %v9629_v18 = vpop.f32.mrb[112].mxu1  ;;  %v19698_v0 = vld [vmem:[#allocation155_spill] sm:$0xff] }
 0x7a5   :  { %v9630_v29 = vpop.f32.mrb[113].mxu1  ;;  %6813 = vmatprep.subr.bf16.mxu0 %v11255_v37 }
 0x7a6   :  { %v9631_v20 = vadd.f32 %v9630_v29, %v9629_v18  ;;  %v9632_v34 = vpop.f32.mrb[114].mxu1  ;;  %6503 = vmatpush1.bf16.msra.mxu1 %v16298_v45  ;;  %v11260_v45 = vld [vmem:[%s18133_s4 + $0x48] ss:$12 sps:$4 sm:$0xff]   ;;  %v11270_v18 = vld [vmem:[%s18133_s4 + $0xc0] ss:$12 sps:$4 sm:$0xff]  }
 0x7a7   :  { %v9633_v43 = vpop.f32.mrb[115].mxu1  ;;  %6513 = vmatprep.subr.bf16.mxu1 %v16304_v44  ;;  %v11258_v44 = vld [vmem:[%s18133_s4 + $0x30] ss:$12 sps:$4 sm:$0xff]  }
 0x7a8   :  { %v10180_v36 = vadd.f32 %v10179_v51, %v9631_v20  ;;  %6814 = vmatpush1.bf16.msra.mxu0 %v11256_v56  ;;  %v11271_v51 = vld [vmem:[%s18133_s4 + $0xdc] ss:$12 sps:$4 sm:$0xff]   ;;  %v11272_v56 = vld [vmem:[%s18133_s4 + $0xd8] ss:$12 sps:$4 sm:$0xff]  }
 0x7a9   :  { %6505 = vmatmul.mubr.bf16.vlgmr.msra.gmra.mrb[120].mxu1 %v16792_v57  ;;  %6815 = vmatprep.subr.bf16.mxu0 %v11257_v19 }
 0x7aa   :  { %6514 = vmatpush1.bf16.msra.mxu1 %v16313_v22  ;;  %6545 = vmatprep.mubr.bf16.mxu1 %v18790_v21  ;;  %v11261_v22 = vld [vmem:[%s18133_s4 + $0x64] ss:$12 sps:$4 sm:$0xff]  }
 0x7ab   :  { %6515 = vmatprep.subr.bf16.mxu1 %v16320_v46  ;;  %v11262_v46 = vld [vmem:[%s18133_s4 + $0x60] ss:$12 sps:$4 sm:$0xff]  }
 0x7ac   :  { %6816 = vmatpush1.bf16.msra.mxu0 %v11258_v44  ;;  %v11273_v44 = vld [vmem:[%s18133_s4 + $0xf4] ss:$12 sps:$4 sm:$0xff]  }
 0x7ad   :  { %6817 = vmatprep.subr.bf16.mxu0 %v11259_v28  ;;  %v19700_v28 = vld [vmem:[#allocation143_spill] sm:$0xff] }
 0x7ae   :  { %6516 = vmatpush1.bf16.msra.mxu1 %v16328_v31  ;;  %v11263_v31 = vld [vmem:[%s18133_s4 + $0x7c] ss:$12 sps:$4 sm:$0xff]  }
 0x7af   :  { %8985 = vmatprep.subr.msk.bf16.mxu1 %vm2146_vm3, %v16334_v35  ;;  %v11264_v35 = vld [vmem:[%s18133_s4 + $0x78] ss:$12 sps:$4 sm:$0xff]  }
 0x7b0   :  { %6818 = vmatpush1.bf16.msra.mxu0 %v11260_v45  ;;  %v19701_v45 = vld [vmem:[#allocation130_spill] sm:$0xff] }
 0x7b1   :  { %6819 = vmatprep.subr.bf16.mxu0 %v11261_v22  ;;  %v11287_v22 = vld [vmem:[%s18133_s4 + $0x19c] ss:$12 sps:$4 sm:$0xff]  }
 0x7b2   :  { %6518 = vmatpush1.bf16.msra.mxu1 %v13520_v4 }
 0x7b3   :  { %10071 = vmatprep.subr.bf16.mxu1 %v18770_v16 }
 0x7b4   :  { %6820 = vmatpush1.bf16.msra.mxu0 %v11262_v46  ;;  %v19702_v46 = vld [vmem:[#allocation15_spill] sm:$0xff] }
 0x7b5   :  { %8986 = vmatmul.mubr.msk.bf16.vlgmr.msra.gmra.mrb[120].mxu1 %vm2142_vm4, %v16928_v11  ;;  %6821 = vmatprep.subr.bf16.mxu0 %v11263_v31  ;;  %v19703_v31 = vld [vmem:[#allocation7_spill] sm:$0xff] }
 0x7b6   :  { %10072 = vmatpush3.bf16.msra.mxu1 %v19568_v53  ;;  %10077 = vmatprep.mubr.msk.bf16.mxu1 %vm11410_vm2, %v18770_v16  ;;  %v11266_v53 = vld [vmem:[%s18133_s4 + $0x90] ss:$12 sps:$4 sm:$0xff]  }
 0x7b7   :  { %10073 = vmatprep.subr.bf16.mxu1 %v18770_v16 }
 0x7b8   :  { %6822 = vmatpush1.bf16.msra.mxu0 %v11264_v35  ;;  %v11288_v35 = vld [vmem:[%s18133_s4 + $0x198] ss:$12 sps:$4 sm:$0xff]  }
 0x7b9   :  { %6823 = vmatprep.subr.bf16.mxu0 %v11265_v61  ;;  %v11289_v61 = vld [vmem:[%s18133_s4 + $0x1b4] ss:$12 sps:$4 sm:$0x3f]  }
 0x7ba   :  { %10074 = vmatpush3.bf16.msra.mxu1 %v19571_v59  ;;  %v11268_v59 = vld [vmem:[%s18133_s4 + $0xa8] ss:$12 sps:$4 sm:$0xff]  }
 0x7bb   :  { %10075 = vmatprep.subr.bf16.mxu1 %v18770_v16 }
 0x7bc   :  { %6824 = vmatpush1.bf16.msra.mxu0 %v11266_v53  ;;  %v19704_v53 = vld [vmem:[#allocation134_spill] sm:$0xff] }
 0x7bd   :  { %6825 = vmatprep.subr.bf16.mxu0 %v11267_v40  ;;  %v19705_v40 = vld [vmem:[#allocation19_spill] sm:$0xff] }
 0x7be   :  { %10076 = vmatpush3.bf16.msra.mxu1 %v19574_v58 }
 0x7bf   :  { %6640 = vmatprep.subr.bf16.mxu1 %v19696_v12  ;;  %v19706_v12 = vld [vmem:[#allocation56_spill] sm:$0xff] }
 0x7c0   :  { %6826 = vmatpush1.bf16.msra.mxu0 %v11268_v59  ;;  %v11290_v59 = vld [vmem:[%s18133_s4 + $0xc8] ss:$12 sps:$4 sm:$0xff]  }
 0x7c1   :  { %10078 = vmatmul.mubr.msk.bf16.vlgmr.msra.gmra.mrb[128].mxu1 %vm2142_vm4, %v16928_v11  ;;  %6827 = vmatprep.subr.bf16.mxu0 %v11269_v13  ;;  %v19707_v13 = vld [vmem:[#allocation20_spill] sm:$0xff] }
 0x7c2   :  { %6641 = vmatpush1.bf16.msra.mxu1 %v19697_v32  ;;  %6672 = vmatprep.mubr.bf16.mxu1 %v17000_v15  ;;  %v19708_v32 = vld [vmem:[#allocation22_spill] sm:$0xff] }
 0x7c3   :  { %6642 = vmatprep.subr.bf16.mxu1 %v19698_v0  ;;  %v11291_v0 = vld [vmem:[%s18133_s4 + $0x8] ss:$12 sps:$4 sm:$0xff]  }
 0x7c4   :  { %6828 = vmatpush1.bf16.msra.mxu0 %v11270_v18  ;;  %v9655_v29 = vpop.f32.mrb[116].mxu1  ;;  %v11292_v18 = vld [vmem:[%s18133_s4 + $0xe0] ss:$12 sps:$4 sm:$0xff]  }
 0x7c5   :  { %v9656_v37 = vpop.f32.mrb[117].mxu1  ;;  %6829 = vmatprep.subr.bf16.mxu0 %v11271_v51  ;;  %v11293_v51 = vld [vmem:[%s18133_s4 + $0x20] ss:$12 sps:$4 sm:$0xff]  }
 0x7c6   :  { %v9657_v20 = vadd.f32 %v9656_v37, %v9655_v29  ;;  %v9658_v34 = vpop.f32.mrb[118].mxu1  ;;  %6643 = vmatpush1.bf16.msra.mxu1 %v16395_v52  ;;  %v11274_v52 = vld [vmem:[%s18133_s4 + $0xf0] ss:$12 sps:$4 sm:$0xff]  }
 0x7c7   :  { %v9659_v43 = vpop.f32.mrb[119].mxu1  ;;  %6644 = vmatprep.subr.bf16.mxu1 %v16401_v47  ;;  %v11275_v47 = vld [vmem:[%s18133_s4 + $0x10c] ss:$12 sps:$4 sm:$0xff]  }
 0x7c8   :  { %6830 = vmatpush1.bf16.msra.mxu0 %v11272_v56  ;;  %v17157_v19 = vadd.f32 %v10180_v36, %v9657_v20  ;;  %v19699_v36 = vld [vmem:[#allocation129_spill] sm:$0xff] }
 0x7c9   :  { %6831 = vmatprep.subr.bf16.mxu0 %v11273_v44  ;;  %v19709_v29 = vld [vmem:[#allocation89_spill] sm:$0xff]  ;;  %v19713_v44 = vld [vmem:[#allocation16_spill] sm:$0xff] }
 0x7ca   :  { %6645 = vmatpush1.bf16.msra.mxu1 %v16411_v42  ;;  %v11276_v42 = vld [vmem:[%s18133_s4 + $0x108] ss:$12 sps:$4 sm:$0xff]   ;;  %v11294_v20 = vld [vmem:[%s18133_s4 + $0xf8] ss:$12 sps:$4 sm:$0xff]   ;;  %v11296_v56 = vld [vmem:[%s18133_s4 + $0x110] ss:$12 sps:$4 sm:$0xff]  }
 0x7cb   :  { %6646 = vmatprep.subr.bf16.mxu1 %v19584_v5  ;;  %v11277_v5 = vld [vmem:[%s18133_s4 + $0x124] ss:$12 sps:$4 sm:$0xff]  }
 0x7cc   :  { %6832 = vmatpush1.bf16.msra.mxu0 %v11274_v52  ;;  %v19710_v37 = vld [vmem:[#allocation93_spill] sm:$0xff] }
 0x7cd   :  { %6833 = vmatprep.subr.bf16.mxu0 %v11275_v47  ;;  %v19712_v34 = vld [vmem:[#allocation97_spill] sm:$0xff] }
 0x7ce   :  { %6647 = vmatpush1.bf16.msra.mxu1 %v19587_v38  ;;  %v11278_v38 = vld [vmem:[%s18133_s4 + $0x120] ss:$12 sps:$4 sm:$0xff]   ;;  %v11295_v43 = vld [vmem:[%s18133_s4 + $0x38] ss:$12 sps:$4 sm:$0xff]   ;;  %v11297_v47 = vld [vmem:[%s18133_s4 + $0x50] ss:$12 sps:$4 sm:$0xff]  }
 0x7cf   :  { %6648 = vmatprep.subr.bf16.mxu1 %v19588_v25  ;;  %v11279_v25 = vld [vmem:[%s18133_s4 + $0x13c] ss:$12 sps:$4 sm:$0xff]   ;;  %v19714_v52 = vld [vmem:[#allocation61_spill] sm:$0xff] }
 0x7d0   :  { %6834 = vmatpush1.bf16.msra.mxu0 %v11276_v42  ;;  %v11298_v42 = vld [vmem:[%s18133_s4 + $0x128] ss:$12 sps:$4 sm:$0xff]  }
 0x7d1   :  { %6835 = vmatprep.subr.bf16.mxu0 %v11277_v5  ;;  %v19715_v5 = vld [vmem:[#allocation66_spill] sm:$0xff] }
 0x7d2   :  { %6649 = vmatpush1.bf16.msra.mxu1 %v16439_v3  ;;  %v11280_v3 = vld [vmem:[%s18133_s4 + $0x138] ss:$12 sps:$4 sm:$0xff]  }
 0x7d3   :  { %6650 = vmatprep.subr.bf16.mxu1 %v16445_v9  ;;  %v11281_v9 = vld [vmem:[%s18133_s4 + $0x154] ss:$12 sps:$4 sm:$0xff]  }
 0x7d4   :  { %6836 = vmatpush1.bf16.msra.mxu0 %v11278_v38  ;;  %v19716_v38 = vld [vmem:[#allocation98_spill] sm:$0xff] }
 0x7d5   :  { %6837 = vmatprep.subr.bf16.mxu0 %v11279_v25  ;;  %v11299_v25 = vld [vmem:[%s18133_s4 + $0x68] ss:$12 sps:$4 sm:$0xff]  }
 0x7d6   :  { %6651 = vmatpush1.bf16.msra.mxu1 %v16453_v49  ;;  %v11282_v49 = vld [vmem:[%s18133_s4 + $0x150] ss:$12 sps:$4 sm:$0xff]  }
 0x7d7   :  { %6652 = vmatprep.subr.bf16.mxu1 %v16459_v54  ;;  %v11283_v54 = vld [vmem:[%s18133_s4 + $0x16c] ss:$12 sps:$4 sm:$0xff]  }
 0x7d8   :  { %6838 = vmatpush1.bf16.msra.mxu0 %v11280_v3  ;;  %v11300_v3 = vld [vmem:[%s18133_s4 + $0x140] ss:$12 sps:$4 sm:$0xff]  }
 0x7d9   :  { %6839 = vmatprep.subr.bf16.mxu0 %v11281_v9  ;;  %v19717_v9 = vld [vmem:[#allocation110_spill] sm:$0xff] }
 0x7da   :  { %6653 = vmatpush1.bf16.msra.mxu1 %v16467_v60  ;;  %v11284_v60 = vld [vmem:[%s18133_s4 + $0x168] ss:$12 sps:$4 sm:$0xff]  }
 0x7db   :  { %6654 = vmatprep.subr.bf16.mxu1 %v16473_v7  ;;  %v11285_v7 = vld [vmem:[%s18133_s4 + $0x184] ss:$12 sps:$4 sm:$0xff]  }
 0x7dc   :  { %6840 = vmatpush1.bf16.msra.mxu0 %v11282_v49  ;;  %v19718_v49 = vld [vmem:[#allocation34_spill] sm:$0xff] }
 0x7dd   :  { %6841 = vmatprep.subr.bf16.mxu0 %v11283_v54  ;;  %v19719_v54 = vld [vmem:[#allocation106_spill] sm:$0xff] }
 0x7de   :  { %6655 = vmatpush1.bf16.msra.mxu1 %v16481_v1  ;;  %v11286_v1 = vld [vmem:[%s18133_s4 + $0x180] ss:$12 sps:$4 sm:$0xff]  }
 0x7df   :  { %6656 = vmatprep.subr.bf16.mxu1 %v19699_v36  ;;  %v1714_v36 = vadd.f32 %v19719_v54, %v19718_v49  ;;  %v19728_v54 = vld [vmem:[#allocation112_spill] sm:$0xff] }
 0x7e0   :  { %6842 = vmatpush1.bf16.msra.mxu0 %v11284_v60  ;;  %v19720_v60 = vld [vmem:[#allocation111_spill] sm:$0xff] }
 0x7e1   :  { %6852 = vmatprep.subr.bf16.mxu0 %v11285_v7  ;;  %v11301_v7 = vld [vmem:[%s18133_s4 + $0x80] ss:$12 sps:$4 sm:$0xff]  }
 0x7e2   :  { %6657 = vmatpush1.bf16.msra.mxu1 %v19700_v28 }
 0x7e3   :  { %6844 = vmatmul.mubr.bf16.vlgmr.msra.gmra.mrb[116].mxu0 %v16792_v57  ;;  %6658 = vmatprep.subr.bf16.mxu1 %v19701_v45  ;;  %v11302_v45 = vld [vmem:[%s18133_s4 + $0x158] ss:$12 sps:$4 sm:$0xff]  }
 0x7e4   :  { %6853 = vmatpush1.bf16.msra.mxu0 %v11286_v1  ;;  %6884 = vmatprep.mubr.bf16.mxu0 %v18790_v21  ;;  %v19721_v1 = vld [vmem:[#allocation48_spill] sm:$0xff] }
 0x7e5   :  { %6854 = vmatprep.subr.bf16.mxu0 %v11287_v22  ;;  %v1721_v22 = vmax.f32 %v1714_v36, 0.0 }
 0x7e6   :  { %6659 = vmatpush1.bf16.msra.mxu1 %v19702_v46  ;;  %v19722_v46 = vld [vmem:[#allocation47_spill] sm:$0xff] }
 0x7e7   :  { %6660 = vmatprep.subr.bf16.mxu1 %v19703_v31  ;;  %v11303_v31 = vld [vmem:[%s18133_s4 + $0x98] ss:$12 sps:$4 sm:$0xff]  }
 0x7e8   :  { %6855 = vmatpush1.bf16.msra.mxu0 %v11288_v35  ;;  %v11304_v35 = vld [vmem:[%s18133_s4 + $0x170] ss:$12 sps:$4 sm:$0xff]  }
 0x7e9   :  { %8991 = vmatprep.subr.msk.bf16.mxu0 %vm2146_vm3, %v11289_v61  ;;  %v19723_v61 = vld [vmem:[#allocation21_spill] sm:$0xff] }
 0x7ea   :  { %6661 = vmatpush1.bf16.msra.mxu1 %v19704_v53  ;;  %v17300_v53 = vpack.c.bf16 %v1721_v22, %v1721_v22  ;;  %v11328_v22 = vld [vmem:[%s18133_s4 + $0x228] ss:$12 sps:$4 sm:$0xff]  }
 0x7eb   :  { %6662 = vmatprep.subr.bf16.mxu1 %v19705_v40  ;;  %v11305_v40 = vld [vmem:[%s18133_s4 + $0xb0] ss:$12 sps:$4 sm:$0xff]  }
 0x7ec   :  { %6857 = vmatpush1.bf16.msra.mxu0 %v19706_v12  ;;  %v19724_v12 = vld [vmem:[#allocation46_spill] sm:$0xff] }
 0x7ed   :  { %9743 = vmatprep.subr.bf16.mxu0 %v11290_v59  ;;  %v11306_v59 = vld [vmem:[%s18133_s4 + $0x188] ss:$12 sps:$4 sm:$0xff]  }
 0x7ee   :  { %6663 = vmatpush1.bf16.msra.mxu1 %v19707_v13  ;;  %v19725_v13 = vld [vmem:[#allocation157_spill] sm:$0xff] }
 0x7ef   :  { %8992 = vmatmul.mubr.msk.bf16.vlgmr.msra.gmra.mrb[116].mxu0 %vm2142_vm4, %v16928_v11  ;;  %6664 = vmatprep.subr.bf16.mxu1 %v19708_v32  ;;  %v19726_v32 = vld [vmem:[#allocation100_spill] sm:$0xff] }
 0x7f0   :  { %9744 = vmatpush3.bf16.msra.mxu0 %v11291_v0  ;;  %6925 = vmatprep.mubr.bf16.mxu0 %v16722_v2  ;;  %v19711_v2 = vld [vmem:[#allocation87_spill] sm:$0xff]  ;;  %v11308_v0 = vld [vmem:[%s18133_s4 + $0x290] ss:$12 sps:$4 sm:$0xff]  }
 0x7f1   :  { %9745 = vmatprep.subr.bf16.mxu0 %v11292_v18  ;;  %v19727_v18 = vld [vmem:[#allocation36_spill] sm:$0xff] }
 0x7f2   :  { %6665 = vmatpush1.bf16.msra.mxu1 %v19709_v29  ;;  %v11309_v29 = vld [vmem:[%s18133_s4 + $0x1cc] ss:$12 sps:$4 sm:$0xff]  }
 0x7f3   :  { %6666 = vmatprep.subr.bf16.mxu1 %v19710_v37  ;;  %v11310_v37 = vld [vmem:[%s18133_s4 + $0x1d0] ss:$12 sps:$4 sm:$0xff]  }
 0x7f4   :  { %9746 = vmatpush3.bf16.msra.mxu0 %v11293_v51  ;;  %v11311_v51 = vld [vmem:[%s18133_s4 + $0x2a8] ss:$12 sps:$4 sm:$0xff]  }
 0x7f5   :  { %9747 = vmatprep.subr.bf16.mxu0 %v11294_v20  ;;  %v11312_v20 = vld [vmem:[%s18133_s4 + $0x1c8] ss:$12 sps:$4 sm:$0xff]  }
 0x7f6   :  { %6667 = vmatpush1.bf16.msra.mxu1 %v19711_v2  ;;  %v11313_v2 = vld [vmem:[%s18133_s4 + $0x1e4] ss:$12 sps:$4 sm:$0xff]  }
 0x7f7   :  { %6668 = vmatprep.subr.bf16.mxu1 %v19712_v34  ;;  %v11315_v34 = vld [vmem:[%s18133_s4 + $0x2c0] ss:$12 sps:$4 sm:$0xff]  }
 0x7f8   :  { %9748 = vmatpush3.bf16.msra.mxu0 %v11295_v43  ;;  %v11316_v43 = vld [vmem:[%s18133_s4 + $0x1e0] ss:$12 sps:$4 sm:$0xff]  }
 0x7f9   :  { %9749 = vmatprep.subr.bf16.mxu0 %v11296_v56  ;;  %v11318_v56 = vld [vmem:[%s18133_s4 + $0x200] ss:$12 sps:$4 sm:$0xff]  }
 0x7fa   :  { %6669 = vmatpush1.bf16.msra.mxu1 %v19713_v44  ;;  %v11319_v44 = vld [vmem:[%s18133_s4 + $0x2d8] ss:$12 sps:$4 sm:$0xff]  }
 0x7fb   :  { %6670 = vmatprep.subr.bf16.mxu1 %v19714_v52  ;;  %v11320_v52 = vld [vmem:[%s18133_s4 + $0x1f8] ss:$12 sps:$4 sm:$0xff]  }
 0x7fc   :  { %9750 = vmatpush3.bf16.msra.mxu0 %v11297_v47  ;;  %v11321_v47 = vld [vmem:[%s18133_s4 + $0x214] ss:$12 sps:$4 sm:$0xff]  }
 0x7fd   :  { %9751 = vmatprep.subr.bf16.mxu0 %v11298_v42  ;;  %v11322_v42 = vld [vmem:[%s18133_s4 + $0x218] ss:$12 sps:$4 sm:$0xff]  }
 0x7fe   :  { %6671 = vmatpush1.bf16.msra.mxu1 %v19715_v5  ;;  %v11323_v5 = vld [vmem:[%s18133_s4 + $0x2f0] ss:$12 sps:$4 sm:$0xff]  }
 0x7ff   :  { %6681 = vmatprep.subr.bf16.mxu1 %v19716_v38  ;;  %v11324_v38 = vld [vmem:[%s18133_s4 + $0x210] ss:$12 sps:$4 sm:$0xff]  }
 0x800   :  { %9752 = vmatpush3.bf16.msra.mxu0 %v11299_v25  ;;  %v11325_v25 = vld [vmem:[%s18133_s4 + $0x22c] ss:$12 sps:$4 sm:$0xff]  }
 0x801   :  { %6673 = vmatmul.mubr.bf16.vlgmr.msra.gmra.mrb[120].mxu1 %v17061_v48  ;;  %9753 = vmatprep.subr.bf16.mxu0 %v11300_v3 }
 0x802   :  { %6682 = vmatpush1.bf16.msra.mxu1 %v19717_v9  ;;  %6713 = vmatprep.mubr.bf16.mxu1 %v18790_v21  ;;  %v11326_v9 = vld [vmem:[%s18133_s4 + $0x230] ss:$12 sps:$4 sm:$0xff]  }
 0x803   :  { %6683 = vmatprep.subr.bf16.mxu1 %v19720_v60 }
 0x804   :  { %9754 = vmatpush3.bf16.msra.mxu0 %v11301_v7  ;;  %v11327_v7 = vld [vmem:[%s18133_s4 + $0x308] ss:$12 sps:$4 sm:$0xff]  }
 0x805   :  { %9755 = vmatprep.subr.bf16.mxu0 %v11302_v45 }
 0x806   :  { %6684 = vmatpush1.bf16.msra.mxu1 %v19721_v1 }
 0x807   :  { %8988 = vmatprep.subr.msk.bf16.mxu1 %vm2146_vm3, %v19722_v46 }
 0x808   :  { %9756 = vmatpush3.bf16.msra.mxu0 %v11303_v31 }
 0x809   :  { %9757 = vmatprep.subr.bf16.mxu0 %v11304_v35  ;;  %v11329_v35 = vld [vmem:[%s18133_s4 + $0x244] ss:$12 sps:$4 sm:$0xff]  }
 0x80a   :  { %6686 = vmatpush1.bf16.msra.mxu1 %v19723_v61 }
 0x80b   :  { %10081 = vmatprep.subr.bf16.mxu1 %v18770_v16 }
 0x80c   :  { %9758 = vmatpush3.bf16.msra.mxu0 %v11305_v40 }
 0x80d   :  { %8989 = vmatmul.mubr.msk.bf16.vlgmr.msra.gmra.mrb[120].mxu1 %vm2142_vm4, %v17300_v53  ;;  %10091 = vmatprep.subr.bf16.mxu0 %v18770_v16 }
 0x80e   :  { %10082 = vmatpush3.bf16.msra.mxu1 %v19724_v12  ;;  %10087 = vmatprep.mubr.msk.bf16.mxu1 %vm11410_vm2, %v18770_v16  ;;  %v11330_v12 = vld [vmem:[%s18133_s4 + $0x248] ss:$12 sps:$4 sm:$0xff]  }
 0x80f   :  { %6926 = vmatmul.mubr.bf16.vlgmr.msra.gmra.mrb[120].mxu0 %v16792_v57  ;;  %10083 = vmatprep.subr.bf16.mxu1 %v18770_v16  ;;  %v11307_v57 = vld [vmem:[%s18133_s4 + $0x1a0] ss:$12 sps:$4 sm:$0xff]  }
 0x810   :  { %10092 = vmatpush3.bf16.msra.mxu0 %v11306_v59  ;;  %10097 = vmatprep.mubr.msk.bf16.mxu0 %vm11410_vm2, %v18770_v16 }
 0x811   :  { %10093 = vmatprep.subr.bf16.mxu0 %v18770_v16 }
 0x812   :  { %10084 = vmatpush3.bf16.msra.mxu1 %v19725_v13  ;;  %v11331_v13 = vld [vmem:[%s18133_s4 + $0x320] ss:$12 sps:$4 sm:$0xff]  }
 0x813   :  { %10085 = vmatprep.subr.bf16.mxu1 %v18770_v16 }
 0x814   :  { %10094 = vmatpush3.bf16.msra.mxu0 %v11307_v57  ;;  %v19729_v57 = vld [vmem:[#allocation133_spill] sm:$0xff] }
 0x815   :  { %10095 = vmatprep.subr.bf16.mxu0 %v18770_v16 }
 0x816   :  { %10086 = vmatpush3.bf16.msra.mxu1 %v19726_v32 }
 0x817   :  { %9769 = vmatprep.subr.bf16.mxu1 %v11308_v0  ;;  %v1791_v0 = vadd.f32 %v19729_v57, %v19528_v39  ;;  %v11334_v39 = vld [vmem:[%s18133_s4 + $0x260] ss:$12 sps:$4 sm:$0xff]  }
 0x818   :  { %10096 = vmatpush3.bf16.msra.mxu0 %v19727_v18 }
 0x819   :  { %10088 = vmatmul.mubr.msk.bf16.vlgmr.msra.gmra.mrb[128].mxu1 %vm2142_vm4, %v17300_v53  ;;  %6976 = vmatprep.subr.bf16.mxu0 %v11309_v29  ;;  %v11332_v29 = vld [vmem:[%s18133_s4 + $0x240] ss:$12 sps:$4 sm:$0xff]  }
 0x81a   :  { %9770 = vmatpush3.bf16.msra.mxu1 %v11310_v37  ;;  %7090 = vmatprep.mubr.bf16.mxu1 %v17000_v15 }
 0x81b   :  { %10098 = vmatmul.mubr.msk.bf16.vlgmr.msra.gmra.mrb[124].mxu0 %vm2142_vm4, %v16928_v11  ;;  %9771 = vmatprep.subr.bf16.mxu1 %v11311_v51  ;;  %v11314_v11 = vld [vmem:[%s18133_s4 + $0x1e8] ss:$12 sps:$4 sm:$0xff]  }
 0x81c   :  { %6977 = vmatpush1.bf16.msra.mxu0 %v11312_v20  ;;  %7008 = vmatprep.mubr.bf16.mxu0 %v17000_v15  ;;  %v11317_v15 = vld [vmem:[%s18133_s4 + $0x1fc] ss:$12 sps:$4 sm:$0xff]  }
 0x81d   :  { %6978 = vmatprep.subr.bf16.mxu0 %v11313_v2 }
 0x81e   :  { %9772 = vmatpush3.bf16.msra.mxu1 %v11314_v11  ;;  %v11335_v11 = vld [vmem:[%s18133_s4 + $0x338] ss:$12 sps:$4 sm:$0xff]  }
 0x81f   :  { %9773 = vmatprep.subr.bf16.mxu1 %v11315_v34  ;;  %v1836_v34 = vmax.f32 %v1791_v0, 0.0  ;;  %v11357_v0 = vld [vmem:[%s18133_s4 + $0x4e8] ss:$12 sps:$4 sm:$0xff]  }
 0x820   :  { %6979 = vmatpush1.bf16.msra.mxu0 %v11316_v43  ;;  %v11336_v43 = vld [vmem:[%s18133_s4 + $0x258] ss:$12 sps:$4 sm:$0xff]  }
 0x821   :  { %6980 = vmatprep.subr.bf16.mxu0 %v11317_v15  ;;  %v11337_v15 = vld [vmem:[%s18133_s4 + $0x274] ss:$12 sps:$4 sm:$0xff]  }
 0x822   :  { %9774 = vmatpush3.bf16.msra.mxu1 %v11318_v56 }
 0x823   :  { %9775 = vmatprep.subr.bf16.mxu1 %v11319_v44  ;;  %v11338_v44 = vld [vmem:[%s18133_s4 + $0x278] ss:$12 sps:$4 sm:$0xff]  }
 0x824   :  { %6981 = vmatpush1.bf16.msra.mxu0 %v11320_v52 }
 0x825   :  { %6982 = vmatprep.subr.bf16.mxu0 %v11321_v47 }
 0x826   :  { %9776 = vmatpush3.bf16.msra.mxu1 %v11322_v42  ;;  %v11339_v42 = vld [vmem:[%s18133_s4 + $0x458] ss:$12 sps:$4 sm:$0xff]  }
 0x827   :  { %9777 = vmatprep.subr.bf16.mxu1 %v11323_v5  ;;  %v17443_v5 = vpack.c.bf16 %v1836_v34, %v1836_v34  ;;  %v11365_v34 = vld [vmem:[%s18133_s4 + $0x360] ss:$12 sps:$4 sm:$0xff]  }
 0x828   :  { %6983 = vmatpush1.bf16.msra.mxu0 %v11324_v38 }
 0x829   :  { %6984 = vmatprep.subr.bf16.mxu0 %v11325_v25 }
 0x82a   :  { %v6211_v3 = vpop.f32.mrb[96].mxu0  ;;  %9778 = vmatpush3.bf16.msra.mxu1 %v11326_v9 }
 0x82b   :  { %v10177_v36 = vadd.f32 %v6211_v3, %v19728_v54  ;;  %v6213_v60 = vpop.f32.mrb[97].mxu0  ;;  %9779 = vmatprep.subr.bf16.mxu1 %v11327_v7  ;;  %v11348_v7 = vld [vmem:[%s18133_s4 + $0x2b8] ss:$12 sps:$4 sm:$0xff]  }
 0x82c   :  { %v10178_v45 = vadd.f32 %v6213_v60, %v19668_v8  ;;  %v6215_v1 = vpop.f32.mrb[98].mxu0  ;;  %6985 = vmatpush1.bf16.msra.mxu0 %v11328_v22  ;;  %v11347_v60 = vld [vmem:[%s18133_s4 + $0x4a0] ss:$12 sps:$4 sm:$0xff]   ;;  %v11351_v22 = vld [vmem:[%s18133_s4 + $0x4b8] ss:$12 sps:$4 sm:$0xff]  }
 0x82d   :  { %v6301_v46 = vmax.f32 %v10177_v36, 0.0  ;;  %v6216_v31 = vpop.f32.mrb[99].mxu0  ;;  %6986 = vmatprep.subr.bf16.mxu0 %v11329_v35  ;;  %v11343_v36 = vld [vmem:[%s18133_s4 + $0x488] ss:$12 sps:$4 sm:$0xff]   ;;  %v11350_v1 = vld [vmem:[%s18133_s4 + $0x3e0] ss:$12 sps:$4 sm:$0xff]  }
 0x82e   :  { %v6302_v40 = vmax.f32 %v10178_v45, 0.0  ;;  %9780 = vmatpush3.bf16.msra.mxu1 %v11330_v12  ;;  %v11349_v45 = vld [vmem:[%s18133_s4 + $0x2d4] ss:$12 sps:$4 sm:$0xff]   ;;  %v11353_v31 = vld [vmem:[%s18133_s4 + $0x2ec] ss:$12 sps:$4 sm:$0xff]  }
 0x82f   :  { %v17406_v59 = vadd.f32 %v6301_v46, %v16990_v63  ;;  %9781 = vmatprep.subr.bf16.mxu1 %v11331_v13  ;;  %v11333_v63 = vld [vmem:[%s18133_s4 + $0x25c] ss:$12 sps:$4 sm:$0xff]   ;;  %v11354_v35 = vld [vmem:[%s18133_s4 + $0x3f8] ss:$12 sps:$4 sm:$0xff]  }
 0x830   :  { %v17414_v18 = vadd.f32 %v6302_v40, %v16994_v10  ;;  %6987 = vmatpush1.bf16.msra.mxu0 %v11332_v29  ;;  %v9681_v37 = vpop.f32.mrb[124].mxu1  ;;  %v11352_v46 = vld [vmem:[%s18133_s4 + $0x2d0] ss:$12 sps:$4 sm:$0xff]   ;;  %v11359_v29 = vld [vmem:[%s18133_s4 + $0x500] ss:$12 sps:$4 sm:$0xff]  }
 0x831   :  { %v9682_v51 = vpop.f32.mrb[125].mxu1  ;;  %6988 = vmatprep.subr.bf16.mxu0 %v11333_v63  ;;  %v11355_v40 = vld [vmem:[%s18133_s4 + $0x4d0] ss:$12 sps:$4 sm:$0xff]  }
 0x832   :  { %v17422_v20 = vadd.f32 %v9682_v51, %v9681_v37  ;;  %v9684_v2 = vpop.f32.mrb[126].mxu1  ;;  %9782 = vmatpush3.bf16.msra.mxu1 %v11334_v39  ;;  %v11356_v12 = vld [vmem:[%s18133_s4 + $0x410] ss:$12 sps:$4 sm:$0xff]   ;;  %v11362_v39 = vld [vmem:[%s18133_s4 + $0x34c] ss:$12 sps:$4 sm:$0xff]  }
 0x833   :  { %v9685_v10 = vpop.f32.mrb[127].mxu1  ;;  %9783 = vmatprep.subr.bf16.mxu1 %v11335_v11  ;;  %v19730_v13 = vld [vmem:[#allocation132_spill] sm:$0xff] }
 0x834   :  { %6989 = vmatpush1.bf16.msra.mxu0 %v11336_v43  ;;  %v1789_v57 = vadd.f32 %v19730_v13, %v19685_v41  ;;  %v10185_v51 = vadd.f32 %v17422_v20, %v13896_v14  ;;  %v11363_v20 = vld [vmem:[%s18133_s4 + $0x348] ss:$12 sps:$4 sm:$0xff]   ;;  %v11364_v11 = vld [vmem:[%s18133_s4 + $0x364] ss:$12 sps:$4 sm:$0xff]  }
 0x835   :  { %6990 = vmatprep.subr.bf16.mxu0 %v11337_v15  ;;  %v11367_v43 = vld [vmem:[%s18133_s4 + $0x350] ss:$12 sps:$4 sm:$0xff]   ;;  %v11368_v15 = vld [vmem:[%s18133_s4 + $0x368] ss:$12 sps:$4 sm:$0xff]  }
 0x836   :  { %v6292_v56 = vpop.f32.mrb[104].mxu0  ;;  %9784 = vmatpush3.bf16.msra.mxu1 %v11338_v44  ;;  %v11371_v44 = vld [vmem:[%s18133_s4 + $0x3ac] ss:$12 sps:$4 sm:$0xff]   ;;  %v11393_v13 = vld [vmem:[%s18133_s4 + $0x4b0] ss:$12 sps:$4 sm:$0xff]  }
 0x837   :  { %v10182_v52 = vadd.f32 %v17157_v19, %v6292_v56  ;;  %v10059_v47 = vpop.f32.mrb[105].mxu0  ;;  %9795 = vmatprep.subr.bf16.mxu1 %v11339_v42  ;;  %v11340_v19 = vld [vmem:[%s18133_s4 + $0x398] ss:$12 sps:$4 sm:$0xff]   ;;  %v11370_v56 = vld [vmem:[%s18133_s4 + $0x390] ss:$12 sps:$4 sm:$0xff]  }
 0x838   :  { %v6295_v38 = vpop.f32.mrb[106].mxu0  ;;  %6991 = vmatpush1.bf16.msra.mxu0 %v17012_v23  ;;  %v11341_v23 = vld [vmem:[%s18133_s4 + $0x470] ss:$12 sps:$4 sm:$0xff]  }
 0x839   :  { %v6303_v25 = vmax.f32 %v10182_v52, 0.0  ;;  %v10060_v3 = vpop.f32.mrb[107].mxu0  ;;  %7091 = vmatmul.mubr.bf16.vlgmr.msra.gmra.mrb[132].mxu1 %v17061_v48  ;;  %6992 = vmatprep.subr.bf16.mxu0 %v17018_v26  ;;  %v11342_v26 = vld [vmem:[%s18133_s4 + $0x3b0] ss:$12 sps:$4 sm:$0xff]  }
 0x83a   :  { %9796 = vmatpush3.bf16.msra.mxu1 %v11340_v19  ;;  %7258 = vmatprep.mubr.bf16.mxu1 %v17443_v5  ;;  %v11374_v3 = vld [vmem:[%s18133_s4 + $0x3c0] ss:$12 sps:$4 sm:$0xff]   ;;  %v11375_v19 = vld [vmem:[%s18133_s4 + $0x3dc] ss:$12 sps:$4 sm:$0xff]  }
 0x83b   :  { %v17453_v9 = vadd.f32 %v6303_v25, %v17023_v50  ;;  %9797 = vmatprep.subr.bf16.mxu1 %v11341_v23  ;;  %v11344_v50 = vld [vmem:[%s18133_s4 + $0x2a0] ss:$12 sps:$4 sm:$0xff]   ;;  %v11373_v25 = vld [vmem:[%s18133_s4 + $0x3c4] ss:$12 sps:$4 sm:$0xff]  }
 0x83c   :  { %6993 = vmatpush1.bf16.msra.mxu0 %v17029_v27  ;;  %v11345_v27 = vld [vmem:[%s18133_s4 + $0x2bc] ss:$12 sps:$4 sm:$0xff]   ;;  %v11376_v23 = vld [vmem:[%s18133_s4 + $0x3d8] ss:$12 sps:$4 sm:$0xff]  }
 0x83d   :  { %6994 = vmatprep.subr.bf16.mxu0 %v17035_v62  ;;  %v11346_v62 = vld [vmem:[%s18133_s4 + $0x3c8] ss:$12 sps:$4 sm:$0xff]  }
 0x83e   :  { %9798 = vmatpush3.bf16.msra.mxu1 %v11342_v26  ;;  %v11377_v26 = vld [vmem:[%s18133_s4 + $0x3f4] ss:$12 sps:$4 sm:$0xff]  }
 0x83f   :  { %9799 = vmatprep.subr.bf16.mxu1 %v11343_v36  ;;  %v11378_v36 = vld [vmem:[%s18133_s4 + $0x3f0] ss:$12 sps:$4 sm:$0xff]  }
 0x840   :  { %6995 = vmatpush1.bf16.msra.mxu0 %v11344_v50  ;;  %v11379_v50 = vld [vmem:[%s18133_s4 + $0x40c] ss:$12 sps:$4 sm:$0xff]  }
 0x841   :  { %6996 = vmatprep.subr.bf16.mxu0 %v11345_v27  ;;  %v11380_v27 = vld [vmem:[%s18133_s4 + $0x408] ss:$12 sps:$4 sm:$0xff]  }
 0x842   :  { %9800 = vmatpush3.bf16.msra.mxu1 %v11346_v62  ;;  %v11381_v62 = vld [vmem:[%s18133_s4 + $0x424] ss:$12 sps:$4 sm:$0xff]  }
 0x843   :  { %9801 = vmatprep.subr.bf16.mxu1 %v11347_v60  ;;  %v11382_v60 = vld [vmem:[%s18133_s4 + $0x420] ss:$12 sps:$4 sm:$0xff]  }
 0x844   :  { %6997 = vmatpush1.bf16.msra.mxu0 %v11348_v7  ;;  %v11383_v7 = vld [vmem:[%s18133_s4 + $0x43c] ss:$12 sps:$4 sm:$0xff]  }
 0x845   :  { %6998 = vmatprep.subr.bf16.mxu0 %v11349_v45  ;;  %v11384_v45 = vld [vmem:[%s18133_s4 + $0x438] ss:$12 sps:$4 sm:$0xff]  }
 0x846   :  { %9802 = vmatpush3.bf16.msra.mxu1 %v11350_v1  ;;  %v11385_v1 = vld [vmem:[%s18133_s4 + $0x454] ss:$12 sps:$4 sm:$0xff]  }
 0x847   :  { %9803 = vmatprep.subr.bf16.mxu1 %v11351_v22  ;;  %v11386_v22 = vld [vmem:[%s18133_s4 + $0x46c] ss:$12 sps:$4 sm:$0xff]  }
 0x848   :  { %6999 = vmatpush1.bf16.msra.mxu0 %v11352_v46  ;;  %v11387_v46 = vld [vmem:[%s18133_s4 + $0x468] ss:$12 sps:$4 sm:$0xff]  }
 0x849   :  { %7000 = vmatprep.subr.bf16.mxu0 %v11353_v31  ;;  %v11388_v31 = vld [vmem:[%s18133_s4 + $0x484] ss:$12 sps:$4 sm:$0xff]  }
 0x84a   :  { %9804 = vmatpush3.bf16.msra.mxu1 %v11354_v35  ;;  %v11389_v35 = vld [vmem:[%s18133_s4 + $0x480] ss:$12 sps:$4 sm:$0xff]  }
 0x84b   :  { %9805 = vmatprep.subr.bf16.mxu1 %v11355_v40  ;;  %v11391_v40 = vld [vmem:[%s18133_s4 + $0x498] ss:$12 sps:$4 sm:$0xff]  }
 0x84c   :  { %7001 = vmatpush1.bf16.msra.mxu0 %v19688_v33  ;;  %v11358_v33 = vld [vmem:[%s18133_s4 + $0x428] ss:$12 sps:$4 sm:$0xff]  }
 0x84d   :  { %7002 = vmatprep.subr.bf16.mxu0 %v19689_v6  ;;  %v1835_v6 = vmax.f32 %v1789_v57, 0.0  ;;  %v11394_v57 = vld [vmem:[%s18133_s4 + $0x4cc] ss:$12 sps:$4 sm:$0xff]  }
 0x84e   :  { %9806 = vmatpush3.bf16.msra.mxu1 %v11356_v12  ;;  %v11392_v12 = vld [vmem:[%s18133_s4 + $0x4b4] ss:$12 sps:$4 sm:$0xff]  }
 0x84f   :  { %9807 = vmatprep.subr.bf16.mxu1 %v11357_v0  ;;  %v11395_v0 = vld [vmem:[%s18133_s4 + $0x4c8] ss:$12 sps:$4 sm:$0xff]  }
 0x850   :  { %7003 = vmatpush1.bf16.msra.mxu0 %v19692_v55  ;;  %v11360_v55 = vld [vmem:[%s18133_s4 + $0x440] ss:$12 sps:$4 sm:$0xff]  }
 0x851   :  { %7004 = vmatprep.subr.bf16.mxu0 %v19693_v17  ;;  %v17525_v17 = vpack.c.bf16 %v1835_v6, %v1835_v6  ;;  %v11397_v6 = vld [vmem:[%s18133_s4 + $0x4e0] ss:$12 sps:$4 sm:$0xff]  }
 0x852   :  { %9808 = vmatpush3.bf16.msra.mxu1 %v11358_v33  ;;  %v11396_v33 = vld [vmem:[%s18133_s4 + $0x4e4] ss:$12 sps:$4 sm:$0xff]  }
 0x853   :  { %9809 = vmatprep.subr.bf16.mxu1 %v11359_v29  ;;  %v11398_v29 = vld [vmem:[%s18133_s4 + $0x4fc] ss:$12 sps:$4 sm:$0xff]  }
 0x854   :  { %7005 = vmatpush1.bf16.msra.mxu0 %v19694_v24  ;;  %v11361_v24 = vld [vmem:[%s18133_s4 + $0x330] ss:$12 sps:$4 sm:$0xff]  }
 0x855   :  { %7006 = vmatprep.subr.bf16.mxu0 %v19695_v30 }
 0x856   :  { %v9707_v41 = vpop.f32.mrb[108].mxu0  ;;  %9810 = vmatpush3.bf16.msra.mxu1 %v11360_v55  ;;  %v10731_v55 = vld [vmem:[%s18136_s7] ss:$20 sps:$4 sm:$0xff]  }
 0x857   :  { %v9708_v37 = vpop.f32.mrb[109].mxu0 }
 0x858   :  { %v9709_v63 = vadd.f32 %v9708_v37, %v9707_v41  ;;  %v9710_v2 = vpop.f32.mrb[110].mxu0  ;;  %7007 = vmatpush1.bf16.msra.mxu0 %v11361_v24  ;;  %v11399_v41 = vld [vmem:[%s18133_s4 + $0x4f8] ss:$12 sps:$4 sm:$0xff]   ;;  %v11411_v37 = vmov 65535   ;;  %v10736_v24 = vld [vmem:[%s18136_s7 + $0x2c] ss:$20 sps:$4 sm:$0xff]  }
 0x859   :  { %v9711_v30 = vpop.f32.mrb[111].mxu0  ;;  %7259 = vmatmul.mubr.bf16.vlgmr.msra.gmra.mrb[136].mxu1 %v17525_v17  ;;  %7017 = vmatprep.subr.bf16.mxu0 %v11362_v39  ;;  %v10733_v2 = vld [vmem:[%s18136_s7 + $0x4] ss:$20 sps:$4 sm:$0xff]  }
 0x85a   :  { %v10186_v10 = vadd.f32 %v10185_v51, %v9709_v63  ;;  %7567 = vmatprep.mubr.bf16.mxu1 %v18790_v21  ;;  %v7518_v51 = vsel %vm7517_vm5, 4294967295, %v11411_v37  ;;  %v11400_v63 = vld [vmem:[%s18133_s4 + $0x514] ss:$12 sps:$4 sm:$0xff]   ;;  %7535 = vmatprep.subr.bf16.mxu1 %v10733_v2  ;;  %v10791_v37 = vld [vmem:[%s18137_s6 + $0xfc] ss:$20 sps:$4 sm:$0xff]  }
 0x85b   :  { %7009 = vmatmul.mubr.bf16.vlgmr.msra.gmra.mrb[116].mxu0 %v17061_v48  ;;  %v11366_v48 = vld [vmem:[%s18133_s4 + $0x37c] ss:$12 sps:$4 sm:$0x3f]   ;;  %v7445_v30 = vld [vmem:[%s18136_s7 + $0x50] sm:$0x77]  ;;  %7536 = vmatpush1.bf16.msra.mxu1 %v10731_v55 }
 0x85c   :  { %7018 = vmatpush1.bf16.msra.mxu0 %v11363_v20  ;;  %7049 = vmatprep.mubr.bf16.mxu0 %v18790_v21  ;;  %v9011_v39 = vcombine.high %v7445_v30, %v7445_v30  ;;  %v11401_v20 = vld [vmem:[%s18133_s4 + $0x510] ss:$12 sps:$4 sm:$0xff]  }
 0x85d   :  { %7019 = vmatprep.subr.bf16.mxu0 %v11364_v11  ;;  %v19731_v11 = vld [vmem:[#allocation131_spill] sm:$0xff]  ;;  %7537 = vmatprep.subr.bf16.mxu1 %v10736_v24  ;;  %v10770_v55 = vld [vmem:[%s18137_s6 + $0x7c] ss:$20 sps:$4 sm:$0xff]   ;;  %v10768_v24 = vld [vmem:[%s18137_s6 + $0x78] ss:$20 sps:$4 sm:$0xff]  }
 0x860   :  { %7020 = vmatpush1.bf16.msra.mxu0 %v11365_v34  ;;  %v1830_v34 = vadd.f32 %v19731_v11, %v19718_v49 }
 0x861   :  { %8994 = vmatprep.subr.msk.bf16.mxu0 %vm2146_vm3, %v11366_v48  ;;  %v11402_v48 = vld [vmem:[%s18133_s4 + $0x52c] ss:$12 sps:$4 sm:$0xff]  }
 0x862   :  { %v1837_v49 = vmax.f32 %v1830_v34, 0.0 }
 0x864   :  { %7022 = vmatpush1.bf16.msra.mxu0 %v13520_v4  ;;  %v11369_v4 = vld [vmem:[%s18133_s4 + $0x394] ss:$12 sps:$4 sm:$0xff]  }
 0x865   :  { %10101 = vmatprep.subr.bf16.mxu0 %v18770_v16 }
 0x867   :  { %8995 = vmatmul.mubr.msk.bf16.vlgmr.msra.gmra.mrb[116].mxu0 %vm2142_vm4, %v17300_v53 }
 0x868   :  { %10102 = vmatpush3.bf16.msra.mxu0 %v11367_v43  ;;  %10107 = vmatprep.mubr.msk.bf16.mxu0 %vm11410_vm2, %v18770_v16  ;;  %v9010_v43 = vcombine.low %v7445_v30, %v7445_v30 }
 0x869   :  { %10103 = vmatprep.subr.bf16.mxu0 %v18770_v16 }
 0x86c   :  { %10104 = vmatpush3.bf16.msra.mxu0 %v11368_v15 }
 0x86d   :  { %10105 = vmatprep.subr.bf16.mxu0 %v18770_v16 }
 0x870   :  { %10106 = vmatpush3.bf16.msra.mxu0 %v19574_v58 }
 0x871   :  { %7144 = vmatprep.subr.bf16.mxu0 %v11369_v4  ;;  %v11403_v4 = vld [vmem:[%s18133_s4 + $0x528] ss:$12 sps:$4 sm:$0xff]  }
 0x873   :  { %10108 = vmatmul.mubr.msk.bf16.vlgmr.msra.gmra.mrb[124].mxu0 %vm2142_vm4, %v17300_v53  ;;  %v11372_v53 = vld [vmem:[%s18133_s4 + $0x3a8] ss:$12 sps:$4 sm:$0xff]  }
 0x874   :  { %7145 = vmatpush1.bf16.msra.mxu0 %v11370_v56  ;;  %7176 = vmatprep.mubr.bf16.mxu0 %v17443_v5  ;;  %v11404_v56 = vld [vmem:[%s18133_s4 + $0x544] ss:$12 sps:$4 sm:$0x3f]  }
 0x875   :  { %7146 = vmatprep.subr.bf16.mxu0 %v11371_v44 }
 0x876   :  { %v9733_v58 = vpop.f32.mrb[112].mxu0 }
 0x877   :  { %v9734_v52 = vpop.f32.mrb[113].mxu0 }
 0x878   :  { %v9735_v47 = vadd.f32 %v9734_v52, %v9733_v58  ;;  %v9736_v42 = vpop.f32.mrb[114].mxu0  ;;  %7147 = vmatpush1.bf16.msra.mxu0 %v11372_v53  ;;  %v10741_v58 = vld [vmem:[%s18136_s7 + $0xc] ss:$20 sps:$4 sm:$0xff]   ;;  %v7446_v52 = vld [vmem:[%s18136_s7 + $0x58] sm:$0x77] }
 0x879   :  { %v9737_v38 = vpop.f32.mrb[115].mxu0  ;;  %7148 = vmatprep.subr.bf16.mxu0 %v11373_v25  ;;  %v7432_v42 = vld [vmem:[%s18138_s1] sm:$0x1]  ;;  %v10739_v53 = vld [vmem:[%s18136_s7 + $0x8] ss:$20 sps:$4 sm:$0xff]  }
 0x87a   :  { %v17585_v5 = vadd.f32 %v10186_v10, %v9735_v47  ;;  %v17684_v10 = vsel %vm584_vm1, %v7518_v51, 0  ;;  %v1840_v47 = vpack.c.bf16 %v1837_v49, %v1837_v49  ;;  %v9013_v38 = vcombine.high %v7446_v52, %v7446_v52  ;;  %v11405_v25 = vld [vmem:[%s18133_s4 + $0x518] ss:$12 sps:$4 sm:$0xff]  }
 0x87b   :  { %v7524_v15 = vand.u32 %v9011_v39, %v17684_v10  ;;  %v7521_v44 = vand.u32 %v9010_v43, %v17684_v10  ;;  %v10789_v51 = vld [vmem:[%s18137_s6 + $0xf8] ss:$20 sps:$4 sm:$0xff]  }
 0x87c   :  { %7149 = vmatpush1.bf16.msra.mxu0 %v11374_v3  ;;  %v10742_v3 = vld [vmem:[%s18136_s7 + $0x30] ss:$20 sps:$4 sm:$0xff]  }
 0x87d   :  { %7150 = vmatprep.subr.bf16.mxu0 %v11375_v19  ;;  %v9012_v19 = vcombine.low %v7446_v52, %v7446_v52 }
 0x880   :  { %7151 = vmatpush1.bf16.msra.mxu0 %v11376_v23  ;;  %v7530_v23 = vand.u32 %v9013_v38, %v17684_v10  ;;  %v10780_v38 = vld [vmem:[%s18137_s6 + $0xc8] ss:$20 sps:$4 sm:$0xff]  }
 0x881   :  { %7152 = vmatprep.subr.bf16.mxu0 %v11377_v26  ;;  %v11406_v26 = vld [vmem:[%s18133_s4 + $0x530] ss:$12 sps:$4 sm:$0xff]  }
 0x884   :  { %7153 = vmatpush1.bf16.msra.mxu0 %v11378_v36  ;;  %v10755_v36 = vld [vmem:[%s18137_s6 + $0xc] ss:$20 sps:$4 sm:$0xff]  }
 0x885   :  { %7154 = vmatprep.subr.bf16.mxu0 %v11379_v50  ;;  %v7527_v50 = vand.u32 %v9012_v19, %v17684_v10 }
 0x888   :  { %7155 = vmatpush1.bf16.msra.mxu0 %v11380_v27  ;;  %v10753_v27 = vld [vmem:[%s18137_s6 + $0x8] ss:$20 sps:$4 sm:$0xff]  }
 0x889   :  { %7156 = vmatprep.subr.bf16.mxu0 %v11381_v62  ;;  %v10761_v62 = vld [vmem:[%s18137_s6 + $0x34] ss:$20 sps:$4 sm:$0xff]  }
 0x88c   :  { %7157 = vmatpush1.bf16.msra.mxu0 %v11382_v60  ;;  %v10747_v60 = vld [vmem:[%s18136_s7 + $0x10] ss:$20 sps:$4 sm:$0xff]  }
 0x88d   :  { %7158 = vmatprep.subr.bf16.mxu0 %v11383_v7  ;;  %v10759_v7 = vld [vmem:[%s18137_s6 + $0x30] ss:$20 sps:$4 sm:$0xff]  }
 0x890   :  { %7159 = vmatpush1.bf16.msra.mxu0 %v11384_v45  ;;  %v10767_v45 = vld [vmem:[%s18137_s6 + $0x5c] ss:$20 sps:$4 sm:$0xff]  }
 0x891   :  { %7160 = vmatprep.subr.bf16.mxu0 %v11385_v1  ;;  %v10749_v1 = vld [vmem:[%s18136_s7 + $0x60] ss:$0 sps:$4 sm:$0x77]  }
 0x894   :  { %7161 = vmatpush1.bf16.msra.mxu0 %v19700_v28  ;;  %v11390_v28 = vld [vmem:[%s18133_s4 + $0x49c] ss:$12 sps:$4 sm:$0xff]  }
 0x895   :  { %7162 = vmatprep.subr.bf16.mxu0 %v11386_v22  ;;  %v10765_v22 = vld [vmem:[%s18137_s6 + $0x58] ss:$20 sps:$4 sm:$0xff]  }
 0x898   :  { %7163 = vmatpush1.bf16.msra.mxu0 %v11387_v46  ;;  %v10773_v46 = vld [vmem:[%s18137_s6 + $0x84] ss:$20 sps:$4 sm:$0xff]  }
 0x899   :  { %7164 = vmatprep.subr.bf16.mxu0 %v11388_v31  ;;  %v7533_v31 = vand.u32 %v10749_v1, %v17684_v10  ;;  %v10776_v10 = vld [vmem:[%s18137_s6 + $0xa4] ss:$20 sps:$4 sm:$0xff]  }
 0x89a   :  { %v10800_v1 = vld [vmem:[%s18137_s6 + $0x144] ss:$20 sps:$4 sm:$0xff]  }
 0x89c   :  { %7165 = vmatpush1.bf16.msra.mxu0 %v11389_v35  ;;  %v10752_v35 = vld [vmem:[%s18137_s6 + $0x4] ss:$20 sps:$4 sm:$0xff]  }
 0x89d   :  { %7166 = vmatprep.subr.bf16.mxu0 %v11390_v28  ;;  %v10771_v28 = vld [vmem:[%s18137_s6 + $0x80] ss:$20 sps:$4 sm:$0xff]  }
 0x8a0   :  { %7167 = vmatpush1.bf16.msra.mxu0 %v11391_v40  ;;  %v10779_v40 = vld [vmem:[%s18137_s6 + $0xac] ss:$20 sps:$4 sm:$0xff]  }
 0x8a1   :  { %7168 = vmatprep.subr.bf16.mxu0 %v11392_v12  ;;  %v10750_v12 = vld [vmem:[%s18137_s6] ss:$20 sps:$4 sm:$0xff]  }
 0x8a4   :  { %7169 = vmatpush1.bf16.msra.mxu0 %v11393_v13  ;;  %v10758_v13 = vld [vmem:[%s18137_s6 + $0x2c] ss:$20 sps:$4 sm:$0xff]  }
 0x8a5   :  { %7170 = vmatprep.subr.bf16.mxu0 %v11394_v57  ;;  %v10777_v57 = vld [vmem:[%s18137_s6 + $0xa8] ss:$20 sps:$4 sm:$0xff]  }
 0x8a8   :  { %7171 = vmatpush1.bf16.msra.mxu0 %v11395_v0  ;;  %v10785_v0 = vld [vmem:[%s18137_s6 + $0xd4] ss:$20 sps:$4 sm:$0xff]  }
 0x8a9   :  { %7172 = vmatprep.subr.bf16.mxu0 %v11396_v33  ;;  %v10756_v33 = vld [vmem:[%s18137_s6 + $0x28] ss:$20 sps:$4 sm:$0xff]  }
 0x8ac   :  { %7173 = vmatpush1.bf16.msra.mxu0 %v11397_v6  ;;  %v10764_v6 = vld [vmem:[%s18137_s6 + $0x54] ss:$20 sps:$4 sm:$0xff]  }
 0x8ad   :  { %7174 = vmatprep.subr.bf16.mxu0 %v11398_v29  ;;  %v10762_v29 = vld [vmem:[%s18137_s6 + $0x50] ss:$20 sps:$4 sm:$0xff]  }
 0x8b0   :  { %7175 = vmatpush1.bf16.msra.mxu0 %v11399_v41  ;;  %v10783_v41 = vld [vmem:[%s18137_s6 + $0xd0] ss:$20 sps:$4 sm:$0xff]  }
 0x8b1   :  { %7185 = vmatprep.subr.bf16.mxu0 %v11400_v63  ;;  %v10797_v63 = vld [vmem:[%s18137_s6 + $0x124] ss:$20 sps:$4 sm:$0xff]  }
 0x8b3   :  { %7177 = vmatmul.mubr.bf16.vlgmr.msra.gmra.mrb[116].mxu0 %v17525_v17  ;;  %v10734_v17 = vld [vmem:[%s18136_s7 + $0x28] ss:$20 sps:$4 sm:$0xff]  }
 0x8b4   :  { %7186 = vmatpush1.bf16.msra.mxu0 %v11401_v20  ;;  %7217 = vmatprep.mubr.bf16.mxu0 %v18790_v21 }
 0x8b5   :  { %7187 = vmatprep.subr.bf16.mxu0 %v11402_v48  ;;  %7538 = vmatpush1.bf16.msra.mxu1 %v10734_v17  ;;  %v10795_v48 = vld [vmem:[%s18137_s6 + $0x120] ss:$20 sps:$4 sm:$0xff]  }
 0x8b6   :  { %7539 = vmatprep.subr.bf16.mxu1 %v7524_v15 }
 0x8b8   :  { %7188 = vmatpush1.bf16.msra.mxu0 %v11403_v4  ;;  %v10803_v4 = vld [vmem:[%s18137_s6 + $0x14c] ss:$20 sps:$4 sm:$0xff]  }
 0x8b9   :  { %8997 = vmatprep.subr.msk.bf16.mxu0 %vm2146_vm3, %v11404_v56  ;;  %7540 = vmatpush1.bf16.msra.mxu1 %v7521_v44 }
 0x8ba   :  { %7576 = vmatprep.subr.bf16.mxu1 %v10741_v58  ;;  %v10774_v58 = vld [vmem:[%s18137_s6 + $0xa0] ss:$20 sps:$4 sm:$0xff]  }
 0x8bc   :  { %7190 = vmatpush1.bf16.msra.mxu0 %v19723_v61  ;;  %v10744_v61 = vld [vmem:[%s18136_s7 + $0x34] ss:$20 sps:$4 sm:$0xff]   ;;  %9015 = vmatmul.mubr.msk.bf16.vlgmr.msra.gmra.mrb[140].mxu1 %vm7513_vm6, %v7432_v42 }
 0x8bd   :  { %10111 = vmatprep.subr.bf16.mxu0 %v18770_v16  ;;  %7577 = vmatpush1.bf16.msra.mxu1 %v10739_v53 }
 0x8be   :  { %7608 = vmatprep.mubr.bf16.mxu1 %v18790_v21  ;;  %7578 = vmatprep.subr.bf16.mxu1 %v10744_v61  ;;  %v10801_v61 = vld [vmem:[%s18137_s6 + $0x148] ss:$20 sps:$4 sm:$0xff]  }
 0x8bf   :  { %8998 = vmatmul.mubr.msk.bf16.vlgmr.msra.gmra.mrb[116].mxu0 %vm2142_vm4, %v1840_v47 }
 0x8c0   :  { %10112 = vmatpush3.bf16.msra.mxu0 %v11405_v25  ;;  %10117 = vmatprep.mubr.msk.bf16.mxu0 %vm11410_vm2, %v18770_v16  ;;  %v10807_v25 = vld [vmem:[%s18137_s6 + $0x170] ss:$20 sps:$4 sm:$0xff]  }
 0x8c1   :  { %10113 = vmatprep.subr.bf16.mxu0 %v18770_v16  ;;  %7579 = vmatpush1.bf16.msra.mxu1 %v10742_v3  ;;  %v10815_v3 = vld [vmem:[%s18137_s6 + $0x19c] ss:$20 sps:$4 sm:$0xff]  }
 0x8c2   :  { %7580 = vmatprep.subr.bf16.mxu1 %v7530_v23  ;;  %v10786_v23 = vld [vmem:[%s18137_s6 + $0xf0] ss:$20 sps:$4 sm:$0xff]  }
 0x8c4   :  { %10114 = vmatpush3.bf16.msra.mxu0 %v11406_v26 }
 0x8c5   :  { %10115 = vmatprep.subr.bf16.mxu0 %v18770_v16  ;;  %7581 = vmatpush1.bf16.msra.mxu1 %v7527_v50  ;;  %v10794_v50 = vld [vmem:[%s18137_s6 + $0x11c] ss:$20 sps:$4 sm:$0xff]  }
 0x8c6   :  { %10121 = vmatprep.subr.bf16.mxu1 %v18770_v16 }
 0x8c8   :  { %10116 = vmatpush3.bf16.msra.mxu0 %v19726_v32  ;;  %v10748_v32 = vld [vmem:[%s18136_s7 + $0x38] ss:$20 sps:$4 sm:$0xff]   ;;  %9016 = vmatmul.mubr.msk.bf16.vlgmr.msra.gmra.mrb[144].mxu1 %vm7513_vm6, %v7432_v42 }
 0x8c9   :  { %8246 = vmatprep.subr.bf16.mxu0 %v10755_v36  ;;  %10122 = vmatpush3.bf16.msra.mxu1 %v10747_v60 }
 0x8ca   :  { %10127 = vmatprep.mubr.msk.bf16.mxu1 %vm11410_vm2, %v18770_v16  ;;  %10123 = vmatprep.subr.bf16.mxu1 %v18770_v16 }
 0x8cb   :  { %10118 = vmatmul.mubr.msk.bf16.vlgmr.msra.gmra.mrb[124].mxu0 %vm2142_vm4, %v1840_v47 }
 0x8cc   :  { %8247 = vmatpush1.bf16.msra.mxu0 %v10753_v27 }
 0x8cd   :  { %8248 = vmatprep.subr.bf16.mxu0 %v10761_v62  ;;  %10124 = vmatpush3.bf16.msra.mxu1 %v10748_v32  ;;  %v10813_v62 = vld [vmem:[%s18137_s6 + $0x198] ss:$20 sps:$4 sm:$0xff]  }
 0x8ce   :  { %10125 = vmatprep.subr.bf16.mxu1 %v18770_v16 }
 0x8d0   :  { %8249 = vmatpush1.bf16.msra.mxu0 %v10759_v7  ;;  %v10821_v7 = vld [vmem:[%s18137_s6 + $0x1c4] ss:$20 sps:$4 sm:$0xff]  }
 0x8d1   :  { %8250 = vmatprep.subr.bf16.mxu0 %v10767_v45  ;;  %10126 = vmatpush3.bf16.msra.mxu1 %v7533_v31  ;;  %v10806_v31 = vld [vmem:[%s18137_s6 + $0x16c] ss:$20 sps:$4 sm:$0xff]  }
 0x8d2   :  { %8164 = vmatprep.subr.bf16.mxu1 %v10752_v35  ;;  %v10825_v35 = vld [vmem:[%s18137_s6 + $0x1e8] ss:$20 sps:$4 sm:$0xff]  }
 0x8d4   :  { %8251 = vmatpush1.bf16.msra.mxu0 %v10765_v22  ;;  %10128 = vmatmul.mubr.msk.bf16.vlgmr.msra.gmra.mrb[148].mxu1 %vm7513_vm6, %v7432_v42  ;;  %v10782_v42 = vld [vmem:[%s18137_s6 + $0xcc] ss:$20 sps:$4 sm:$0xff]  }
 0x8d5   :  { %8252 = vmatprep.subr.bf16.mxu0 %v10773_v46  ;;  %8165 = vmatpush1.bf16.msra.mxu1 %v10750_v12  ;;  %v10819_v22 = vld [vmem:[%s18137_s6 + $0x1c0] ss:$20 sps:$4 sm:$0xff]  }
 0x8d6   :  { %8166 = vmatprep.subr.bf16.mxu1 %v10758_v13  ;;  %v10827_v46 = vld [vmem:[%s18137_s6 + $0x1ec] ss:$20 sps:$4 sm:$0xff]   ;;  %v10812_v12 = vld [vmem:[%s18137_s6 + $0x194] ss:$20 sps:$4 sm:$0xff]   ;;  %v10831_v13 = vld [vmem:[%s18137_s6 + $0x210] ss:$20 sps:$4 sm:$0xff]  }
 0x8d8   :  { %8253 = vmatpush1.bf16.msra.mxu0 %v10771_v28  ;;  %v10833_v28 = vld [vmem:[%s18137_s6 + $0x214] ss:$20 sps:$4 sm:$0xff]  }
 0x8d9   :  { %8254 = vmatprep.subr.bf16.mxu0 %v10779_v40  ;;  %8167 = vmatpush1.bf16.msra.mxu1 %v10756_v33  ;;  %v10804_v40 = vld [vmem:[%s18137_s6 + $0x168] ss:$20 sps:$4 sm:$0xff]   ;;  %v10816_v33 = vld [vmem:[%s18137_s6 + $0x1b8] ss:$20 sps:$4 sm:$0xff]  }
 0x8da   :  { %8168 = vmatprep.subr.bf16.mxu1 %v10764_v6  ;;  %v10824_v6 = vld [vmem:[%s18137_s6 + $0x1e4] ss:$20 sps:$4 sm:$0xff]  }
 0x8dc   :  { %8255 = vmatpush1.bf16.msra.mxu0 %v10777_v57  ;;  %v10810_v57 = vld [vmem:[%s18137_s6 + $0x190] ss:$20 sps:$4 sm:$0xff]  }
 0x8dd   :  { %8256 = vmatprep.subr.bf16.mxu0 %v10785_v0  ;;  %8169 = vmatpush1.bf16.msra.mxu1 %v10762_v29  ;;  %v10818_v0 = vld [vmem:[%s18137_s6 + $0x1bc] ss:$20 sps:$4 sm:$0xff]   ;;  %v10822_v29 = vld [vmem:[%s18137_s6 + $0x1e0] ss:$20 sps:$4 sm:$0xff]  }
 0x8de   :  { %8170 = vmatprep.subr.bf16.mxu1 %v10770_v55  ;;  %v10828_v55 = vld [vmem:[%s18137_s6 + $0x208] ss:$20 sps:$4 sm:$0xff]  }
 0x8e0   :  { %v6715_v2 = vpop.f32.mrb[120].mxu1  ;;  %8257 = vmatpush1.bf16.msra.mxu0 %v10783_v41  ;;  %v10830_v41 = vld [vmem:[%s18137_s6 + $0x20c] ss:$20 sps:$4 sm:$0xff]  }
 0x8e1   :  { %v10183_v30 = vadd.f32 %v6715_v2, %v19728_v54  ;;  %v6717_v39 = vpop.f32.mrb[121].mxu1  ;;  %8258 = vmatprep.subr.bf16.mxu0 %v10791_v37  ;;  %8171 = vmatpush1.bf16.msra.mxu1 %v10768_v24 }
 0x8e2   :  { %v10184_v20 = vadd.f32 %v6717_v39, %v19668_v8  ;;  %v9759_v11 = vpop.f32.mrb[120].mxu0  ;;  %v6719_v34 = vpop.f32.mrb[122].mxu1  ;;  %8172 = vmatprep.subr.bf16.mxu1 %v10776_v10  ;;  %v10836_v10 = vld [vmem:[%s18137_s6 + $0x234] ss:$20 sps:$4 sm:$0xff]  }
 0x8e3   :  { %v6805_v17 = vmax.f32 %v10183_v30, 0.0  ;;  %v9760_v43 = vpop.f32.mrb[121].mxu0  ;;  %v6720_v15 = vpop.f32.mrb[123].mxu1  ;;  %v10842_v34 = vld [vmem:[%s18137_s6 + $0x25c] ss:$20 sps:$4 sm:$0xff]  }
 0x8e4   :  { %v6806_v49 = vmax.f32 %v10184_v20, 0.0  ;;  %v17841_v56 = vadd.f32 %v9760_v43, %v9759_v11  ;;  %v9762_v44 = vpop.f32.mrb[122].mxu0  ;;  %8259 = vmatpush1.bf16.msra.mxu0 %v10789_v51  ;;  %v10834_v20 = vld [vmem:[%s18137_s6 + $0x230] ss:$20 sps:$4 sm:$0xff]   ;;  %v10843_v43 = vld [vmem:[%s18137_s6 + $0x260] ss:$20 sps:$4 sm:$0xff]  }
 0x8e5   :  { %v17847_v52 = vadd.f32 %v6805_v17, %v17406_v59  ;;  %v9763_v47 = vpop.f32.mrb[123].mxu0  ;;  %8260 = vmatprep.subr.bf16.mxu0 %v10797_v63  ;;  %v10809_v59 = vld [vmem:[%s18137_s6 + $0x174] ss:$20 sps:$4 sm:$0xff]   ;;  %8173 = vmatpush1.bf16.msra.mxu1 %v10774_v58  ;;  %v10839_v11 = vld [vmem:[%s18137_s6 + $0x23c] ss:$20 sps:$4 sm:$0xff]  }
 0x8e6   :  { %v17853_v53 = vadd.f32 %v6806_v49, %v17414_v18  ;;  %v10788_v18 = vld [vmem:[%s18137_s6 + $0xf4] ss:$20 sps:$4 sm:$0xff]   ;;  %8174 = vmatprep.subr.bf16.mxu1 %v10782_v42  ;;  %v10191_v63 = vadd.f32 %v17841_v56, %v13896_v14  ;;  %v10837_v14 = vld [vmem:[%s18137_s6 + $0x238] ss:$20 sps:$4 sm:$0xff]  }
 0x8e7   :  { %v10845_v17 = vld [vmem:[%s18137_s6 + $0x264] ss:$20 sps:$4 sm:$0xff]  }
 0x8e8   :  { %8261 = vmatpush1.bf16.msra.mxu0 %v10795_v48  ;;  %v10840_v48 = vld [vmem:[%s18137_s6 + $0x258] ss:$20 sps:$4 sm:$0xff]  }
 0x8e9   :  { %8262 = vmatprep.subr.bf16.mxu0 %v10803_v4  ;;  %8175 = vmatpush1.bf16.msra.mxu1 %v10780_v38  ;;  %v10848_v15 = vld [vmem:[%s18137_s6 + $0x284] ss:$20 sps:$4 sm:$0xff]  }
 0x8ea   :  { %8176 = vmatprep.subr.bf16.mxu1 %v10788_v18 }
 0x8ec   :  { %v6796_v19 = vpop.f32.mrb[128].mxu1  ;;  %8263 = vmatpush1.bf16.msra.mxu0 %v10801_v61 }
 0x8ed   :  { %v10188_v26 = vadd.f32 %v17585_v5, %v6796_v19  ;;  %v10089_v36 = vpop.f32.mrb[129].mxu1  ;;  %8264 = vmatprep.subr.bf16.mxu0 %v10809_v59  ;;  %v10792_v5 = vld [vmem:[%s18137_s6 + $0x118] ss:$20 sps:$4 sm:$0xff]   ;;  %8177 = vmatpush1.bf16.msra.mxu1 %v10786_v23 }
 0x8ee   :  { %v6799_v27 = vpop.f32.mrb[130].mxu1  ;;  %8178 = vmatprep.subr.bf16.mxu1 %v10794_v50 }
 0x8ef   :  { %v6807_v60 = vmax.f32 %v10188_v26, 0.0  ;;  %v10090_v32 = vpop.f32.mrb[131].mxu1 }
 0x8f0   :  { %8265 = vmatpush1.bf16.msra.mxu0 %v10807_v25  ;;  %v10851_v32 = vld [vmem:[%s18137_s6 + $0x2ac] ss:$20 sps:$4 sm:$0xff]  }
 0x8f1   :  { %v17890_v45 = vadd.f32 %v6807_v60, %v17453_v9  ;;  %8266 = vmatprep.subr.bf16.mxu0 %v10815_v3  ;;  %8179 = vmatpush1.bf16.msra.mxu1 %v10792_v5  ;;  %v10798_v9 = vld [vmem:[%s18137_s6 + $0x140] ss:$20 sps:$4 sm:$0xff]  }
 0x8f2   :  { %8180 = vmatprep.subr.bf16.mxu1 %v10800_v1 }
 0x8f4   :  { %8267 = vmatpush1.bf16.msra.mxu0 %v10813_v62 }
 0x8f5   :  { %8268 = vmatprep.subr.bf16.mxu0 %v10821_v7  ;;  %8181 = vmatpush1.bf16.msra.mxu1 %v10798_v9  ;;  %v10852_v7 = vld [vmem:[%s18137_s6 + $0x2d4] ss:$20 sps:$4 sm:$0x3f]  }
 0x8f6   :  { %8182 = vmatprep.subr.bf16.mxu1 %v10806_v31 }
 0x8f8   :  { %8269 = vmatpush1.bf16.msra.mxu0 %v10819_v22  ;;  %v10854_v22 = vld [vmem:[%s18137_s6 + $0x2d0] ss:$20 sps:$4 sm:$0x3f]  }
 0x8f9   :  { %8270 = vmatprep.subr.bf16.mxu0 %v10827_v46  ;;  %8183 = vmatpush1.bf16.msra.mxu1 %v10804_v40 }
 0x8fa   :  { %8184 = vmatprep.subr.bf16.mxu1 %v10812_v12 }
 0x8fc   :  { %8271 = vmatpush1.bf16.msra.mxu0 %v10825_v35 }
 0x8fd   :  { %8272 = vmatprep.subr.bf16.mxu0 %v10833_v28  ;;  %8185 = vmatpush1.bf16.msra.mxu1 %v10810_v57  ;;  %v10857_v57 = vld [vmem:[%s18137_s6 + $0x28c] ss:$20 sps:$4 sm:$0xff]  }
 0x8fe   :  { %8186 = vmatprep.subr.bf16.mxu1 %v10818_v0 }
 0x900   :  { %8273 = vmatpush1.bf16.msra.mxu0 %v10831_v13  ;;  %v8150_v13 = vsel %vm2146_vm3, %v10854_v22, 0 }
 0x901   :  { %8187 = vmatpush1.bf16.msra.mxu1 %v10816_v33  ;;  %8274 = vmatprep.subr.bf16.mxu0 %v10839_v11  ;;  %v10869_v11 = vld [vmem:[%s18137_s6 + $0x60] ss:$20 sps:$4 sm:$0xff]  }
 0x902   :  { %8188 = vmatprep.subr.bf16.mxu1 %v10824_v6  ;;  %v10855_v6 = vld [vmem:[%s18137_s6 + $0x288] ss:$20 sps:$4 sm:$0xff]  }
 0x904   :  { %8275 = vmatpush1.bf16.msra.mxu0 %v10837_v14  ;;  %v10870_v14 = vld [vmem:[%s18137_s6 + $0x1c8] ss:$20 sps:$4 sm:$0xff]  }
 0x905   :  { %8189 = vmatpush1.bf16.msra.mxu1 %v10822_v29  ;;  %8276 = vmatprep.subr.bf16.mxu0 %v10845_v17  ;;  %v10858_v29 = vld [vmem:[%s18137_s6 + $0x2b0] ss:$20 sps:$4 sm:$0xff]  }
 0x906   :  { %8190 = vmatprep.subr.bf16.mxu1 %v10830_v41  ;;  %v10861_v41 = vld [vmem:[%s18137_s6 + $0x2dc] ss:$20 sps:$4 sm:$0x3f]  }
 0x907   :  { %v10873_v17 = vld [vmem:[%s18137_s6 + $0xb0] ss:$20 sps:$4 sm:$0xff]  }
 0x908   :  { %8277 = vmatpush1.bf16.msra.mxu0 %v10843_v43  ;;  %v10874_v43 = vld [vmem:[%s18137_s6 + $0x218] ss:$20 sps:$4 sm:$0xff]  }
 0x909   :  { %8191 = vmatpush1.bf16.msra.mxu1 %v10828_v55  ;;  %v10863_v55 = vld [vmem:[%s18137_s6 + $0x2d8] ss:$20 sps:$4 sm:$0x3f]  }
 0x90a   :  { %8192 = vmatprep.subr.bf16.mxu1 %v10836_v10  ;;  %v10867_v10 = vld [vmem:[%s18137_s6 + $0x38] ss:$20 sps:$4 sm:$0xff]  }
 0x90c   :  { %v9785_v37 = vpop.f32.mrb[132].mxu1 }
 0x90d   :  { %v9786_v51 = vpop.f32.mrb[133].mxu1  ;;  %8193 = vmatpush1.bf16.msra.mxu1 %v10834_v20  ;;  %v10868_v20 = vld [vmem:[%s18137_s6 + $0x1a0] ss:$20 sps:$4 sm:$0xff]  }
 0x90e   :  { %v9787_v2 = vadd.f32 %v9786_v51, %v9785_v37  ;;  %v9788_v24 = vpop.f32.mrb[134].mxu1  ;;  %8194 = vmatprep.subr.bf16.mxu1 %v10842_v34  ;;  %v10871_v34 = vld [vmem:[%s18137_s6 + $0x88] ss:$20 sps:$4 sm:$0xff]  }
 0x90f   :  { %v9789_v30 = vpop.f32.mrb[135].mxu1 }
 0x910   :  { %v10192_v39 = vadd.f32 %v10191_v63, %v9787_v2  ;;  %v8156_v2 = vsel %vm2146_vm3, %v10863_v55, 0  ;;  %v10865_v30 = vld [vmem:[%s18137_s6 + $0x10] ss:$20 sps:$4 sm:$0xff]  }
 0x911   :  { %8195 = vmatpush1.bf16.msra.mxu1 %v10840_v48  ;;  %v10872_v48 = vld [vmem:[%s18137_s6 + $0x1f0] ss:$20 sps:$4 sm:$0xff]  }
 0x912   :  { %8205 = vmatprep.subr.bf16.mxu1 %v10848_v15  ;;  %v10875_v15 = vld [vmem:[%s18137_s6 + $0xd8] ss:$20 sps:$4 sm:$0xff]  }
 0x92c   :  { %v9811_v4 = vpop.f32.mrb[136].mxu1 }
 0x92d   :  { %v9812_v49 = vpop.f32.mrb[137].mxu1 }
 0x92e   :  { %v9813_v56 = vadd.f32 %v9812_v49, %v9811_v4  ;;  %v9814_v44 = vpop.f32.mrb[138].mxu1  ;;  %v10876_v4 = vld [vmem:[%s18137_s6 + $0x240] ss:$20 sps:$4 sm:$0xff]  }
 0x92f   :  { %v9815_v58 = vpop.f32.mrb[139].mxu1  ;;  %v10877_v49 = vld [vmem:[%s18137_s6 + $0x100] ss:$20 sps:$4 sm:$0xff]   ;;  %v10879_v44 = vld [vmem:[%s18137_s6 + $0x128] ss:$20 sps:$4 sm:$0xff]  }
 0x930   :  { %v10193_v47 = vadd.f32 %v10192_v39, %v9813_v56  ;;  %v10866_v39 = vld [vmem:[%s18137_s6 + $0x178] ss:$20 sps:$4 sm:$0xff]   ;;  %v10878_v56 = vld [vmem:[%s18137_s6 + $0x268] ss:$20 sps:$4 sm:$0xff]   ;;  %v10880_v58 = vld [vmem:[%s18137_s6 + $0x290] ss:$20 sps:$4 sm:$0xff]  }
 0x98f   :  { %v17974_v25 = vpop.f32.mrb[140].mxu1 }
 0x990   :  { %v17976_v23 = vpop.f32.mrb[141].mxu1 }
 0x991   :  { %v7573_v36 = vpop.f32.mrb[142].mxu1 }
 0x992   :  { %v7219_v42 = vpop.f32.mrb[116].mxu0  ;;  %v7574_v27 = vpop.f32.mrb[143].mxu1 }
 0x993   :  { %v10189_v61 = vadd.f32 %v7219_v42, %v19728_v54  ;;  %v7221_v59 = vpop.f32.mrb[117].mxu0  ;;  %v10846_v54 = vld [vmem:[%s18137_s6 + $0x280] ss:$20 sps:$4 sm:$0xff]  }
 0x994   :  { %v10190_v38 = vadd.f32 %v7221_v59, %v19668_v8  ;;  %v7223_v18 = vpop.f32.mrb[118].mxu0  ;;  %v10882_v42 = vld [vmem:[%s18137_s6 + $0x2e0] ss:$20 sps:$4 sm:$0x3f]   ;;  %v16_v59 = vstv %s18139_s10 }
 0x995   :  { %v7309_v3 = vmax.f32 %v10189_v61, 0.0  ;;  %v7224_v19 = vpop.f32.mrb[119].mxu0  ;;  %v8162_v61 = vsel %vm2146_vm3, %v10882_v42, 0  ;;  %17 = vst [vmem:[#allocation2] sm:$0x1] %v16_v59 }
 0x996   :  { %v7310_v26 = vmax.f32 %v10190_v38, 0.0 }
 0x997   :  { %v7312_v50 = vadd.f32 %v7309_v3, %v17847_v52 }
 0x998   :  { %v7313_v62 = vadd.f32 %v7310_v26, %v17853_v53  ;;  %v10849_v53 = vld [vmem:[%s18137_s6 + $0x2a8] ss:$20 sps:$4 sm:$0xff]  }
 0x999   :  { %v17983_v8 = vpack.c.bf16 %v7312_v50, %v7312_v50 }
 0x99a   :  { %v7316_v60 = vpack.c.bf16 %v7313_v62, %v7313_v62 }
 0x99b   :  { %v18000_v9 = vpop.f32.mrb[144].mxu1 }
 0x99c   :  { %8196 = vmatprep.mubr.bf16.mxu1 %v7316_v60  ;;  %8278 = vmatprep.mubr.bf16.mxu0 %v7316_v60  ;;  %v18002_v28 = vpop.f32.mrb[145].mxu1 }
 0x99d   :  { %8197 = vmatmul.mubr.bf16.vlgmr.msra.gmra.mrb[152].mxu1 %v17983_v8  ;;  %8279 = vmatmul.mubr.bf16.vlgmr.msra.gmra.mrb[128].mxu0 %v17983_v8  ;;  %v7614_v40 = vpop.f32.mrb[146].mxu1 }
 0x99e   :  { %8206 = vmatpush1.bf16.msra.mxu1 %v10846_v54  ;;  %v7300_v52 = vpop.f32.mrb[124].mxu0  ;;  %8237 = vmatprep.mubr.bf16.mxu1 %v18790_v21  ;;  %v7615_v0 = vpop.f32.mrb[147].mxu1 }
 0x99f   :  { %v10194_v5 = vadd.f32 %v10193_v47, %v7300_v52  ;;  %v10119_v1 = vpop.f32.mrb[125].mxu0  ;;  %8207 = vmatprep.subr.bf16.mxu1 %v10851_v32  ;;  %v10881_v47 = vld [vmem:[%s18137_s6 + $0x2b8] ss:$20 sps:$4 sm:$0xff]  }
 0x9a0   :  { %v7303_v46 = vpop.f32.mrb[126].mxu0  ;;  %v19732_v32 = vld [vmem:[#allocation24_spill] sm:$0xff] }
 0x9a1   :  { %v7311_v31 = vmax.f32 %v10194_v5, 0.0  ;;  %v10120_v35 = vpop.f32.mrb[127].mxu0 }
 0x9a2   :  { %8208 = vmatpush1.bf16.msra.mxu1 %v10849_v53 }
 0x9a3   :  { %v7314_v12 = vadd.f32 %v7311_v31, %v17890_v45  ;;  %9113 = vmatprep.subr.msk.bf16.mxu1 %vm2146_vm3, %v10852_v7  ;;  %v10860_v45 = vld [vmem:[%s18137_s6 + $0x2b4] ss:$20 sps:$4 sm:$0xff]  }
 0x9a4   :  { %v19733_v7 = vld [vmem:[#allocation13_spill] sm:$0xff] }
 0x9a5   :  { %v18010_v33 = vpack.c.bf16 %v7314_v12, %v7314_v12 }
 0x9a6   :  { %8210 = vmatpush1.bf16.msra.mxu1 %v8150_v13 }
 0x9a7   :  { %8287 = vmatprep.subr.bf16.mxu1 %v10857_v57  ;;  %v18030_v37 = vpop.f32.mrb[148].mxu1 }
 0x9a8   :  { %v10129_v51 = vpop.f32.mrb[149].mxu1 }
 0x9a9   :  { %9114 = vmatmul.mubr.msk.bf16.vlgmr.msra.gmra.mrb[156].mxu1 %vm2142_vm4, %v18010_v33  ;;  %v7654_v63 = vpop.f32.mrb[150].mxu1 }
 0x9aa   :  { %8288 = vmatpush1.bf16.msra.mxu1 %v10855_v6  ;;  %8319 = vmatprep.mubr.bf16.mxu1 %v18790_v21  ;;  %v10864_v21 = vld [vmem:[%s18137_s6 + $0x150] ss:$20 sps:$4 sm:$0xff]   ;;  %v10130_v24 = vpop.f32.mrb[151].mxu1 }
 0x9ab   :  { %8289 = vmatprep.subr.bf16.mxu1 %v10860_v45 }
 0x9ae   :  { %8290 = vmatpush1.bf16.msra.mxu1 %v10858_v29 }
 0x9af   :  { %9115 = vmatprep.subr.msk.bf16.mxu1 %vm2146_vm3, %v10861_v41  ;;  %v19735_v41 = vld [vmem:[#allocation32_spill] sm:$0xff] }
 0x9b2   :  { %8292 = vmatpush1.bf16.msra.mxu1 %v8156_v2 }
 0x9b3   :  { %9825 = vmatprep.subr.bf16.mxu1 %v10864_v21 }
 0x9b5   :  { %9116 = vmatmul.mubr.msk.bf16.vlgmr.msra.gmra.mrb[160].mxu1 %vm2142_vm4, %v18010_v33 }
 0x9b6   :  { %9826 = vmatpush3.bf16.msra.mxu1 %v10865_v30  ;;  %8360 = vmatprep.mubr.bf16.mxu1 %v7316_v60 }
 0x9b7   :  { %9827 = vmatprep.subr.bf16.mxu1 %v10866_v39 }
 0x9ba   :  { %9828 = vmatpush3.bf16.msra.mxu1 %v10867_v10 }
 0x9bb   :  { %9829 = vmatprep.subr.bf16.mxu1 %v10868_v20 }
 0x9be   :  { %9830 = vmatpush3.bf16.msra.mxu1 %v10869_v11 }
 0x9bf   :  { %9831 = vmatprep.subr.bf16.mxu1 %v10870_v14 }
 0x9c2   :  { %9832 = vmatpush3.bf16.msra.mxu1 %v10871_v34 }
 0x9c3   :  { %9833 = vmatprep.subr.bf16.mxu1 %v10872_v48 }
 0x9c6   :  { %9834 = vmatpush3.bf16.msra.mxu1 %v10873_v17 }
 0x9c7   :  { %9835 = vmatprep.subr.bf16.mxu1 %v10874_v43 }
 0x9ca   :  { %9836 = vmatpush3.bf16.msra.mxu1 %v10875_v15 }
 0x9cb   :  { %9837 = vmatprep.subr.bf16.mxu1 %v10876_v4 }
 0x9ce   :  { %9838 = vmatpush3.bf16.msra.mxu1 %v10877_v49 }
 0x9cf   :  { %9839 = vmatprep.subr.bf16.mxu1 %v10878_v56 }
 0x9d2   :  { %9840 = vmatpush3.bf16.msra.mxu1 %v10879_v44 }
 0x9d3   :  { %10131 = vmatprep.subr.bf16.mxu1 %v18770_v16 }
 0x9d5   :  { %8361 = vmatmul.mubr.bf16.vlgmr.msra.gmra.mrb[164].mxu1 %v17983_v8  ;;  %v8408_v8 = vld [vmem:[%s18140_s8] sm:$0x1f] }
 0x9d6   :  { %10132 = vmatpush3.bf16.msra.mxu1 %v10880_v58  ;;  %10137 = vmatprep.mubr.msk.bf16.mxu1 %vm11410_vm2, %v18770_v16  ;;  %v8413_v52 = vrot.slane %v8408_v8, %v19732_v32  ;;  %v8417_v5 = vrot.slane %v8408_v8, %v19733_v7  ;;  %v8421_v55 = vrot.slane %v8408_v8, %v19735_v41 }
 0x9d7   :  { %10133 = vmatprep.subr.bf16.mxu1 %v18770_v16 }
 0x9da   :  { %10134 = vmatpush3.bf16.msra.mxu1 %v10881_v47 }
 0x9db   :  { %10135 = vmatprep.subr.bf16.mxu1 %v18770_v16 }
 0x9de   :  { %10136 = vmatpush3.bf16.msra.mxu1 %v8162_v61 }
 0x9e1   :  { %10138 = vmatmul.mubr.msk.bf16.vlgmr.msra.gmra.mrb[168].mxu1 %vm2142_vm4, %v18010_v33  ;;  %v19734_v33 = vld [vmem:[#allocation3_spill] sm:$0xff] }
 0x9e2   :  { %v8424_v6 = vsub.s32 3, %v19734_v33 }
 0x9e4   :  { %v8425_v2 = vrot.slane %v8408_v8, %v8424_v6 }
 0xa70   :  { %v8198_v38 = vpop.f32.mrb[152].mxu1  ;;  %v8280_v18 = vpop.f32.mrb[128].mxu0 }
 0xa71   :  { %v8199_v3 = vadd.f32 %v8198_v38, %v17974_v25  ;;  %v8281_v19 = vadd.f32 %v8280_v18, %v18000_v9  ;;  %v8200_v26 = vpop.f32.mrb[153].mxu1  ;;  %v8282_v36 = vpop.f32.mrb[129].mxu0  ;;  %v8445_v25 = vld [vmem:[%s18141_s9] sm:$0x1f]  ;;  %v8428_v18 = vsub.s32 4, %v19734_v33 }
 0xa72   :  { %v8201_v16 = vadd.f32 %v8200_v26, %v17976_v23  ;;  %v8283_v50 = vadd.f32 %v8282_v36, %v18002_v28  ;;  %v8202_v27 = vpop.f32.mrb[154].mxu1  ;;  %v8284_v62 = vpop.f32.mrb[130].mxu0  ;;  %v8450_v31 = vrot.slane %v8445_v25, %v19732_v32  ;;  %v8454_v40 = vrot.slane %v8445_v25, %v19733_v7 }
 0xa73   :  { %v8203_v60 = vpop.f32.mrb[155].mxu1  ;;  %v8285_v54 = vpop.f32.mrb[131].mxu0  ;;  %v8458_v20 = vrot.slane %v8445_v25, %v19735_v41  ;;  %v8462_v34 = vrot.slane %v8445_v25, %v8424_v6  ;;  %v8466_v62 = vrot.slane %v8445_v25, %v8428_v18 }
 0xa7c   :  { %v8239_v53 = vpop.f32.mrb[156].mxu1 }
 0xa7d   :  { %v8240_v23 = vadd.f32 %v8239_v53, %v8199_v3  ;;  %v8241_v1 = vpop.f32.mrb[157].mxu1  ;;  %v8429_v3 = vrot.slane %v8408_v8, %v8428_v18  ;;  %v9118_v53 = vld [vmem:[#allocation2] ss:$0 sm:$0xff] }
 0xa7e   :  { %v8242_v22 = vadd.f32 %v8241_v1, %v8201_v16  ;;  %v8243_v46 = vpop.f32.mrb[158].mxu1 }
 0xa7f   :  { %v8435_v9 = vadd.f32 %v8413_v52, %v8240_v23  ;;  %v8244_v35 = vpop.f32.mrb[159].mxu1 }
 0xa80   :  { %v8436_v28 = vadd.f32 %v8417_v5, %v8242_v22 }
 0xa81   :  { %v8440_v12 = vmax.f32 %v8435_v9, 0.0 }
 0xa82   :  { %v8441_v13 = vmax.f32 %v8436_v28, 0.0 }
 0xa83   :  { %v8472_v57 = vmul.f32 %v8450_v31, %v8440_v12 }
 0xa84   :  { %v8473_v0 = vmul.f32 %v8454_v40, %v8441_v13 }
 0xa85   :  { %v8477_v45 = vsel %vm7517_vm5, %v8472_v57, 0.0 }
 0xa86   :  { %v8478_v29 = vsel %vm7517_vm5, %v8473_v0, 0.0 }
 0xa87   :  { %v8479_v51 = vadd.f32 %v8478_v29, %v8477_v45 }
 0xa88   :  { %v8321_v63 = vpop.f32.mrb[160].mxu1 }
 0xa89   :  { %v8322_v21 = vadd.f32 %v8321_v63, %v8281_v19  ;;  %v8323_v24 = vpop.f32.mrb[161].mxu1 }
 0xa8a   :  { %v8324_v30 = vadd.f32 %v8323_v24, %v8283_v50  ;;  %v8325_v39 = vpop.f32.mrb[162].mxu1 }
 0xa8b   :  { %v8437_v10 = vadd.f32 %v8421_v55, %v8322_v21  ;;  %v8326_v11 = vpop.f32.mrb[163].mxu1 }
 0xa8c   :  { %v8438_v14 = vadd.f32 %v8425_v2, %v8324_v30 }
 0xa8d   :  { %v8442_v48 = vmax.f32 %v8437_v10, 0.0 }
 0xa8e   :  { %v8443_v17 = vmax.f32 %v8438_v14, 0.0 }
 0xa8f   :  { %v8474_v43 = vmul.f32 %v8458_v20, %v8442_v48 }
 0xa90   :  { %v8475_v15 = vmul.f32 %v8462_v34, %v8443_v17 }
 0xa91   :  { %v8480_v4 = vsel %vm7517_vm5, %v8474_v43, 0.0 }
 0xa92   :  { %v8481_v49 = vadd.f32 %v8480_v4, %v8479_v51  ;;  %v8482_v56 = vsel %vm7517_vm5, %v8475_v15, 0.0 }
 0xa94   :  { %v8483_v44 = vadd.f32 %v8482_v56, %v8481_v49 }
 0xaa8   :  { %v9841_v58 = vpop.f32.mrb[164].mxu1 }
 0xaa9   :  { %v9842_v47 = vpop.f32.mrb[165].mxu1 }
 0xaaa   :  { %v9843_v42 = vadd.f32 %v9842_v47, %v9841_v58  ;;  %v9844_v61 = vpop.f32.mrb[166].mxu1 }
 0xaab   :  { %v9845_v59 = vpop.f32.mrb[167].mxu1 }
 0xaac   :  { %v8363_v38 = vadd.f32 %v9843_v42, %v18030_v37 }
 0xab4   :  { %v8402_v19 = vpop.f32.mrb[168].mxu1 }
 0xab5   :  { %v8403_v26 = vadd.f32 %v8402_v19, %v8363_v38  ;;  %v10139_v36 = vpop.f32.mrb[169].mxu1 }
 0xab6   :  { %v8405_v16 = vpop.f32.mrb[170].mxu1 }
 0xab7   :  { %v8439_v50 = vadd.f32 %v8429_v3, %v8403_v26  ;;  %v10140_v27 = vpop.f32.mrb[171].mxu1 }
 0xab9   :  { %v8444_v60 = vmax.f32 %v8439_v50, 0.0 }
 0xabb   :  { %v8476_v54 = vmul.f32 %v8466_v62, %v8444_v60 }
 0xabd   :  { %v8485_v32 = vsel %vm8484_vm7, %v8476_v54, 0.0 }
 0xabe   :  { %v8486_v52 = vadd.f32 %v8485_v32, %v8483_v44 }
 0xac0   :  { %8487 = vadd.xlane.f32.xlu0 %v8486_v52 }
 0xb4d   :  { %v8488_v7 = vpop.xlane.xlu0 %8487 }
 0xb4e   :  { %v8496_v37 = vadd.f32 %v9118_v53, %v8488_v7 }
 0xb50   :  { %8498 = vst.msk [vmem:[%s18142_s11] sm:$0x3] %vm8497_vm8, %v8496_v37 }

</bundles_post_ra>
